<compile_context>
chip_gen: v7x
topology: tpu7x:2x2x1
jax: 0.10.0
libtpu: 0.0.40
codegen_flags: <defaults>
</compile_context>

<pallas_src>
import functools

import jax
import jax.numpy as jnp
from jax import lax
from jax.experimental import pallas as pl
from jax.experimental.pallas import tpu as pltpu


def _round_up(v, m):
    return -(-v // m) * m


def _vmem_bytes(shape, itemsize):
    """Lane/sublane-padding-aware VMEM footprint estimate."""
    if len(shape) == 0:
        return 512
    if len(shape) == 1:
        return _round_up(shape[0] * itemsize, 512)
    lead = 1
    for d in shape[:-2]:
        lead *= d
    sub = _round_up(shape[-2], 8)
    lane = _round_up(shape[-1], 128)
    return lead * sub * lane * itemsize


# ----------------------------------------------------------------------------
# Kernel: one batch tile; stacked (LSTM + fused LayerNorm) layers + Linear head.
# ----------------------------------------------------------------------------
def teledal_kernel(num_layers, hidden, eps, *refs):
    # refs layout:
    #   [0]                    x_ref   (T, TB, E)           time-major tile
    #   [1+5l .. 5+5l]         per layer: wih (D,4H), whh (H,4H), b (1,4H),
    #                          gamma (1,H), beta (1,H)
    #   [1+5L], [2+5L]         wtop (H, KE_pad), btop (1, KE_pad)
    #   [3+5L]                 out_ref (T, TB, KE_pad)
    #   [4+5L], [5+5L]         scratch: pre_ref (T,TB,4H) f32, act_ref (T,TB,H) f32
    H = hidden
    x_ref = refs[0]
    layer_refs = refs[1:1 + 5 * num_layers]
    wtop_ref = refs[1 + 5 * num_layers]
    btop_ref = refs[2 + 5 * num_layers]
    out_ref = refs[3 + 5 * num_layers]
    pre_ref = refs[4 + 5 * num_layers]
    act_ref = refs[5 + 5 * num_layers]

    T, TB, _ = x_ref.shape
    inv_h = 1.0 / H

    for l in range(num_layers):
        wih_ref, whh_ref, b_ref, gamma_ref, beta_ref = layer_refs[5 * l:5 * l + 5]
        wih = wih_ref[...]                       # (D, 4H), possibly bf16
        whh = whh_ref[...]                       # (H, 4H), possibly bf16
        D = wih.shape[0]

        if l == 0:
            inp_flat = x_ref[...].reshape(T * TB, D)
        else:
            inp_flat = act_ref[...].reshape(T * TB, D)

        # Input projection for all timesteps of the tile in one tall matmul,
        # produced directly in time-major row order.
        pre = jnp.dot(inp_flat.astype(wih.dtype), wih,
                      preferred_element_type=jnp.float32) + b_ref[...]
        pre_ref[...] = pre.reshape(T, TB, 4 * H)

        # Hoisted broadcasts (JAX does not CSE broadcast_in_dim inside loops).
        gamma = jnp.broadcast_to(gamma_ref[...], (TB, H))
        beta = jnp.broadcast_to(beta_ref[...], (TB, H))

        def step(t, h, c):
            # Contiguous (TB, 4H) slab read: time-major scratch, no strided vld.
            gates = pre_ref[t] + jnp.dot(h.astype(whh.dtype), whh,
                                         preferred_element_type=jnp.float32)
            # Single full-width sigmoid over the (TB, 4H) gate block; g-gate
            # columns were pre-scaled by 2, so tanh(x) = 2*sigmoid(2x) - 1.
            s = jax.nn.sigmoid(gates)
            i_g = s[:, 0:H]
            f_g = s[:, H:2 * H]
            g_g = 2.0 * s[:, 2 * H:3 * H] - 1.0
            o_g = s[:, 3 * H:4 * H]
            c = f_g * c + i_g * g_g
            h = o_g * jnp.tanh(c)
            # Fused LayerNorm (one-pass stats, f32); recurrence keeps the
            # un-normalized h/c, only act_ref gets the normalized value.
            s1 = jnp.sum(h, axis=-1, keepdims=True)
            s2 = jnp.sum(h * h, axis=-1, keepdims=True)
            mean = s1 * inv_h
            var = s2 * inv_h - mean * mean
            normed = (h - mean) * lax.rsqrt(var + eps)
            act_ref[t] = normed * gamma + beta
            return h, c

        h = jnp.zeros((TB, H), jnp.float32)
        c = jnp.zeros((TB, H), jnp.float32)
        if T <= 32:
            # Small static T: full Python unroll (static indices, LLO-visible).
            for t in range(T):
                h, c = step(t, h, c)
        else:
            # Long sequences: lightly unrolled fori_loop over time-major scratch.
            def body(t, carry):
                return step(t, carry[0], carry[1])
            _ = lax.fori_loop(0, T, body, (h, c), unroll=2)

    # Top-k linear head: lane-dense output (KE padded to a multiple of 128).
    wtop = wtop_ref[...]                         # (H, KE_pad)
    outflat = jnp.dot(act_ref[...].reshape(T * TB, H).astype(wtop.dtype), wtop,
                      preferred_element_type=jnp.float32) + btop_ref[...]
    # TODO(synk): emit bf16 here (and in out_shape) if downstream accepts it.
    out_ref[...] = outflat.reshape(T, TB, -1).astype(out_ref.dtype)


# ----------------------------------------------------------------------------
# Wrapper: tiling, padding, gate pre-scaling, dtype casts, pallas_call.
# ----------------------------------------------------------------------------
def teledal_forward(x, params, *, k, num_layers, hidden, eps=1e-5,
                    batch_tile=128, matmul_dtype=jnp.bfloat16,
                    single_buffer_weights=True):
    B, T, E = x.shape
    H = hidden
    KE = k * E
    KE_pad = max(128, _round_up(KE, 128))        # lane-dense head width

    # Batch tiling: tall tiles (dense MXU rows) but grid length >= 2 so v7x's
    # second TensorCore gets a share and the x/out DMA pipeline can overlap.
    tb_cap = max(8, _round_up(int(batch_tile), 8))
    grid_len = max(2, -(-B // tb_cap))
    TB = min(tb_cap, _round_up(max(1, -(-B // grid_len)), 8))
    B_pad = grid_len * TB

    # Time-major (T, B, E) so per-step reads inside the kernel are contiguous.
    xp = jnp.transpose(x.astype(matmul_dtype), (1, 0, 2))
    if B_pad != B:
        xp = jnp.pad(xp, ((0, 0), (0, B_pad - B), (0, 0)))

    # Pre-scale the g-gate columns by 2 so the kernel can use a single
    # full-width sigmoid (tanh(x) = 2*sigmoid(2x) - 1).
    gscale = jnp.concatenate([jnp.ones((2 * H,), jnp.float32),
                              jnp.full((H,), 2.0, jnp.float32),
                              jnp.ones((H,), jnp.float32)])

    weights = []
    for l in range(num_layers):
        p = params["layers"][l]
        weights += [
            (p["wih_T"] * gscale).astype(matmul_dtype),   # (D, 4H)
            (p["whh_T"] * gscale).astype(matmul_dtype),   # (H, 4H)
            (p["b"] * gscale).astype(jnp.float32),        # (1, 4H)
            p["gamma"].astype(jnp.float32),               # (1, H)
            p["beta"].astype(jnp.float32),                # (1, H)
        ]
    wtop = params["wtop_T"].astype(matmul_dtype)
    btop = params["btop"].astype(jnp.float32)
    if KE_pad != KE:
        wtop = jnp.pad(wtop, ((0, 0), (0, KE_pad - KE)))
        btop = jnp.pad(btop, ((0, 0), (0, KE_pad - KE)))
    weights += [wtop, btop]

    # --- VMEM budget (padding-aware, accounts for weight buffering factor) ---
    isz = jnp.dtype(matmul_dtype).itemsize
    w_buf = 1 if single_buffer_weights else 2
    w_bytes = sum(_vmem_bytes(w.shape, jnp.dtype(w.dtype).itemsize)
                  for w in weights)
    tile_bytes = (2 * _vmem_bytes((T, TB, E), isz)          # x, double-buffered
                  + 2 * _vmem_bytes((T, TB, KE_pad), 4))    # out, double-buffered
    scratch_bytes = (_vmem_bytes((T, TB, 4 * H), 4)
                     + _vmem_bytes((T, TB, H), 4))
    need = w_buf * w_bytes + tile_bytes + scratch_bytes + (8 << 20)  # headroom
    try:
        vmem_cap = int(pltpu.get_tpu_info().vmem_capacity_bytes)
    except Exception:
        vmem_cap = 64 << 20
    vmem_limit = int(min(max(need, 32 << 20), int(vmem_cap * 0.85)))

    # --- cost hint -----------------------------------------------------------
    flops = 0
    d = E
    for _ in range(num_layers):
        flops += 2 * B_pad * T * (d * 4 * H + H * 4 * H)
        d = H
    flops += 2 * B_pad * T * H * KE_pad
    cost = pl.CostEstimate(
        flops=int(flops),
        transcendentals=int(num_layers * B_pad * T * (5 * H + 1)),
        bytes_accessed=int(xp.size * isz + w_bytes + B_pad * T * KE_pad * 4),
    )

    kern = functools.partial(teledal_kernel, num_layers, H, eps)

    def run(weight_pipeline_mode):
        def const_spec(a):
            nd = a.ndim
            if weight_pipeline_mode is None:
                return pl.BlockSpec(a.shape, lambda b, nd=nd: (0,) * nd)
            return pl.BlockSpec(a.shape, lambda b, nd=nd: (0,) * nd,
                                pipeline_mode=weight_pipeline_mode)

        in_specs = [pl.BlockSpec((T, TB, E), lambda b: (0, b, 0))]
        in_specs += [const_spec(w) for w in weights]

        grid_spec = pltpu.PrefetchScalarGridSpec(
            num_scalar_prefetch=0,
            grid=(grid_len,),
            in_specs=in_specs,
            out_specs=pl.BlockSpec((T, TB, KE_pad), lambda b: (0, b, 0)),
            scratch_shapes=[
                pltpu.VMEM((T, TB, 4 * H), jnp.float32),   # pre-gate buffer
                pltpu.VMEM((T, TB, H), jnp.float32),       # layer activations
            ],
        )
        return pl.pallas_call(
            kern,
            out_shape=jax.ShapeDtypeStruct((T, B_pad, KE_pad), jnp.float32),
            grid_spec=grid_spec,
            compiler_params=pltpu.CompilerParams(
                dimension_semantics=("parallel",),
                vmem_limit_bytes=vmem_limit,
            ),
            cost_estimate=cost,
        )(xp, *weights)

    if single_buffer_weights:
        try:
            # Constant-index weight specs: single buffer (they never re-fetch).
            out = jax.block_until_ready(run(pl.Buffered(1)))
        except Exception:
            # Fallback for JAX builds that reject buffer_count=1 on pallas_call.
            out = run(None)
    else:
        out = run(None)

    # Strip lane/batch padding, back to batch-major, reshape like the module.
    out = jnp.transpose(out[:, :B, :KE], (1, 0, 2))
    return out.reshape(B, T, k, E)


# ----------------------------------------------------------------------------
# Deterministic parameter init (mimics PyTorch uniform(-1/sqrt(H), 1/sqrt(H))).
# ----------------------------------------------------------------------------
def init_params(key, *, embedding_dim, hidden, num_layers, k):
    H = hidden
    bound = 1.0 / jnp.sqrt(jnp.float32(H))
    layers = []
    for l in range(num_layers):
        key, k1, k2, k3, k4 = jax.random.split(key, 5)
        in_dim = embedding_dim if l == 0 else H
        w_ih = jax.random.uniform(k1, (4 * H, in_dim), jnp.float32, -bound, bound)
        w_hh = jax.random.uniform(k2, (4 * H, H), jnp.float32, -bound, bound)
        b_ih = jax.random.uniform(k3, (4 * H,), jnp.float32, -bound, bound)
        b_hh = jax.random.uniform(k4, (4 * H,), jnp.float32, -bound, bound)
        layers.append(dict(
            wih_T=w_ih.T,                                   # (in_dim, 4H)
            whh_T=w_hh.T,                                   # (H, 4H)
            b=(b_ih + b_hh).reshape(1, 4 * H),              # combined bias
            gamma=jnp.ones((1, H), jnp.float32),            # LayerNorm weight
            beta=jnp.zeros((1, H), jnp.float32),            # LayerNorm bias
        ))
    key, k5, k6 = jax.random.split(key, 3)
    out_dim = embedding_dim * k
    w_top = jax.random.uniform(k5, (out_dim, H), jnp.float32, -bound, bound)
    b_top = jax.random.uniform(k6, (out_dim,), jnp.float32, -bound, bound)
    return dict(layers=layers, wtop_T=w_top.T, btop=b_top.reshape(1, out_dim))


# ----------------------------------------------------------------------------
# Pure-JAX reference (same semantics as the PyTorch module) for verification.
# ----------------------------------------------------------------------------
def ref_forward(x, params, *, k, num_layers, hidden):
    B, T, E = x.shape
    H = hidden
    out = x
    for l in range(num_layers):
        p = params["layers"][l]
        h = jnp.zeros((B, H), jnp.float32)
        c = jnp.zeros((B, H), jnp.float32)
        hs = []
        for t in range(T):
            gates = out[:, t, :] @ p["wih_T"] + p["b"][0] + h @ p["whh_T"]
            i_g = jax.nn.sigmoid(gates[:, 0:H])
            f_g = jax.nn.sigmoid(gates[:, H:2 * H])
            g_g = jnp.tanh(gates[:, 2 * H:3 * H])
            o_g = jax.nn.sigmoid(gates[:, 3 * H:4 * H])
            c = f_g * c + i_g * g_g
            h = o_g * jnp.tanh(c)
            hs.append(h)
        seq = jnp.stack(hs, axis=1)  # (B, T, H)
        mean = seq.mean(-1, keepdims=True)
        var = ((seq - mean) ** 2).mean(-1, keepdims=True)
        out = (seq - mean) / jnp.sqrt(var + 1e-5) * p["gamma"][0] + p["beta"][0]
    o = out @ params["wtop_T"] + params["btop"][0]
    return o.reshape(B, T, k, E)


if __name__ == "__main__":
    # Small shapes consistent with TeleDAL's forward: x is (batch, seq, embedding_dim).
    B, T, E = 2, 8, 32
    K, H, L = 5, 32, 2

    key = jax.random.PRNGKey(0)
    key, pkey, xkey = jax.random.split(key, 3)
    params = init_params(pkey, embedding_dim=E, hidden=H, num_layers=L, k=K)
    x = jax.random.normal(xkey, (B, T, E), jnp.float32)
    expected = ref_forward(x, params, k=K, num_layers=L, hidden=H)

    # Default path: bf16 MXU operands (f32 state/LN/accumulation) — loose check.
    out = teledal_forward(x, params, k=K, num_layers=L, hidden=H)
    out = jax.block_until_ready(out)
    assert out.shape == (B, T, K, E), out.shape
    assert jnp.allclose(out, expected, atol=7e-2, rtol=7e-2), (
        float(jnp.max(jnp.abs(out - expected))))

    # Float32 MXU path: strict check against the pure-JAX reference.
    out_f32 = teledal_forward(x, params, k=K, num_layers=L, hidden=H,
                              matmul_dtype=jnp.float32)
    out_f32 = jax.block_until_ready(out_f32)
    assert jnp.allclose(out_f32, expected, atol=2e-3, rtol=2e-3), (
        float(jnp.max(jnp.abs(out_f32 - expected))))

    print("KERNEL_OK")
</pallas_src>

<mosaic_0001>
module attributes {stable_mosaic.version = 11 : i64} {
  func.func @teledal_kernel(%arg0: i32, %arg1: memref<8x8x32xbf16, #tpu.memory_space<vmem>>, %arg2: memref<32x128xbf16, #tpu.memory_space<vmem>>, %arg3: memref<32x128xbf16, #tpu.memory_space<vmem>>, %arg4: memref<1x128xf32, #tpu.memory_space<vmem>>, %arg5: memref<1x32xf32, #tpu.memory_space<vmem>>, %arg6: memref<1x32xf32, #tpu.memory_space<vmem>>, %arg7: memref<32x128xbf16, #tpu.memory_space<vmem>>, %arg8: memref<32x128xbf16, #tpu.memory_space<vmem>>, %arg9: memref<1x128xf32, #tpu.memory_space<vmem>>, %arg10: memref<1x32xf32, #tpu.memory_space<vmem>>, %arg11: memref<1x32xf32, #tpu.memory_space<vmem>>, %arg12: memref<32x256xbf16, #tpu.memory_space<vmem>>, %arg13: memref<1x256xf32, #tpu.memory_space<vmem>>, %arg14: memref<8x8x256xf32, #tpu.memory_space<vmem>>, %arg15: memref<8x8x128xf32, #tpu.memory_space<vmem>>, %arg16: memref<8x8x32xf32, #tpu.memory_space<vmem>>) attributes {dimension_semantics = [#tpu.dimension_semantics<parallel>], iteration_bounds = array<i64: 2>, scalar_prefetch = 0 : i64, scratch_operands = 2 : i64, tpu.core_type = #tpu.core_type<tc>, window_params = [{transform_indices = @transform_0, window_bounds = array<i64: 8, 8, 32>}, {pipeline_mode = #tpu.pipeline_mode<synchronous>, transform_indices = @transform_1, window_bounds = array<i64: 32, 128>}, {pipeline_mode = #tpu.pipeline_mode<synchronous>, transform_indices = @transform_2, window_bounds = array<i64: 32, 128>}, {pipeline_mode = #tpu.pipeline_mode<synchronous>, transform_indices = @transform_3, window_bounds = array<i64: 1, 128>}, {pipeline_mode = #tpu.pipeline_mode<synchronous>, transform_indices = @transform_4, window_bounds = array<i64: 1, 32>}, {pipeline_mode = #tpu.pipeline_mode<synchronous>, transform_indices = @transform_5, window_bounds = array<i64: 1, 32>}, {pipeline_mode = #tpu.pipeline_mode<synchronous>, transform_indices = @transform_6, window_bounds = array<i64: 32, 128>}, {pipeline_mode = #tpu.pipeline_mode<synchronous>, transform_indices = @transform_7, window_bounds = array<i64: 32, 128>}, {pipeline_mode = #tpu.pipeline_mode<synchronous>, transform_indices = @transform_8, window_bounds = array<i64: 1, 128>}, {pipeline_mode = #tpu.pipeline_mode<synchronous>, transform_indices = @transform_9, window_bounds = array<i64: 1, 32>}, {pipeline_mode = #tpu.pipeline_mode<synchronous>, transform_indices = @transform_10, window_bounds = array<i64: 1, 32>}, {pipeline_mode = #tpu.pipeline_mode<synchronous>, transform_indices = @transform_11, window_bounds = array<i64: 32, 256>}, {pipeline_mode = #tpu.pipeline_mode<synchronous>, transform_indices = @transform_12, window_bounds = array<i64: 1, 256>}, {transform_indices = @transform_13, window_bounds = array<i64: 8, 8, 256>}]} {
    %c0 = arith.constant 0 : index
    %c0_0 = arith.constant 0 : index
    %0 = vector.load %arg2[%c0, %c0_0] : memref<32x128xbf16, #tpu.memory_space<vmem>>, vector<32x128xbf16>
    %c0_1 = arith.constant 0 : index
    %c0_2 = arith.constant 0 : index
    %1 = vector.load %arg3[%c0_1, %c0_2] : memref<32x128xbf16, #tpu.memory_space<vmem>>, vector<32x128xbf16>
    %c0_3 = arith.constant 0 : index
    %c0_4 = arith.constant 0 : index
    %c0_5 = arith.constant 0 : index
    %2 = vector.load %arg1[%c0_3, %c0_4, %c0_5] : memref<8x8x32xbf16, #tpu.memory_space<vmem>>, vector<8x8x32xbf16>
    %3 = vector.shape_cast %2 : vector<8x8x32xbf16> to vector<64x32xbf16>
    %cst = arith.constant dense<0.000000e+00> : vector<64x128xf32>
    %4 = tpu.matmul %3, %0, %cst {dimension_numbers = #tpu.dot_dimension_numbers<[1], [0], [0], [1], [0, 0, 1, 1], [], []>} : vector<64x32xbf16>, vector<32x128xbf16>, vector<64x128xf32> -> vector<64x128xf32>
    %c0_6 = arith.constant 0 : index
    %c0_7 = arith.constant 0 : index
    %5 = vector.load %arg4[%c0_6, %c0_7] : memref<1x128xf32, #tpu.memory_space<vmem>>, vector<1x128xf32>
    %6 = vector.broadcast %5 : vector<1x128xf32> to vector<64x128xf32>
    %7 = arith.addf %4, %6 : vector<64x128xf32>
    %8 = vector.shape_cast %7 : vector<64x128xf32> to vector<8x8x128xf32>
    %c0_8 = arith.constant 0 : index
    %c0_9 = arith.constant 0 : index
    %c0_10 = arith.constant 0 : index
    %9 = vector.load %arg15[%c0_8, %c0_9, %c0_10] : memref<8x8x128xf32, #tpu.memory_space<vmem>>, vector<8x8x128xf32>
    tpu.vector_store %arg15[%c0_8, %c0_9, %c0_10], %8 {strides = array<i32>} : memref<8x8x128xf32, #tpu.memory_space<vmem>>, vector<8x8x128xf32>,
    %c0_11 = arith.constant 0 : index
    %c0_12 = arith.constant 0 : index
    %10 = vector.load %arg5[%c0_11, %c0_12] : memref<1x32xf32, #tpu.memory_space<vmem>>, vector<1x32xf32>
    %11 = vector.shape_cast %10 : vector<1x32xf32> to vector<1x32xf32>
    %12 = vector.broadcast %11 : vector<1x32xf32> to vector<8x32xf32>
    %c0_13 = arith.constant 0 : index
    %c0_14 = arith.constant 0 : index
    %13 = vector.load %arg6[%c0_13, %c0_14] : memref<1x32xf32, #tpu.memory_space<vmem>>, vector<1x32xf32>
    %14 = vector.shape_cast %13 : vector<1x32xf32> to vector<1x32xf32>
    %15 = vector.broadcast %14 : vector<1x32xf32> to vector<8x32xf32>
    %cst_15 = arith.constant 0.000000e+00 : f32
    %16 = vector.broadcast %cst_15 : f32 to vector<8x32xf32>
    %cst_16 = arith.constant 0.000000e+00 : f32
    %17 = vector.broadcast %cst_16 : f32 to vector<8x32xf32>
    %c0_17 = arith.constant 0 : index
    %c0_18 = arith.constant 0 : index
    %c0_19 = arith.constant 0 : index
    %18 = vector.load %arg15[%c0_17, %c0_18, %c0_19] : memref<8x8x128xf32, #tpu.memory_space<vmem>>, vector<1x8x128xf32>
    %19 = vector.shape_cast %18 : vector<1x8x128xf32> to vector<8x128xf32>
    %20 = arith.truncf %16 : vector<8x32xf32> to vector<8x32xbf16>
    %cst_20 = arith.constant dense<0.000000e+00> : vector<8x128xf32>
    %21 = tpu.matmul %20, %1, %cst_20 {dimension_numbers = #tpu.dot_dimension_numbers<[1], [0], [0], [1], [0, 0, 1, 1], [], []>} : vector<8x32xbf16>, vector<32x128xbf16>, vector<8x128xf32> -> vector<8x128xf32>
    %22 = arith.addf %19, %21 : vector<8x128xf32>
    %23 = arith.negf %22 : vector<8x128xf32>
    %24 = math.exp %23 : vector<8x128xf32>
    %cst_21 = arith.constant 1.000000e+00 : f32
    %25 = vector.broadcast %cst_21 : f32 to vector<8x128xf32>
    %26 = arith.addf %25, %24 : vector<8x128xf32>
    %27 = arith.divf %25, %26 : vector<8x128xf32>
    %28 = vector.extract_strided_slice %27 {offsets = [0, 0], sizes = [8, 32], strides = [1, 1]} : vector<8x128xf32> to vector<8x32xf32>
    %29 = vector.extract_strided_slice %27 {offsets = [0, 32], sizes = [8, 32], strides = [1, 1]} : vector<8x128xf32> to vector<8x32xf32>
    %30 = vector.extract_strided_slice %27 {offsets = [0, 64], sizes = [8, 32], strides = [1, 1]} : vector<8x128xf32> to vector<8x32xf32>
    %cst_22 = arith.constant 2.000000e+00 : f32
    %31 = vector.broadcast %cst_22 : f32 to vector<8x32xf32>
    %32 = arith.mulf %31, %30 : vector<8x32xf32>
    %cst_23 = arith.constant 1.000000e+00 : f32
    %33 = vector.broadcast %cst_23 : f32 to vector<8x32xf32>
    %34 = arith.subf %32, %33 : vector<8x32xf32>
    %35 = vector.extract_strided_slice %27 {offsets = [0, 96], sizes = [8, 32], strides = [1, 1]} : vector<8x128xf32> to vector<8x32xf32>
    %36 = arith.mulf %29, %17 : vector<8x32xf32>
    %37 = arith.mulf %28, %34 : vector<8x32xf32>
    %38 = arith.addf %36, %37 : vector<8x32xf32>
    %39 = math.tanh %38 : vector<8x32xf32>
    %40 = arith.mulf %35, %39 : vector<8x32xf32>
    %cst_24 = arith.constant dense<0.000000e+00> : vector<8xf32>
    %41 = vector.multi_reduction <add>, %40, %cst_24 [1] : vector<8x32xf32> to vector<8xf32>
    %42 = vector.shape_cast %41 : vector<8xf32> to vector<8x1xf32>
    %43 = arith.mulf %40, %40 : vector<8x32xf32>
    %cst_25 = arith.constant dense<0.000000e+00> : vector<8xf32>
    %44 = vector.multi_reduction <add>, %43, %cst_25 [1] : vector<8x32xf32> to vector<8xf32>
    %45 = vector.shape_cast %44 : vector<8xf32> to vector<8x1xf32>
    %cst_26 = arith.constant 3.125000e-02 : f32
    %46 = vector.broadcast %cst_26 : f32 to vector<8x1xf32>
    %47 = arith.mulf %42, %46 : vector<8x1xf32>
    %cst_27 = arith.constant 3.125000e-02 : f32
    %48 = vector.broadcast %cst_27 : f32 to vector<8x1xf32>
    %49 = arith.mulf %45, %48 : vector<8x1xf32>
    %50 = arith.mulf %47, %47 : vector<8x1xf32>
    %51 = arith.subf %49, %50 : vector<8x1xf32>
    %52 = vector.broadcast %47 : vector<8x1xf32> to vector<8x32xf32>
    %53 = arith.subf %40, %52 : vector<8x32xf32>
    %cst_28 = arith.constant 9.99999974E-6 : f32
    %54 = vector.broadcast %cst_28 : f32 to vector<8x1xf32>
    %55 = arith.addf %51, %54 : vector<8x1xf32>
    %56 = math.rsqrt %55 : vector<8x1xf32>
    %57 = vector.broadcast %56 : vector<8x1xf32> to vector<8x32xf32>
    %58 = arith.mulf %53, %57 : vector<8x32xf32>
    %59 = arith.mulf %58, %12 : vector<8x32xf32>
    %60 = arith.addf %59, %15 : vector<8x32xf32>
    %c0_29 = arith.constant 0 : index
    %c0_30 = arith.constant 0 : index
    %c0_31 = arith.constant 0 : index
    %61 = vector.load %arg16[%c0_29, %c0_30, %c0_31] : memref<8x8x32xf32, #tpu.memory_space<vmem>>, vector<1x8x32xf32>
    %62 = vector.shape_cast %61 : vector<1x8x32xf32> to vector<8x32xf32>
    %63 = vector.shape_cast %60 : vector<8x32xf32> to vector<1x8x32xf32>
    tpu.vector_store %arg16[%c0_29, %c0_30, %c0_31], %63 {strides = array<i32>} : memref<8x8x32xf32, #tpu.memory_space<vmem>>, vector<1x8x32xf32>,
    %c1 = arith.constant 1 : index
    %c0_32 = arith.constant 0 : index
    %c0_33 = arith.constant 0 : index
    %64 = vector.load %arg15[%c1, %c0_32, %c0_33] : memref<8x8x128xf32, #tpu.memory_space<vmem>>, vector<1x8x128xf32>
    %65 = vector.shape_cast %64 : vector<1x8x128xf32> to vector<8x128xf32>
    %66 = arith.truncf %40 : vector<8x32xf32> to vector<8x32xbf16>
    %cst_34 = arith.constant dense<0.000000e+00> : vector<8x128xf32>
    %67 = tpu.matmul %66, %1, %cst_34 {dimension_numbers = #tpu.dot_dimension_numbers<[1], [0], [0], [1], [0, 0, 1, 1], [], []>} : vector<8x32xbf16>, vector<32x128xbf16>, vector<8x128xf32> -> vector<8x128xf32>
    %68 = arith.addf %65, %67 : vector<8x128xf32>
    %69 = arith.negf %68 : vector<8x128xf32>
    %70 = math.exp %69 : vector<8x128xf32>
    %cst_35 = arith.constant 1.000000e+00 : f32
    %71 = vector.broadcast %cst_35 : f32 to vector<8x128xf32>
    %72 = arith.addf %71, %70 : vector<8x128xf32>
    %73 = arith.divf %71, %72 : vector<8x128xf32>
    %74 = vector.extract_strided_slice %73 {offsets = [0, 0], sizes = [8, 32], strides = [1, 1]} : vector<8x128xf32> to vector<8x32xf32>
    %75 = vector.extract_strided_slice %73 {offsets = [0, 32], sizes = [8, 32], strides = [1, 1]} : vector<8x128xf32> to vector<8x32xf32>
    %76 = vector.extract_strided_slice %73 {offsets = [0, 64], sizes = [8, 32], strides = [1, 1]} : vector<8x128xf32> to vector<8x32xf32>
    %cst_36 = arith.constant 2.000000e+00 : f32
    %77 = vector.broadcast %cst_36 : f32 to vector<8x32xf32>
    %78 = arith.mulf %77, %76 : vector<8x32xf32>
    %cst_37 = arith.constant 1.000000e+00 : f32
    %79 = vector.broadcast %cst_37 : f32 to vector<8x32xf32>
    %80 = arith.subf %78, %79 : vector<8x32xf32>
    %81 = vector.extract_strided_slice %73 {offsets = [0, 96], sizes = [8, 32], strides = [1, 1]} : vector<8x128xf32> to vector<8x32xf32>
    %82 = arith.mulf %75, %38 : vector<8x32xf32>
    %83 = arith.mulf %74, %80 : vector<8x32xf32>
    %84 = arith.addf %82, %83 : vector<8x32xf32>
    %85 = math.tanh %84 : vector<8x32xf32>
    %86 = arith.mulf %81, %85 : vector<8x32xf32>
    %cst_38 = arith.constant dense<0.000000e+00> : vector<8xf32>
    %87 = vector.multi_reduction <add>, %86, %cst_38 [1] : vector<8x32xf32> to vector<8xf32>
    %88 = vector.shape_cast %87 : vector<8xf32> to vector<8x1xf32>
    %89 = arith.mulf %86, %86 : vector<8x32xf32>
    %cst_39 = arith.constant dense<0.000000e+00> : vector<8xf32>
    %90 = vector.multi_reduction <add>, %89, %cst_39 [1] : vector<8x32xf32> to vector<8xf32>
    %91 = vector.shape_cast %90 : vector<8xf32> to vector<8x1xf32>
    %cst_40 = arith.constant 3.125000e-02 : f32
    %92 = vector.broadcast %cst_40 : f32 to vector<8x1xf32>
    %93 = arith.mulf %88, %92 : vector<8x1xf32>
    %cst_41 = arith.constant 3.125000e-02 : f32
    %94 = vector.broadcast %cst_41 : f32 to vector<8x1xf32>
    %95 = arith.mulf %91, %94 : vector<8x1xf32>
    %96 = arith.mulf %93, %93 : vector<8x1xf32>
    %97 = arith.subf %95, %96 : vector<8x1xf32>
    %98 = vector.broadcast %93 : vector<8x1xf32> to vector<8x32xf32>
    %99 = arith.subf %86, %98 : vector<8x32xf32>
    %cst_42 = arith.constant 9.99999974E-6 : f32
    %100 = vector.broadcast %cst_42 : f32 to vector<8x1xf32>
    %101 = arith.addf %97, %100 : vector<8x1xf32>
    %102 = math.rsqrt %101 : vector<8x1xf32>
    %103 = vector.broadcast %102 : vector<8x1xf32> to vector<8x32xf32>
    %104 = arith.mulf %99, %103 : vector<8x32xf32>
    %105 = arith.mulf %104, %12 : vector<8x32xf32>
    %106 = arith.addf %105, %15 : vector<8x32xf32>
    %c1_43 = arith.constant 1 : index
    %c0_44 = arith.constant 0 : index
    %c0_45 = arith.constant 0 : index
    %107 = vector.load %arg16[%c1_43, %c0_44, %c0_45] : memref<8x8x32xf32, #tpu.memory_space<vmem>>, vector<1x8x32xf32>
    %108 = vector.shape_cast %107 : vector<1x8x32xf32> to vector<8x32xf32>
    %109 = vector.shape_cast %106 : vector<8x32xf32> to vector<1x8x32xf32>
    tpu.vector_store %arg16[%c1_43, %c0_44, %c0_45], %109 {strides = array<i32>} : memref<8x8x32xf32, #tpu.memory_space<vmem>>, vector<1x8x32xf32>,
    %c2 = arith.constant 2 : index
    %c0_46 = arith.constant 0 : index
    %c0_47 = arith.constant 0 : index
    %110 = vector.load %arg15[%c2, %c0_46, %c0_47] : memref<8x8x128xf32, #tpu.memory_space<vmem>>, vector<1x8x128xf32>
    %111 = vector.shape_cast %110 : vector<1x8x128xf32> to vector<8x128xf32>
    %112 = arith.truncf %86 : vector<8x32xf32> to vector<8x32xbf16>
    %cst_48 = arith.constant dense<0.000000e+00> : vector<8x128xf32>
    %113 = tpu.matmul %112, %1, %cst_48 {dimension_numbers = #tpu.dot_dimension_numbers<[1], [0], [0], [1], [0, 0, 1, 1], [], []>} : vector<8x32xbf16>, vector<32x128xbf16>, vector<8x128xf32> -> vector<8x128xf32>
    %114 = arith.addf %111, %113 : vector<8x128xf32>
    %115 = arith.negf %114 : vector<8x128xf32>
    %116 = math.exp %115 : vector<8x128xf32>
    %cst_49 = arith.constant 1.000000e+00 : f32
    %117 = vector.broadcast %cst_49 : f32 to vector<8x128xf32>
    %118 = arith.addf %117, %116 : vector<8x128xf32>
    %119 = arith.divf %117, %118 : vector<8x128xf32>
    %120 = vector.extract_strided_slice %119 {offsets = [0, 0], sizes = [8, 32], strides = [1, 1]} : vector<8x128xf32> to vector<8x32xf32>
    %121 = vector.extract_strided_slice %119 {offsets = [0, 32], sizes = [8, 32], strides = [1, 1]} : vector<8x128xf32> to vector<8x32xf32>
    %122 = vector.extract_strided_slice %119 {offsets = [0, 64], sizes = [8, 32], strides = [1, 1]} : vector<8x128xf32> to vector<8x32xf32>
    %cst_50 = arith.constant 2.000000e+00 : f32
    %123 = vector.broadcast %cst_50 : f32 to vector<8x32xf32>
    %124 = arith.mulf %123, %122 : vector<8x32xf32>
    %cst_51 = arith.constant 1.000000e+00 : f32
    %125 = vector.broadcast %cst_51 : f32 to vector<8x32xf32>
    %126 = arith.subf %124, %125 : vector<8x32xf32>
    %127 = vector.extract_strided_slice %119 {offsets = [0, 96], sizes = [8, 32], strides = [1, 1]} : vector<8x128xf32> to vector<8x32xf32>
    %128 = arith.mulf %121, %84 : vector<8x32xf32>
    %129 = arith.mulf %120, %126 : vector<8x32xf32>
    %130 = arith.addf %128, %129 : vector<8x32xf32>
    %131 = math.tanh %130 : vector<8x32xf32>
    %132 = arith.mulf %127, %131 : vector<8x32xf32>
    %cst_52 = arith.constant dense<0.000000e+00> : vector<8xf32>
    %133 = vector.multi_reduction <add>, %132, %cst_52 [1] : vector<8x32xf32> to vector<8xf32>
    %134 = vector.shape_cast %133 : vector<8xf32> to vector<8x1xf32>
    %135 = arith.mulf %132, %132 : vector<8x32xf32>
    %cst_53 = arith.constant dense<0.000000e+00> : vector<8xf32>
    %136 = vector.multi_reduction <add>, %135, %cst_53 [1] : vector<8x32xf32> to vector<8xf32>
    %137 = vector.shape_cast %136 : vector<8xf32> to vector<8x1xf32>
    %cst_54 = arith.constant 3.125000e-02 : f32
    %138 = vector.broadcast %cst_54 : f32 to vector<8x1xf32>
    %139 = arith.mulf %134, %138 : vector<8x1xf32>
    %cst_55 = arith.constant 3.125000e-02 : f32
    %140 = vector.broadcast %cst_55 : f32 to vector<8x1xf32>
    %141 = arith.mulf %137, %140 : vector<8x1xf32>
    %142 = arith.mulf %139, %139 : vector<8x1xf32>
    %143 = arith.subf %141, %142 : vector<8x1xf32>
    %144 = vector.broadcast %139 : vector<8x1xf32> to vector<8x32xf32>
    %145 = arith.subf %132, %144 : vector<8x32xf32>
    %cst_56 = arith.constant 9.99999974E-6 : f32
    %146 = vector.broadcast %cst_56 : f32 to vector<8x1xf32>
    %147 = arith.addf %143, %146 : vector<8x1xf32>
    %148 = math.rsqrt %147 : vector<8x1xf32>
    %149 = vector.broadcast %148 : vector<8x1xf32> to vector<8x32xf32>
    %150 = arith.mulf %145, %149 : vector<8x32xf32>
    %151 = arith.mulf %150, %12 : vector<8x32xf32>
    %152 = arith.addf %151, %15 : vector<8x32xf32>
    %c2_57 = arith.constant 2 : index
    %c0_58 = arith.constant 0 : index
    %c0_59 = arith.constant 0 : index
    %153 = vector.load %arg16[%c2_57, %c0_58, %c0_59] : memref<8x8x32xf32, #tpu.memory_space<vmem>>, vector<1x8x32xf32>
    %154 = vector.shape_cast %153 : vector<1x8x32xf32> to vector<8x32xf32>
    %155 = vector.shape_cast %152 : vector<8x32xf32> to vector<1x8x32xf32>
    tpu.vector_store %arg16[%c2_57, %c0_58, %c0_59], %155 {strides = array<i32>} : memref<8x8x32xf32, #tpu.memory_space<vmem>>, vector<1x8x32xf32>,
    %c3 = arith.constant 3 : index
    %c0_60 = arith.constant 0 : index
    %c0_61 = arith.constant 0 : index
    %156 = vector.load %arg15[%c3, %c0_60, %c0_61] : memref<8x8x128xf32, #tpu.memory_space<vmem>>, vector<1x8x128xf32>
    %157 = vector.shape_cast %156 : vector<1x8x128xf32> to vector<8x128xf32>
    %158 = arith.truncf %132 : vector<8x32xf32> to vector<8x32xbf16>
    %cst_62 = arith.constant dense<0.000000e+00> : vector<8x128xf32>
    %159 = tpu.matmul %158, %1, %cst_62 {dimension_numbers = #tpu.dot_dimension_numbers<[1], [0], [0], [1], [0, 0, 1, 1], [], []>} : vector<8x32xbf16>, vector<32x128xbf16>, vector<8x128xf32> -> vector<8x128xf32>
    %160 = arith.addf %157, %159 : vector<8x128xf32>
    %161 = arith.negf %160 : vector<8x128xf32>
    %162 = math.exp %161 : vector<8x128xf32>
    %cst_63 = arith.constant 1.000000e+00 : f32
    %163 = vector.broadcast %cst_63 : f32 to vector<8x128xf32>
    %164 = arith.addf %163, %162 : vector<8x128xf32>
    %165 = arith.divf %163, %164 : vector<8x128xf32>
    %166 = vector.extract_strided_slice %165 {offsets = [0, 0], sizes = [8, 32], strides = [1, 1]} : vector<8x128xf32> to vector<8x32xf32>
    %167 = vector.extract_strided_slice %165 {offsets = [0, 32], sizes = [8, 32], strides = [1, 1]} : vector<8x128xf32> to vector<8x32xf32>
    %168 = vector.extract_strided_slice %165 {offsets = [0, 64], sizes = [8, 32], strides = [1, 1]} : vector<8x128xf32> to vector<8x32xf32>
    %cst_64 = arith.constant 2.000000e+00 : f32
    %169 = vector.broadcast %cst_64 : f32 to vector<8x32xf32>
    %170 = arith.mulf %169, %168 : vector<8x32xf32>
    %cst_65 = arith.constant 1.000000e+00 : f32
    %171 = vector.broadcast %cst_65 : f32 to vector<8x32xf32>
    %172 = arith.subf %170, %171 : vector<8x32xf32>
    %173 = vector.extract_strided_slice %165 {offsets = [0, 96], sizes = [8, 32], strides = [1, 1]} : vector<8x128xf32> to vector<8x32xf32>
    %174 = arith.mulf %167, %130 : vector<8x32xf32>
    %175 = arith.mulf %166, %172 : vector<8x32xf32>
    %176 = arith.addf %174, %175 : vector<8x32xf32>
    %177 = math.tanh %176 : vector<8x32xf32>
    %178 = arith.mulf %173, %177 : vector<8x32xf32>
    %cst_66 = arith.constant dense<0.000000e+00> : vector<8xf32>
    %179 = vector.multi_reduction <add>, %178, %cst_66 [1] : vector<8x32xf32> to vector<8xf32>
    %180 = vector.shape_cast %179 : vector<8xf32> to vector<8x1xf32>
    %181 = arith.mulf %178, %178 : vector<8x32xf32>
    %cst_67 = arith.constant dense<0.000000e+00> : vector<8xf32>
    %182 = vector.multi_reduction <add>, %181, %cst_67 [1] : vector<8x32xf32> to vector<8xf32>
    %183 = vector.shape_cast %182 : vector<8xf32> to vector<8x1xf32>
    %cst_68 = arith.constant 3.125000e-02 : f32
    %184 = vector.broadcast %cst_68 : f32 to vector<8x1xf32>
    %185 = arith.mulf %180, %184 : vector<8x1xf32>
    %cst_69 = arith.constant 3.125000e-02 : f32
    %186 = vector.broadcast %cst_69 : f32 to vector<8x1xf32>
    %187 = arith.mulf %183, %186 : vector<8x1xf32>
    %188 = arith.mulf %185, %185 : vector<8x1xf32>
    %189 = arith.subf %187, %188 : vector<8x1xf32>
    %190 = vector.broadcast %185 : vector<8x1xf32> to vector<8x32xf32>
    %191 = arith.subf %178, %190 : vector<8x32xf32>
    %cst_70 = arith.constant 9.99999974E-6 : f32
    %192 = vector.broadcast %cst_70 : f32 to vector<8x1xf32>
    %193 = arith.addf %189, %192 : vector<8x1xf32>
    %194 = math.rsqrt %193 : vector<8x1xf32>
    %195 = vector.broadcast %194 : vector<8x1xf32> to vector<8x32xf32>
    %196 = arith.mulf %191, %195 : vector<8x32xf32>
    %197 = arith.mulf %196, %12 : vector<8x32xf32>
    %198 = arith.addf %197, %15 : vector<8x32xf32>
    %c3_71 = arith.constant 3 : index
    %c0_72 = arith.constant 0 : index
    %c0_73 = arith.constant 0 : index
    %199 = vector.load %arg16[%c3_71, %c0_72, %c0_73] : memref<8x8x32xf32, #tpu.memory_space<vmem>>, vector<1x8x32xf32>
    %200 = vector.shape_cast %199 : vector<1x8x32xf32> to vector<8x32xf32>
    %201 = vector.shape_cast %198 : vector<8x32xf32> to vector<1x8x32xf32>
    tpu.vector_store %arg16[%c3_71, %c0_72, %c0_73], %201 {strides = array<i32>} : memref<8x8x32xf32, #tpu.memory_space<vmem>>, vector<1x8x32xf32>,
    %c4 = arith.constant 4 : index
    %c0_74 = arith.constant 0 : index
    %c0_75 = arith.constant 0 : index
    %202 = vector.load %arg15[%c4, %c0_74, %c0_75] : memref<8x8x128xf32, #tpu.memory_space<vmem>>, vector<1x8x128xf32>
    %203 = vector.shape_cast %202 : vector<1x8x128xf32> to vector<8x128xf32>
    %204 = arith.truncf %178 : vector<8x32xf32> to vector<8x32xbf16>
    %cst_76 = arith.constant dense<0.000000e+00> : vector<8x128xf32>
    %205 = tpu.matmul %204, %1, %cst_76 {dimension_numbers = #tpu.dot_dimension_numbers<[1], [0], [0], [1], [0, 0, 1, 1], [], []>} : vector<8x32xbf16>, vector<32x128xbf16>, vector<8x128xf32> -> vector<8x128xf32>
    %206 = arith.addf %203, %205 : vector<8x128xf32>
    %207 = arith.negf %206 : vector<8x128xf32>
    %208 = math.exp %207 : vector<8x128xf32>
    %cst_77 = arith.constant 1.000000e+00 : f32
    %209 = vector.broadcast %cst_77 : f32 to vector<8x128xf32>
    %210 = arith.addf %209, %208 : vector<8x128xf32>
    %211 = arith.divf %209, %210 : vector<8x128xf32>
    %212 = vector.extract_strided_slice %211 {offsets = [0, 0], sizes = [8, 32], strides = [1, 1]} : vector<8x128xf32> to vector<8x32xf32>
    %213 = vector.extract_strided_slice %211 {offsets = [0, 32], sizes = [8, 32], strides = [1, 1]} : vector<8x128xf32> to vector<8x32xf32>
    %214 = vector.extract_strided_slice %211 {offsets = [0, 64], sizes = [8, 32], strides = [1, 1]} : vector<8x128xf32> to vector<8x32xf32>
    %cst_78 = arith.constant 2.000000e+00 : f32
    %215 = vector.broadcast %cst_78 : f32 to vector<8x32xf32>
    %216 = arith.mulf %215, %214 : vector<8x32xf32>
    %cst_79 = arith.constant 1.000000e+00 : f32
    %217 = vector.broadcast %cst_79 : f32 to vector<8x32xf32>
    %218 = arith.subf %216, %217 : vector<8x32xf32>
    %219 = vector.extract_strided_slice %211 {offsets = [0, 96], sizes = [8, 32], strides = [1, 1]} : vector<8x128xf32> to vector<8x32xf32>
    %220 = arith.mulf %213, %176 : vector<8x32xf32>
    %221 = arith.mulf %212, %218 : vector<8x32xf32>
    %222 = arith.addf %220, %221 : vector<8x32xf32>
    %223 = math.tanh %222 : vector<8x32xf32>
    %224 = arith.mulf %219, %223 : vector<8x32xf32>
    %cst_80 = arith.constant dense<0.000000e+00> : vector<8xf32>
    %225 = vector.multi_reduction <add>, %224, %cst_80 [1] : vector<8x32xf32> to vector<8xf32>
    %226 = vector.shape_cast %225 : vector<8xf32> to vector<8x1xf32>
    %227 = arith.mulf %224, %224 : vector<8x32xf32>
    %cst_81 = arith.constant dense<0.000000e+00> : vector<8xf32>
    %228 = vector.multi_reduction <add>, %227, %cst_81 [1] : vector<8x32xf32> to vector<8xf32>
    %229 = vector.shape_cast %228 : vector<8xf32> to vector<8x1xf32>
    %cst_82 = arith.constant 3.125000e-02 : f32
    %230 = vector.broadcast %cst_82 : f32 to vector<8x1xf32>
    %231 = arith.mulf %226, %230 : vector<8x1xf32>
    %cst_83 = arith.constant 3.125000e-02 : f32
    %232 = vector.broadcast %cst_83 : f32 to vector<8x1xf32>
    %233 = arith.mulf %229, %232 : vector<8x1xf32>
    %234 = arith.mulf %231, %231 : vector<8x1xf32>
    %235 = arith.subf %233, %234 : vector<8x1xf32>
    %236 = vector.broadcast %231 : vector<8x1xf32> to vector<8x32xf32>
    %237 = arith.subf %224, %236 : vector<8x32xf32>
    %cst_84 = arith.constant 9.99999974E-6 : f32
    %238 = vector.broadcast %cst_84 : f32 to vector<8x1xf32>
    %239 = arith.addf %235, %238 : vector<8x1xf32>
    %240 = math.rsqrt %239 : vector<8x1xf32>
    %241 = vector.broadcast %240 : vector<8x1xf32> to vector<8x32xf32>
    %242 = arith.mulf %237, %241 : vector<8x32xf32>
    %243 = arith.mulf %242, %12 : vector<8x32xf32>
    %244 = arith.addf %243, %15 : vector<8x32xf32>
    %c4_85 = arith.constant 4 : index
    %c0_86 = arith.constant 0 : index
    %c0_87 = arith.constant 0 : index
    %245 = vector.load %arg16[%c4_85, %c0_86, %c0_87] : memref<8x8x32xf32, #tpu.memory_space<vmem>>, vector<1x8x32xf32>
    %246 = vector.shape_cast %245 : vector<1x8x32xf32> to vector<8x32xf32>
    %247 = vector.shape_cast %244 : vector<8x32xf32> to vector<1x8x32xf32>
    tpu.vector_store %arg16[%c4_85, %c0_86, %c0_87], %247 {strides = array<i32>} : memref<8x8x32xf32, #tpu.memory_space<vmem>>, vector<1x8x32xf32>,
    %c5 = arith.constant 5 : index
    %c0_88 = arith.constant 0 : index
    %c0_89 = arith.constant 0 : index
    %248 = vector.load %arg15[%c5, %c0_88, %c0_89] : memref<8x8x128xf32, #tpu.memory_space<vmem>>, vector<1x8x128xf32>
    %249 = vector.shape_cast %248 : vector<1x8x128xf32> to vector<8x128xf32>
    %250 = arith.truncf %224 : vector<8x32xf32> to vector<8x32xbf16>
    %cst_90 = arith.constant dense<0.000000e+00> : vector<8x128xf32>
    %251 = tpu.matmul %250, %1, %cst_90 {dimension_numbers = #tpu.dot_dimension_numbers<[1], [0], [0], [1], [0, 0, 1, 1], [], []>} : vector<8x32xbf16>, vector<32x128xbf16>, vector<8x128xf32> -> vector<8x128xf32>
    %252 = arith.addf %249, %251 : vector<8x128xf32>
    %253 = arith.negf %252 : vector<8x128xf32>
    %254 = math.exp %253 : vector<8x128xf32>
    %cst_91 = arith.constant 1.000000e+00 : f32
    %255 = vector.broadcast %cst_91 : f32 to vector<8x128xf32>
    %256 = arith.addf %255, %254 : vector<8x128xf32>
    %257 = arith.divf %255, %256 : vector<8x128xf32>
    %258 = vector.extract_strided_slice %257 {offsets = [0, 0], sizes = [8, 32], strides = [1, 1]} : vector<8x128xf32> to vector<8x32xf32>
    %259 = vector.extract_strided_slice %257 {offsets = [0, 32], sizes = [8, 32], strides = [1, 1]} : vector<8x128xf32> to vector<8x32xf32>
    %260 = vector.extract_strided_slice %257 {offsets = [0, 64], sizes = [8, 32], strides = [1, 1]} : vector<8x128xf32> to vector<8x32xf32>
    %cst_92 = arith.constant 2.000000e+00 : f32
    %261 = vector.broadcast %cst_92 : f32 to vector<8x32xf32>
    %262 = arith.mulf %261, %260 : vector<8x32xf32>
    %cst_93 = arith.constant 1.000000e+00 : f32
    %263 = vector.broadcast %cst_93 : f32 to vector<8x32xf32>
    %264 = arith.subf %262, %263 : vector<8x32xf32>
    %265 = vector.extract_strided_slice %257 {offsets = [0, 96], sizes = [8, 32], strides = [1, 1]} : vector<8x128xf32> to vector<8x32xf32>
    %266 = arith.mulf %259, %222 : vector<8x32xf32>
    %267 = arith.mulf %258, %264 : vector<8x32xf32>
    %268 = arith.addf %266, %267 : vector<8x32xf32>
    %269 = math.tanh %268 : vector<8x32xf32>
    %270 = arith.mulf %265, %269 : vector<8x32xf32>
    %cst_94 = arith.constant dense<0.000000e+00> : vector<8xf32>
    %271 = vector.multi_reduction <add>, %270, %cst_94 [1] : vector<8x32xf32> to vector<8xf32>
    %272 = vector.shape_cast %271 : vector<8xf32> to vector<8x1xf32>
    %273 = arith.mulf %270, %270 : vector<8x32xf32>
    %cst_95 = arith.constant dense<0.000000e+00> : vector<8xf32>
    %274 = vector.multi_reduction <add>, %273, %cst_95 [1] : vector<8x32xf32> to vector<8xf32>
    %275 = vector.shape_cast %274 : vector<8xf32> to vector<8x1xf32>
    %cst_96 = arith.constant 3.125000e-02 : f32
    %276 = vector.broadcast %cst_96 : f32 to vector<8x1xf32>
    %277 = arith.mulf %272, %276 : vector<8x1xf32>
    %cst_97 = arith.constant 3.125000e-02 : f32
    %278 = vector.broadcast %cst_97 : f32 to vector<8x1xf32>
    %279 = arith.mulf %275, %278 : vector<8x1xf32>
    %280 = arith.mulf %277, %277 : vector<8x1xf32>
    %281 = arith.subf %279, %280 : vector<8x1xf32>
    %282 = vector.broadcast %277 : vector<8x1xf32> to vector<8x32xf32>
    %283 = arith.subf %270, %282 : vector<8x32xf32>
    %cst_98 = arith.constant 9.99999974E-6 : f32
    %284 = vector.broadcast %cst_98 : f32 to vector<8x1xf32>
    %285 = arith.addf %281, %284 : vector<8x1xf32>
    %286 = math.rsqrt %285 : vector<8x1xf32>
    %287 = vector.broadcast %286 : vector<8x1xf32> to vector<8x32xf32>
    %288 = arith.mulf %283, %287 : vector<8x32xf32>
    %289 = arith.mulf %288, %12 : vector<8x32xf32>
    %290 = arith.addf %289, %15 : vector<8x32xf32>
    %c5_99 = arith.constant 5 : index
    %c0_100 = arith.constant 0 : index
    %c0_101 = arith.constant 0 : index
    %291 = vector.load %arg16[%c5_99, %c0_100, %c0_101] : memref<8x8x32xf32, #tpu.memory_space<vmem>>, vector<1x8x32xf32>
    %292 = vector.shape_cast %291 : vector<1x8x32xf32> to vector<8x32xf32>
    %293 = vector.shape_cast %290 : vector<8x32xf32> to vector<1x8x32xf32>
    tpu.vector_store %arg16[%c5_99, %c0_100, %c0_101], %293 {strides = array<i32>} : memref<8x8x32xf32, #tpu.memory_space<vmem>>, vector<1x8x32xf32>,
    %c6 = arith.constant 6 : index
    %c0_102 = arith.constant 0 : index
    %c0_103 = arith.constant 0 : index
    %294 = vector.load %arg15[%c6, %c0_102, %c0_103] : memref<8x8x128xf32, #tpu.memory_space<vmem>>, vector<1x8x128xf32>
    %295 = vector.shape_cast %294 : vector<1x8x128xf32> to vector<8x128xf32>
    %296 = arith.truncf %270 : vector<8x32xf32> to vector<8x32xbf16>
    %cst_104 = arith.constant dense<0.000000e+00> : vector<8x128xf32>
    %297 = tpu.matmul %296, %1, %cst_104 {dimension_numbers = #tpu.dot_dimension_numbers<[1], [0], [0], [1], [0, 0, 1, 1], [], []>} : vector<8x32xbf16>, vector<32x128xbf16>, vector<8x128xf32> -> vector<8x128xf32>
    %298 = arith.addf %295, %297 : vector<8x128xf32>
    %299 = arith.negf %298 : vector<8x128xf32>
    %300 = math.exp %299 : vector<8x128xf32>
    %cst_105 = arith.constant 1.000000e+00 : f32
    %301 = vector.broadcast %cst_105 : f32 to vector<8x128xf32>
    %302 = arith.addf %301, %300 : vector<8x128xf32>
    %303 = arith.divf %301, %302 : vector<8x128xf32>
    %304 = vector.extract_strided_slice %303 {offsets = [0, 0], sizes = [8, 32], strides = [1, 1]} : vector<8x128xf32> to vector<8x32xf32>
    %305 = vector.extract_strided_slice %303 {offsets = [0, 32], sizes = [8, 32], strides = [1, 1]} : vector<8x128xf32> to vector<8x32xf32>
    %306 = vector.extract_strided_slice %303 {offsets = [0, 64], sizes = [8, 32], strides = [1, 1]} : vector<8x128xf32> to vector<8x32xf32>
    %cst_106 = arith.constant 2.000000e+00 : f32
    %307 = vector.broadcast %cst_106 : f32 to vector<8x32xf32>
    %308 = arith.mulf %307, %306 : vector<8x32xf32>
    %cst_107 = arith.constant 1.000000e+00 : f32
    %309 = vector.broadcast %cst_107 : f32 to vector<8x32xf32>
    %310 = arith.subf %308, %309 : vector<8x32xf32>
    %311 = vector.extract_strided_slice %303 {offsets = [0, 96], sizes = [8, 32], strides = [1, 1]} : vector<8x128xf32> to vector<8x32xf32>
    %312 = arith.mulf %305, %268 : vector<8x32xf32>
    %313 = arith.mulf %304, %310 : vector<8x32xf32>
    %314 = arith.addf %312, %313 : vector<8x32xf32>
    %315 = math.tanh %314 : vector<8x32xf32>
    %316 = arith.mulf %311, %315 : vector<8x32xf32>
    %cst_108 = arith.constant dense<0.000000e+00> : vector<8xf32>
    %317 = vector.multi_reduction <add>, %316, %cst_108 [1] : vector<8x32xf32> to vector<8xf32>
    %318 = vector.shape_cast %317 : vector<8xf32> to vector<8x1xf32>
    %319 = arith.mulf %316, %316 : vector<8x32xf32>
    %cst_109 = arith.constant dense<0.000000e+00> : vector<8xf32>
    %320 = vector.multi_reduction <add>, %319, %cst_109 [1] : vector<8x32xf32> to vector<8xf32>
    %321 = vector.shape_cast %320 : vector<8xf32> to vector<8x1xf32>
    %cst_110 = arith.constant 3.125000e-02 : f32
    %322 = vector.broadcast %cst_110 : f32 to vector<8x1xf32>
    %323 = arith.mulf %318, %322 : vector<8x1xf32>
    %cst_111 = arith.constant 3.125000e-02 : f32
    %324 = vector.broadcast %cst_111 : f32 to vector<8x1xf32>
    %325 = arith.mulf %321, %324 : vector<8x1xf32>
    %326 = arith.mulf %323, %323 : vector<8x1xf32>
    %327 = arith.subf %325, %326 : vector<8x1xf32>
    %328 = vector.broadcast %323 : vector<8x1xf32> to vector<8x32xf32>
    %329 = arith.subf %316, %328 : vector<8x32xf32>
    %cst_112 = arith.constant 9.99999974E-6 : f32
    %330 = vector.broadcast %cst_112 : f32 to vector<8x1xf32>
    %331 = arith.addf %327, %330 : vector<8x1xf32>
    %332 = math.rsqrt %331 : vector<8x1xf32>
    %333 = vector.broadcast %332 : vector<8x1xf32> to vector<8x32xf32>
    %334 = arith.mulf %329, %333 : vector<8x32xf32>
    %335 = arith.mulf %334, %12 : vector<8x32xf32>
    %336 = arith.addf %335, %15 : vector<8x32xf32>
    %c6_113 = arith.constant 6 : index
    %c0_114 = arith.constant 0 : index
    %c0_115 = arith.constant 0 : index
    %337 = vector.load %arg16[%c6_113, %c0_114, %c0_115] : memref<8x8x32xf32, #tpu.memory_space<vmem>>, vector<1x8x32xf32>
    %338 = vector.shape_cast %337 : vector<1x8x32xf32> to vector<8x32xf32>
    %339 = vector.shape_cast %336 : vector<8x32xf32> to vector<1x8x32xf32>
    tpu.vector_store %arg16[%c6_113, %c0_114, %c0_115], %339 {strides = array<i32>} : memref<8x8x32xf32, #tpu.memory_space<vmem>>, vector<1x8x32xf32>,
    %c7 = arith.constant 7 : index
    %c0_116 = arith.constant 0 : index
    %c0_117 = arith.constant 0 : index
    %340 = vector.load %arg15[%c7, %c0_116, %c0_117] : memref<8x8x128xf32, #tpu.memory_space<vmem>>, vector<1x8x128xf32>
    %341 = vector.shape_cast %340 : vector<1x8x128xf32> to vector<8x128xf32>
    %342 = arith.truncf %316 : vector<8x32xf32> to vector<8x32xbf16>
    %cst_118 = arith.constant dense<0.000000e+00> : vector<8x128xf32>
    %343 = tpu.matmul %342, %1, %cst_118 {dimension_numbers = #tpu.dot_dimension_numbers<[1], [0], [0], [1], [0, 0, 1, 1], [], []>} : vector<8x32xbf16>, vector<32x128xbf16>, vector<8x128xf32> -> vector<8x128xf32>
    %344 = arith.addf %341, %343 : vector<8x128xf32>
    %345 = arith.negf %344 : vector<8x128xf32>
    %346 = math.exp %345 : vector<8x128xf32>
    %cst_119 = arith.constant 1.000000e+00 : f32
    %347 = vector.broadcast %cst_119 : f32 to vector<8x128xf32>
    %348 = arith.addf %347, %346 : vector<8x128xf32>
    %349 = arith.divf %347, %348 : vector<8x128xf32>
    %350 = vector.extract_strided_slice %349 {offsets = [0, 0], sizes = [8, 32], strides = [1, 1]} : vector<8x128xf32> to vector<8x32xf32>
    %351 = vector.extract_strided_slice %349 {offsets = [0, 32], sizes = [8, 32], strides = [1, 1]} : vector<8x128xf32> to vector<8x32xf32>
    %352 = vector.extract_strided_slice %349 {offsets = [0, 64], sizes = [8, 32], strides = [1, 1]} : vector<8x128xf32> to vector<8x32xf32>
    %cst_120 = arith.constant 2.000000e+00 : f32
    %353 = vector.broadcast %cst_120 : f32 to vector<8x32xf32>
    %354 = arith.mulf %353, %352 : vector<8x32xf32>
    %cst_121 = arith.constant 1.000000e+00 : f32
    %355 = vector.broadcast %cst_121 : f32 to vector<8x32xf32>
    %356 = arith.subf %354, %355 : vector<8x32xf32>
    %357 = vector.extract_strided_slice %349 {offsets = [0, 96], sizes = [8, 32], strides = [1, 1]} : vector<8x128xf32> to vector<8x32xf32>
    %358 = arith.mulf %351, %314 : vector<8x32xf32>
    %359 = arith.mulf %350, %356 : vector<8x32xf32>
    %360 = arith.addf %358, %359 : vector<8x32xf32>
    %361 = math.tanh %360 : vector<8x32xf32>
    %362 = arith.mulf %357, %361 : vector<8x32xf32>
    %cst_122 = arith.constant dense<0.000000e+00> : vector<8xf32>
    %363 = vector.multi_reduction <add>, %362, %cst_122 [1] : vector<8x32xf32> to vector<8xf32>
    %364 = vector.shape_cast %363 : vector<8xf32> to vector<8x1xf32>
    %365 = arith.mulf %362, %362 : vector<8x32xf32>
    %cst_123 = arith.constant dense<0.000000e+00> : vector<8xf32>
    %366 = vector.multi_reduction <add>, %365, %cst_123 [1] : vector<8x32xf32> to vector<8xf32>
    %367 = vector.shape_cast %366 : vector<8xf32> to vector<8x1xf32>
    %cst_124 = arith.constant 3.125000e-02 : f32
    %368 = vector.broadcast %cst_124 : f32 to vector<8x1xf32>
    %369 = arith.mulf %364, %368 : vector<8x1xf32>
    %cst_125 = arith.constant 3.125000e-02 : f32
    %370 = vector.broadcast %cst_125 : f32 to vector<8x1xf32>
    %371 = arith.mulf %367, %370 : vector<8x1xf32>
    %372 = arith.mulf %369, %369 : vector<8x1xf32>
    %373 = arith.subf %371, %372 : vector<8x1xf32>
    %374 = vector.broadcast %369 : vector<8x1xf32> to vector<8x32xf32>
    %375 = arith.subf %362, %374 : vector<8x32xf32>
    %cst_126 = arith.constant 9.99999974E-6 : f32
    %376 = vector.broadcast %cst_126 : f32 to vector<8x1xf32>
    %377 = arith.addf %373, %376 : vector<8x1xf32>
    %378 = math.rsqrt %377 : vector<8x1xf32>
    %379 = vector.broadcast %378 : vector<8x1xf32> to vector<8x32xf32>
    %380 = arith.mulf %375, %379 : vector<8x32xf32>
    %381 = arith.mulf %380, %12 : vector<8x32xf32>
    %382 = arith.addf %381, %15 : vector<8x32xf32>
    %c7_127 = arith.constant 7 : index
    %c0_128 = arith.constant 0 : index
    %c0_129 = arith.constant 0 : index
    %383 = vector.load %arg16[%c7_127, %c0_128, %c0_129] : memref<8x8x32xf32, #tpu.memory_space<vmem>>, vector<1x8x32xf32>
    %384 = vector.shape_cast %383 : vector<1x8x32xf32> to vector<8x32xf32>
    %385 = vector.shape_cast %382 : vector<8x32xf32> to vector<1x8x32xf32>
    tpu.vector_store %arg16[%c7_127, %c0_128, %c0_129], %385 {strides = array<i32>} : memref<8x8x32xf32, #tpu.memory_space<vmem>>, vector<1x8x32xf32>,
    %c0_130 = arith.constant 0 : index
    %c0_131 = arith.constant 0 : index
    %386 = vector.load %arg7[%c0_130, %c0_131] : memref<32x128xbf16, #tpu.memory_space<vmem>>, vector<32x128xbf16>
    %c0_132 = arith.constant 0 : index
    %c0_133 = arith.constant 0 : index
    %387 = vector.load %arg8[%c0_132, %c0_133] : memref<32x128xbf16, #tpu.memory_space<vmem>>, vector<32x128xbf16>
    %c0_134 = arith.constant 0 : index
    %c0_135 = arith.constant 0 : index
    %c0_136 = arith.constant 0 : index
    %388 = vector.load %arg16[%c0_134, %c0_135, %c0_136] : memref<8x8x32xf32, #tpu.memory_space<vmem>>, vector<8x8x32xf32>
    %389 = vector.shape_cast %388 : vector<8x8x32xf32> to vector<64x32xf32>
    %390 = arith.truncf %389 : vector<64x32xf32> to vector<64x32xbf16>
    %cst_137 = arith.constant dense<0.000000e+00> : vector<64x128xf32>
    %391 = tpu.matmul %390, %386, %cst_137 {dimension_numbers = #tpu.dot_dimension_numbers<[1], [0], [0], [1], [0, 0, 1, 1], [], []>} : vector<64x32xbf16>, vector<32x128xbf16>, vector<64x128xf32> -> vector<64x128xf32>
    %c0_138 = arith.constant 0 : index
    %c0_139 = arith.constant 0 : index
    %392 = vector.load %arg9[%c0_138, %c0_139] : memref<1x128xf32, #tpu.memory_space<vmem>>, vector<1x128xf32>
    %393 = vector.broadcast %392 : vector<1x128xf32> to vector<64x128xf32>
    %394 = arith.addf %391, %393 : vector<64x128xf32>
    %395 = vector.shape_cast %394 : vector<64x128xf32> to vector<8x8x128xf32>
    %c0_140 = arith.constant 0 : index
    %c0_141 = arith.constant 0 : index
    %c0_142 = arith.constant 0 : index
    %396 = vector.load %arg15[%c0_140, %c0_141, %c0_142] : memref<8x8x128xf32, #tpu.memory_space<vmem>>, vector<8x8x128xf32>
    tpu.vector_store %arg15[%c0_140, %c0_141, %c0_142], %395 {strides = array<i32>} : memref<8x8x128xf32, #tpu.memory_space<vmem>>, vector<8x8x128xf32>,
    %c0_143 = arith.constant 0 : index
    %c0_144 = arith.constant 0 : index
    %397 = vector.load %arg10[%c0_143, %c0_144] : memref<1x32xf32, #tpu.memory_space<vmem>>, vector<1x32xf32>
    %398 = vector.shape_cast %397 : vector<1x32xf32> to vector<1x32xf32>
    %399 = vector.broadcast %398 : vector<1x32xf32> to vector<8x32xf32>
    %c0_145 = arith.constant 0 : index
    %c0_146 = arith.constant 0 : index
    %400 = vector.load %arg11[%c0_145, %c0_146] : memref<1x32xf32, #tpu.memory_space<vmem>>, vector<1x32xf32>
    %401 = vector.shape_cast %400 : vector<1x32xf32> to vector<1x32xf32>
    %402 = vector.broadcast %401 : vector<1x32xf32> to vector<8x32xf32>
    %cst_147 = arith.constant 0.000000e+00 : f32
    %403 = vector.broadcast %cst_147 : f32 to vector<8x32xf32>
    %cst_148 = arith.constant 0.000000e+00 : f32
    %404 = vector.broadcast %cst_148 : f32 to vector<8x32xf32>
    %c0_149 = arith.constant 0 : index
    %c0_150 = arith.constant 0 : index
    %c0_151 = arith.constant 0 : index
    %405 = vector.load %arg15[%c0_149, %c0_150, %c0_151] : memref<8x8x128xf32, #tpu.memory_space<vmem>>, vector<1x8x128xf32>
    %406 = vector.shape_cast %405 : vector<1x8x128xf32> to vector<8x128xf32>
    %407 = arith.truncf %403 : vector<8x32xf32> to vector<8x32xbf16>
    %cst_152 = arith.constant dense<0.000000e+00> : vector<8x128xf32>
    %408 = tpu.matmul %407, %387, %cst_152 {dimension_numbers = #tpu.dot_dimension_numbers<[1], [0], [0], [1], [0, 0, 1, 1], [], []>} : vector<8x32xbf16>, vector<32x128xbf16>, vector<8x128xf32> -> vector<8x128xf32>
    %409 = arith.addf %406, %408 : vector<8x128xf32>
    %410 = arith.negf %409 : vector<8x128xf32>
    %411 = math.exp %410 : vector<8x128xf32>
    %cst_153 = arith.constant 1.000000e+00 : f32
    %412 = vector.broadcast %cst_153 : f32 to vector<8x128xf32>
    %413 = arith.addf %412, %411 : vector<8x128xf32>
    %414 = arith.divf %412, %413 : vector<8x128xf32>
    %415 = vector.extract_strided_slice %414 {offsets = [0, 0], sizes = [8, 32], strides = [1, 1]} : vector<8x128xf32> to vector<8x32xf32>
    %416 = vector.extract_strided_slice %414 {offsets = [0, 32], sizes = [8, 32], strides = [1, 1]} : vector<8x128xf32> to vector<8x32xf32>
    %417 = vector.extract_strided_slice %414 {offsets = [0, 64], sizes = [8, 32], strides = [1, 1]} : vector<8x128xf32> to vector<8x32xf32>
    %cst_154 = arith.constant 2.000000e+00 : f32
    %418 = vector.broadcast %cst_154 : f32 to vector<8x32xf32>
    %419 = arith.mulf %418, %417 : vector<8x32xf32>
    %cst_155 = arith.constant 1.000000e+00 : f32
    %420 = vector.broadcast %cst_155 : f32 to vector<8x32xf32>
    %421 = arith.subf %419, %420 : vector<8x32xf32>
    %422 = vector.extract_strided_slice %414 {offsets = [0, 96], sizes = [8, 32], strides = [1, 1]} : vector<8x128xf32> to vector<8x32xf32>
    %423 = arith.mulf %416, %404 : vector<8x32xf32>
    %424 = arith.mulf %415, %421 : vector<8x32xf32>
    %425 = arith.addf %423, %424 : vector<8x32xf32>
    %426 = math.tanh %425 : vector<8x32xf32>
    %427 = arith.mulf %422, %426 : vector<8x32xf32>
    %cst_156 = arith.constant dense<0.000000e+00> : vector<8xf32>
    %428 = vector.multi_reduction <add>, %427, %cst_156 [1] : vector<8x32xf32> to vector<8xf32>
    %429 = vector.shape_cast %428 : vector<8xf32> to vector<8x1xf32>
    %430 = arith.mulf %427, %427 : vector<8x32xf32>
    %cst_157 = arith.constant dense<0.000000e+00> : vector<8xf32>
    %431 = vector.multi_reduction <add>, %430, %cst_157 [1] : vector<8x32xf32> to vector<8xf32>
    %432 = vector.shape_cast %431 : vector<8xf32> to vector<8x1xf32>
    %cst_158 = arith.constant 3.125000e-02 : f32
    %433 = vector.broadcast %cst_158 : f32 to vector<8x1xf32>
    %434 = arith.mulf %429, %433 : vector<8x1xf32>
    %cst_159 = arith.constant 3.125000e-02 : f32
    %435 = vector.broadcast %cst_159 : f32 to vector<8x1xf32>
    %436 = arith.mulf %432, %435 : vector<8x1xf32>
    %437 = arith.mulf %434, %434 : vector<8x1xf32>
    %438 = arith.subf %436, %437 : vector<8x1xf32>
    %439 = vector.broadcast %434 : vector<8x1xf32> to vector<8x32xf32>
    %440 = arith.subf %427, %439 : vector<8x32xf32>
    %cst_160 = arith.constant 9.99999974E-6 : f32
    %441 = vector.broadcast %cst_160 : f32 to vector<8x1xf32>
    %442 = arith.addf %438, %441 : vector<8x1xf32>
    %443 = math.rsqrt %442 : vector<8x1xf32>
    %444 = vector.broadcast %443 : vector<8x1xf32> to vector<8x32xf32>
    %445 = arith.mulf %440, %444 : vector<8x32xf32>
    %446 = arith.mulf %445, %399 : vector<8x32xf32>
    %447 = arith.addf %446, %402 : vector<8x32xf32>
    %c0_161 = arith.constant 0 : index
    %c0_162 = arith.constant 0 : index
    %c0_163 = arith.constant 0 : index
    %448 = vector.load %arg16[%c0_161, %c0_162, %c0_163] : memref<8x8x32xf32, #tpu.memory_space<vmem>>, vector<1x8x32xf32>
    %449 = vector.shape_cast %448 : vector<1x8x32xf32> to vector<8x32xf32>
    %450 = vector.shape_cast %447 : vector<8x32xf32> to vector<1x8x32xf32>
    tpu.vector_store %arg16[%c0_161, %c0_162, %c0_163], %450 {strides = array<i32>} : memref<8x8x32xf32, #tpu.memory_space<vmem>>, vector<1x8x32xf32>,
    %c1_164 = arith.constant 1 : index
    %c0_165 = arith.constant 0 : index
    %c0_166 = arith.constant 0 : index
    %451 = vector.load %arg15[%c1_164, %c0_165, %c0_166] : memref<8x8x128xf32, #tpu.memory_space<vmem>>, vector<1x8x128xf32>
    %452 = vector.shape_cast %451 : vector<1x8x128xf32> to vector<8x128xf32>
    %453 = arith.truncf %427 : vector<8x32xf32> to vector<8x32xbf16>
    %cst_167 = arith.constant dense<0.000000e+00> : vector<8x128xf32>
    %454 = tpu.matmul %453, %387, %cst_167 {dimension_numbers = #tpu.dot_dimension_numbers<[1], [0], [0], [1], [0, 0, 1, 1], [], []>} : vector<8x32xbf16>, vector<32x128xbf16>, vector<8x128xf32> -> vector<8x128xf32>
    %455 = arith.addf %452, %454 : vector<8x128xf32>
    %456 = arith.negf %455 : vector<8x128xf32>
    %457 = math.exp %456 : vector<8x128xf32>
    %cst_168 = arith.constant 1.000000e+00 : f32
    %458 = vector.broadcast %cst_168 : f32 to vector<8x128xf32>
    %459 = arith.addf %458, %457 : vector<8x128xf32>
    %460 = arith.divf %458, %459 : vector<8x128xf32>
    %461 = vector.extract_strided_slice %460 {offsets = [0, 0], sizes = [8, 32], strides = [1, 1]} : vector<8x128xf32> to vector<8x32xf32>
    %462 = vector.extract_strided_slice %460 {offsets = [0, 32], sizes = [8, 32], strides = [1, 1]} : vector<8x128xf32> to vector<8x32xf32>
    %463 = vector.extract_strided_slice %460 {offsets = [0, 64], sizes = [8, 32], strides = [1, 1]} : vector<8x128xf32> to vector<8x32xf32>
    %cst_169 = arith.constant 2.000000e+00 : f32
    %464 = vector.broadcast %cst_169 : f32 to vector<8x32xf32>
    %465 = arith.mulf %464, %463 : vector<8x32xf32>
    %cst_170 = arith.constant 1.000000e+00 : f32
    %466 = vector.broadcast %cst_170 : f32 to vector<8x32xf32>
    %467 = arith.subf %465, %466 : vector<8x32xf32>
    %468 = vector.extract_strided_slice %460 {offsets = [0, 96], sizes = [8, 32], strides = [1, 1]} : vector<8x128xf32> to vector<8x32xf32>
    %469 = arith.mulf %462, %425 : vector<8x32xf32>
    %470 = arith.mulf %461, %467 : vector<8x32xf32>
    %471 = arith.addf %469, %470 : vector<8x32xf32>
    %472 = math.tanh %471 : vector<8x32xf32>
    %473 = arith.mulf %468, %472 : vector<8x32xf32>
    %cst_171 = arith.constant dense<0.000000e+00> : vector<8xf32>
    %474 = vector.multi_reduction <add>, %473, %cst_171 [1] : vector<8x32xf32> to vector<8xf32>
    %475 = vector.shape_cast %474 : vector<8xf32> to vector<8x1xf32>
    %476 = arith.mulf %473, %473 : vector<8x32xf32>
    %cst_172 = arith.constant dense<0.000000e+00> : vector<8xf32>
    %477 = vector.multi_reduction <add>, %476, %cst_172 [1] : vector<8x32xf32> to vector<8xf32>
    %478 = vector.shape_cast %477 : vector<8xf32> to vector<8x1xf32>
    %cst_173 = arith.constant 3.125000e-02 : f32
    %479 = vector.broadcast %cst_173 : f32 to vector<8x1xf32>
    %480 = arith.mulf %475, %479 : vector<8x1xf32>
    %cst_174 = arith.constant 3.125000e-02 : f32
    %481 = vector.broadcast %cst_174 : f32 to vector<8x1xf32>
    %482 = arith.mulf %478, %481 : vector<8x1xf32>
    %483 = arith.mulf %480, %480 : vector<8x1xf32>
    %484 = arith.subf %482, %483 : vector<8x1xf32>
    %485 = vector.broadcast %480 : vector<8x1xf32> to vector<8x32xf32>
    %486 = arith.subf %473, %485 : vector<8x32xf32>
    %cst_175 = arith.constant 9.99999974E-6 : f32
    %487 = vector.broadcast %cst_175 : f32 to vector<8x1xf32>
    %488 = arith.addf %484, %487 : vector<8x1xf32>
    %489 = math.rsqrt %488 : vector<8x1xf32>
    %490 = vector.broadcast %489 : vector<8x1xf32> to vector<8x32xf32>
    %491 = arith.mulf %486, %490 : vector<8x32xf32>
    %492 = arith.mulf %491, %399 : vector<8x32xf32>
    %493 = arith.addf %492, %402 : vector<8x32xf32>
    %c1_176 = arith.constant 1 : index
    %c0_177 = arith.constant 0 : index
    %c0_178 = arith.constant 0 : index
    %494 = vector.load %arg16[%c1_176, %c0_177, %c0_178] : memref<8x8x32xf32, #tpu.memory_space<vmem>>, vector<1x8x32xf32>
    %495 = vector.shape_cast %494 : vector<1x8x32xf32> to vector<8x32xf32>
    %496 = vector.shape_cast %493 : vector<8x32xf32> to vector<1x8x32xf32>
    tpu.vector_store %arg16[%c1_176, %c0_177, %c0_178], %496 {strides = array<i32>} : memref<8x8x32xf32, #tpu.memory_space<vmem>>, vector<1x8x32xf32>,
    %c2_179 = arith.constant 2 : index
    %c0_180 = arith.constant 0 : index
    %c0_181 = arith.constant 0 : index
    %497 = vector.load %arg15[%c2_179, %c0_180, %c0_181] : memref<8x8x128xf32, #tpu.memory_space<vmem>>, vector<1x8x128xf32>
    %498 = vector.shape_cast %497 : vector<1x8x128xf32> to vector<8x128xf32>
    %499 = arith.truncf %473 : vector<8x32xf32> to vector<8x32xbf16>
    %cst_182 = arith.constant dense<0.000000e+00> : vector<8x128xf32>
    %500 = tpu.matmul %499, %387, %cst_182 {dimension_numbers = #tpu.dot_dimension_numbers<[1], [0], [0], [1], [0, 0, 1, 1], [], []>} : vector<8x32xbf16>, vector<32x128xbf16>, vector<8x128xf32> -> vector<8x128xf32>
    %501 = arith.addf %498, %500 : vector<8x128xf32>
    %502 = arith.negf %501 : vector<8x128xf32>
    %503 = math.exp %502 : vector<8x128xf32>
    %cst_183 = arith.constant 1.000000e+00 : f32
    %504 = vector.broadcast %cst_183 : f32 to vector<8x128xf32>
    %505 = arith.addf %504, %503 : vector<8x128xf32>
    %506 = arith.divf %504, %505 : vector<8x128xf32>
    %507 = vector.extract_strided_slice %506 {offsets = [0, 0], sizes = [8, 32], strides = [1, 1]} : vector<8x128xf32> to vector<8x32xf32>
    %508 = vector.extract_strided_slice %506 {offsets = [0, 32], sizes = [8, 32], strides = [1, 1]} : vector<8x128xf32> to vector<8x32xf32>
    %509 = vector.extract_strided_slice %506 {offsets = [0, 64], sizes = [8, 32], strides = [1, 1]} : vector<8x128xf32> to vector<8x32xf32>
    %cst_184 = arith.constant 2.000000e+00 : f32
    %510 = vector.broadcast %cst_184 : f32 to vector<8x32xf32>
    %511 = arith.mulf %510, %509 : vector<8x32xf32>
    %cst_185 = arith.constant 1.000000e+00 : f32
    %512 = vector.broadcast %cst_185 : f32 to vector<8x32xf32>
    %513 = arith.subf %511, %512 : vector<8x32xf32>
    %514 = vector.extract_strided_slice %506 {offsets = [0, 96], sizes = [8, 32], strides = [1, 1]} : vector<8x128xf32> to vector<8x32xf32>
    %515 = arith.mulf %508, %471 : vector<8x32xf32>
    %516 = arith.mulf %507, %513 : vector<8x32xf32>
    %517 = arith.addf %515, %516 : vector<8x32xf32>
    %518 = math.tanh %517 : vector<8x32xf32>
    %519 = arith.mulf %514, %518 : vector<8x32xf32>
    %cst_186 = arith.constant dense<0.000000e+00> : vector<8xf32>
    %520 = vector.multi_reduction <add>, %519, %cst_186 [1] : vector<8x32xf32> to vector<8xf32>
    %521 = vector.shape_cast %520 : vector<8xf32> to vector<8x1xf32>
    %522 = arith.mulf %519, %519 : vector<8x32xf32>
    %cst_187 = arith.constant dense<0.000000e+00> : vector<8xf32>
    %523 = vector.multi_reduction <add>, %522, %cst_187 [1] : vector<8x32xf32> to vector<8xf32>
    %524 = vector.shape_cast %523 : vector<8xf32> to vector<8x1xf32>
    %cst_188 = arith.constant 3.125000e-02 : f32
    %525 = vector.broadcast %cst_188 : f32 to vector<8x1xf32>
    %526 = arith.mulf %521, %525 : vector<8x1xf32>
    %cst_189 = arith.constant 3.125000e-02 : f32
    %527 = vector.broadcast %cst_189 : f32 to vector<8x1xf32>
    %528 = arith.mulf %524, %527 : vector<8x1xf32>
    %529 = arith.mulf %526, %526 : vector<8x1xf32>
    %530 = arith.subf %528, %529 : vector<8x1xf32>
    %531 = vector.broadcast %526 : vector<8x1xf32> to vector<8x32xf32>
    %532 = arith.subf %519, %531 : vector<8x32xf32>
    %cst_190 = arith.constant 9.99999974E-6 : f32
    %533 = vector.broadcast %cst_190 : f32 to vector<8x1xf32>
    %534 = arith.addf %530, %533 : vector<8x1xf32>
    %535 = math.rsqrt %534 : vector<8x1xf32>
    %536 = vector.broadcast %535 : vector<8x1xf32> to vector<8x32xf32>
    %537 = arith.mulf %532, %536 : vector<8x32xf32>
    %538 = arith.mulf %537, %399 : vector<8x32xf32>
    %539 = arith.addf %538, %402 : vector<8x32xf32>
    %c2_191 = arith.constant 2 : index
    %c0_192 = arith.constant 0 : index
    %c0_193 = arith.constant 0 : index
    %540 = vector.load %arg16[%c2_191, %c0_192, %c0_193] : memref<8x8x32xf32, #tpu.memory_space<vmem>>, vector<1x8x32xf32>
    %541 = vector.shape_cast %540 : vector<1x8x32xf32> to vector<8x32xf32>
    %542 = vector.shape_cast %539 : vector<8x32xf32> to vector<1x8x32xf32>
    tpu.vector_store %arg16[%c2_191, %c0_192, %c0_193], %542 {strides = array<i32>} : memref<8x8x32xf32, #tpu.memory_space<vmem>>, vector<1x8x32xf32>,
    %c3_194 = arith.constant 3 : index
    %c0_195 = arith.constant 0 : index
    %c0_196 = arith.constant 0 : index
    %543 = vector.load %arg15[%c3_194, %c0_195, %c0_196] : memref<8x8x128xf32, #tpu.memory_space<vmem>>, vector<1x8x128xf32>
    %544 = vector.shape_cast %543 : vector<1x8x128xf32> to vector<8x128xf32>
    %545 = arith.truncf %519 : vector<8x32xf32> to vector<8x32xbf16>
    %cst_197 = arith.constant dense<0.000000e+00> : vector<8x128xf32>
    %546 = tpu.matmul %545, %387, %cst_197 {dimension_numbers = #tpu.dot_dimension_numbers<[1], [0], [0], [1], [0, 0, 1, 1], [], []>} : vector<8x32xbf16>, vector<32x128xbf16>, vector<8x128xf32> -> vector<8x128xf32>
    %547 = arith.addf %544, %546 : vector<8x128xf32>
    %548 = arith.negf %547 : vector<8x128xf32>
    %549 = math.exp %548 : vector<8x128xf32>
    %cst_198 = arith.constant 1.000000e+00 : f32
    %550 = vector.broadcast %cst_198 : f32 to vector<8x128xf32>
    %551 = arith.addf %550, %549 : vector<8x128xf32>
    %552 = arith.divf %550, %551 : vector<8x128xf32>
    %553 = vector.extract_strided_slice %552 {offsets = [0, 0], sizes = [8, 32], strides = [1, 1]} : vector<8x128xf32> to vector<8x32xf32>
    %554 = vector.extract_strided_slice %552 {offsets = [0, 32], sizes = [8, 32], strides = [1, 1]} : vector<8x128xf32> to vector<8x32xf32>
    %555 = vector.extract_strided_slice %552 {offsets = [0, 64], sizes = [8, 32], strides = [1, 1]} : vector<8x128xf32> to vector<8x32xf32>
    %cst_199 = arith.constant 2.000000e+00 : f32
    %556 = vector.broadcast %cst_199 : f32 to vector<8x32xf32>
    %557 = arith.mulf %556, %555 : vector<8x32xf32>
    %cst_200 = arith.constant 1.000000e+00 : f32
    %558 = vector.broadcast %cst_200 : f32 to vector<8x32xf32>
    %559 = arith.subf %557, %558 : vector<8x32xf32>
    %560 = vector.extract_strided_slice %552 {offsets = [0, 96], sizes = [8, 32], strides = [1, 1]} : vector<8x128xf32> to vector<8x32xf32>
    %561 = arith.mulf %554, %517 : vector<8x32xf32>
    %562 = arith.mulf %553, %559 : vector<8x32xf32>
    %563 = arith.addf %561, %562 : vector<8x32xf32>
    %564 = math.tanh %563 : vector<8x32xf32>
    %565 = arith.mulf %560, %564 : vector<8x32xf32>
    %cst_201 = arith.constant dense<0.000000e+00> : vector<8xf32>
    %566 = vector.multi_reduction <add>, %565, %cst_201 [1] : vector<8x32xf32> to vector<8xf32>
    %567 = vector.shape_cast %566 : vector<8xf32> to vector<8x1xf32>
    %568 = arith.mulf %565, %565 : vector<8x32xf32>
    %cst_202 = arith.constant dense<0.000000e+00> : vector<8xf32>
    %569 = vector.multi_reduction <add>, %568, %cst_202 [1] : vector<8x32xf32> to vector<8xf32>
    %570 = vector.shape_cast %569 : vector<8xf32> to vector<8x1xf32>
    %cst_203 = arith.constant 3.125000e-02 : f32
    %571 = vector.broadcast %cst_203 : f32 to vector<8x1xf32>
    %572 = arith.mulf %567, %571 : vector<8x1xf32>
    %cst_204 = arith.constant 3.125000e-02 : f32
    %573 = vector.broadcast %cst_204 : f32 to vector<8x1xf32>
    %574 = arith.mulf %570, %573 : vector<8x1xf32>
    %575 = arith.mulf %572, %572 : vector<8x1xf32>
    %576 = arith.subf %574, %575 : vector<8x1xf32>
    %577 = vector.broadcast %572 : vector<8x1xf32> to vector<8x32xf32>
    %578 = arith.subf %565, %577 : vector<8x32xf32>
    %cst_205 = arith.constant 9.99999974E-6 : f32
    %579 = vector.broadcast %cst_205 : f32 to vector<8x1xf32>
    %580 = arith.addf %576, %579 : vector<8x1xf32>
    %581 = math.rsqrt %580 : vector<8x1xf32>
    %582 = vector.broadcast %581 : vector<8x1xf32> to vector<8x32xf32>
    %583 = arith.mulf %578, %582 : vector<8x32xf32>
    %584 = arith.mulf %583, %399 : vector<8x32xf32>
    %585 = arith.addf %584, %402 : vector<8x32xf32>
    %c3_206 = arith.constant 3 : index
    %c0_207 = arith.constant 0 : index
    %c0_208 = arith.constant 0 : index
    %586 = vector.load %arg16[%c3_206, %c0_207, %c0_208] : memref<8x8x32xf32, #tpu.memory_space<vmem>>, vector<1x8x32xf32>
    %587 = vector.shape_cast %586 : vector<1x8x32xf32> to vector<8x32xf32>
    %588 = vector.shape_cast %585 : vector<8x32xf32> to vector<1x8x32xf32>
    tpu.vector_store %arg16[%c3_206, %c0_207, %c0_208], %588 {strides = array<i32>} : memref<8x8x32xf32, #tpu.memory_space<vmem>>, vector<1x8x32xf32>,
    %c4_209 = arith.constant 4 : index
    %c0_210 = arith.constant 0 : index
    %c0_211 = arith.constant 0 : index
    %589 = vector.load %arg15[%c4_209, %c0_210, %c0_211] : memref<8x8x128xf32, #tpu.memory_space<vmem>>, vector<1x8x128xf32>
    %590 = vector.shape_cast %589 : vector<1x8x128xf32> to vector<8x128xf32>
    %591 = arith.truncf %565 : vector<8x32xf32> to vector<8x32xbf16>
    %cst_212 = arith.constant dense<0.000000e+00> : vector<8x128xf32>
    %592 = tpu.matmul %591, %387, %cst_212 {dimension_numbers = #tpu.dot_dimension_numbers<[1], [0], [0], [1], [0, 0, 1, 1], [], []>} : vector<8x32xbf16>, vector<32x128xbf16>, vector<8x128xf32> -> vector<8x128xf32>
    %593 = arith.addf %590, %592 : vector<8x128xf32>
    %594 = arith.negf %593 : vector<8x128xf32>
    %595 = math.exp %594 : vector<8x128xf32>
    %cst_213 = arith.constant 1.000000e+00 : f32
    %596 = vector.broadcast %cst_213 : f32 to vector<8x128xf32>
    %597 = arith.addf %596, %595 : vector<8x128xf32>
    %598 = arith.divf %596, %597 : vector<8x128xf32>
    %599 = vector.extract_strided_slice %598 {offsets = [0, 0], sizes = [8, 32], strides = [1, 1]} : vector<8x128xf32> to vector<8x32xf32>
    %600 = vector.extract_strided_slice %598 {offsets = [0, 32], sizes = [8, 32], strides = [1, 1]} : vector<8x128xf32> to vector<8x32xf32>
    %601 = vector.extract_strided_slice %598 {offsets = [0, 64], sizes = [8, 32], strides = [1, 1]} : vector<8x128xf32> to vector<8x32xf32>
    %cst_214 = arith.constant 2.000000e+00 : f32
    %602 = vector.broadcast %cst_214 : f32 to vector<8x32xf32>
    %603 = arith.mulf %602, %601 : vector<8x32xf32>
    %cst_215 = arith.constant 1.000000e+00 : f32
    %604 = vector.broadcast %cst_215 : f32 to vector<8x32xf32>
    %605 = arith.subf %603, %604 : vector<8x32xf32>
    %606 = vector.extract_strided_slice %598 {offsets = [0, 96], sizes = [8, 32], strides = [1, 1]} : vector<8x128xf32> to vector<8x32xf32>
    %607 = arith.mulf %600, %563 : vector<8x32xf32>
    %608 = arith.mulf %599, %605 : vector<8x32xf32>
    %609 = arith.addf %607, %608 : vector<8x32xf32>
    %610 = math.tanh %609 : vector<8x32xf32>
    %611 = arith.mulf %606, %610 : vector<8x32xf32>
    %cst_216 = arith.constant dense<0.000000e+00> : vector<8xf32>
    %612 = vector.multi_reduction <add>, %611, %cst_216 [1] : vector<8x32xf32> to vector<8xf32>
    %613 = vector.shape_cast %612 : vector<8xf32> to vector<8x1xf32>
    %614 = arith.mulf %611, %611 : vector<8x32xf32>
    %cst_217 = arith.constant dense<0.000000e+00> : vector<8xf32>
    %615 = vector.multi_reduction <add>, %614, %cst_217 [1] : vector<8x32xf32> to vector<8xf32>
    %616 = vector.shape_cast %615 : vector<8xf32> to vector<8x1xf32>
    %cst_218 = arith.constant 3.125000e-02 : f32
    %617 = vector.broadcast %cst_218 : f32 to vector<8x1xf32>
    %618 = arith.mulf %613, %617 : vector<8x1xf32>
    %cst_219 = arith.constant 3.125000e-02 : f32
    %619 = vector.broadcast %cst_219 : f32 to vector<8x1xf32>
    %620 = arith.mulf %616, %619 : vector<8x1xf32>
    %621 = arith.mulf %618, %618 : vector<8x1xf32>
    %622 = arith.subf %620, %621 : vector<8x1xf32>
    %623 = vector.broadcast %618 : vector<8x1xf32> to vector<8x32xf32>
    %624 = arith.subf %611, %623 : vector<8x32xf32>
    %cst_220 = arith.constant 9.99999974E-6 : f32
    %625 = vector.broadcast %cst_220 : f32 to vector<8x1xf32>
    %626 = arith.addf %622, %625 : vector<8x1xf32>
    %627 = math.rsqrt %626 : vector<8x1xf32>
    %628 = vector.broadcast %627 : vector<8x1xf32> to vector<8x32xf32>
    %629 = arith.mulf %624, %628 : vector<8x32xf32>
    %630 = arith.mulf %629, %399 : vector<8x32xf32>
    %631 = arith.addf %630, %402 : vector<8x32xf32>
    %c4_221 = arith.constant 4 : index
    %c0_222 = arith.constant 0 : index
    %c0_223 = arith.constant 0 : index
    %632 = vector.load %arg16[%c4_221, %c0_222, %c0_223] : memref<8x8x32xf32, #tpu.memory_space<vmem>>, vector<1x8x32xf32>
    %633 = vector.shape_cast %632 : vector<1x8x32xf32> to vector<8x32xf32>
    %634 = vector.shape_cast %631 : vector<8x32xf32> to vector<1x8x32xf32>
    tpu.vector_store %arg16[%c4_221, %c0_222, %c0_223], %634 {strides = array<i32>} : memref<8x8x32xf32, #tpu.memory_space<vmem>>, vector<1x8x32xf32>,
    %c5_224 = arith.constant 5 : index
    %c0_225 = arith.constant 0 : index
    %c0_226 = arith.constant 0 : index
    %635 = vector.load %arg15[%c5_224, %c0_225, %c0_226] : memref<8x8x128xf32, #tpu.memory_space<vmem>>, vector<1x8x128xf32>
    %636 = vector.shape_cast %635 : vector<1x8x128xf32> to vector<8x128xf32>
    %637 = arith.truncf %611 : vector<8x32xf32> to vector<8x32xbf16>
    %cst_227 = arith.constant dense<0.000000e+00> : vector<8x128xf32>
    %638 = tpu.matmul %637, %387, %cst_227 {dimension_numbers = #tpu.dot_dimension_numbers<[1], [0], [0], [1], [0, 0, 1, 1], [], []>} : vector<8x32xbf16>, vector<32x128xbf16>, vector<8x128xf32> -> vector<8x128xf32>
    %639 = arith.addf %636, %638 : vector<8x128xf32>
    %640 = arith.negf %639 : vector<8x128xf32>
    %641 = math.exp %640 : vector<8x128xf32>
    %cst_228 = arith.constant 1.000000e+00 : f32
    %642 = vector.broadcast %cst_228 : f32 to vector<8x128xf32>
    %643 = arith.addf %642, %641 : vector<8x128xf32>
    %644 = arith.divf %642, %643 : vector<8x128xf32>
    %645 = vector.extract_strided_slice %644 {offsets = [0, 0], sizes = [8, 32], strides = [1, 1]} : vector<8x128xf32> to vector<8x32xf32>
    %646 = vector.extract_strided_slice %644 {offsets = [0, 32], sizes = [8, 32], strides = [1, 1]} : vector<8x128xf32> to vector<8x32xf32>
    %647 = vector.extract_strided_slice %644 {offsets = [0, 64], sizes = [8, 32], strides = [1, 1]} : vector<8x128xf32> to vector<8x32xf32>
    %cst_229 = arith.constant 2.000000e+00 : f32
    %648 = vector.broadcast %cst_229 : f32 to vector<8x32xf32>
    %649 = arith.mulf %648, %647 : vector<8x32xf32>
    %cst_230 = arith.constant 1.000000e+00 : f32
    %650 = vector.broadcast %cst_230 : f32 to vector<8x32xf32>
    %651 = arith.subf %649, %650 : vector<8x32xf32>
    %652 = vector.extract_strided_slice %644 {offsets = [0, 96], sizes = [8, 32], strides = [1, 1]} : vector<8x128xf32> to vector<8x32xf32>
    %653 = arith.mulf %646, %609 : vector<8x32xf32>
    %654 = arith.mulf %645, %651 : vector<8x32xf32>
    %655 = arith.addf %653, %654 : vector<8x32xf32>
    %656 = math.tanh %655 : vector<8x32xf32>
    %657 = arith.mulf %652, %656 : vector<8x32xf32>
    %cst_231 = arith.constant dense<0.000000e+00> : vector<8xf32>
    %658 = vector.multi_reduction <add>, %657, %cst_231 [1] : vector<8x32xf32> to vector<8xf32>
    %659 = vector.shape_cast %658 : vector<8xf32> to vector<8x1xf32>
    %660 = arith.mulf %657, %657 : vector<8x32xf32>
    %cst_232 = arith.constant dense<0.000000e+00> : vector<8xf32>
    %661 = vector.multi_reduction <add>, %660, %cst_232 [1] : vector<8x32xf32> to vector<8xf32>
    %662 = vector.shape_cast %661 : vector<8xf32> to vector<8x1xf32>
    %cst_233 = arith.constant 3.125000e-02 : f32
    %663 = vector.broadcast %cst_233 : f32 to vector<8x1xf32>
    %664 = arith.mulf %659, %663 : vector<8x1xf32>
    %cst_234 = arith.constant 3.125000e-02 : f32
    %665 = vector.broadcast %cst_234 : f32 to vector<8x1xf32>
    %666 = arith.mulf %662, %665 : vector<8x1xf32>
    %667 = arith.mulf %664, %664 : vector<8x1xf32>
    %668 = arith.subf %666, %667 : vector<8x1xf32>
    %669 = vector.broadcast %664 : vector<8x1xf32> to vector<8x32xf32>
    %670 = arith.subf %657, %669 : vector<8x32xf32>
    %cst_235 = arith.constant 9.99999974E-6 : f32
    %671 = vector.broadcast %cst_235 : f32 to vector<8x1xf32>
    %672 = arith.addf %668, %671 : vector<8x1xf32>
    %673 = math.rsqrt %672 : vector<8x1xf32>
    %674 = vector.broadcast %673 : vector<8x1xf32> to vector<8x32xf32>
    %675 = arith.mulf %670, %674 : vector<8x32xf32>
    %676 = arith.mulf %675, %399 : vector<8x32xf32>
    %677 = arith.addf %676, %402 : vector<8x32xf32>
    %c5_236 = arith.constant 5 : index
    %c0_237 = arith.constant 0 : index
    %c0_238 = arith.constant 0 : index
    %678 = vector.load %arg16[%c5_236, %c0_237, %c0_238] : memref<8x8x32xf32, #tpu.memory_space<vmem>>, vector<1x8x32xf32>
    %679 = vector.shape_cast %678 : vector<1x8x32xf32> to vector<8x32xf32>
    %680 = vector.shape_cast %677 : vector<8x32xf32> to vector<1x8x32xf32>
    tpu.vector_store %arg16[%c5_236, %c0_237, %c0_238], %680 {strides = array<i32>} : memref<8x8x32xf32, #tpu.memory_space<vmem>>, vector<1x8x32xf32>,
    %c6_239 = arith.constant 6 : index
    %c0_240 = arith.constant 0 : index
    %c0_241 = arith.constant 0 : index
    %681 = vector.load %arg15[%c6_239, %c0_240, %c0_241] : memref<8x8x128xf32, #tpu.memory_space<vmem>>, vector<1x8x128xf32>
    %682 = vector.shape_cast %681 : vector<1x8x128xf32> to vector<8x128xf32>
    %683 = arith.truncf %657 : vector<8x32xf32> to vector<8x32xbf16>
    %cst_242 = arith.constant dense<0.000000e+00> : vector<8x128xf32>
    %684 = tpu.matmul %683, %387, %cst_242 {dimension_numbers = #tpu.dot_dimension_numbers<[1], [0], [0], [1], [0, 0, 1, 1], [], []>} : vector<8x32xbf16>, vector<32x128xbf16>, vector<8x128xf32> -> vector<8x128xf32>
    %685 = arith.addf %682, %684 : vector<8x128xf32>
    %686 = arith.negf %685 : vector<8x128xf32>
    %687 = math.exp %686 : vector<8x128xf32>
    %cst_243 = arith.constant 1.000000e+00 : f32
    %688 = vector.broadcast %cst_243 : f32 to vector<8x128xf32>
    %689 = arith.addf %688, %687 : vector<8x128xf32>
    %690 = arith.divf %688, %689 : vector<8x128xf32>
    %691 = vector.extract_strided_slice %690 {offsets = [0, 0], sizes = [8, 32], strides = [1, 1]} : vector<8x128xf32> to vector<8x32xf32>
    %692 = vector.extract_strided_slice %690 {offsets = [0, 32], sizes = [8, 32], strides = [1, 1]} : vector<8x128xf32> to vector<8x32xf32>
    %693 = vector.extract_strided_slice %690 {offsets = [0, 64], sizes = [8, 32], strides = [1, 1]} : vector<8x128xf32> to vector<8x32xf32>
    %cst_244 = arith.constant 2.000000e+00 : f32
    %694 = vector.broadcast %cst_244 : f32 to vector<8x32xf32>
    %695 = arith.mulf %694, %693 : vector<8x32xf32>
    %cst_245 = arith.constant 1.000000e+00 : f32
    %696 = vector.broadcast %cst_245 : f32 to vector<8x32xf32>
    %697 = arith.subf %695, %696 : vector<8x32xf32>
    %698 = vector.extract_strided_slice %690 {offsets = [0, 96], sizes = [8, 32], strides = [1, 1]} : vector<8x128xf32> to vector<8x32xf32>
    %699 = arith.mulf %692, %655 : vector<8x32xf32>
    %700 = arith.mulf %691, %697 : vector<8x32xf32>
    %701 = arith.addf %699, %700 : vector<8x32xf32>
    %702 = math.tanh %701 : vector<8x32xf32>
    %703 = arith.mulf %698, %702 : vector<8x32xf32>
    %cst_246 = arith.constant dense<0.000000e+00> : vector<8xf32>
    %704 = vector.multi_reduction <add>, %703, %cst_246 [1] : vector<8x32xf32> to vector<8xf32>
    %705 = vector.shape_cast %704 : vector<8xf32> to vector<8x1xf32>
    %706 = arith.mulf %703, %703 : vector<8x32xf32>
    %cst_247 = arith.constant dense<0.000000e+00> : vector<8xf32>
    %707 = vector.multi_reduction <add>, %706, %cst_247 [1] : vector<8x32xf32> to vector<8xf32>
    %708 = vector.shape_cast %707 : vector<8xf32> to vector<8x1xf32>
    %cst_248 = arith.constant 3.125000e-02 : f32
    %709 = vector.broadcast %cst_248 : f32 to vector<8x1xf32>
    %710 = arith.mulf %705, %709 : vector<8x1xf32>
    %cst_249 = arith.constant 3.125000e-02 : f32
    %711 = vector.broadcast %cst_249 : f32 to vector<8x1xf32>
    %712 = arith.mulf %708, %711 : vector<8x1xf32>
    %713 = arith.mulf %710, %710 : vector<8x1xf32>
    %714 = arith.subf %712, %713 : vector<8x1xf32>
    %715 = vector.broadcast %710 : vector<8x1xf32> to vector<8x32xf32>
    %716 = arith.subf %703, %715 : vector<8x32xf32>
    %cst_250 = arith.constant 9.99999974E-6 : f32
    %717 = vector.broadcast %cst_250 : f32 to vector<8x1xf32>
    %718 = arith.addf %714, %717 : vector<8x1xf32>
    %719 = math.rsqrt %718 : vector<8x1xf32>
    %720 = vector.broadcast %719 : vector<8x1xf32> to vector<8x32xf32>
    %721 = arith.mulf %716, %720 : vector<8x32xf32>
    %722 = arith.mulf %721, %399 : vector<8x32xf32>
    %723 = arith.addf %722, %402 : vector<8x32xf32>
    %c6_251 = arith.constant 6 : index
    %c0_252 = arith.constant 0 : index
    %c0_253 = arith.constant 0 : index
    %724 = vector.load %arg16[%c6_251, %c0_252, %c0_253] : memref<8x8x32xf32, #tpu.memory_space<vmem>>, vector<1x8x32xf32>
    %725 = vector.shape_cast %724 : vector<1x8x32xf32> to vector<8x32xf32>
    %726 = vector.shape_cast %723 : vector<8x32xf32> to vector<1x8x32xf32>
    tpu.vector_store %arg16[%c6_251, %c0_252, %c0_253], %726 {strides = array<i32>} : memref<8x8x32xf32, #tpu.memory_space<vmem>>, vector<1x8x32xf32>,
    %c7_254 = arith.constant 7 : index
    %c0_255 = arith.constant 0 : index
    %c0_256 = arith.constant 0 : index
    %727 = vector.load %arg15[%c7_254, %c0_255, %c0_256] : memref<8x8x128xf32, #tpu.memory_space<vmem>>, vector<1x8x128xf32>
    %728 = vector.shape_cast %727 : vector<1x8x128xf32> to vector<8x128xf32>
    %729 = arith.truncf %703 : vector<8x32xf32> to vector<8x32xbf16>
    %cst_257 = arith.constant dense<0.000000e+00> : vector<8x128xf32>
    %730 = tpu.matmul %729, %387, %cst_257 {dimension_numbers = #tpu.dot_dimension_numbers<[1], [0], [0], [1], [0, 0, 1, 1], [], []>} : vector<8x32xbf16>, vector<32x128xbf16>, vector<8x128xf32> -> vector<8x128xf32>
    %731 = arith.addf %728, %730 : vector<8x128xf32>
    %732 = arith.negf %731 : vector<8x128xf32>
    %733 = math.exp %732 : vector<8x128xf32>
    %cst_258 = arith.constant 1.000000e+00 : f32
    %734 = vector.broadcast %cst_258 : f32 to vector<8x128xf32>
    %735 = arith.addf %734, %733 : vector<8x128xf32>
    %736 = arith.divf %734, %735 : vector<8x128xf32>
    %737 = vector.extract_strided_slice %736 {offsets = [0, 0], sizes = [8, 32], strides = [1, 1]} : vector<8x128xf32> to vector<8x32xf32>
    %738 = vector.extract_strided_slice %736 {offsets = [0, 32], sizes = [8, 32], strides = [1, 1]} : vector<8x128xf32> to vector<8x32xf32>
    %739 = vector.extract_strided_slice %736 {offsets = [0, 64], sizes = [8, 32], strides = [1, 1]} : vector<8x128xf32> to vector<8x32xf32>
    %cst_259 = arith.constant 2.000000e+00 : f32
    %740 = vector.broadcast %cst_259 : f32 to vector<8x32xf32>
    %741 = arith.mulf %740, %739 : vector<8x32xf32>
    %cst_260 = arith.constant 1.000000e+00 : f32
    %742 = vector.broadcast %cst_260 : f32 to vector<8x32xf32>
    %743 = arith.subf %741, %742 : vector<8x32xf32>
    %744 = vector.extract_strided_slice %736 {offsets = [0, 96], sizes = [8, 32], strides = [1, 1]} : vector<8x128xf32> to vector<8x32xf32>
    %745 = arith.mulf %738, %701 : vector<8x32xf32>
    %746 = arith.mulf %737, %743 : vector<8x32xf32>
    %747 = arith.addf %745, %746 : vector<8x32xf32>
    %748 = math.tanh %747 : vector<8x32xf32>
    %749 = arith.mulf %744, %748 : vector<8x32xf32>
    %cst_261 = arith.constant dense<0.000000e+00> : vector<8xf32>
    %750 = vector.multi_reduction <add>, %749, %cst_261 [1] : vector<8x32xf32> to vector<8xf32>
    %751 = vector.shape_cast %750 : vector<8xf32> to vector<8x1xf32>
    %752 = arith.mulf %749, %749 : vector<8x32xf32>
    %cst_262 = arith.constant dense<0.000000e+00> : vector<8xf32>
    %753 = vector.multi_reduction <add>, %752, %cst_262 [1] : vector<8x32xf32> to vector<8xf32>
    %754 = vector.shape_cast %753 : vector<8xf32> to vector<8x1xf32>
    %cst_263 = arith.constant 3.125000e-02 : f32
    %755 = vector.broadcast %cst_263 : f32 to vector<8x1xf32>
    %756 = arith.mulf %751, %755 : vector<8x1xf32>
    %cst_264 = arith.constant 3.125000e-02 : f32
    %757 = vector.broadcast %cst_264 : f32 to vector<8x1xf32>
    %758 = arith.mulf %754, %757 : vector<8x1xf32>
    %759 = arith.mulf %756, %756 : vector<8x1xf32>
    %760 = arith.subf %758, %759 : vector<8x1xf32>
    %761 = vector.broadcast %756 : vector<8x1xf32> to vector<8x32xf32>
    %762 = arith.subf %749, %761 : vector<8x32xf32>
    %cst_265 = arith.constant 9.99999974E-6 : f32
    %763 = vector.broadcast %cst_265 : f32 to vector<8x1xf32>
    %764 = arith.addf %760, %763 : vector<8x1xf32>
    %765 = math.rsqrt %764 : vector<8x1xf32>
    %766 = vector.broadcast %765 : vector<8x1xf32> to vector<8x32xf32>
    %767 = arith.mulf %762, %766 : vector<8x32xf32>
    %768 = arith.mulf %767, %399 : vector<8x32xf32>
    %769 = arith.addf %768, %402 : vector<8x32xf32>
    %c7_266 = arith.constant 7 : index
    %c0_267 = arith.constant 0 : index
    %c0_268 = arith.constant 0 : index
    %770 = vector.load %arg16[%c7_266, %c0_267, %c0_268] : memref<8x8x32xf32, #tpu.memory_space<vmem>>, vector<1x8x32xf32>
    %771 = vector.shape_cast %770 : vector<1x8x32xf32> to vector<8x32xf32>
    %772 = vector.shape_cast %769 : vector<8x32xf32> to vector<1x8x32xf32>
    tpu.vector_store %arg16[%c7_266, %c0_267, %c0_268], %772 {strides = array<i32>} : memref<8x8x32xf32, #tpu.memory_space<vmem>>, vector<1x8x32xf32>,
    %c0_269 = arith.constant 0 : index
    %c0_270 = arith.constant 0 : index
    %773 = vector.load %arg12[%c0_269, %c0_270] : memref<32x256xbf16, #tpu.memory_space<vmem>>, vector<32x256xbf16>
    %c0_271 = arith.constant 0 : index
    %c0_272 = arith.constant 0 : index
    %c0_273 = arith.constant 0 : index
    %774 = vector.load %arg16[%c0_271, %c0_272, %c0_273] : memref<8x8x32xf32, #tpu.memory_space<vmem>>, vector<8x8x32xf32>
    %775 = vector.shape_cast %774 : vector<8x8x32xf32> to vector<64x32xf32>
    %776 = arith.truncf %775 : vector<64x32xf32> to vector<64x32xbf16>
    %cst_274 = arith.constant dense<0.000000e+00> : vector<64x256xf32>
    %777 = tpu.matmul %776, %773, %cst_274 {dimension_numbers = #tpu.dot_dimension_numbers<[1], [0], [0], [1], [0, 0, 1, 1], [], []>} : vector<64x32xbf16>, vector<32x256xbf16>, vector<64x256xf32> -> vector<64x256xf32>
    %c0_275 = arith.constant 0 : index
    %c0_276 = arith.constant 0 : index
    %778 = vector.load %arg13[%c0_275, %c0_276] : memref<1x256xf32, #tpu.memory_space<vmem>>, vector<1x256xf32>
    %779 = vector.broadcast %778 : vector<1x256xf32> to vector<64x256xf32>
    %780 = arith.addf %777, %779 : vector<64x256xf32>
    %781 = vector.shape_cast %780 : vector<64x256xf32> to vector<8x8x256xf32>
    %c0_277 = arith.constant 0 : index
    %c0_278 = arith.constant 0 : index
    %c0_279 = arith.constant 0 : index
    %782 = vector.load %arg14[%c0_277, %c0_278, %c0_279] : memref<8x8x256xf32, #tpu.memory_space<vmem>>, vector<8x8x256xf32>
    tpu.vector_store %arg14[%c0_277, %c0_278, %c0_279], %781 {strides = array<i32>} : memref<8x8x256xf32, #tpu.memory_space<vmem>>, vector<8x8x256xf32>,
    return
  }
  func.func @transform_0(%arg0: i32) -> (i32, i32, i32) {
    %c0_i32 = arith.constant 0 : i32
    %c0_i32_0 = arith.constant 0 : i32
    %c0_i32_1 = arith.constant 0 : i32
    return %c0_i32, %arg0, %c0_i32_0 : i32, i32, i32
  }
  func.func @transform_1(%arg0: i32) -> (i32, i32) {
    %c0_i32 = arith.constant 0 : i32
    %c0_i32_0 = arith.constant 0 : i32
    %c0_i32_1 = arith.constant 0 : i32
    return %c0_i32, %c0_i32_0 : i32, i32
  }
  func.func @transform_2(%arg0: i32) -> (i32, i32) {
    %c0_i32 = arith.constant 0 : i32
    %c0_i32_0 = arith.constant 0 : i32
    %c0_i32_1 = arith.constant 0 : i32
    return %c0_i32, %c0_i32_0 : i32, i32
  }
  func.func @transform_3(%arg0: i32) -> (i32, i32) {
    %c0_i32 = arith.constant 0 : i32
    %c0_i32_0 = arith.constant 0 : i32
    %c0_i32_1 = arith.constant 0 : i32
    return %c0_i32, %c0_i32_0 : i32, i32
  }
  func.func @transform_4(%arg0: i32) -> (i32, i32) {
    %c0_i32 = arith.constant 0 : i32
    %c0_i32_0 = arith.constant 0 : i32
    %c0_i32_1 = arith.constant 0 : i32
    return %c0_i32, %c0_i32_0 : i32, i32
  }
  func.func @transform_5(%arg0: i32) -> (i32, i32) {
    %c0_i32 = arith.constant 0 : i32
    %c0_i32_0 = arith.constant 0 : i32
    %c0_i32_1 = arith.constant 0 : i32
    return %c0_i32, %c0_i32_0 : i32, i32
  }
  func.func @transform_6(%arg0: i32) -> (i32, i32) {
    %c0_i32 = arith.constant 0 : i32
    %c0_i32_0 = arith.constant 0 : i32
    %c0_i32_1 = arith.constant 0 : i32
    return %c0_i32, %c0_i32_0 : i32, i32
  }
  func.func @transform_7(%arg0: i32) -> (i32, i32) {
    %c0_i32 = arith.constant 0 : i32
    %c0_i32_0 = arith.constant 0 : i32
    %c0_i32_1 = arith.constant 0 : i32
    return %c0_i32, %c0_i32_0 : i32, i32
  }
  func.func @transform_8(%arg0: i32) -> (i32, i32) {
    %c0_i32 = arith.constant 0 : i32
    %c0_i32_0 = arith.constant 0 : i32
    %c0_i32_1 = arith.constant 0 : i32
    return %c0_i32, %c0_i32_0 : i32, i32
  }
  func.func @transform_9(%arg0: i32) -> (i32, i32) {
    %c0_i32 = arith.constant 0 : i32
    %c0_i32_0 = arith.constant 0 : i32
    %c0_i32_1 = arith.constant 0 : i32
    return %c0_i32, %c0_i32_0 : i32, i32
  }
  func.func @transform_10(%arg0: i32) -> (i32, i32) {
    %c0_i32 = arith.constant 0 : i32
    %c0_i32_0 = arith.constant 0 : i32
    %c0_i32_1 = arith.constant 0 : i32
    return %c0_i32, %c0_i32_0 : i32, i32
  }
  func.func @transform_11(%arg0: i32) -> (i32, i32) {
    %c0_i32 = arith.constant 0 : i32
    %c0_i32_0 = arith.constant 0 : i32
    %c0_i32_1 = arith.constant 0 : i32
    return %c0_i32, %c0_i32_0 : i32, i32
  }
  func.func @transform_12(%arg0: i32) -> (i32, i32) {
    %c0_i32 = arith.constant 0 : i32
    %c0_i32_0 = arith.constant 0 : i32
    %c0_i32_1 = arith.constant 0 : i32
    return %c0_i32, %c0_i32_0 : i32, i32
  }
  func.func @transform_13(%arg0: i32) -> (i32, i32, i32) {
    %c0_i32 = arith.constant 0 : i32
    %c0_i32_0 = arith.constant 0 : i32
    %c0_i32_1 = arith.constant 0 : i32
    return %c0_i32, %arg0, %c0_i32_0 : i32, i32, i32
  }
}

module attributes {stable_mosaic.version = 11 : i64} {
  func.func @teledal_kernel(%arg0: i32, %arg1: memref<8x8x32xbf16, #tpu.memory_space<vmem>>, %arg2: memref<32x128xbf16, #tpu.memory_space<vmem>>, %arg3: memref<32x128xbf16, #tpu.memory_space<vmem>>, %arg4: memref<1x128xf32, #tpu.memory_space<vmem>>, %arg5: memref<1x32xf32, #tpu.memory_space<vmem>>, %arg6: memref<1x32xf32, #tpu.memory_space<vmem>>, %arg7: memref<32x128xbf16, #tpu.memory_space<vmem>>, %arg8: memref<32x128xbf16, #tpu.memory_space<vmem>>, %arg9: memref<1x128xf32, #tpu.memory_space<vmem>>, %arg10: memref<1x32xf32, #tpu.memory_space<vmem>>, %arg11: memref<1x32xf32, #tpu.memory_space<vmem>>, %arg12: memref<32x256xbf16, #tpu.memory_space<vmem>>, %arg13: memref<1x256xf32, #tpu.memory_space<vmem>>, %arg14: memref<8x8x256xf32, #tpu.memory_space<vmem>>, %arg15: memref<8x8x128xf32, #tpu.memory_space<vmem>>, %arg16: memref<8x8x32xf32, #tpu.memory_space<vmem>>) attributes {dimension_semantics = [#tpu.dimension_semantics<parallel>], iteration_bounds = array<i64: 2>, scalar_prefetch = 0 : i64, scratch_operands = 2 : i64, tpu.core_type = #tpu.core_type<tc>, window_params = [{transform_indices = @transform_0, window_bounds = array<i64: 8, 8, 32>}, {pipeline_mode = #tpu.pipeline_mode<synchronous>, transform_indices = @transform_1, window_bounds = array<i64: 32, 128>}, {pipeline_mode = #tpu.pipeline_mode<synchronous>, transform_indices = @transform_2, window_bounds = array<i64: 32, 128>}, {pipeline_mode = #tpu.pipeline_mode<synchronous>, transform_indices = @transform_3, window_bounds = array<i64: 1, 128>}, {pipeline_mode = #tpu.pipeline_mode<synchronous>, transform_indices = @transform_4, window_bounds = array<i64: 1, 32>}, {pipeline_mode = #tpu.pipeline_mode<synchronous>, transform_indices = @transform_5, window_bounds = array<i64: 1, 32>}, {pipeline_mode = #tpu.pipeline_mode<synchronous>, transform_indices = @transform_6, window_bounds = array<i64: 32, 128>}, {pipeline_mode = #tpu.pipeline_mode<synchronous>, transform_indices = @transform_7, window_bounds = array<i64: 32, 128>}, {pipeline_mode = #tpu.pipeline_mode<synchronous>, transform_indices = @transform_8, window_bounds = array<i64: 1, 128>}, {pipeline_mode = #tpu.pipeline_mode<synchronous>, transform_indices = @transform_9, window_bounds = array<i64: 1, 32>}, {pipeline_mode = #tpu.pipeline_mode<synchronous>, transform_indices = @transform_10, window_bounds = array<i64: 1, 32>}, {pipeline_mode = #tpu.pipeline_mode<synchronous>, transform_indices = @transform_11, window_bounds = array<i64: 32, 256>}, {pipeline_mode = #tpu.pipeline_mode<synchronous>, transform_indices = @transform_12, window_bounds = array<i64: 1, 256>}, {transform_indices = @transform_13, window_bounds = array<i64: 8, 8, 256>}]} {
    %c0 = arith.constant 0 : index
    %c0_0 = arith.constant 0 : index
    %0 = vector.load %arg2[%c0, %c0_0] : memref<32x128xbf16, #tpu.memory_space<vmem>>, vector<32x128xbf16>
    %c0_1 = arith.constant 0 : index
    %c0_2 = arith.constant 0 : index
    %1 = vector.load %arg3[%c0_1, %c0_2] : memref<32x128xbf16, #tpu.memory_space<vmem>>, vector<32x128xbf16>
    %c0_3 = arith.constant 0 : index
    %c0_4 = arith.constant 0 : index
    %c0_5 = arith.constant 0 : index
    %2 = vector.load %arg1[%c0_3, %c0_4, %c0_5] : memref<8x8x32xbf16, #tpu.memory_space<vmem>>, vector<8x8x32xbf16>
    %3 = vector.shape_cast %2 : vector<8x8x32xbf16> to vector<64x32xbf16>
    %cst = arith.constant dense<0.000000e+00> : vector<64x128xf32>
    %4 = tpu.matmul %3, %0, %cst {dimension_numbers = #tpu.dot_dimension_numbers<[1], [0], [0], [1], [0, 0, 1, 1], [], []>} : vector<64x32xbf16>, vector<32x128xbf16>, vector<64x128xf32> -> vector<64x128xf32>
    %c0_6 = arith.constant 0 : index
    %c0_7 = arith.constant 0 : index
    %5 = vector.load %arg4[%c0_6, %c0_7] : memref<1x128xf32, #tpu.memory_space<vmem>>, vector<1x128xf32>
    %6 = vector.broadcast %5 : vector<1x128xf32> to vector<64x128xf32>
    %7 = arith.addf %4, %6 : vector<64x128xf32>
    %8 = vector.shape_cast %7 : vector<64x128xf32> to vector<8x8x128xf32>
    %c0_8 = arith.constant 0 : index
    %c0_9 = arith.constant 0 : index
    %c0_10 = arith.constant 0 : index
    %9 = vector.load %arg15[%c0_8, %c0_9, %c0_10] : memref<8x8x128xf32, #tpu.memory_space<vmem>>, vector<8x8x128xf32>
    tpu.vector_store %arg15[%c0_8, %c0_9, %c0_10], %8 {strides = array<i32>} : memref<8x8x128xf32, #tpu.memory_space<vmem>>, vector<8x8x128xf32>,
    %c0_11 = arith.constant 0 : index
    %c0_12 = arith.constant 0 : index
    %10 = vector.load %arg5[%c0_11, %c0_12] : memref<1x32xf32, #tpu.memory_space<vmem>>, vector<1x32xf32>
    %11 = vector.shape_cast %10 : vector<1x32xf32> to vector<1x32xf32>
    %12 = vector.broadcast %11 : vector<1x32xf32> to vector<8x32xf32>
    %c0_13 = arith.constant 0 : index
    %c0_14 = arith.constant 0 : index
    %13 = vector.load %arg6[%c0_13, %c0_14] : memref<1x32xf32, #tpu.memory_space<vmem>>, vector<1x32xf32>
    %14 = vector.shape_cast %13 : vector<1x32xf32> to vector<1x32xf32>
    %15 = vector.broadcast %14 : vector<1x32xf32> to vector<8x32xf32>
    %cst_15 = arith.constant 0.000000e+00 : f32
    %16 = vector.broadcast %cst_15 : f32 to vector<8x32xf32>
    %cst_16 = arith.constant 0.000000e+00 : f32
    %17 = vector.broadcast %cst_16 : f32 to vector<8x32xf32>
    %c0_17 = arith.constant 0 : index
    %c0_18 = arith.constant 0 : index
    %c0_19 = arith.constant 0 : index
    %18 = vector.load %arg15[%c0_17, %c0_18, %c0_19] : memref<8x8x128xf32, #tpu.memory_space<vmem>>, vector<1x8x128xf32>
    %19 = vector.shape_cast %18 : vector<1x8x128xf32> to vector<8x128xf32>
    %20 = arith.truncf %16 : vector<8x32xf32> to vector<8x32xbf16>
    %cst_20 = arith.constant dense<0.000000e+00> : vector<8x128xf32>
    %21 = tpu.matmul %20, %1, %cst_20 {dimension_numbers = #tpu.dot_dimension_numbers<[1], [0], [0], [1], [0, 0, 1, 1], [], []>} : vector<8x32xbf16>, vector<32x128xbf16>, vector<8x128xf32> -> vector<8x128xf32>
    %22 = arith.addf %19, %21 : vector<8x128xf32>
    %23 = arith.negf %22 : vector<8x128xf32>
    %24 = math.exp %23 : vector<8x128xf32>
    %cst_21 = arith.constant 1.000000e+00 : f32
    %25 = vector.broadcast %cst_21 : f32 to vector<8x128xf32>
    %26 = arith.addf %25, %24 : vector<8x128xf32>
    %27 = arith.divf %25, %26 : vector<8x128xf32>
    %28 = vector.extract_strided_slice %27 {offsets = [0, 0], sizes = [8, 32], strides = [1, 1]} : vector<8x128xf32> to vector<8x32xf32>
    %29 = vector.extract_strided_slice %27 {offsets = [0, 32], sizes = [8, 32], strides = [1, 1]} : vector<8x128xf32> to vector<8x32xf32>
    %30 = vector.extract_strided_slice %27 {offsets = [0, 64], sizes = [8, 32], strides = [1, 1]} : vector<8x128xf32> to vector<8x32xf32>
    %cst_22 = arith.constant 2.000000e+00 : f32
    %31 = vector.broadcast %cst_22 : f32 to vector<8x32xf32>
    %32 = arith.mulf %31, %30 : vector<8x32xf32>
    %cst_23 = arith.constant 1.000000e+00 : f32
    %33 = vector.broadcast %cst_23 : f32 to vector<8x32xf32>
    %34 = arith.subf %32, %33 : vector<8x32xf32>
    %35 = vector.extract_strided_slice %27 {offsets = [0, 96], sizes = [8, 32], strides = [1, 1]} : vector<8x128xf32> to vector<8x32xf32>
    %36 = arith.mulf %29, %17 : vector<8x32xf32>
    %37 = arith.mulf %28, %34 : vector<8x32xf32>
    %38 = arith.addf %36, %37 : vector<8x32xf32>
    %39 = math.tanh %38 : vector<8x32xf32>
    %40 = arith.mulf %35, %39 : vector<8x32xf32>
    %cst_24 = arith.constant dense<0.000000e+00> : vector<8xf32>
    %41 = vector.multi_reduction <add>, %40, %cst_24 [1] : vector<8x32xf32> to vector<8xf32>
    %42 = vector.shape_cast %41 : vector<8xf32> to vector<8x1xf32>
    %43 = arith.mulf %40, %40 : vector<8x32xf32>
    %cst_25 = arith.constant dense<0.000000e+00> : vector<8xf32>
    %44 = vector.multi_reduction <add>, %43, %cst_25 [1] : vector<8x32xf32> to vector<8xf32>
    %45 = vector.shape_cast %44 : vector<8xf32> to vector<8x1xf32>
    %cst_26 = arith.constant 3.125000e-02 : f32
    %46 = vector.broadcast %cst_26 : f32 to vector<8x1xf32>
    %47 = arith.mulf %42, %46 : vector<8x1xf32>
    %cst_27 = arith.constant 3.125000e-02 : f32
    %48 = vector.broadcast %cst_27 : f32 to vector<8x1xf32>
    %49 = arith.mulf %45, %48 : vector<8x1xf32>
    %50 = arith.mulf %47, %47 : vector<8x1xf32>
    %51 = arith.subf %49, %50 : vector<8x1xf32>
    %52 = vector.broadcast %47 : vector<8x1xf32> to vector<8x32xf32>
    %53 = arith.subf %40, %52 : vector<8x32xf32>
    %cst_28 = arith.constant 9.99999974E-6 : f32
    %54 = vector.broadcast %cst_28 : f32 to vector<8x1xf32>
    %55 = arith.addf %51, %54 : vector<8x1xf32>
    %56 = math.rsqrt %55 : vector<8x1xf32>
    %57 = vector.broadcast %56 : vector<8x1xf32> to vector<8x32xf32>
    %58 = arith.mulf %53, %57 : vector<8x32xf32>
    %59 = arith.mulf %58, %12 : vector<8x32xf32>
    %60 = arith.addf %59, %15 : vector<8x32xf32>
    %c0_29 = arith.constant 0 : index
    %c0_30 = arith.constant 0 : index
    %c0_31 = arith.constant 0 : index
    %61 = vector.load %arg16[%c0_29, %c0_30, %c0_31] : memref<8x8x32xf32, #tpu.memory_space<vmem>>, vector<1x8x32xf32>
    %62 = vector.shape_cast %61 : vector<1x8x32xf32> to vector<8x32xf32>
    %63 = vector.shape_cast %60 : vector<8x32xf32> to vector<1x8x32xf32>
    tpu.vector_store %arg16[%c0_29, %c0_30, %c0_31], %63 {strides = array<i32>} : memref<8x8x32xf32, #tpu.memory_space<vmem>>, vector<1x8x32xf32>,
    %c1 = arith.constant 1 : index
    %c0_32 = arith.constant 0 : index
    %c0_33 = arith.constant 0 : index
    %64 = vector.load %arg15[%c1, %c0_32, %c0_33] : memref<8x8x128xf32, #tpu.memory_space<vmem>>, vector<1x8x128xf32>
    %65 = vector.shape_cast %64 : vector<1x8x128xf32> to vector<8x128xf32>
    %66 = arith.truncf %40 : vector<8x32xf32> to vector<8x32xbf16>
    %cst_34 = arith.constant dense<0.000000e+00> : vector<8x128xf32>
    %67 = tpu.matmul %66, %1, %cst_34 {dimension_numbers = #tpu.dot_dimension_numbers<[1], [0], [0], [1], [0, 0, 1, 1], [], []>} : vector<8x32xbf16>, vector<32x128xbf16>, vector<8x128xf32> -> vector<8x128xf32>
    %68 = arith.addf %65, %67 : vector<8x128xf32>
    %69 = arith.negf %68 : vector<8x128xf32>
    %70 = math.exp %69 : vector<8x128xf32>
    %cst_35 = arith.constant 1.000000e+00 : f32
    %71 = vector.broadcast %cst_35 : f32 to vector<8x128xf32>
    %72 = arith.addf %71, %70 : vector<8x128xf32>
    %73 = arith.divf %71, %72 : vector<8x128xf32>
    %74 = vector.extract_strided_slice %73 {offsets = [0, 0], sizes = [8, 32], strides = [1, 1]} : vector<8x128xf32> to vector<8x32xf32>
    %75 = vector.extract_strided_slice %73 {offsets = [0, 32], sizes = [8, 32], strides = [1, 1]} : vector<8x128xf32> to vector<8x32xf32>
    %76 = vector.extract_strided_slice %73 {offsets = [0, 64], sizes = [8, 32], strides = [1, 1]} : vector<8x128xf32> to vector<8x32xf32>
    %cst_36 = arith.constant 2.000000e+00 : f32
    %77 = vector.broadcast %cst_36 : f32 to vector<8x32xf32>
    %78 = arith.mulf %77, %76 : vector<8x32xf32>
    %cst_37 = arith.constant 1.000000e+00 : f32
    %79 = vector.broadcast %cst_37 : f32 to vector<8x32xf32>
    %80 = arith.subf %78, %79 : vector<8x32xf32>
    %81 = vector.extract_strided_slice %73 {offsets = [0, 96], sizes = [8, 32], strides = [1, 1]} : vector<8x128xf32> to vector<8x32xf32>
    %82 = arith.mulf %75, %38 : vector<8x32xf32>
    %83 = arith.mulf %74, %80 : vector<8x32xf32>
    %84 = arith.addf %82, %83 : vector<8x32xf32>
    %85 = math.tanh %84 : vector<8x32xf32>
    %86 = arith.mulf %81, %85 : vector<8x32xf32>
    %cst_38 = arith.constant dense<0.000000e+00> : vector<8xf32>
    %87 = vector.multi_reduction <add>, %86, %cst_38 [1] : vector<8x32xf32> to vector<8xf32>
    %88 = vector.shape_cast %87 : vector<8xf32> to vector<8x1xf32>
    %89 = arith.mulf %86, %86 : vector<8x32xf32>
    %cst_39 = arith.constant dense<0.000000e+00> : vector<8xf32>
    %90 = vector.multi_reduction <add>, %89, %cst_39 [1] : vector<8x32xf32> to vector<8xf32>
    %91 = vector.shape_cast %90 : vector<8xf32> to vector<8x1xf32>
    %cst_40 = arith.constant 3.125000e-02 : f32
    %92 = vector.broadcast %cst_40 : f32 to vector<8x1xf32>
    %93 = arith.mulf %88, %92 : vector<8x1xf32>
    %cst_41 = arith.constant 3.125000e-02 : f32
    %94 = vector.broadcast %cst_41 : f32 to vector<8x1xf32>
    %95 = arith.mulf %91, %94 : vector<8x1xf32>
    %96 = arith.mulf %93, %93 : vector<8x1xf32>
    %97 = arith.subf %95, %96 : vector<8x1xf32>
    %98 = vector.broadcast %93 : vector<8x1xf32> to vector<8x32xf32>
    %99 = arith.subf %86, %98 : vector<8x32xf32>
    %cst_42 = arith.constant 9.99999974E-6 : f32
    %100 = vector.broadcast %cst_42 : f32 to vector<8x1xf32>
    %101 = arith.addf %97, %100 : vector<8x1xf32>
    %102 = math.rsqrt %101 : vector<8x1xf32>
    %103 = vector.broadcast %102 : vector<8x1xf32> to vector<8x32xf32>
    %104 = arith.mulf %99, %103 : vector<8x32xf32>
    %105 = arith.mulf %104, %12 : vector<8x32xf32>
    %106 = arith.addf %105, %15 : vector<8x32xf32>
    %c1_43 = arith.constant 1 : index
    %c0_44 = arith.constant 0 : index
    %c0_45 = arith.constant 0 : index
    %107 = vector.load %arg16[%c1_43, %c0_44, %c0_45] : memref<8x8x32xf32, #tpu.memory_space<vmem>>, vector<1x8x32xf32>
    %108 = vector.shape_cast %107 : vector<1x8x32xf32> to vector<8x32xf32>
    %109 = vector.shape_cast %106 : vector<8x32xf32> to vector<1x8x32xf32>
    tpu.vector_store %arg16[%c1_43, %c0_44, %c0_45], %109 {strides = array<i32>} : memref<8x8x32xf32, #tpu.memory_space<vmem>>, vector<1x8x32xf32>,
    %c2 = arith.constant 2 : index
    %c0_46 = arith.constant 0 : index
    %c0_47 = arith.constant 0 : index
    %110 = vector.load %arg15[%c2, %c0_46, %c0_47] : memref<8x8x128xf32, #tpu.memory_space<vmem>>, vector<1x8x128xf32>
    %111 = vector.shape_cast %110 : vector<1x8x128xf32> to vector<8x128xf32>
    %112 = arith.truncf %86 : vector<8x32xf32> to vector<8x32xbf16>
    %cst_48 = arith.constant dense<0.000000e+00> : vector<8x128xf32>
    %113 = tpu.matmul %112, %1, %cst_48 {dimension_numbers = #tpu.dot_dimension_numbers<[1], [0], [0], [1], [0, 0, 1, 1], [], []>} : vector<8x32xbf16>, vector<32x128xbf16>, vector<8x128xf32> -> vector<8x128xf32>
    %114 = arith.addf %111, %113 : vector<8x128xf32>
    %115 = arith.negf %114 : vector<8x128xf32>
    %116 = math.exp %115 : vector<8x128xf32>
    %cst_49 = arith.constant 1.000000e+00 : f32
    %117 = vector.broadcast %cst_49 : f32 to vector<8x128xf32>
    %118 = arith.addf %117, %116 : vector<8x128xf32>
    %119 = arith.divf %117, %118 : vector<8x128xf32>
    %120 = vector.extract_strided_slice %119 {offsets = [0, 0], sizes = [8, 32], strides = [1, 1]} : vector<8x128xf32> to vector<8x32xf32>
    %121 = vector.extract_strided_slice %119 {offsets = [0, 32], sizes = [8, 32], strides = [1, 1]} : vector<8x128xf32> to vector<8x32xf32>
    %122 = vector.extract_strided_slice %119 {offsets = [0, 64], sizes = [8, 32], strides = [1, 1]} : vector<8x128xf32> to vector<8x32xf32>
    %cst_50 = arith.constant 2.000000e+00 : f32
    %123 = vector.broadcast %cst_50 : f32 to vector<8x32xf32>
    %124 = arith.mulf %123, %122 : vector<8x32xf32>
    %cst_51 = arith.constant 1.000000e+00 : f32
    %125 = vector.broadcast %cst_51 : f32 to vector<8x32xf32>
    %126 = arith.subf %124, %125 : vector<8x32xf32>
    %127 = vector.extract_strided_slice %119 {offsets = [0, 96], sizes = [8, 32], strides = [1, 1]} : vector<8x128xf32> to vector<8x32xf32>
    %128 = arith.mulf %121, %84 : vector<8x32xf32>
    %129 = arith.mulf %120, %126 : vector<8x32xf32>
    %130 = arith.addf %128, %129 : vector<8x32xf32>
    %131 = math.tanh %130 : vector<8x32xf32>
    %132 = arith.mulf %127, %131 : vector<8x32xf32>
    %cst_52 = arith.constant dense<0.000000e+00> : vector<8xf32>
    %133 = vector.multi_reduction <add>, %132, %cst_52 [1] : vector<8x32xf32> to vector<8xf32>
    %134 = vector.shape_cast %133 : vector<8xf32> to vector<8x1xf32>
    %135 = arith.mulf %132, %132 : vector<8x32xf32>
    %cst_53 = arith.constant dense<0.000000e+00> : vector<8xf32>
    %136 = vector.multi_reduction <add>, %135, %cst_53 [1] : vector<8x32xf32> to vector<8xf32>
    %137 = vector.shape_cast %136 : vector<8xf32> to vector<8x1xf32>
    %cst_54 = arith.constant 3.125000e-02 : f32
    %138 = vector.broadcast %cst_54 : f32 to vector<8x1xf32>
    %139 = arith.mulf %134, %138 : vector<8x1xf32>
    %cst_55 = arith.constant 3.125000e-02 : f32
    %140 = vector.broadcast %cst_55 : f32 to vector<8x1xf32>
    %141 = arith.mulf %137, %140 : vector<8x1xf32>
    %142 = arith.mulf %139, %139 : vector<8x1xf32>
    %143 = arith.subf %141, %142 : vector<8x1xf32>
    %144 = vector.broadcast %139 : vector<8x1xf32> to vector<8x32xf32>
    %145 = arith.subf %132, %144 : vector<8x32xf32>
    %cst_56 = arith.constant 9.99999974E-6 : f32
    %146 = vector.broadcast %cst_56 : f32 to vector<8x1xf32>
    %147 = arith.addf %143, %146 : vector<8x1xf32>
    %148 = math.rsqrt %147 : vector<8x1xf32>
    %149 = vector.broadcast %148 : vector<8x1xf32> to vector<8x32xf32>
    %150 = arith.mulf %145, %149 : vector<8x32xf32>
    %151 = arith.mulf %150, %12 : vector<8x32xf32>
    %152 = arith.addf %151, %15 : vector<8x32xf32>
    %c2_57 = arith.constant 2 : index
    %c0_58 = arith.constant 0 : index
    %c0_59 = arith.constant 0 : index
    %153 = vector.load %arg16[%c2_57, %c0_58, %c0_59] : memref<8x8x32xf32, #tpu.memory_space<vmem>>, vector<1x8x32xf32>
    %154 = vector.shape_cast %153 : vector<1x8x32xf32> to vector<8x32xf32>
    %155 = vector.shape_cast %152 : vector<8x32xf32> to vector<1x8x32xf32>
    tpu.vector_store %arg16[%c2_57, %c0_58, %c0_59], %155 {strides = array<i32>} : memref<8x8x32xf32, #tpu.memory_space<vmem>>, vector<1x8x32xf32>,
    %c3 = arith.constant 3 : index
    %c0_60 = arith.constant 0 : index
    %c0_61 = arith.constant 0 : index
    %156 = vector.load %arg15[%c3, %c0_60, %c0_61] : memref<8x8x128xf32, #tpu.memory_space<vmem>>, vector<1x8x128xf32>
    %157 = vector.shape_cast %156 : vector<1x8x128xf32> to vector<8x128xf32>
    %158 = arith.truncf %132 : vector<8x32xf32> to vector<8x32xbf16>
    %cst_62 = arith.constant dense<0.000000e+00> : vector<8x128xf32>
    %159 = tpu.matmul %158, %1, %cst_62 {dimension_numbers = #tpu.dot_dimension_numbers<[1], [0], [0], [1], [0, 0, 1, 1], [], []>} : vector<8x32xbf16>, vector<32x128xbf16>, vector<8x128xf32> -> vector<8x128xf32>
    %160 = arith.addf %157, %159 : vector<8x128xf32>
    %161 = arith.negf %160 : vector<8x128xf32>
    %162 = math.exp %161 : vector<8x128xf32>
    %cst_63 = arith.constant 1.000000e+00 : f32
    %163 = vector.broadcast %cst_63 : f32 to vector<8x128xf32>
    %164 = arith.addf %163, %162 : vector<8x128xf32>
    %165 = arith.divf %163, %164 : vector<8x128xf32>
    %166 = vector.extract_strided_slice %165 {offsets = [0, 0], sizes = [8, 32], strides = [1, 1]} : vector<8x128xf32> to vector<8x32xf32>
    %167 = vector.extract_strided_slice %165 {offsets = [0, 32], sizes = [8, 32], strides = [1, 1]} : vector<8x128xf32> to vector<8x32xf32>
    %168 = vector.extract_strided_slice %165 {offsets = [0, 64], sizes = [8, 32], strides = [1, 1]} : vector<8x128xf32> to vector<8x32xf32>
    %cst_64 = arith.constant 2.000000e+00 : f32
    %169 = vector.broadcast %cst_64 : f32 to vector<8x32xf32>
    %170 = arith.mulf %169, %168 : vector<8x32xf32>
    %cst_65 = arith.constant 1.000000e+00 : f32
    %171 = vector.broadcast %cst_65 : f32 to vector<8x32xf32>
    %172 = arith.subf %170, %171 : vector<8x32xf32>
    %173 = vector.extract_strided_slice %165 {offsets = [0, 96], sizes = [8, 32], strides = [1, 1]} : vector<8x128xf32> to vector<8x32xf32>
    %174 = arith.mulf %167, %130 : vector<8x32xf32>
    %175 = arith.mulf %166, %172 : vector<8x32xf32>
    %176 = arith.addf %174, %175 : vector<8x32xf32>
    %177 = math.tanh %176 : vector<8x32xf32>
    %178 = arith.mulf %173, %177 : vector<8x32xf32>
    %cst_66 = arith.constant dense<0.000000e+00> : vector<8xf32>
    %179 = vector.multi_reduction <add>, %178, %cst_66 [1] : vector<8x32xf32> to vector<8xf32>
    %180 = vector.shape_cast %179 : vector<8xf32> to vector<8x1xf32>
    %181 = arith.mulf %178, %178 : vector<8x32xf32>
    %cst_67 = arith.constant dense<0.000000e+00> : vector<8xf32>
    %182 = vector.multi_reduction <add>, %181, %cst_67 [1] : vector<8x32xf32> to vector<8xf32>
    %183 = vector.shape_cast %182 : vector<8xf32> to vector<8x1xf32>
    %cst_68 = arith.constant 3.125000e-02 : f32
    %184 = vector.broadcast %cst_68 : f32 to vector<8x1xf32>
    %185 = arith.mulf %180, %184 : vector<8x1xf32>
    %cst_69 = arith.constant 3.125000e-02 : f32
    %186 = vector.broadcast %cst_69 : f32 to vector<8x1xf32>
    %187 = arith.mulf %183, %186 : vector<8x1xf32>
    %188 = arith.mulf %185, %185 : vector<8x1xf32>
    %189 = arith.subf %187, %188 : vector<8x1xf32>
    %190 = vector.broadcast %185 : vector<8x1xf32> to vector<8x32xf32>
    %191 = arith.subf %178, %190 : vector<8x32xf32>
    %cst_70 = arith.constant 9.99999974E-6 : f32
    %192 = vector.broadcast %cst_70 : f32 to vector<8x1xf32>
    %193 = arith.addf %189, %192 : vector<8x1xf32>
    %194 = math.rsqrt %193 : vector<8x1xf32>
    %195 = vector.broadcast %194 : vector<8x1xf32> to vector<8x32xf32>
    %196 = arith.mulf %191, %195 : vector<8x32xf32>
    %197 = arith.mulf %196, %12 : vector<8x32xf32>
    %198 = arith.addf %197, %15 : vector<8x32xf32>
    %c3_71 = arith.constant 3 : index
    %c0_72 = arith.constant 0 : index
    %c0_73 = arith.constant 0 : index
    %199 = vector.load %arg16[%c3_71, %c0_72, %c0_73] : memref<8x8x32xf32, #tpu.memory_space<vmem>>, vector<1x8x32xf32>
    %200 = vector.shape_cast %199 : vector<1x8x32xf32> to vector<8x32xf32>
    %201 = vector.shape_cast %198 : vector<8x32xf32> to vector<1x8x32xf32>
    tpu.vector_store %arg16[%c3_71, %c0_72, %c0_73], %201 {strides = array<i32>} : memref<8x8x32xf32, #tpu.memory_space<vmem>>, vector<1x8x32xf32>,
    %c4 = arith.constant 4 : index
    %c0_74 = arith.constant 0 : index
    %c0_75 = arith.constant 0 : index
    %202 = vector.load %arg15[%c4, %c0_74, %c0_75] : memref<8x8x128xf32, #tpu.memory_space<vmem>>, vector<1x8x128xf32>
    %203 = vector.shape_cast %202 : vector<1x8x128xf32> to vector<8x128xf32>
    %204 = arith.truncf %178 : vector<8x32xf32> to vector<8x32xbf16>
    %cst_76 = arith.constant dense<0.000000e+00> : vector<8x128xf32>
    %205 = tpu.matmul %204, %1, %cst_76 {dimension_numbers = #tpu.dot_dimension_numbers<[1], [0], [0], [1], [0, 0, 1, 1], [], []>} : vector<8x32xbf16>, vector<32x128xbf16>, vector<8x128xf32> -> vector<8x128xf32>
    %206 = arith.addf %203, %205 : vector<8x128xf32>
    %207 = arith.negf %206 : vector<8x128xf32>
    %208 = math.exp %207 : vector<8x128xf32>
    %cst_77 = arith.constant 1.000000e+00 : f32
    %209 = vector.broadcast %cst_77 : f32 to vector<8x128xf32>
    %210 = arith.addf %209, %208 : vector<8x128xf32>
    %211 = arith.divf %209, %210 : vector<8x128xf32>
    %212 = vector.extract_strided_slice %211 {offsets = [0, 0], sizes = [8, 32], strides = [1, 1]} : vector<8x128xf32> to vector<8x32xf32>
    %213 = vector.extract_strided_slice %211 {offsets = [0, 32], sizes = [8, 32], strides = [1, 1]} : vector<8x128xf32> to vector<8x32xf32>
    %214 = vector.extract_strided_slice %211 {offsets = [0, 64], sizes = [8, 32], strides = [1, 1]} : vector<8x128xf32> to vector<8x32xf32>
    %cst_78 = arith.constant 2.000000e+00 : f32
    %215 = vector.broadcast %cst_78 : f32 to vector<8x32xf32>
    %216 = arith.mulf %215, %214 : vector<8x32xf32>
    %cst_79 = arith.constant 1.000000e+00 : f32
    %217 = vector.broadcast %cst_79 : f32 to vector<8x32xf32>
    %218 = arith.subf %216, %217 : vector<8x32xf32>
    %219 = vector.extract_strided_slice %211 {offsets = [0, 96], sizes = [8, 32], strides = [1, 1]} : vector<8x128xf32> to vector<8x32xf32>
    %220 = arith.mulf %213, %176 : vector<8x32xf32>
    %221 = arith.mulf %212, %218 : vector<8x32xf32>
    %222 = arith.addf %220, %221 : vector<8x32xf32>
    %223 = math.tanh %222 : vector<8x32xf32>
    %224 = arith.mulf %219, %223 : vector<8x32xf32>
    %cst_80 = arith.constant dense<0.000000e+00> : vector<8xf32>
    %225 = vector.multi_reduction <add>, %224, %cst_80 [1] : vector<8x32xf32> to vector<8xf32>
    %226 = vector.shape_cast %225 : vector<8xf32> to vector<8x1xf32>
    %227 = arith.mulf %224, %224 : vector<8x32xf32>
    %cst_81 = arith.constant dense<0.000000e+00> : vector<8xf32>
    %228 = vector.multi_reduction <add>, %227, %cst_81 [1] : vector<8x32xf32> to vector<8xf32>
    %229 = vector.shape_cast %228 : vector<8xf32> to vector<8x1xf32>
    %cst_82 = arith.constant 3.125000e-02 : f32
    %230 = vector.broadcast %cst_82 : f32 to vector<8x1xf32>
    %231 = arith.mulf %226, %230 : vector<8x1xf32>
    %cst_83 = arith.constant 3.125000e-02 : f32
    %232 = vector.broadcast %cst_83 : f32 to vector<8x1xf32>
    %233 = arith.mulf %229, %232 : vector<8x1xf32>
    %234 = arith.mulf %231, %231 : vector<8x1xf32>
    %235 = arith.subf %233, %234 : vector<8x1xf32>
    %236 = vector.broadcast %231 : vector<8x1xf32> to vector<8x32xf32>
    %237 = arith.subf %224, %236 : vector<8x32xf32>
    %cst_84 = arith.constant 9.99999974E-6 : f32
    %238 = vector.broadcast %cst_84 : f32 to vector<8x1xf32>
    %239 = arith.addf %235, %238 : vector<8x1xf32>
    %240 = math.rsqrt %239 : vector<8x1xf32>
    %241 = vector.broadcast %240 : vector<8x1xf32> to vector<8x32xf32>
    %242 = arith.mulf %237, %241 : vector<8x32xf32>
    %243 = arith.mulf %242, %12 : vector<8x32xf32>
    %244 = arith.addf %243, %15 : vector<8x32xf32>
    %c4_85 = arith.constant 4 : index
    %c0_86 = arith.constant 0 : index
    %c0_87 = arith.constant 0 : index
    %245 = vector.load %arg16[%c4_85, %c0_86, %c0_87] : memref<8x8x32xf32, #tpu.memory_space<vmem>>, vector<1x8x32xf32>
    %246 = vector.shape_cast %245 : vector<1x8x32xf32> to vector<8x32xf32>
    %247 = vector.shape_cast %244 : vector<8x32xf32> to vector<1x8x32xf32>
    tpu.vector_store %arg16[%c4_85, %c0_86, %c0_87], %247 {strides = array<i32>} : memref<8x8x32xf32, #tpu.memory_space<vmem>>, vector<1x8x32xf32>,
    %c5 = arith.constant 5 : index
    %c0_88 = arith.constant 0 : index
    %c0_89 = arith.constant 0 : index
    %248 = vector.load %arg15[%c5, %c0_88, %c0_89] : memref<8x8x128xf32, #tpu.memory_space<vmem>>, vector<1x8x128xf32>
    %249 = vector.shape_cast %248 : vector<1x8x128xf32> to vector<8x128xf32>
    %250 = arith.truncf %224 : vector<8x32xf32> to vector<8x32xbf16>
    %cst_90 = arith.constant dense<0.000000e+00> : vector<8x128xf32>
    %251 = tpu.matmul %250, %1, %cst_90 {dimension_numbers = #tpu.dot_dimension_numbers<[1], [0], [0], [1], [0, 0, 1, 1], [], []>} : vector<8x32xbf16>, vector<32x128xbf16>, vector<8x128xf32> -> vector<8x128xf32>
    %252 = arith.addf %249, %251 : vector<8x128xf32>
    %253 = arith.negf %252 : vector<8x128xf32>
    %254 = math.exp %253 : vector<8x128xf32>
    %cst_91 = arith.constant 1.000000e+00 : f32
    %255 = vector.broadcast %cst_91 : f32 to vector<8x128xf32>
    %256 = arith.addf %255, %254 : vector<8x128xf32>
    %257 = arith.divf %255, %256 : vector<8x128xf32>
    %258 = vector.extract_strided_slice %257 {offsets = [0, 0], sizes = [8, 32], strides = [1, 1]} : vector<8x128xf32> to vector<8x32xf32>
    %259 = vector.extract_strided_slice %257 {offsets = [0, 32], sizes = [8, 32], strides = [1, 1]} : vector<8x128xf32> to vector<8x32xf32>
    %260 = vector.extract_strided_slice %257 {offsets = [0, 64], sizes = [8, 32], strides = [1, 1]} : vector<8x128xf32> to vector<8x32xf32>
    %cst_92 = arith.constant 2.000000e+00 : f32
    %261 = vector.broadcast %cst_92 : f32 to vector<8x32xf32>
    %262 = arith.mulf %261, %260 : vector<8x32xf32>
    %cst_93 = arith.constant 1.000000e+00 : f32
    %263 = vector.broadcast %cst_93 : f32 to vector<8x32xf32>
    %264 = arith.subf %262, %263 : vector<8x32xf32>
    %265 = vector.extract_strided_slice %257 {offsets = [0, 96], sizes = [8, 32], strides = [1, 1]} : vector<8x128xf32> to vector<8x32xf32>
    %266 = arith.mulf %259, %222 : vector<8x32xf32>
    %267 = arith.mulf %258, %264 : vector<8x32xf32>
    %268 = arith.addf %266, %267 : vector<8x32xf32>
    %269 = math.tanh %268 : vector<8x32xf32>
    %270 = arith.mulf %265, %269 : vector<8x32xf32>
    %cst_94 = arith.constant dense<0.000000e+00> : vector<8xf32>
    %271 = vector.multi_reduction <add>, %270, %cst_94 [1] : vector<8x32xf32> to vector<8xf32>
    %272 = vector.shape_cast %271 : vector<8xf32> to vector<8x1xf32>
    %273 = arith.mulf %270, %270 : vector<8x32xf32>
    %cst_95 = arith.constant dense<0.000000e+00> : vector<8xf32>
    %274 = vector.multi_reduction <add>, %273, %cst_95 [1] : vector<8x32xf32> to vector<8xf32>
    %275 = vector.shape_cast %274 : vector<8xf32> to vector<8x1xf32>
    %cst_96 = arith.constant 3.125000e-02 : f32
    %276 = vector.broadcast %cst_96 : f32 to vector<8x1xf32>
    %277 = arith.mulf %272, %276 : vector<8x1xf32>
    %cst_97 = arith.constant 3.125000e-02 : f32
    %278 = vector.broadcast %cst_97 : f32 to vector<8x1xf32>
    %279 = arith.mulf %275, %278 : vector<8x1xf32>
    %280 = arith.mulf %277, %277 : vector<8x1xf32>
    %281 = arith.subf %279, %280 : vector<8x1xf32>
    %282 = vector.broadcast %277 : vector<8x1xf32> to vector<8x32xf32>
    %283 = arith.subf %270, %282 : vector<8x32xf32>
    %cst_98 = arith.constant 9.99999974E-6 : f32
    %284 = vector.broadcast %cst_98 : f32 to vector<8x1xf32>
    %285 = arith.addf %281, %284 : vector<8x1xf32>
    %286 = math.rsqrt %285 : vector<8x1xf32>
    %287 = vector.broadcast %286 : vector<8x1xf32> to vector<8x32xf32>
    %288 = arith.mulf %283, %287 : vector<8x32xf32>
    %289 = arith.mulf %288, %12 : vector<8x32xf32>
    %290 = arith.addf %289, %15 : vector<8x32xf32>
    %c5_99 = arith.constant 5 : index
    %c0_100 = arith.constant 0 : index
    %c0_101 = arith.constant 0 : index
    %291 = vector.load %arg16[%c5_99, %c0_100, %c0_101] : memref<8x8x32xf32, #tpu.memory_space<vmem>>, vector<1x8x32xf32>
    %292 = vector.shape_cast %291 : vector<1x8x32xf32> to vector<8x32xf32>
    %293 = vector.shape_cast %290 : vector<8x32xf32> to vector<1x8x32xf32>
    tpu.vector_store %arg16[%c5_99, %c0_100, %c0_101], %293 {strides = array<i32>} : memref<8x8x32xf32, #tpu.memory_space<vmem>>, vector<1x8x32xf32>,
    %c6 = arith.constant 6 : index
    %c0_102 = arith.constant 0 : index
    %c0_103 = arith.constant 0 : index
    %294 = vector.load %arg15[%c6, %c0_102, %c0_103] : memref<8x8x128xf32, #tpu.memory_space<vmem>>, vector<1x8x128xf32>
    %295 = vector.shape_cast %294 : vector<1x8x128xf32> to vector<8x128xf32>
    %296 = arith.truncf %270 : vector<8x32xf32> to vector<8x32xbf16>
    %cst_104 = arith.constant dense<0.000000e+00> : vector<8x128xf32>
    %297 = tpu.matmul %296, %1, %cst_104 {dimension_numbers = #tpu.dot_dimension_numbers<[1], [0], [0], [1], [0, 0, 1, 1], [], []>} : vector<8x32xbf16>, vector<32x128xbf16>, vector<8x128xf32> -> vector<8x128xf32>
    %298 = arith.addf %295, %297 : vector<8x128xf32>
    %299 = arith.negf %298 : vector<8x128xf32>
    %300 = math.exp %299 : vector<8x128xf32>
    %cst_105 = arith.constant 1.000000e+00 : f32
    %301 = vector.broadcast %cst_105 : f32 to vector<8x128xf32>
    %302 = arith.addf %301, %300 : vector<8x128xf32>
    %303 = arith.divf %301, %302 : vector<8x128xf32>
    %304 = vector.extract_strided_slice %303 {offsets = [0, 0], sizes = [8, 32], strides = [1, 1]} : vector<8x128xf32> to vector<8x32xf32>
    %305 = vector.extract_strided_slice %303 {offsets = [0, 32], sizes = [8, 32], strides = [1, 1]} : vector<8x128xf32> to vector<8x32xf32>
    %306 = vector.extract_strided_slice %303 {offsets = [0, 64], sizes = [8, 32], strides = [1, 1]} : vector<8x128xf32> to vector<8x32xf32>
    %cst_106 = arith.constant 2.000000e+00 : f32
    %307 = vector.broadcast %cst_106 : f32 to vector<8x32xf32>
    %308 = arith.mulf %307, %306 : vector<8x32xf32>
    %cst_107 = arith.constant 1.000000e+00 : f32
    %309 = vector.broadcast %cst_107 : f32 to vector<8x32xf32>
    %310 = arith.subf %308, %309 : vector<8x32xf32>
    %311 = vector.extract_strided_slice %303 {offsets = [0, 96], sizes = [8, 32], strides = [1, 1]} : vector<8x128xf32> to vector<8x32xf32>
    %312 = arith.mulf %305, %268 : vector<8x32xf32>
    %313 = arith.mulf %304, %310 : vector<8x32xf32>
    %314 = arith.addf %312, %313 : vector<8x32xf32>
    %315 = math.tanh %314 : vector<8x32xf32>
    %316 = arith.mulf %311, %315 : vector<8x32xf32>
    %cst_108 = arith.constant dense<0.000000e+00> : vector<8xf32>
    %317 = vector.multi_reduction <add>, %316, %cst_108 [1] : vector<8x32xf32> to vector<8xf32>
    %318 = vector.shape_cast %317 : vector<8xf32> to vector<8x1xf32>
    %319 = arith.mulf %316, %316 : vector<8x32xf32>
    %cst_109 = arith.constant dense<0.000000e+00> : vector<8xf32>
    %320 = vector.multi_reduction <add>, %319, %cst_109 [1] : vector<8x32xf32> to vector<8xf32>
    %321 = vector.shape_cast %320 : vector<8xf32> to vector<8x1xf32>
    %cst_110 = arith.constant 3.125000e-02 : f32
    %322 = vector.broadcast %cst_110 : f32 to vector<8x1xf32>
    %323 = arith.mulf %318, %322 : vector<8x1xf32>
    %cst_111 = arith.constant 3.125000e-02 : f32
    %324 = vector.broadcast %cst_111 : f32 to vector<8x1xf32>
    %325 = arith.mulf %321, %324 : vector<8x1xf32>
    %326 = arith.mulf %323, %323 : vector<8x1xf32>
    %327 = arith.subf %325, %326 : vector<8x1xf32>
    %328 = vector.broadcast %323 : vector<8x1xf32> to vector<8x32xf32>
    %329 = arith.subf %316, %328 : vector<8x32xf32>
    %cst_112 = arith.constant 9.99999974E-6 : f32
    %330 = vector.broadcast %cst_112 : f32 to vector<8x1xf32>
    %331 = arith.addf %327, %330 : vector<8x1xf32>
    %332 = math.rsqrt %331 : vector<8x1xf32>
    %333 = vector.broadcast %332 : vector<8x1xf32> to vector<8x32xf32>
    %334 = arith.mulf %329, %333 : vector<8x32xf32>
    %335 = arith.mulf %334, %12 : vector<8x32xf32>
    %336 = arith.addf %335, %15 : vector<8x32xf32>
    %c6_113 = arith.constant 6 : index
    %c0_114 = arith.constant 0 : index
    %c0_115 = arith.constant 0 : index
    %337 = vector.load %arg16[%c6_113, %c0_114, %c0_115] : memref<8x8x32xf32, #tpu.memory_space<vmem>>, vector<1x8x32xf32>
    %338 = vector.shape_cast %337 : vector<1x8x32xf32> to vector<8x32xf32>
    %339 = vector.shape_cast %336 : vector<8x32xf32> to vector<1x8x32xf32>
    tpu.vector_store %arg16[%c6_113, %c0_114, %c0_115], %339 {strides = array<i32>} : memref<8x8x32xf32, #tpu.memory_space<vmem>>, vector<1x8x32xf32>,
    %c7 = arith.constant 7 : index
    %c0_116 = arith.constant 0 : index
    %c0_117 = arith.constant 0 : index
    %340 = vector.load %arg15[%c7, %c0_116, %c0_117] : memref<8x8x128xf32, #tpu.memory_space<vmem>>, vector<1x8x128xf32>
    %341 = vector.shape_cast %340 : vector<1x8x128xf32> to vector<8x128xf32>
    %342 = arith.truncf %316 : vector<8x32xf32> to vector<8x32xbf16>
    %cst_118 = arith.constant dense<0.000000e+00> : vector<8x128xf32>
    %343 = tpu.matmul %342, %1, %cst_118 {dimension_numbers = #tpu.dot_dimension_numbers<[1], [0], [0], [1], [0, 0, 1, 1], [], []>} : vector<8x32xbf16>, vector<32x128xbf16>, vector<8x128xf32> -> vector<8x128xf32>
    %344 = arith.addf %341, %343 : vector<8x128xf32>
    %345 = arith.negf %344 : vector<8x128xf32>
    %346 = math.exp %345 : vector<8x128xf32>
    %cst_119 = arith.constant 1.000000e+00 : f32
    %347 = vector.broadcast %cst_119 : f32 to vector<8x128xf32>
    %348 = arith.addf %347, %346 : vector<8x128xf32>
    %349 = arith.divf %347, %348 : vector<8x128xf32>
    %350 = vector.extract_strided_slice %349 {offsets = [0, 0], sizes = [8, 32], strides = [1, 1]} : vector<8x128xf32> to vector<8x32xf32>
    %351 = vector.extract_strided_slice %349 {offsets = [0, 32], sizes = [8, 32], strides = [1, 1]} : vector<8x128xf32> to vector<8x32xf32>
    %352 = vector.extract_strided_slice %349 {offsets = [0, 64], sizes = [8, 32], strides = [1, 1]} : vector<8x128xf32> to vector<8x32xf32>
    %cst_120 = arith.constant 2.000000e+00 : f32
    %353 = vector.broadcast %cst_120 : f32 to vector<8x32xf32>
    %354 = arith.mulf %353, %352 : vector<8x32xf32>
    %cst_121 = arith.constant 1.000000e+00 : f32
    %355 = vector.broadcast %cst_121 : f32 to vector<8x32xf32>
    %356 = arith.subf %354, %355 : vector<8x32xf32>
    %357 = vector.extract_strided_slice %349 {offsets = [0, 96], sizes = [8, 32], strides = [1, 1]} : vector<8x128xf32> to vector<8x32xf32>
    %358 = arith.mulf %351, %314 : vector<8x32xf32>
    %359 = arith.mulf %350, %356 : vector<8x32xf32>
    %360 = arith.addf %358, %359 : vector<8x32xf32>
    %361 = math.tanh %360 : vector<8x32xf32>
    %362 = arith.mulf %357, %361 : vector<8x32xf32>
    %cst_122 = arith.constant dense<0.000000e+00> : vector<8xf32>
    %363 = vector.multi_reduction <add>, %362, %cst_122 [1] : vector<8x32xf32> to vector<8xf32>
    %364 = vector.shape_cast %363 : vector<8xf32> to vector<8x1xf32>
    %365 = arith.mulf %362, %362 : vector<8x32xf32>
    %cst_123 = arith.constant dense<0.000000e+00> : vector<8xf32>
    %366 = vector.multi_reduction <add>, %365, %cst_123 [1] : vector<8x32xf32> to vector<8xf32>
    %367 = vector.shape_cast %366 : vector<8xf32> to vector<8x1xf32>
    %cst_124 = arith.constant 3.125000e-02 : f32
    %368 = vector.broadcast %cst_124 : f32 to vector<8x1xf32>
    %369 = arith.mulf %364, %368 : vector<8x1xf32>
    %cst_125 = arith.constant 3.125000e-02 : f32
    %370 = vector.broadcast %cst_125 : f32 to vector<8x1xf32>
    %371 = arith.mulf %367, %370 : vector<8x1xf32>
    %372 = arith.mulf %369, %369 : vector<8x1xf32>
    %373 = arith.subf %371, %372 : vector<8x1xf32>
    %374 = vector.broadcast %369 : vector<8x1xf32> to vector<8x32xf32>
    %375 = arith.subf %362, %374 : vector<8x32xf32>
    %cst_126 = arith.constant 9.99999974E-6 : f32
    %376 = vector.broadcast %cst_126 : f32 to vector<8x1xf32>
    %377 = arith.addf %373, %376 : vector<8x1xf32>
    %378 = math.rsqrt %377 : vector<8x1xf32>
    %379 = vector.broadcast %378 : vector<8x1xf32> to vector<8x32xf32>
    %380 = arith.mulf %375, %379 : vector<8x32xf32>
    %381 = arith.mulf %380, %12 : vector<8x32xf32>
    %382 = arith.addf %381, %15 : vector<8x32xf32>
    %c7_127 = arith.constant 7 : index
    %c0_128 = arith.constant 0 : index
    %c0_129 = arith.constant 0 : index
    %383 = vector.load %arg16[%c7_127, %c0_128, %c0_129] : memref<8x8x32xf32, #tpu.memory_space<vmem>>, vector<1x8x32xf32>
    %384 = vector.shape_cast %383 : vector<1x8x32xf32> to vector<8x32xf32>
    %385 = vector.shape_cast %382 : vector<8x32xf32> to vector<1x8x32xf32>
    tpu.vector_store %arg16[%c7_127, %c0_128, %c0_129], %385 {strides = array<i32>} : memref<8x8x32xf32, #tpu.memory_space<vmem>>, vector<1x8x32xf32>,
    %c0_130 = arith.constant 0 : index
    %c0_131 = arith.constant 0 : index
    %386 = vector.load %arg7[%c0_130, %c0_131] : memref<32x128xbf16, #tpu.memory_space<vmem>>, vector<32x128xbf16>
    %c0_132 = arith.constant 0 : index
    %c0_133 = arith.constant 0 : index
    %387 = vector.load %arg8[%c0_132, %c0_133] : memref<32x128xbf16, #tpu.memory_space<vmem>>, vector<32x128xbf16>
    %c0_134 = arith.constant 0 : index
    %c0_135 = arith.constant 0 : index
    %c0_136 = arith.constant 0 : index
    %388 = vector.load %arg16[%c0_134, %c0_135, %c0_136] : memref<8x8x32xf32, #tpu.memory_space<vmem>>, vector<8x8x32xf32>
    %389 = vector.shape_cast %388 : vector<8x8x32xf32> to vector<64x32xf32>
    %390 = arith.truncf %389 : vector<64x32xf32> to vector<64x32xbf16>
    %cst_137 = arith.constant dense<0.000000e+00> : vector<64x128xf32>
    %391 = tpu.matmul %390, %386, %cst_137 {dimension_numbers = #tpu.dot_dimension_numbers<[1], [0], [0], [1], [0, 0, 1, 1], [], []>} : vector<64x32xbf16>, vector<32x128xbf16>, vector<64x128xf32> -> vector<64x128xf32>
    %c0_138 = arith.constant 0 : index
    %c0_139 = arith.constant 0 : index
    %392 = vector.load %arg9[%c0_138, %c0_139] : memref<1x128xf32, #tpu.memory_space<vmem>>, vector<1x128xf32>
    %393 = vector.broadcast %392 : vector<1x128xf32> to vector<64x128xf32>
    %394 = arith.addf %391, %393 : vector<64x128xf32>
    %395 = vector.shape_cast %394 : vector<64x128xf32> to vector<8x8x128xf32>
    %c0_140 = arith.constant 0 : index
    %c0_141 = arith.constant 0 : index
    %c0_142 = arith.constant 0 : index
    %396 = vector.load %arg15[%c0_140, %c0_141, %c0_142] : memref<8x8x128xf32, #tpu.memory_space<vmem>>, vector<8x8x128xf32>
    tpu.vector_store %arg15[%c0_140, %c0_141, %c0_142], %395 {strides = array<i32>} : memref<8x8x128xf32, #tpu.memory_space<vmem>>, vector<8x8x128xf32>,
    %c0_143 = arith.constant 0 : index
    %c0_144 = arith.constant 0 : index
    %397 = vector.load %arg10[%c0_143, %c0_144] : memref<1x32xf32, #tpu.memory_space<vmem>>, vector<1x32xf32>
    %398 = vector.shape_cast %397 : vector<1x32xf32> to vector<1x32xf32>
    %399 = vector.broadcast %398 : vector<1x32xf32> to vector<8x32xf32>
    %c0_145 = arith.constant 0 : index
    %c0_146 = arith.constant 0 : index
    %400 = vector.load %arg11[%c0_145, %c0_146] : memref<1x32xf32, #tpu.memory_space<vmem>>, vector<1x32xf32>
    %401 = vector.shape_cast %400 : vector<1x32xf32> to vector<1x32xf32>
    %402 = vector.broadcast %401 : vector<1x32xf32> to vector<8x32xf32>
    %cst_147 = arith.constant 0.000000e+00 : f32
    %403 = vector.broadcast %cst_147 : f32 to vector<8x32xf32>
    %cst_148 = arith.constant 0.000000e+00 : f32
    %404 = vector.broadcast %cst_148 : f32 to vector<8x32xf32>
    %c0_149 = arith.constant 0 : index
    %c0_150 = arith.constant 0 : index
    %c0_151 = arith.constant 0 : index
    %405 = vector.load %arg15[%c0_149, %c0_150, %c0_151] : memref<8x8x128xf32, #tpu.memory_space<vmem>>, vector<1x8x128xf32>
    %406 = vector.shape_cast %405 : vector<1x8x128xf32> to vector<8x128xf32>
    %407 = arith.truncf %403 : vector<8x32xf32> to vector<8x32xbf16>
    %cst_152 = arith.constant dense<0.000000e+00> : vector<8x128xf32>
    %408 = tpu.matmul %407, %387, %cst_152 {dimension_numbers = #tpu.dot_dimension_numbers<[1], [0], [0], [1], [0, 0, 1, 1], [], []>} : vector<8x32xbf16>, vector<32x128xbf16>, vector<8x128xf32> -> vector<8x128xf32>
    %409 = arith.addf %406, %408 : vector<8x128xf32>
    %410 = arith.negf %409 : vector<8x128xf32>
    %411 = math.exp %410 : vector<8x128xf32>
    %cst_153 = arith.constant 1.000000e+00 : f32
    %412 = vector.broadcast %cst_153 : f32 to vector<8x128xf32>
    %413 = arith.addf %412, %411 : vector<8x128xf32>
    %414 = arith.divf %412, %413 : vector<8x128xf32>
    %415 = vector.extract_strided_slice %414 {offsets = [0, 0], sizes = [8, 32], strides = [1, 1]} : vector<8x128xf32> to vector<8x32xf32>
    %416 = vector.extract_strided_slice %414 {offsets = [0, 32], sizes = [8, 32], strides = [1, 1]} : vector<8x128xf32> to vector<8x32xf32>
    %417 = vector.extract_strided_slice %414 {offsets = [0, 64], sizes = [8, 32], strides = [1, 1]} : vector<8x128xf32> to vector<8x32xf32>
    %cst_154 = arith.constant 2.000000e+00 : f32
    %418 = vector.broadcast %cst_154 : f32 to vector<8x32xf32>
    %419 = arith.mulf %418, %417 : vector<8x32xf32>
    %cst_155 = arith.constant 1.000000e+00 : f32
    %420 = vector.broadcast %cst_155 : f32 to vector<8x32xf32>
    %421 = arith.subf %419, %420 : vector<8x32xf32>
    %422 = vector.extract_strided_slice %414 {offsets = [0, 96], sizes = [8, 32], strides = [1, 1]} : vector<8x128xf32> to vector<8x32xf32>
    %423 = arith.mulf %416, %404 : vector<8x32xf32>
    %424 = arith.mulf %415, %421 : vector<8x32xf32>
    %425 = arith.addf %423, %424 : vector<8x32xf32>
    %426 = math.tanh %425 : vector<8x32xf32>
    %427 = arith.mulf %422, %426 : vector<8x32xf32>
    %cst_156 = arith.constant dense<0.000000e+00> : vector<8xf32>
    %428 = vector.multi_reduction <add>, %427, %cst_156 [1] : vector<8x32xf32> to vector<8xf32>
    %429 = vector.shape_cast %428 : vector<8xf32> to vector<8x1xf32>
    %430 = arith.mulf %427, %427 : vector<8x32xf32>
    %cst_157 = arith.constant dense<0.000000e+00> : vector<8xf32>
    %431 = vector.multi_reduction <add>, %430, %cst_157 [1] : vector<8x32xf32> to vector<8xf32>
    %432 = vector.shape_cast %431 : vector<8xf32> to vector<8x1xf32>
    %cst_158 = arith.constant 3.125000e-02 : f32
    %433 = vector.broadcast %cst_158 : f32 to vector<8x1xf32>
    %434 = arith.mulf %429, %433 : vector<8x1xf32>
    %cst_159 = arith.constant 3.125000e-02 : f32
    %435 = vector.broadcast %cst_159 : f32 to vector<8x1xf32>
    %436 = arith.mulf %432, %435 : vector<8x1xf32>
    %437 = arith.mulf %434, %434 : vector<8x1xf32>
    %438 = arith.subf %436, %437 : vector<8x1xf32>
    %439 = vector.broadcast %434 : vector<8x1xf32> to vector<8x32xf32>
    %440 = arith.subf %427, %439 : vector<8x32xf32>
    %cst_160 = arith.constant 9.99999974E-6 : f32
    %441 = vector.broadcast %cst_160 : f32 to vector<8x1xf32>
    %442 = arith.addf %438, %441 : vector<8x1xf32>
    %443 = math.rsqrt %442 : vector<8x1xf32>
    %444 = vector.broadcast %443 : vector<8x1xf32> to vector<8x32xf32>
    %445 = arith.mulf %440, %444 : vector<8x32xf32>
    %446 = arith.mulf %445, %399 : vector<8x32xf32>
    %447 = arith.addf %446, %402 : vector<8x32xf32>
    %c0_161 = arith.constant 0 : index
    %c0_162 = arith.constant 0 : index
    %c0_163 = arith.constant 0 : index
    %448 = vector.load %arg16[%c0_161, %c0_162, %c0_163] : memref<8x8x32xf32, #tpu.memory_space<vmem>>, vector<1x8x32xf32>
    %449 = vector.shape_cast %448 : vector<1x8x32xf32> to vector<8x32xf32>
    %450 = vector.shape_cast %447 : vector<8x32xf32> to vector<1x8x32xf32>
    tpu.vector_store %arg16[%c0_161, %c0_162, %c0_163], %450 {strides = array<i32>} : memref<8x8x32xf32, #tpu.memory_space<vmem>>, vector<1x8x32xf32>,
    %c1_164 = arith.constant 1 : index
    %c0_165 = arith.constant 0 : index
    %c0_166 = arith.constant 0 : index
    %451 = vector.load %arg15[%c1_164, %c0_165, %c0_166] : memref<8x8x128xf32, #tpu.memory_space<vmem>>, vector<1x8x128xf32>
    %452 = vector.shape_cast %451 : vector<1x8x128xf32> to vector<8x128xf32>
    %453 = arith.truncf %427 : vector<8x32xf32> to vector<8x32xbf16>
    %cst_167 = arith.constant dense<0.000000e+00> : vector<8x128xf32>
    %454 = tpu.matmul %453, %387, %cst_167 {dimension_numbers = #tpu.dot_dimension_numbers<[1], [0], [0], [1], [0, 0, 1, 1], [], []>} : vector<8x32xbf16>, vector<32x128xbf16>, vector<8x128xf32> -> vector<8x128xf32>
    %455 = arith.addf %452, %454 : vector<8x128xf32>
    %456 = arith.negf %455 : vector<8x128xf32>
    %457 = math.exp %456 : vector<8x128xf32>
    %cst_168 = arith.constant 1.000000e+00 : f32
    %458 = vector.broadcast %cst_168 : f32 to vector<8x128xf32>
    %459 = arith.addf %458, %457 : vector<8x128xf32>
    %460 = arith.divf %458, %459 : vector<8x128xf32>
    %461 = vector.extract_strided_slice %460 {offsets = [0, 0], sizes = [8, 32], strides = [1, 1]} : vector<8x128xf32> to vector<8x32xf32>
    %462 = vector.extract_strided_slice %460 {offsets = [0, 32], sizes = [8, 32], strides = [1, 1]} : vector<8x128xf32> to vector<8x32xf32>
    %463 = vector.extract_strided_slice %460 {offsets = [0, 64], sizes = [8, 32], strides = [1, 1]} : vector<8x128xf32> to vector<8x32xf32>
    %cst_169 = arith.constant 2.000000e+00 : f32
    %464 = vector.broadcast %cst_169 : f32 to vector<8x32xf32>
    %465 = arith.mulf %464, %463 : vector<8x32xf32>
    %cst_170 = arith.constant 1.000000e+00 : f32
    %466 = vector.broadcast %cst_170 : f32 to vector<8x32xf32>
    %467 = arith.subf %465, %466 : vector<8x32xf32>
    %468 = vector.extract_strided_slice %460 {offsets = [0, 96], sizes = [8, 32], strides = [1, 1]} : vector<8x128xf32> to vector<8x32xf32>
    %469 = arith.mulf %462, %425 : vector<8x32xf32>
    %470 = arith.mulf %461, %467 : vector<8x32xf32>
    %471 = arith.addf %469, %470 : vector<8x32xf32>
    %472 = math.tanh %471 : vector<8x32xf32>
    %473 = arith.mulf %468, %472 : vector<8x32xf32>
    %cst_171 = arith.constant dense<0.000000e+00> : vector<8xf32>
    %474 = vector.multi_reduction <add>, %473, %cst_171 [1] : vector<8x32xf32> to vector<8xf32>
    %475 = vector.shape_cast %474 : vector<8xf32> to vector<8x1xf32>
    %476 = arith.mulf %473, %473 : vector<8x32xf32>
    %cst_172 = arith.constant dense<0.000000e+00> : vector<8xf32>
    %477 = vector.multi_reduction <add>, %476, %cst_172 [1] : vector<8x32xf32> to vector<8xf32>
    %478 = vector.shape_cast %477 : vector<8xf32> to vector<8x1xf32>
    %cst_173 = arith.constant 3.125000e-02 : f32
    %479 = vector.broadcast %cst_173 : f32 to vector<8x1xf32>
    %480 = arith.mulf %475, %479 : vector<8x1xf32>
    %cst_174 = arith.constant 3.125000e-02 : f32
    %481 = vector.broadcast %cst_174 : f32 to vector<8x1xf32>
    %482 = arith.mulf %478, %481 : vector<8x1xf32>
    %483 = arith.mulf %480, %480 : vector<8x1xf32>
    %484 = arith.subf %482, %483 : vector<8x1xf32>
    %485 = vector.broadcast %480 : vector<8x1xf32> to vector<8x32xf32>
    %486 = arith.subf %473, %485 : vector<8x32xf32>
    %cst_175 = arith.constant 9.99999974E-6 : f32
    %487 = vector.broadcast %cst_175 : f32 to vector<8x1xf32>
    %488 = arith.addf %484, %487 : vector<8x1xf32>
    %489 = math.rsqrt %488 : vector<8x1xf32>
    %490 = vector.broadcast %489 : vector<8x1xf32> to vector<8x32xf32>
    %491 = arith.mulf %486, %490 : vector<8x32xf32>
    %492 = arith.mulf %491, %399 : vector<8x32xf32>
    %493 = arith.addf %492, %402 : vector<8x32xf32>
    %c1_176 = arith.constant 1 : index
    %c0_177 = arith.constant 0 : index
    %c0_178 = arith.constant 0 : index
    %494 = vector.load %arg16[%c1_176, %c0_177, %c0_178] : memref<8x8x32xf32, #tpu.memory_space<vmem>>, vector<1x8x32xf32>
    %495 = vector.shape_cast %494 : vector<1x8x32xf32> to vector<8x32xf32>
    %496 = vector.shape_cast %493 : vector<8x32xf32> to vector<1x8x32xf32>
    tpu.vector_store %arg16[%c1_176, %c0_177, %c0_178], %496 {strides = array<i32>} : memref<8x8x32xf32, #tpu.memory_space<vmem>>, vector<1x8x32xf32>,
    %c2_179 = arith.constant 2 : index
    %c0_180 = arith.constant 0 : index
    %c0_181 = arith.constant 0 : index
    %497 = vector.load %arg15[%c2_179, %c0_180, %c0_181] : memref<8x8x128xf32, #tpu.memory_space<vmem>>, vector<1x8x128xf32>
    %498 = vector.shape_cast %497 : vector<1x8x128xf32> to vector<8x128xf32>
    %499 = arith.truncf %473 : vector<8x32xf32> to vector<8x32xbf16>
    %cst_182 = arith.constant dense<0.000000e+00> : vector<8x128xf32>
    %500 = tpu.matmul %499, %387, %cst_182 {dimension_numbers = #tpu.dot_dimension_numbers<[1], [0], [0], [1], [0, 0, 1, 1], [], []>} : vector<8x32xbf16>, vector<32x128xbf16>, vector<8x128xf32> -> vector<8x128xf32>
    %501 = arith.addf %498, %500 : vector<8x128xf32>
    %502 = arith.negf %501 : vector<8x128xf32>
    %503 = math.exp %502 : vector<8x128xf32>
    %cst_183 = arith.constant 1.000000e+00 : f32
    %504 = vector.broadcast %cst_183 : f32 to vector<8x128xf32>
    %505 = arith.addf %504, %503 : vector<8x128xf32>
    %506 = arith.divf %504, %505 : vector<8x128xf32>
    %507 = vector.extract_strided_slice %506 {offsets = [0, 0], sizes = [8, 32], strides = [1, 1]} : vector<8x128xf32> to vector<8x32xf32>
    %508 = vector.extract_strided_slice %506 {offsets = [0, 32], sizes = [8, 32], strides = [1, 1]} : vector<8x128xf32> to vector<8x32xf32>
    %509 = vector.extract_strided_slice %506 {offsets = [0, 64], sizes = [8, 32], strides = [1, 1]} : vector<8x128xf32> to vector<8x32xf32>
    %cst_184 = arith.constant 2.000000e+00 : f32
    %510 = vector.broadcast %cst_184 : f32 to vector<8x32xf32>
    %511 = arith.mulf %510, %509 : vector<8x32xf32>
    %cst_185 = arith.constant 1.000000e+00 : f32
    %512 = vector.broadcast %cst_185 : f32 to vector<8x32xf32>
    %513 = arith.subf %511, %512 : vector<8x32xf32>
    %514 = vector.extract_strided_slice %506 {offsets = [0, 96], sizes = [8, 32], strides = [1, 1]} : vector<8x128xf32> to vector<8x32xf32>
    %515 = arith.mulf %508, %471 : vector<8x32xf32>
    %516 = arith.mulf %507, %513 : vector<8x32xf32>
    %517 = arith.addf %515, %516 : vector<8x32xf32>
    %518 = math.tanh %517 : vector<8x32xf32>
    %519 = arith.mulf %514, %518 : vector<8x32xf32>
    %cst_186 = arith.constant dense<0.000000e+00> : vector<8xf32>
    %520 = vector.multi_reduction <add>, %519, %cst_186 [1] : vector<8x32xf32> to vector<8xf32>
    %521 = vector.shape_cast %520 : vector<8xf32> to vector<8x1xf32>
    %522 = arith.mulf %519, %519 : vector<8x32xf32>
    %cst_187 = arith.constant dense<0.000000e+00> : vector<8xf32>
    %523 = vector.multi_reduction <add>, %522, %cst_187 [1] : vector<8x32xf32> to vector<8xf32>
    %524 = vector.shape_cast %523 : vector<8xf32> to vector<8x1xf32>
    %cst_188 = arith.constant 3.125000e-02 : f32
    %525 = vector.broadcast %cst_188 : f32 to vector<8x1xf32>
    %526 = arith.mulf %521, %525 : vector<8x1xf32>
    %cst_189 = arith.constant 3.125000e-02 : f32
    %527 = vector.broadcast %cst_189 : f32 to vector<8x1xf32>
    %528 = arith.mulf %524, %527 : vector<8x1xf32>
    %529 = arith.mulf %526, %526 : vector<8x1xf32>
    %530 = arith.subf %528, %529 : vector<8x1xf32>
    %531 = vector.broadcast %526 : vector<8x1xf32> to vector<8x32xf32>
    %532 = arith.subf %519, %531 : vector<8x32xf32>
    %cst_190 = arith.constant 9.99999974E-6 : f32
    %533 = vector.broadcast %cst_190 : f32 to vector<8x1xf32>
    %534 = arith.addf %530, %533 : vector<8x1xf32>
    %535 = math.rsqrt %534 : vector<8x1xf32>
    %536 = vector.broadcast %535 : vector<8x1xf32> to vector<8x32xf32>
    %537 = arith.mulf %532, %536 : vector<8x32xf32>
    %538 = arith.mulf %537, %399 : vector<8x32xf32>
    %539 = arith.addf %538, %402 : vector<8x32xf32>
    %c2_191 = arith.constant 2 : index
    %c0_192 = arith.constant 0 : index
    %c0_193 = arith.constant 0 : index
    %540 = vector.load %arg16[%c2_191, %c0_192, %c0_193] : memref<8x8x32xf32, #tpu.memory_space<vmem>>, vector<1x8x32xf32>
    %541 = vector.shape_cast %540 : vector<1x8x32xf32> to vector<8x32xf32>
    %542 = vector.shape_cast %539 : vector<8x32xf32> to vector<1x8x32xf32>
    tpu.vector_store %arg16[%c2_191, %c0_192, %c0_193], %542 {strides = array<i32>} : memref<8x8x32xf32, #tpu.memory_space<vmem>>, vector<1x8x32xf32>,
    %c3_194 = arith.constant 3 : index
    %c0_195 = arith.constant 0 : index
    %c0_196 = arith.constant 0 : index
    %543 = vector.load %arg15[%c3_194, %c0_195, %c0_196] : memref<8x8x128xf32, #tpu.memory_space<vmem>>, vector<1x8x128xf32>
    %544 = vector.shape_cast %543 : vector<1x8x128xf32> to vector<8x128xf32>
    %545 = arith.truncf %519 : vector<8x32xf32> to vector<8x32xbf16>
    %cst_197 = arith.constant dense<0.000000e+00> : vector<8x128xf32>
    %546 = tpu.matmul %545, %387, %cst_197 {dimension_numbers = #tpu.dot_dimension_numbers<[1], [0], [0], [1], [0, 0, 1, 1], [], []>} : vector<8x32xbf16>, vector<32x128xbf16>, vector<8x128xf32> -> vector<8x128xf32>
    %547 = arith.addf %544, %546 : vector<8x128xf32>
    %548 = arith.negf %547 : vector<8x128xf32>
    %549 = math.exp %548 : vector<8x128xf32>
    %cst_198 = arith.constant 1.000000e+00 : f32
    %550 = vector.broadcast %cst_198 : f32 to vector<8x128xf32>
    %551 = arith.addf %550, %549 : vector<8x128xf32>
    %552 = arith.divf %550, %551 : vector<8x128xf32>
    %553 = vector.extract_strided_slice %552 {offsets = [0, 0], sizes = [8, 32], strides = [1, 1]} : vector<8x128xf32> to vector<8x32xf32>
    %554 = vector.extract_strided_slice %552 {offsets = [0, 32], sizes = [8, 32], strides = [1, 1]} : vector<8x128xf32> to vector<8x32xf32>
    %555 = vector.extract_strided_slice %552 {offsets = [0, 64], sizes = [8, 32], strides = [1, 1]} : vector<8x128xf32> to vector<8x32xf32>
    %cst_199 = arith.constant 2.000000e+00 : f32
    %556 = vector.broadcast %cst_199 : f32 to vector<8x32xf32>
    %557 = arith.mulf %556, %555 : vector<8x32xf32>
    %cst_200 = arith.constant 1.000000e+00 : f32
    %558 = vector.broadcast %cst_200 : f32 to vector<8x32xf32>
    %559 = arith.subf %557, %558 : vector<8x32xf32>
    %560 = vector.extract_strided_slice %552 {offsets = [0, 96], sizes = [8, 32], strides = [1, 1]} : vector<8x128xf32> to vector<8x32xf32>
    %561 = arith.mulf %554, %517 : vector<8x32xf32>
    %562 = arith.mulf %553, %559 : vector<8x32xf32>
    %563 = arith.addf %561, %562 : vector<8x32xf32>
    %564 = math.tanh %563 : vector<8x32xf32>
    %565 = arith.mulf %560, %564 : vector<8x32xf32>
    %cst_201 = arith.constant dense<0.000000e+00> : vector<8xf32>
    %566 = vector.multi_reduction <add>, %565, %cst_201 [1] : vector<8x32xf32> to vector<8xf32>
    %567 = vector.shape_cast %566 : vector<8xf32> to vector<8x1xf32>
    %568 = arith.mulf %565, %565 : vector<8x32xf32>
    %cst_202 = arith.constant dense<0.000000e+00> : vector<8xf32>
    %569 = vector.multi_reduction <add>, %568, %cst_202 [1] : vector<8x32xf32> to vector<8xf32>
    %570 = vector.shape_cast %569 : vector<8xf32> to vector<8x1xf32>
    %cst_203 = arith.constant 3.125000e-02 : f32
    %571 = vector.broadcast %cst_203 : f32 to vector<8x1xf32>
    %572 = arith.mulf %567, %571 : vector<8x1xf32>
    %cst_204 = arith.constant 3.125000e-02 : f32
    %573 = vector.broadcast %cst_204 : f32 to vector<8x1xf32>
    %574 = arith.mulf %570, %573 : vector<8x1xf32>
    %575 = arith.mulf %572, %572 : vector<8x1xf32>
    %576 = arith.subf %574, %575 : vector<8x1xf32>
    %577 = vector.broadcast %572 : vector<8x1xf32> to vector<8x32xf32>
    %578 = arith.subf %565, %577 : vector<8x32xf32>
    %cst_205 = arith.constant 9.99999974E-6 : f32
    %579 = vector.broadcast %cst_205 : f32 to vector<8x1xf32>
    %580 = arith.addf %576, %579 : vector<8x1xf32>
    %581 = math.rsqrt %580 : vector<8x1xf32>
    %582 = vector.broadcast %581 : vector<8x1xf32> to vector<8x32xf32>
    %583 = arith.mulf %578, %582 : vector<8x32xf32>
    %584 = arith.mulf %583, %399 : vector<8x32xf32>
    %585 = arith.addf %584, %402 : vector<8x32xf32>
    %c3_206 = arith.constant 3 : index
    %c0_207 = arith.constant 0 : index
    %c0_208 = arith.constant 0 : index
    %586 = vector.load %arg16[%c3_206, %c0_207, %c0_208] : memref<8x8x32xf32, #tpu.memory_space<vmem>>, vector<1x8x32xf32>
    %587 = vector.shape_cast %586 : vector<1x8x32xf32> to vector<8x32xf32>
    %588 = vector.shape_cast %585 : vector<8x32xf32> to vector<1x8x32xf32>
    tpu.vector_store %arg16[%c3_206, %c0_207, %c0_208], %588 {strides = array<i32>} : memref<8x8x32xf32, #tpu.memory_space<vmem>>, vector<1x8x32xf32>,
    %c4_209 = arith.constant 4 : index
    %c0_210 = arith.constant 0 : index
    %c0_211 = arith.constant 0 : index
    %589 = vector.load %arg15[%c4_209, %c0_210, %c0_211] : memref<8x8x128xf32, #tpu.memory_space<vmem>>, vector<1x8x128xf32>
    %590 = vector.shape_cast %589 : vector<1x8x128xf32> to vector<8x128xf32>
    %591 = arith.truncf %565 : vector<8x32xf32> to vector<8x32xbf16>
    %cst_212 = arith.constant dense<0.000000e+00> : vector<8x128xf32>
    %592 = tpu.matmul %591, %387, %cst_212 {dimension_numbers = #tpu.dot_dimension_numbers<[1], [0], [0], [1], [0, 0, 1, 1], [], []>} : vector<8x32xbf16>, vector<32x128xbf16>, vector<8x128xf32> -> vector<8x128xf32>
    %593 = arith.addf %590, %592 : vector<8x128xf32>
    %594 = arith.negf %593 : vector<8x128xf32>
    %595 = math.exp %594 : vector<8x128xf32>
    %cst_213 = arith.constant 1.000000e+00 : f32
    %596 = vector.broadcast %cst_213 : f32 to vector<8x128xf32>
    %597 = arith.addf %596, %595 : vector<8x128xf32>
    %598 = arith.divf %596, %597 : vector<8x128xf32>
    %599 = vector.extract_strided_slice %598 {offsets = [0, 0], sizes = [8, 32], strides = [1, 1]} : vector<8x128xf32> to vector<8x32xf32>
    %600 = vector.extract_strided_slice %598 {offsets = [0, 32], sizes = [8, 32], strides = [1, 1]} : vector<8x128xf32> to vector<8x32xf32>
    %601 = vector.extract_strided_slice %598 {offsets = [0, 64], sizes = [8, 32], strides = [1, 1]} : vector<8x128xf32> to vector<8x32xf32>
    %cst_214 = arith.constant 2.000000e+00 : f32
    %602 = vector.broadcast %cst_214 : f32 to vector<8x32xf32>
    %603 = arith.mulf %602, %601 : vector<8x32xf32>
    %cst_215 = arith.constant 1.000000e+00 : f32
    %604 = vector.broadcast %cst_215 : f32 to vector<8x32xf32>
    %605 = arith.subf %603, %604 : vector<8x32xf32>
    %606 = vector.extract_strided_slice %598 {offsets = [0, 96], sizes = [8, 32], strides = [1, 1]} : vector<8x128xf32> to vector<8x32xf32>
    %607 = arith.mulf %600, %563 : vector<8x32xf32>
    %608 = arith.mulf %599, %605 : vector<8x32xf32>
    %609 = arith.addf %607, %608 : vector<8x32xf32>
    %610 = math.tanh %609 : vector<8x32xf32>
    %611 = arith.mulf %606, %610 : vector<8x32xf32>
    %cst_216 = arith.constant dense<0.000000e+00> : vector<8xf32>
    %612 = vector.multi_reduction <add>, %611, %cst_216 [1] : vector<8x32xf32> to vector<8xf32>
    %613 = vector.shape_cast %612 : vector<8xf32> to vector<8x1xf32>
    %614 = arith.mulf %611, %611 : vector<8x32xf32>
    %cst_217 = arith.constant dense<0.000000e+00> : vector<8xf32>
    %615 = vector.multi_reduction <add>, %614, %cst_217 [1] : vector<8x32xf32> to vector<8xf32>
    %616 = vector.shape_cast %615 : vector<8xf32> to vector<8x1xf32>
    %cst_218 = arith.constant 3.125000e-02 : f32
    %617 = vector.broadcast %cst_218 : f32 to vector<8x1xf32>
    %618 = arith.mulf %613, %617 : vector<8x1xf32>
    %cst_219 = arith.constant 3.125000e-02 : f32
    %619 = vector.broadcast %cst_219 : f32 to vector<8x1xf32>
    %620 = arith.mulf %616, %619 : vector<8x1xf32>
    %621 = arith.mulf %618, %618 : vector<8x1xf32>
    %622 = arith.subf %620, %621 : vector<8x1xf32>
    %623 = vector.broadcast %618 : vector<8x1xf32> to vector<8x32xf32>
    %624 = arith.subf %611, %623 : vector<8x32xf32>
    %cst_220 = arith.constant 9.99999974E-6 : f32
    %625 = vector.broadcast %cst_220 : f32 to vector<8x1xf32>
    %626 = arith.addf %622, %625 : vector<8x1xf32>
    %627 = math.rsqrt %626 : vector<8x1xf32>
    %628 = vector.broadcast %627 : vector<8x1xf32> to vector<8x32xf32>
    %629 = arith.mulf %624, %628 : vector<8x32xf32>
    %630 = arith.mulf %629, %399 : vector<8x32xf32>
    %631 = arith.addf %630, %402 : vector<8x32xf32>
    %c4_221 = arith.constant 4 : index
    %c0_222 = arith.constant 0 : index
    %c0_223 = arith.constant 0 : index
    %632 = vector.load %arg16[%c4_221, %c0_222, %c0_223] : memref<8x8x32xf32, #tpu.memory_space<vmem>>, vector<1x8x32xf32>
    %633 = vector.shape_cast %632 : vector<1x8x32xf32> to vector<8x32xf32>
    %634 = vector.shape_cast %631 : vector<8x32xf32> to vector<1x8x32xf32>
    tpu.vector_store %arg16[%c4_221, %c0_222, %c0_223], %634 {strides = array<i32>} : memref<8x8x32xf32, #tpu.memory_space<vmem>>, vector<1x8x32xf32>,
    %c5_224 = arith.constant 5 : index
    %c0_225 = arith.constant 0 : index
    %c0_226 = arith.constant 0 : index
    %635 = vector.load %arg15[%c5_224, %c0_225, %c0_226] : memref<8x8x128xf32, #tpu.memory_space<vmem>>, vector<1x8x128xf32>
    %636 = vector.shape_cast %635 : vector<1x8x128xf32> to vector<8x128xf32>
    %637 = arith.truncf %611 : vector<8x32xf32> to vector<8x32xbf16>
    %cst_227 = arith.constant dense<0.000000e+00> : vector<8x128xf32>
    %638 = tpu.matmul %637, %387, %cst_227 {dimension_numbers = #tpu.dot_dimension_numbers<[1], [0], [0], [1], [0, 0, 1, 1], [], []>} : vector<8x32xbf16>, vector<32x128xbf16>, vector<8x128xf32> -> vector<8x128xf32>
    %639 = arith.addf %636, %638 : vector<8x128xf32>
    %640 = arith.negf %639 : vector<8x128xf32>
    %641 = math.exp %640 : vector<8x128xf32>
    %cst_228 = arith.constant 1.000000e+00 : f32
    %642 = vector.broadcast %cst_228 : f32 to vector<8x128xf32>
    %643 = arith.addf %642, %641 : vector<8x128xf32>
    %644 = arith.divf %642, %643 : vector<8x128xf32>
    %645 = vector.extract_strided_slice %644 {offsets = [0, 0], sizes = [8, 32], strides = [1, 1]} : vector<8x128xf32> to vector<8x32xf32>
    %646 = vector.extract_strided_slice %644 {offsets = [0, 32], sizes = [8, 32], strides = [1, 1]} : vector<8x128xf32> to vector<8x32xf32>
    %647 = vector.extract_strided_slice %644 {offsets = [0, 64], sizes = [8, 32], strides = [1, 1]} : vector<8x128xf32> to vector<8x32xf32>
    %cst_229 = arith.constant 2.000000e+00 : f32
    %648 = vector.broadcast %cst_229 : f32 to vector<8x32xf32>
    %649 = arith.mulf %648, %647 : vector<8x32xf32>
    %cst_230 = arith.constant 1.000000e+00 : f32
    %650 = vector.broadcast %cst_230 : f32 to vector<8x32xf32>
    %651 = arith.subf %649, %650 : vector<8x32xf32>
    %652 = vector.extract_strided_slice %644 {offsets = [0, 96], sizes = [8, 32], strides = [1, 1]} : vector<8x128xf32> to vector<8x32xf32>
    %653 = arith.mulf %646, %609 : vector<8x32xf32>
    %654 = arith.mulf %645, %651 : vector<8x32xf32>
    %655 = arith.addf %653, %654 : vector<8x32xf32>
    %656 = math.tanh %655 : vector<8x32xf32>
    %657 = arith.mulf %652, %656 : vector<8x32xf32>
    %cst_231 = arith.constant dense<0.000000e+00> : vector<8xf32>
    %658 = vector.multi_reduction <add>, %657, %cst_231 [1] : vector<8x32xf32> to vector<8xf32>
    %659 = vector.shape_cast %658 : vector<8xf32> to vector<8x1xf32>
    %660 = arith.mulf %657, %657 : vector<8x32xf32>
    %cst_232 = arith.constant dense<0.000000e+00> : vector<8xf32>
    %661 = vector.multi_reduction <add>, %660, %cst_232 [1] : vector<8x32xf32> to vector<8xf32>
    %662 = vector.shape_cast %661 : vector<8xf32> to vector<8x1xf32>
    %cst_233 = arith.constant 3.125000e-02 : f32
    %663 = vector.broadcast %cst_233 : f32 to vector<8x1xf32>
    %664 = arith.mulf %659, %663 : vector<8x1xf32>
    %cst_234 = arith.constant 3.125000e-02 : f32
    %665 = vector.broadcast %cst_234 : f32 to vector<8x1xf32>
    %666 = arith.mulf %662, %665 : vector<8x1xf32>
    %667 = arith.mulf %664, %664 : vector<8x1xf32>
    %668 = arith.subf %666, %667 : vector<8x1xf32>
    %669 = vector.broadcast %664 : vector<8x1xf32> to vector<8x32xf32>
    %670 = arith.subf %657, %669 : vector<8x32xf32>
    %cst_235 = arith.constant 9.99999974E-6 : f32
    %671 = vector.broadcast %cst_235 : f32 to vector<8x1xf32>
    %672 = arith.addf %668, %671 : vector<8x1xf32>
    %673 = math.rsqrt %672 : vector<8x1xf32>
    %674 = vector.broadcast %673 : vector<8x1xf32> to vector<8x32xf32>
    %675 = arith.mulf %670, %674 : vector<8x32xf32>
    %676 = arith.mulf %675, %399 : vector<8x32xf32>
    %677 = arith.addf %676, %402 : vector<8x32xf32>
    %c5_236 = arith.constant 5 : index
    %c0_237 = arith.constant 0 : index
    %c0_238 = arith.constant 0 : index
    %678 = vector.load %arg16[%c5_236, %c0_237, %c0_238] : memref<8x8x32xf32, #tpu.memory_space<vmem>>, vector<1x8x32xf32>
    %679 = vector.shape_cast %678 : vector<1x8x32xf32> to vector<8x32xf32>
    %680 = vector.shape_cast %677 : vector<8x32xf32> to vector<1x8x32xf32>
    tpu.vector_store %arg16[%c5_236, %c0_237, %c0_238], %680 {strides = array<i32>} : memref<8x8x32xf32, #tpu.memory_space<vmem>>, vector<1x8x32xf32>,
    %c6_239 = arith.constant 6 : index
    %c0_240 = arith.constant 0 : index
    %c0_241 = arith.constant 0 : index
    %681 = vector.load %arg15[%c6_239, %c0_240, %c0_241] : memref<8x8x128xf32, #tpu.memory_space<vmem>>, vector<1x8x128xf32>
    %682 = vector.shape_cast %681 : vector<1x8x128xf32> to vector<8x128xf32>
    %683 = arith.truncf %657 : vector<8x32xf32> to vector<8x32xbf16>
    %cst_242 = arith.constant dense<0.000000e+00> : vector<8x128xf32>
    %684 = tpu.matmul %683, %387, %cst_242 {dimension_numbers = #tpu.dot_dimension_numbers<[1], [0], [0], [1], [0, 0, 1, 1], [], []>} : vector<8x32xbf16>, vector<32x128xbf16>, vector<8x128xf32> -> vector<8x128xf32>
    %685 = arith.addf %682, %684 : vector<8x128xf32>
    %686 = arith.negf %685 : vector<8x128xf32>
    %687 = math.exp %686 : vector<8x128xf32>
    %cst_243 = arith.constant 1.000000e+00 : f32
    %688 = vector.broadcast %cst_243 : f32 to vector<8x128xf32>
    %689 = arith.addf %688, %687 : vector<8x128xf32>
    %690 = arith.divf %688, %689 : vector<8x128xf32>
    %691 = vector.extract_strided_slice %690 {offsets = [0, 0], sizes = [8, 32], strides = [1, 1]} : vector<8x128xf32> to vector<8x32xf32>
    %692 = vector.extract_strided_slice %690 {offsets = [0, 32], sizes = [8, 32], strides = [1, 1]} : vector<8x128xf32> to vector<8x32xf32>
    %693 = vector.extract_strided_slice %690 {offsets = [0, 64], sizes = [8, 32], strides = [1, 1]} : vector<8x128xf32> to vector<8x32xf32>
    %cst_244 = arith.constant 2.000000e+00 : f32
    %694 = vector.broadcast %cst_244 : f32 to vector<8x32xf32>
    %695 = arith.mulf %694, %693 : vector<8x32xf32>
    %cst_245 = arith.constant 1.000000e+00 : f32
    %696 = vector.broadcast %cst_245 : f32 to vector<8x32xf32>
    %697 = arith.subf %695, %696 : vector<8x32xf32>
    %698 = vector.extract_strided_slice %690 {offsets = [0, 96], sizes = [8, 32], strides = [1, 1]} : vector<8x128xf32> to vector<8x32xf32>
    %699 = arith.mulf %692, %655 : vector<8x32xf32>
    %700 = arith.mulf %691, %697 : vector<8x32xf32>
    %701 = arith.addf %699, %700 : vector<8x32xf32>
    %702 = math.tanh %701 : vector<8x32xf32>
    %703 = arith.mulf %698, %702 : vector<8x32xf32>
    %cst_246 = arith.constant dense<0.000000e+00> : vector<8xf32>
    %704 = vector.multi_reduction <add>, %703, %cst_246 [1] : vector<8x32xf32> to vector<8xf32>
    %705 = vector.shape_cast %704 : vector<8xf32> to vector<8x1xf32>
    %706 = arith.mulf %703, %703 : vector<8x32xf32>
    %cst_247 = arith.constant dense<0.000000e+00> : vector<8xf32>
    %707 = vector.multi_reduction <add>, %706, %cst_247 [1] : vector<8x32xf32> to vector<8xf32>
    %708 = vector.shape_cast %707 : vector<8xf32> to vector<8x1xf32>
    %cst_248 = arith.constant 3.125000e-02 : f32
    %709 = vector.broadcast %cst_248 : f32 to vector<8x1xf32>
    %710 = arith.mulf %705, %709 : vector<8x1xf32>
    %cst_249 = arith.constant 3.125000e-02 : f32
    %711 = vector.broadcast %cst_249 : f32 to vector<8x1xf32>
    %712 = arith.mulf %708, %711 : vector<8x1xf32>
    %713 = arith.mulf %710, %710 : vector<8x1xf32>
    %714 = arith.subf %712, %713 : vector<8x1xf32>
    %715 = vector.broadcast %710 : vector<8x1xf32> to vector<8x32xf32>
    %716 = arith.subf %703, %715 : vector<8x32xf32>
    %cst_250 = arith.constant 9.99999974E-6 : f32
    %717 = vector.broadcast %cst_250 : f32 to vector<8x1xf32>
    %718 = arith.addf %714, %717 : vector<8x1xf32>
    %719 = math.rsqrt %718 : vector<8x1xf32>
    %720 = vector.broadcast %719 : vector<8x1xf32> to vector<8x32xf32>
    %721 = arith.mulf %716, %720 : vector<8x32xf32>
    %722 = arith.mulf %721, %399 : vector<8x32xf32>
    %723 = arith.addf %722, %402 : vector<8x32xf32>
    %c6_251 = arith.constant 6 : index
    %c0_252 = arith.constant 0 : index
    %c0_253 = arith.constant 0 : index
    %724 = vector.load %arg16[%c6_251, %c0_252, %c0_253] : memref<8x8x32xf32, #tpu.memory_space<vmem>>, vector<1x8x32xf32>
    %725 = vector.shape_cast %724 : vector<1x8x32xf32> to vector<8x32xf32>
    %726 = vector.shape_cast %723 : vector<8x32xf32> to vector<1x8x32xf32>
    tpu.vector_store %arg16[%c6_251, %c0_252, %c0_253], %726 {strides = array<i32>} : memref<8x8x32xf32, #tpu.memory_space<vmem>>, vector<1x8x32xf32>,
    %c7_254 = arith.constant 7 : index
    %c0_255 = arith.constant 0 : index
    %c0_256 = arith.constant 0 : index
    %727 = vector.load %arg15[%c7_254, %c0_255, %c0_256] : memref<8x8x128xf32, #tpu.memory_space<vmem>>, vector<1x8x128xf32>
    %728 = vector.shape_cast %727 : vector<1x8x128xf32> to vector<8x128xf32>
    %729 = arith.truncf %703 : vector<8x32xf32> to vector<8x32xbf16>
    %cst_257 = arith.constant dense<0.000000e+00> : vector<8x128xf32>
    %730 = tpu.matmul %729, %387, %cst_257 {dimension_numbers = #tpu.dot_dimension_numbers<[1], [0], [0], [1], [0, 0, 1, 1], [], []>} : vector<8x32xbf16>, vector<32x128xbf16>, vector<8x128xf32> -> vector<8x128xf32>
    %731 = arith.addf %728, %730 : vector<8x128xf32>
    %732 = arith.negf %731 : vector<8x128xf32>
    %733 = math.exp %732 : vector<8x128xf32>
    %cst_258 = arith.constant 1.000000e+00 : f32
    %734 = vector.broadcast %cst_258 : f32 to vector<8x128xf32>
    %735 = arith.addf %734, %733 : vector<8x128xf32>
    %736 = arith.divf %734, %735 : vector<8x128xf32>
    %737 = vector.extract_strided_slice %736 {offsets = [0, 0], sizes = [8, 32], strides = [1, 1]} : vector<8x128xf32> to vector<8x32xf32>
    %738 = vector.extract_strided_slice %736 {offsets = [0, 32], sizes = [8, 32], strides = [1, 1]} : vector<8x128xf32> to vector<8x32xf32>
    %739 = vector.extract_strided_slice %736 {offsets = [0, 64], sizes = [8, 32], strides = [1, 1]} : vector<8x128xf32> to vector<8x32xf32>
    %cst_259 = arith.constant 2.000000e+00 : f32
    %740 = vector.broadcast %cst_259 : f32 to vector<8x32xf32>
    %741 = arith.mulf %740, %739 : vector<8x32xf32>
    %cst_260 = arith.constant 1.000000e+00 : f32
    %742 = vector.broadcast %cst_260 : f32 to vector<8x32xf32>
    %743 = arith.subf %741, %742 : vector<8x32xf32>
    %744 = vector.extract_strided_slice %736 {offsets = [0, 96], sizes = [8, 32], strides = [1, 1]} : vector<8x128xf32> to vector<8x32xf32>
    %745 = arith.mulf %738, %701 : vector<8x32xf32>
    %746 = arith.mulf %737, %743 : vector<8x32xf32>
    %747 = arith.addf %745, %746 : vector<8x32xf32>
    %748 = math.tanh %747 : vector<8x32xf32>
    %749 = arith.mulf %744, %748 : vector<8x32xf32>
    %cst_261 = arith.constant dense<0.000000e+00> : vector<8xf32>
    %750 = vector.multi_reduction <add>, %749, %cst_261 [1] : vector<8x32xf32> to vector<8xf32>
    %751 = vector.shape_cast %750 : vector<8xf32> to vector<8x1xf32>
    %752 = arith.mulf %749, %749 : vector<8x32xf32>
    %cst_262 = arith.constant dense<0.000000e+00> : vector<8xf32>
    %753 = vector.multi_reduction <add>, %752, %cst_262 [1] : vector<8x32xf32> to vector<8xf32>
    %754 = vector.shape_cast %753 : vector<8xf32> to vector<8x1xf32>
    %cst_263 = arith.constant 3.125000e-02 : f32
    %755 = vector.broadcast %cst_263 : f32 to vector<8x1xf32>
    %756 = arith.mulf %751, %755 : vector<8x1xf32>
    %cst_264 = arith.constant 3.125000e-02 : f32
    %757 = vector.broadcast %cst_264 : f32 to vector<8x1xf32>
    %758 = arith.mulf %754, %757 : vector<8x1xf32>
    %759 = arith.mulf %756, %756 : vector<8x1xf32>
    %760 = arith.subf %758, %759 : vector<8x1xf32>
    %761 = vector.broadcast %756 : vector<8x1xf32> to vector<8x32xf32>
    %762 = arith.subf %749, %761 : vector<8x32xf32>
    %cst_265 = arith.constant 9.99999974E-6 : f32
    %763 = vector.broadcast %cst_265 : f32 to vector<8x1xf32>
    %764 = arith.addf %760, %763 : vector<8x1xf32>
    %765 = math.rsqrt %764 : vector<8x1xf32>
    %766 = vector.broadcast %765 : vector<8x1xf32> to vector<8x32xf32>
    %767 = arith.mulf %762, %766 : vector<8x32xf32>
    %768 = arith.mulf %767, %399 : vector<8x32xf32>
    %769 = arith.addf %768, %402 : vector<8x32xf32>
    %c7_266 = arith.constant 7 : index
    %c0_267 = arith.constant 0 : index
    %c0_268 = arith.constant 0 : index
    %770 = vector.load %arg16[%c7_266, %c0_267, %c0_268] : memref<8x8x32xf32, #tpu.memory_space<vmem>>, vector<1x8x32xf32>
    %771 = vector.shape_cast %770 : vector<1x8x32xf32> to vector<8x32xf32>
    %772 = vector.shape_cast %769 : vector<8x32xf32> to vector<1x8x32xf32>
    tpu.vector_store %arg16[%c7_266, %c0_267, %c0_268], %772 {strides = array<i32>} : memref<8x8x32xf32, #tpu.memory_space<vmem>>, vector<1x8x32xf32>,
    %c0_269 = arith.constant 0 : index
    %c0_270 = arith.constant 0 : index
    %773 = vector.load %arg12[%c0_269, %c0_270] : memref<32x256xbf16, #tpu.memory_space<vmem>>, vector<32x256xbf16>
    %c0_271 = arith.constant 0 : index
    %c0_272 = arith.constant 0 : index
    %c0_273 = arith.constant 0 : index
    %774 = vector.load %arg16[%c0_271, %c0_272, %c0_273] : memref<8x8x32xf32, #tpu.memory_space<vmem>>, vector<8x8x32xf32>
    %775 = vector.shape_cast %774 : vector<8x8x32xf32> to vector<64x32xf32>
    %776 = arith.truncf %775 : vector<64x32xf32> to vector<64x32xbf16>
    %cst_274 = arith.constant dense<0.000000e+00> : vector<64x256xf32>
    %777 = tpu.matmul %776, %773, %cst_274 {dimension_numbers = #tpu.dot_dimension_numbers<[1], [0], [0], [1], [0, 0, 1, 1], [], []>} : vector<64x32xbf16>, vector<32x256xbf16>, vector<64x256xf32> -> vector<64x256xf32>
    %c0_275 = arith.constant 0 : index
    %c0_276 = arith.constant 0 : index
    %778 = vector.load %arg13[%c0_275, %c0_276] : memref<1x256xf32, #tpu.memory_space<vmem>>, vector<1x256xf32>
    %779 = vector.broadcast %778 : vector<1x256xf32> to vector<64x256xf32>
    %780 = arith.addf %777, %779 : vector<64x256xf32>
    %781 = vector.shape_cast %780 : vector<64x256xf32> to vector<8x8x256xf32>
    %c0_277 = arith.constant 0 : index
    %c0_278 = arith.constant 0 : index
    %c0_279 = arith.constant 0 : index
    %782 = vector.load %arg14[%c0_277, %c0_278, %c0_279] : memref<8x8x256xf32, #tpu.memory_space<vmem>>, vector<8x8x256xf32>
    tpu.vector_store %arg14[%c0_277, %c0_278, %c0_279], %781 {strides = array<i32>} : memref<8x8x256xf32, #tpu.memory_space<vmem>>, vector<8x8x256xf32>,
    return
  }
  func.func @transform_0(%arg0: i32) -> (i32, i32, i32) {
    %c0_i32 = arith.constant 0 : i32
    %c0_i32_0 = arith.constant 0 : i32
    %c0_i32_1 = arith.constant 0 : i32
    return %c0_i32, %arg0, %c0_i32_0 : i32, i32, i32
  }
  func.func @transform_1(%arg0: i32) -> (i32, i32) {
    %c0_i32 = arith.constant 0 : i32
    %c0_i32_0 = arith.constant 0 : i32
    %c0_i32_1 = arith.constant 0 : i32
    return %c0_i32, %c0_i32_0 : i32, i32
  }
  func.func @transform_2(%arg0: i32) -> (i32, i32) {
    %c0_i32 = arith.constant 0 : i32
    %c0_i32_0 = arith.constant 0 : i32
    %c0_i32_1 = arith.constant 0 : i32
    return %c0_i32, %c0_i32_0 : i32, i32
  }
  func.func @transform_3(%arg0: i32) -> (i32, i32) {
    %c0_i32 = arith.constant 0 : i32
    %c0_i32_0 = arith.constant 0 : i32
    %c0_i32_1 = arith.constant 0 : i32
    return %c0_i32, %c0_i32_0 : i32, i32
  }
  func.func @transform_4(%arg0: i32) -> (i32, i32) {
    %c0_i32 = arith.constant 0 : i32
    %c0_i32_0 = arith.constant 0 : i32
    %c0_i32_1 = arith.constant 0 : i32
    return %c0_i32, %c0_i32_0 : i32, i32
  }
  func.func @transform_5(%arg0: i32) -> (i32, i32) {
    %c0_i32 = arith.constant 0 : i32
    %c0_i32_0 = arith.constant 0 : i32
    %c0_i32_1 = arith.constant 0 : i32
    return %c0_i32, %c0_i32_0 : i32, i32
  }
  func.func @transform_6(%arg0: i32) -> (i32, i32) {
    %c0_i32 = arith.constant 0 : i32
    %c0_i32_0 = arith.constant 0 : i32
    %c0_i32_1 = arith.constant 0 : i32
    return %c0_i32, %c0_i32_0 : i32, i32
  }
  func.func @transform_7(%arg0: i32) -> (i32, i32) {
    %c0_i32 = arith.constant 0 : i32
    %c0_i32_0 = arith.constant 0 : i32
    %c0_i32_1 = arith.constant 0 : i32
    return %c0_i32, %c0_i32_0 : i32, i32
  }
  func.func @transform_8(%arg0: i32) -> (i32, i32) {
    %c0_i32 = arith.constant 0 : i32
    %c0_i32_0 = arith.constant 0 : i32
    %c0_i32_1 = arith.constant 0 : i32
    return %c0_i32, %c0_i32_0 : i32, i32
  }
  func.func @transform_9(%arg0: i32) -> (i32, i32) {
    %c0_i32 = arith.constant 0 : i32
    %c0_i32_0 = arith.constant 0 : i32
    %c0_i32_1 = arith.constant 0 : i32
    return %c0_i32, %c0_i32_0 : i32, i32
  }
  func.func @transform_10(%arg0: i32) -> (i32, i32) {
    %c0_i32 = arith.constant 0 : i32
    %c0_i32_0 = arith.constant 0 : i32
    %c0_i32_1 = arith.constant 0 : i32
    return %c0_i32, %c0_i32_0 : i32, i32
  }
  func.func @transform_11(%arg0: i32) -> (i32, i32) {
    %c0_i32 = arith.constant 0 : i32
    %c0_i32_0 = arith.constant 0 : i32
    %c0_i32_1 = arith.constant 0 : i32
    return %c0_i32, %c0_i32_0 : i32, i32
  }
  func.func @transform_12(%arg0: i32) -> (i32, i32) {
    %c0_i32 = arith.constant 0 : i32
    %c0_i32_0 = arith.constant 0 : i32
    %c0_i32_1 = arith.constant 0 : i32
    return %c0_i32, %c0_i32_0 : i32, i32
  }
  func.func @transform_13(%arg0: i32) -> (i32, i32, i32) {
    %c0_i32 = arith.constant 0 : i32
    %c0_i32_0 = arith.constant 0 : i32
    %c0_i32_1 = arith.constant 0 : i32
    return %c0_i32, %arg0, %c0_i32_0 : i32, i32, i32
  }
}

</mosaic_0001>

<bundles_post_ra>
// kernel: tpu_custom_call.1
= control target key start
LH: loop header
LB: loop body
LE: loop exit
PB: predicated region body
PF: predicated region fallthrough
CT: control target
= control target key end

     0   :  { %s4561_s0 = inlined_call_operand.hbm [shape: bf16[8,16,32], index: 0, kind: input, shape index: {}]   ;;  %s4562_s1 = inlined_call_operand.hbm [shape: bf16[32,128], index: 1, kind: input, shape index: {}]   ;;  %s4563_s2 = inlined_call_operand.hbm [shape: bf16[32,128], index: 2, kind: input, shape index: {}]   ;;  %s4564_s3 = inlined_call_operand.vmem [shape: f32[1,128], index: 3, kind: input, shape index: {}]   ;;  %s4565_s4 = inlined_call_operand.vmem [shape: f32[1,32], index: 4, kind: input, shape index: {}]   ;;  %s4566_s5 = inlined_call_operand.vmem [shape: f32[1,32], index: 5, kind: input, shape index: {}]   ;;  %s4567_s6 = inlined_call_operand.hbm [shape: bf16[32,128], index: 6, kind: input, shape index: {}]   ;;  %s4568_s7 = inlined_call_operand.hbm [shape: bf16[32,128], index: 7, kind: input, shape index: {}]   ;;  %s4569_s8 = inlined_call_operand.vmem [shape: f32[1,128], index: 8, kind: input, shape index: {}]   ;;  %s4570_s9 = inlined_call_operand.vmem [shape: f32[1,32], index: 9, kind: input, shape index: {}]   ;;  %s4571_s10 = inlined_call_operand.vmem [shape: f32[1,32], index: 10, kind: input, shape index: {}]   ;;  %s4572_s11 = inlined_call_operand.vmem [shape: bf16[32,256], index: 11, kind: input, shape index: {}]   ;;  %s4573_s12 = inlined_call_operand.vmem [shape: f32[1,256], index: 12, kind: input, shape index: {}]   ;;  %s4574_s13 = inlined_call_operand.hbm [shape: f32[8,16,256], index: 13, kind: output, shape index: {}]  }
   0x1   :  { %4582 = sst [smem:[#allocation20_spill]] %s4570_s9 }
   0x2   :  { %4583 = sst [smem:[#allocation21_spill]] %s4571_s10 }
   0x3   :  { %4584 = sst [smem:[#allocation22_spill]] %s4572_s11 }
   0x4   :  { %4585 = sst [smem:[#allocation23_spill]] %s4573_s12 }
   0x5   :  { %4586 = sst [smem:[#allocation24_spill]] %s4574_s13 }
   0x6   :  { %18 = vsyncpa [#allocation5], 0 }
   0x7   :  { %20 = vsyncpa [#allocation5 + $0x1], 0 }
   0x8   :  { %21 = vsyncpa [#allocation8], 0 }
   0x9   :  { %22 = vsyncpa [#allocation11], 0 }
   0xa   :  { %23 = vsyncpa [#allocation6], 0 }
   0xb   :  { %25 = vsyncpa [#allocation6 + $0x1], 0  ;;  %s3648_s25 = smov 0   ;;  %s3650_s26 = smov 0  }
   0xc   :  { %s3652_s27 = smov 0   ;;  %s3654_s28 = smov 0  }
   0xd LB: > { %4587 = sst [smem:[#allocation18_spill]] %s3546_s25  ;;  %s3669_s29 = sadd.s32 4294967295, %s3558_s28   ;;  %s3558_s28 = sphi %s3654_s28, %s4615_s28   ;;  %s3554_s27 = sphi %s3652_s27, %s4614_s27   ;;  %s3550_s26 = sphi %s3650_s26, %s4613_s26   ;;  %s3546_s25 = sphi %s3648_s25, %s4612_s25  }
   0xe   : > { %s2783_s30 = sadd.s32 4294967294, %s3558_s28   ;;  %p51_p0 = scmp.ne.s32.totalorder %s3550_s26, %s3546_s25 }
   0xf   : > { %p4578_p1 = scmp.eq.s32.totalorder %s3669_s29, 0  ;;  %p333_p3 = scmp.eq.s32.totalorder %s2783_s30, 1 }
  0x10   : > { %p2784_p5 = scmp.ge.s32.totalorder %s3558_s28, 1  ;;  %p340_p7 = scmp.lt.s32.totalorder %s3558_s28, 3 }
  0x11   : > { %p3678_p4 = por %p4578_p1, %p51_p0  ;;  %p3683_p6 = por %p333_p3, %p51_p0 }
  0x12   : > { %p3688_p8 = pnand %p2784_p5, %p340_p7  ;;  %s3560_s17 = smov [#allocation7]  }
  0x13   : > { %s4588_s14 = scalar_select %p3678_p4, 1, 0 }
  0x14   : > { %s4589_s15 = scalar_select %p3683_p6, 1, 0 }
  0x15   : > { %s4591_s16 = scalar_select %p3688_p8, 1, 0 }
  0x16   : > { %4590 = sst [smem:[#allocation19_spill]] %s4589_s15  ;;  %s352_s18 = sshll.u32 %s3560_s17, 4  ;;  %s3692_s18 = int_to_ptr.vmem [resolvable:$true] %s352_s18 }
  0x17   : > { %p3117_p9 = pneg %p3688_p8  ;;  %s3561_s20 = smov [#allocation10]  }
  0x18   : > { %s387_s21 = sshll.u32 %s3561_s20, 4  ;;  %s3562_s22 = smov [#allocation9]   ;;  %s3703_s21 = int_to_ptr.vmem [resolvable:$true] %s387_s21 }
  0x19   : > { %p3699_p11 = pnand %p3117_p9, %p4578_p1  ;;  %s3705_s23 = sshll.u32 %s3562_s22, 4  ;;  %s366_s23 = int_to_ptr.vmem [resolvable:$true] %s3705_s23 }
  0x1a   : > { %s3342_s17 = scalar_lea.hbm %s4562_s1, 256 }
  0x1b   : > { %p3343_p12 = scmp.ne.s32.totalorder %s4562_s1, %s3342_s17  ;;  %p3715_p13 = pneg %p3699_p11 }
  0x1c   : > { %p3349_p5 = scmp.lt.u32.totalorder %s3342_s17, %s4562_s1 }
  0x1d   : > { %p3345_p0 = pnand %p3715_p13, %p3343_p12 }
  0x1f   : > { %p3346_p3 = pneg %p3345_p0 }
  0x21   : > { %p3351_p7 = pnand %p3349_p5, %p3346_p3 }
  0x23   : > { %3354 = shalt.err (!%p3351_p7)
}
  0x24   : > { %s3355_s25 = scalar_lea.vmem %s3692_s18, 256  ;;  %p3363_p2 = scmp.lt.s32.totalorder %s3692_s18, %s3692_s18 }
  0x25   : > { %p3356_p9 = scmp.ne.s32.totalorder %s3692_s18, %s3355_s25  ;;  %p3364_p6 = scmp.lt.s32.totalorder %s3355_s25, %s3355_s25 }
  0x27   : > { %p3358_p10 = pnand %p3356_p9, %p3715_p13  ;;  %p3365_p12 = por %p3364_p6, %p3363_p2 }
  0x29   : > { %p3359_p1 = pneg %p3358_p10 }
  0x2b   : > { %p3366_p0 = pnand %p3365_p12, %p3359_p1 }
  0x2d   : > { %3369 = shalt.err (!%p3366_p0)
}
  0x2e   : > { %s3563_s15 = smov 64   ;;  %s3564_s24 = smov 4  }
  0x2f   : > { %3120 = dma.hbm_to_vmem [thread:$0]  (!%p3699_p11), %s4562_s1, 256, %s3692_s18, [#allocation8], %s3563_s15, %s3563_s15, %s3564_s24  }
  0x30   : > { %s3370_s25 = scalar_lea.hbm %s4567_s6, 256 }
  0x31   : > { %p3371_p1 = scmp.ne.s32.totalorder %s4567_s6, %s3370_s25  ;;  %p3377_p10 = scmp.lt.u32.totalorder %s3370_s25, %s4567_s6 }
  0x33   : > { %p3373_p2 = pnand %p3371_p1, %p3715_p13 }
  0x35   : > { %p3374_p6 = pneg %p3373_p2 }
  0x37   : > { %p3379_p3 = pnand %p3377_p10, %p3374_p6 }
  0x39   : > { %3382 = shalt.err (!%p3379_p3)
}
  0x3a   : > { %s3383_s18 = scalar_lea.vmem %s3703_s21, 256  ;;  %p3391_p12 = scmp.lt.s32.totalorder %s3703_s21, %s3703_s21 }
  0x3b   : > { %p3384_p5 = scmp.ne.s32.totalorder %s3703_s21, %s3383_s18  ;;  %p3392_p0 = scmp.lt.s32.totalorder %s3383_s18, %s3383_s18 }
  0x3d   : > { %p3386_p7 = pnand %p3384_p5, %p3715_p13  ;;  %p3393_p1 = por %p3392_p0, %p3391_p12 }
  0x3f   : > { %p3387_p9 = pneg %p3386_p7 }
  0x41   : > { %p3394_p2 = pnand %p3393_p1, %p3387_p9 }
  0x43   : > { %3397 = shalt.err (!%p3394_p2)
}
  0x44   : > { %3126 = dma.hbm_to_vmem [thread:$0]  (!%p3699_p11), %s4567_s6, 256, %s3703_s21, [#allocation11], %s3563_s15, %s3563_s15, %s3564_s24  }
  0x45   : > { %s3398_s30 = scalar_lea.hbm %s4563_s2, 256 }
  0x46   : > { %p3399_p6 = scmp.ne.s32.totalorder %s4563_s2, %s3398_s30  ;;  %p3405_p5 = scmp.lt.u32.totalorder %s3398_s30, %s4563_s2 }
  0x48   : > { %p3401_p10 = pnand %p3399_p6, %p3715_p13 }
  0x4a   : > { %p3402_p3 = pneg %p3401_p10 }
  0x4c   : > { %p3407_p7 = pnand %p3405_p5, %p3402_p3 }
  0x4e   : > { %3410 = shalt.err (!%p3407_p7)
}
  0x4f   : > { %s3411_s18 = scalar_lea.vmem %s366_s23, 256  ;;  %p3419_p1 = scmp.lt.s32.totalorder %s366_s23, %s366_s23 }
  0x50   : > { %p3412_p9 = scmp.ne.s32.totalorder %s366_s23, %s3411_s18  ;;  %p3420_p2 = scmp.lt.s32.totalorder %s3411_s18, %s3411_s18 }
  0x52   : > { %p3414_p12 = pnand %p3412_p9, %p3715_p13  ;;  %p3421_p4 = por %p3420_p2, %p3419_p1 }
  0x54   : > { %p3415_p0 = pneg %p3414_p12 }
  0x56   : > { %p3422_p8 = pnand %p3421_p4, %p3415_p0 }
  0x58   : > { %3425 = shalt.err (!%p3422_p8)
}
  0x59   : > { %3123 = dma.hbm_to_vmem [thread:$0]  (!%p3699_p11), %s4563_s2, 256, %s366_s23, [#allocation8], %s3563_s15, %s3563_s15, %s3564_s24  }
  0x5a   : > { %s3565_s10 = smov [#allocation12]   ;;  %s3426_s17 = scalar_lea.hbm %s4568_s7, 256 }
  0x5b   : > { %s400_s11 = sshll.u32 %s3565_s10, 4  ;;  %p3427_p4 = scmp.ne.s32.totalorder %s4568_s7, %s3426_s17  ;;  %s401_s11 = int_to_ptr.vmem [resolvable:$true] %s400_s11 }
  0x5c   : > { %p3433_p10 = scmp.lt.u32.totalorder %s3426_s17, %s4568_s7 }
  0x5d   : > { %p3429_p8 = pnand %p3427_p4, %p3715_p13 }
  0x5f   : > { %p3430_p6 = pneg %p3429_p8 }
  0x61   : > { %p3435_p3 = pnand %p3433_p10, %p3430_p6 }
  0x63   : > { %3438 = shalt.err (!%p3435_p3)
}
  0x64   : > { %s3439_s23 = scalar_lea.vmem %s401_s11, 256  ;;  %p3447_p12 = scmp.lt.s32.totalorder %s401_s11, %s401_s11 }
  0x65   : > { %p3440_p5 = scmp.ne.s32.totalorder %s401_s11, %s3439_s23  ;;  %p3448_p0 = scmp.lt.s32.totalorder %s3439_s23, %s3439_s23 }
  0x67   : > { %p3442_p7 = pnand %p3440_p5, %p3715_p13  ;;  %p3449_p1 = por %p3448_p0, %p3447_p12 }
  0x69   : > { %p3443_p9 = pneg %p3442_p7 }
  0x6b   : > { %p3450_p2 = pnand %p3449_p1, %p3443_p9 }
  0x6d   : > { %3453 = shalt.err (!%p3450_p2)
}
  0x6e   : > { %3129 = dma.hbm_to_vmem [thread:$0]  (!%p3699_p11), %s4568_s7, 256, %s401_s11, [#allocation11], %s3563_s15, %s3563_s15, %s3564_s24  }
  0x6f   : > { %s3809_s13 = sadd.s32 1, %s3558_s28   ;;  %s38_s19 = sadd.s32 1, %s3554_s27 }
  0x70   : > { %s35_s10 = ssub.s32 %s3558_s28, %s3809_s13  ;;  %p45_p13 = scmp.ne.s32.totalorder %s3554_s27, %s3550_s26 }
  0x71   : > { %p36_p4 = scmp.eq.s32.totalorder %s35_s10, 0  ;;  %p46_p8 = scmp.eq.s32.totalorder %s3558_s28, 0 }
  0x72   : > { %p4594_p6 = scmp.eq.s32.totalorder %s3669_s29, 1  ;;  %p3142_p3 = scmp.lt.s32.totalorder %s3558_s28, 2 }
  0x73   : > { %s3825_s30 = scalar_select %p36_p4, %s3554_s27, %s38_s19  }
  0x74   : > { %p3819_p10 = por %p4594_p6, %p45_p13  ;;  %p47_p5 = por %p46_p8, %p45_p13 }
  0x75   : > { %s429_s17 = sand.u32 1, %s3554_s27   ;;  %s2791_s11 = sshll.u32 %s3558_s28, 6 }
  0x76   : > { %s2790_s20 = sshll.u32 %s429_s17, 5  ;;  %s3832_s18 = scalar_lea.hbm %s4561_s0, %s2791_s11 }
  0x77   : > { %s433_s23 = scalar_lea.vmem [#allocation4], %s2790_s20  ;;  %p3836_p11 = pnand %p3142_p3, %p47_p5 }
  0x78   : > { %s439_s21 = sshll.u32 %s433_s23, 4  ;;  %s3840_s19 = scalar_lea.sflag [#allocation5], %s429_s17  ;;  %s3834_s21 = int_to_ptr.vmem [resolvable:$true] %s439_s21 }
  0x79   : > { %s3454_s10 = scalar_lea.hbm %s3832_s18, 512  ;;  %p3456_p9 = pneg %p3836_p11 }
  0x7a   : > { %p3455_p7 = scmp.ne.s32.totalorder %s3832_s18, %s3454_s10  ;;  %s3459_s22 = scalar_lea.hbm %s4561_s0, 1024 }
  0x7b   : > { %p3460_p1 = scmp.lt.u32.totalorder %s3832_s18, %s4561_s0  ;;  %p3461_p2 = scmp.lt.u32.totalorder %s3459_s22, %s3454_s10 }
  0x7c   : > { %p3457_p12 = pnand %p3456_p9, %p3455_p7  ;;  %p3463_p4 = scmp.lt.u32.totalorder %s3454_s10, %s3832_s18 }
  0x7d   : > { %p3462_p13 = por %p3461_p2, %p3460_p1 }
  0x7e   : > { %p3458_p0 = pneg %p3457_p12 }
  0x7f   : > { %p3464_p8 = por %p3463_p4, %p3462_p13 }
  0x81   : > { %p3465_p6 = pnand %p3464_p8, %p3458_p0 }
  0x83   : > { %3468 = shalt.err (!%p3465_p6)
}
  0x84   : > { %s3469_s17 = scalar_lea.vmem %s3834_s21, 512  ;;  %s3566_s20 = smov [#allocation4]  }
  0x85   : > { %p3470_p3 = scmp.ne.s32.totalorder %s3834_s21, %s3469_s17  ;;  %s3474_s11 = sshll.u32 %s3566_s20, 4  ;;  %s3475_s11 = int_to_ptr.vmem [resolvable:$false] %s3474_s11 }
  0x86   : > { %s3476_s25 = scalar_lea.vmem %s3475_s11, 1024  ;;  %p3477_p12 = scmp.lt.s32.totalorder %s3834_s21, %s3475_s11 }
  0x87   : > { %p3472_p5 = pnand %p3470_p3, %p3456_p9  ;;  %p3478_p1 = scmp.lt.s32.totalorder %s3476_s25, %s3469_s17 }
  0x89   : > { %p3473_p7 = pneg %p3472_p5  ;;  %p3479_p2 = por %p3478_p1, %p3477_p12 }
  0x8b   : > { %p3480_p13 = pnand %p3479_p2, %p3473_p7 }
  0x8d   : > { %3483 = shalt.err (!%p3480_p13)
}
  0x8e   : > { %s3567_s10 = smov 128   ;;  %p4597_p9 = scmp.ne.s32.totalorder %s4591_s16, 0 }
  0x8f   : > { %3133 = dma.hbm_to_vmem [thread:$0]  (!%p3836_p11), %s3832_s18, 512, %s3834_s21, %s3840_s19, %s3567_s10, %s3563_s15, %s3564_s24  }
  0x90   : > { %451 = sbr.rel (%p4597_p9) target bundleno = 12442 (0x309a), region = 72  ;;  %s3873_s22 = sand.u32 (!%p4597_p9), 1, %s3550_s26  }
  0x91   : > { %s2793_s23 = sshll.u32 (!%p4597_p9), %s3873_s22, 5  ;;  %s454_s17 = scalar_lea.sflag (!%p4597_p9), [#allocation5], %s3873_s22 }
  0x92   : > { %s3877_s20 = scalar_lea.vmem (!%p4597_p9), [#allocation4], %s2793_s23  ;;  %p4598_p0 = scmp.ne.s32.totalorder (!%p4597_p9), %s4588_s14, 0 }
  0x97   : > { %3529 = dma.done.wait (%p4598_p0), %s454_s17, 512  }
  0x98   : > { %3531 = vsyncadd (%p4598_p0), %s454_s17, 4294966784  ;;  %p4599_p11 = scmp.eq.s32.totalorder %s3669_s29, 0 }
  0x9a   : > { %3533 = dma.done.wait (%p4599_p11), [#allocation8], 512   ;;  %p4600_p4 = pmov %p4599_p11 }
  0x9c   : > { %3535 = vsyncadd (%p4600_p4), [#allocation8], 4294966784  ;;  %p4601_p8 = pmov %p4600_p4 }
  0x9d   : > { %p4602_p6 = pmov %p4600_p4 }
  0x9e   : > { %3537 = dma.done.wait (%p4601_p8), [#allocation11], 512  }
  0x9f   : > { %3539 = vsyncadd (%p4602_p6), [#allocation11], 4294966784  ;;  %v3568_v0 = vmov 0.0   ;;  %vm3569_vm0 = vmmov 0   ;;  %v3196_v1 = vld [vmem:[#allocation7] sm:$0xff]   ;;  %v3197_v2 = vld [vmem:[#allocation7 + $0x8] sm:$0xff]  }
  0xa0   : > { %2973 = vmatprep.subr.bf16.mxu0 %v3568_v0  ;;  %2977 = vmatprep.mubr.msk.bf16.mxu0 %vm3569_vm0, %v3568_v0  ;;  %vm572_vm1 = vcmask 261120   ;;  %v3198_v3 = vld [vmem:[%s3877_s20] sm:$0xff]   ;;  %v3896_v4 = vld [vmem:[#allocation9] sm:$0xff]   ;;  %v3199_v5 = vld [vmem:[%s3877_s20 + $0x8] sm:$0xff]   ;;  %v3570_v9 = vmov 0   ;;  %s3571_s15 = smov 64  }
  0xa1   : > { %2945 = vmatprep.subr.bf16.mxu1 %v3196_v1  ;;  %2949 = vmatprep.mubr.msk.bf16.mxu1 %vm572_vm1, %v3198_v3  ;;  %v3201_v6 = vld [vmem:[%s3877_s20 + $0x10] sm:$0xff]   ;;  %v3901_v7 = vld [vmem:[#allocation9 + $0x8] sm:$0xff]   ;;  %v2799_v10 = vld [vmem:[%s4564_s3] ss:$0 sm:$0xff]  ;;  %s3572_s24 = smov 32   ;;  %s3573_s9 = smov 96  }
  0xa2   : > { %2946 = vmatpush3.bf16.msra.mxu1 %v3196_v1  ;;  %2974 = vmatpush3.bf16.msra.mxu0 %v3896_v4  ;;  %v3202_v8 = vld [vmem:[%s3877_s20 + $0x18] sm:$0xff]   ;;  %s4603_s20 = sld [smem:[#allocation21_spill]]  ;;  %s4604_s18 = sld [smem:[#allocation20_spill]] }
  0xa3   : > { %2947 = vmatprep.subr.bf16.mxu1 %v3197_v2  ;;  %2975 = vmatprep.subr.bf16.mxu0 %v3568_v0  ;;  %s4605_s19 = sld [smem:[#allocation22_spill]]  ;;  %s2798_s21 = sshll.u32 %s3873_s22, 7 }
  0xa4   : > { %s4607_s10 = sld [smem:[#allocation24_spill]] }
  0xa6   : > { %2948 = vmatpush3.bf16.msra.mxu1 %v3197_v2  ;;  %2976 = vmatpush3.bf16.msra.mxu0 %v3901_v7 }
  0xa7   : > { %2957 = vmatprep.subr.bf16.mxu1 %v3568_v0  ;;  %2989 = vmatprep.subr.bf16.mxu0 %v3568_v0 }
  0xa9   : > { %2950 = vmatmul.mubr.msk.bf16.vlgmr.msra.gmra.mrb[0].mxu1 %vm572_vm1, %v3199_v5 }
  0xaa   : > { %2958 = vmatpush3.bf16.msra.mxu1 %v3896_v4  ;;  %2953 = vmatprep.mubr.msk.bf16.mxu1 %vm572_vm1, %v3201_v6 }
  0xab   : > { %2959 = vmatprep.subr.bf16.mxu1 %v3568_v0 }
  0xae   : > { %2960 = vmatpush3.bf16.msra.mxu1 %v3901_v7 }
  0xaf   : > { %2965 = vmatprep.subr.bf16.mxu1 %v3568_v0 }
  0xb1   : > { %2954 = vmatmul.mubr.msk.bf16.gmra.mrb[4].mxu1 %vm572_vm1, %v3202_v8 }
  0xb2   : > { %2961 = vmatprep.mubr.msk.bf16.mxu1 %vm3569_vm0, %v3568_v0 }
  0xb9   : > { %2962 = vmatmul.mubr.bf16.vlgmr.msra.gmra.mrb[8].mxu1 %v3570_v9 }
  0xba   : > { %2966 = vmatpush3.bf16.msra.mxu1 %v3896_v4  ;;  %2969 = vmatprep.mubr.msk.bf16.mxu1 %vm3569_vm0, %v3568_v0 }
  0xbb   : > { %2967 = vmatprep.subr.bf16.mxu1 %v3568_v0 }
  0xbe   : > { %2968 = vmatpush3.bf16.msra.mxu1 %v3901_v7 }
  0xbf   : > { %2981 = vmatprep.subr.bf16.mxu1 %v3568_v0 }
 0x17c   : > { %v2951_v11 = vpop.f32.mrb[0].mxu1 }
 0x17d   : > { %v3927_v12 = vadd.f32 %v2951_v11, %v2799_v10  ;;  %v619_v13 = vpop.f32.mrb[1].mxu1 }
 0x17e   : > { %v2952_v14 = vpop.f32.mrb[2].mxu1  ;;  %v620_v26 = vadd.f32 %v2799_v10, %v619_v13 }
 0x17f   : > { %v3929_v15 = vadd.f32 %v2952_v14, %v2799_v10  ;;  %v622_v16 = vpop.f32.mrb[3].mxu1 }
 0x180   : > { %v623_v17 = vadd.f32 %v2799_v10, %v622_v16 }
 0x184   : > { %v2955_v18 = vpop.f32.mrb[4].mxu1 }
 0x185   : > { %v3931_v19 = vadd.f32 %v2955_v18, %v2799_v10  ;;  %v635_v20 = vpop.f32.mrb[5].mxu1 }
 0x186   : > { %v3933_v21 = vadd.f32 %v2799_v10, %v635_v20  ;;  %v2956_v22 = vpop.f32.mrb[6].mxu1 }
 0x187   : > { %v3935_v23 = vadd.f32 %v2956_v22, %v2799_v10  ;;  %v638_v24 = vpop.f32.mrb[7].mxu1 }
 0x188   : > { %v3937_v25 = vadd.f32 %v2799_v10, %v638_v24 }
 0x18c   : > { %v720_v27 = vpop.f32.mrb[8].mxu1 }
 0x18d   : > { %v726_v28 = vadd.f32 %v720_v27, %v620_v26  ;;  %v2963_v29 = vpop.f32.mrb[9].mxu1 }
 0x18e   : > { %v723_v30 = vpop.f32.mrb[10].mxu1 }
 0x18f   : > { %v2814_v31 = vmul.f32 -1.442695, %v726_v28  ;;  %v2964_v32 = vpop.f32.mrb[11].mxu1 }
 0x191   : > { %3214 = vpow2.f32 %v2814_v31 }
 0x19b   : > { %v3215_v33 = vpop.eup %3214 }
 0x19c   : > { %v730_v34 = vadd.f32 1.0, %v3215_v33 }
 0x19e   : > { %3216 = vrcp.f32 %v730_v34 }
 0x1a8   : > { %v3217_v35 = vpop.eup %3216 }
 0x1a9   : > { %v733_v36 = vmul.f32 2.0, %v3217_v35  ;;  %v735_v40 = vmul.f32 0.0, %v3217_v35 }
 0x1ab   : > { %v2815_v37 = vadd.f32 -1.0, %v733_v36 }
 0x1ad   : > { %737 = vrot.lane.b32.xlu0 %v2815_v37, %s3571_s15 }
 0x21f   : > { %v738_v38 = vpop.permute.xlu0 %737 }
 0x220   : > { %v740_v39 = vmul.f32 %v3217_v35, %v738_v38 }
 0x222   : > { %742 = vrot.lane.b32.xlu0 %v740_v39, %s3572_s24 }
 0x294   : > { %v743_v41 = vpop.permute.xlu0 %742 }
 0x295   : > { %v745_v42 = vadd.f32 %v743_v41, %v735_v40 }
 0x297   : > { %3218 = vtanh.f32 %v745_v42 }
 0x2a1   : > { %v3219_v43 = vpop.eup %3218 }
 0x2a2   : > { %748 = vrot.lane.b32.xlu1 %v3219_v43, %s3571_s15 }
 0x314   : > { %v749_v44 = vpop.permute.xlu1 %748 }
 0x315   : > { %v3942_v45 = vmul.f32 %v3217_v35, %v749_v44 }
 0x317   : > { %v790_v46 = vpack.c.bf16 %v3942_v45, %v3942_v45 }
 0x319   : > { %792 = vrot.lane.b32.xlu1 %v790_v46, %s3572_s24 }
 0x38b   : > { %v793_v47 = vpop.permute.xlu1 %792 }
 0x38c   : > { %2970 = vmatmul.mubr.msk.bf16.vlgmr.msra.gmra.mrb[12].mxu1 %vm572_vm1, %v793_v47 }
 0x38d   : > { %2982 = vmatpush3.bf16.msra.mxu1 %v3896_v4  ;;  %2985 = vmatprep.mubr.msk.bf16.mxu1 %vm3569_vm0, %v3568_v0 }
 0x38e   : > { %2983 = vmatprep.subr.bf16.mxu1 %v3568_v0 }
 0x391   : > { %2984 = vmatpush3.bf16.msra.mxu1 %v3901_v7 }
 0x392   : > { %2997 = vmatprep.subr.bf16.mxu1 %v3568_v0 }
 0x45f   : > { %v831_v48 = vpop.f32.mrb[12].mxu1 }
 0x460   : > { %v837_v49 = vadd.f32 %v831_v48, %v623_v17  ;;  %v2971_v50 = vpop.f32.mrb[13].mxu1 }
 0x461   : > { %v834_v51 = vpop.f32.mrb[14].mxu1 }
 0x462   : > { %v2817_v52 = vmul.f32 -1.442695, %v837_v49  ;;  %v2972_v53 = vpop.f32.mrb[15].mxu1 }
 0x464   : > { %3220 = vpow2.f32 %v2817_v52 }
 0x46e   : > { %v3221_v54 = vpop.eup %3220 }
 0x46f   : > { %v841_v55 = vadd.f32 1.0, %v3221_v54 }
 0x471   : > { %3222 = vrcp.f32 %v841_v55 }
 0x47b   : > { %v3223_v56 = vpop.eup %3222 }
 0x47c   : > { %v844_v57 = vmul.f32 2.0, %v3223_v56  ;;  %v846_v61 = vmul.f32 %v3223_v56, %v745_v42 }
 0x47e   : > { %v2818_v58 = vadd.f32 -1.0, %v844_v57 }
 0x480   : > { %848 = vrot.lane.b32.xlu0 %v2818_v58, %s3571_s15 }
 0x4f2   : > { %v849_v59 = vpop.permute.xlu0 %848 }
 0x4f3   : > { %v851_v60 = vmul.f32 %v3223_v56, %v849_v59 }
 0x4f5   : > { %853 = vrot.lane.b32.xlu1 %v851_v60, %s3572_s24 }
 0x567   : > { %v854_v62 = vpop.permute.xlu1 %853 }
 0x568   : > { %v856_v63 = vadd.f32 %v854_v62, %v846_v61 }
 0x56a   : > { %3224 = vtanh.f32 %v856_v63 }
 0x574   : > { %v3225_v1 = vpop.eup %3224 }
 0x575   : > { %859 = vrot.lane.b32.xlu0 %v3225_v1, %s3571_s15 }
 0x5e7   : > { %v860_v2 = vpop.permute.xlu0 %859 }
 0x5e8   : > { %v3957_v3 = vmul.f32 %v3223_v56, %v860_v2 }
 0x5ea   : > { %v896_v5 = vpack.c.bf16 %v3957_v3, %v3957_v3 }
 0x5ec   : > { %898 = vrot.lane.b32.xlu1 %v896_v5, %s3572_s24 }
 0x65e   : > { %v899_v6 = vpop.permute.xlu1 %898 }
 0x65f   : > { %2978 = vmatmul.mubr.msk.bf16.vlgmr.msra.gmra.mrb[0].mxu0 %vm572_vm1, %v899_v6 }
 0x660   : > { %2990 = vmatpush3.bf16.msra.mxu0 %v3896_v4  ;;  %2993 = vmatprep.mubr.msk.bf16.mxu0 %vm3569_vm0, %v3568_v0 }
 0x661   : > { %2991 = vmatprep.subr.bf16.mxu0 %v3568_v0 }
 0x664   : > { %2992 = vmatpush3.bf16.msra.mxu0 %v3901_v7 }
 0x665   : > { %3005 = vmatprep.subr.bf16.mxu0 %v3568_v0 }
 0x732   : > { %v937_v8 = vpop.f32.mrb[0].mxu0 }
 0x733   : > { %v943_v10 = vadd.f32 %v937_v8, %v3927_v12  ;;  %v2979_v11 = vpop.f32.mrb[1].mxu0 }
 0x734   : > { %v940_v13 = vpop.f32.mrb[2].mxu0 }
 0x735   : > { %v2820_v14 = vmul.f32 -1.442695, %v943_v10  ;;  %v2980_v16 = vpop.f32.mrb[3].mxu0 }
 0x737   : > { %3226 = vpow2.f32 %v2820_v14 }
 0x741   : > { %v3227_v17 = vpop.eup %3226 }
 0x742   : > { %v947_v18 = vadd.f32 1.0, %v3227_v17 }
 0x744   : > { %3228 = vrcp.f32 %v947_v18 }
 0x74e   : > { %v3229_v20 = vpop.eup %3228 }
 0x74f   : > { %v950_v22 = vmul.f32 2.0, %v3229_v20  ;;  %v952_v28 = vmul.f32 %v3229_v20, %v856_v63 }
 0x751   : > { %v2821_v24 = vadd.f32 -1.0, %v950_v22 }
 0x753   : > { %954 = vrot.lane.b32.xlu0 %v2821_v24, %s3571_s15 }
 0x7c5   : > { %v955_v26 = vpop.permute.xlu0 %954 }
 0x7c6   : > { %v957_v27 = vmul.f32 %v3229_v20, %v955_v26 }
 0x7c8   : > { %959 = vrot.lane.b32.xlu1 %v957_v27, %s3572_s24 }
 0x83a   : > { %v960_v29 = vpop.permute.xlu1 %959 }
 0x83b   : > { %v962_v12 = vadd.f32 %v960_v29, %v952_v28 }
 0x83d   : > { %3230 = vtanh.f32 %v962_v12 }
 0x847   : > { %v3231_v30 = vpop.eup %3230 }
 0x848   : > { %965 = vrot.lane.b32.xlu0 %v3231_v30, %s3571_s15 }
 0x8ba   : > { %v966_v31 = vpop.permute.xlu0 %965 }
 0x8bb   : > { %v3973_v32 = vmul.f32 %v3229_v20, %v966_v31 }
 0x8bd   : > { %v1002_v33 = vpack.c.bf16 %v3973_v32, %v3973_v32 }
 0x8bf   : > { %1004 = vrot.lane.b32.xlu1 %v1002_v33, %s3572_s24 }
 0x931   : > { %v1005_v34 = vpop.permute.xlu1 %1004 }
 0x932   : > { %2986 = vmatmul.mubr.msk.bf16.vlgmr.msra.gmra.mrb[16].mxu1 %vm572_vm1, %v1005_v34 }
 0x933   : > { %2998 = vmatpush3.bf16.msra.mxu1 %v3896_v4  ;;  %3001 = vmatprep.mubr.msk.bf16.mxu1 %vm3569_vm0, %v3568_v0 }
 0x934   : > { %2999 = vmatprep.subr.bf16.mxu1 %v3568_v0 }
 0x937   : > { %3000 = vmatpush3.bf16.msra.mxu1 %v3901_v7 }
 0x938   : > { %3013 = vmatprep.subr.bf16.mxu1 %v3568_v0 }
 0xa05   : > { %v1043_v35 = vpop.f32.mrb[16].mxu1 }
 0xa06   : > { %v1049_v36 = vadd.f32 %v1043_v35, %v3929_v15  ;;  %v2987_v37 = vpop.f32.mrb[17].mxu1 }
 0xa07   : > { %v1046_v38 = vpop.f32.mrb[18].mxu1 }
 0xa08   : > { %v2823_v39 = vmul.f32 -1.442695, %v1049_v36  ;;  %v2988_v40 = vpop.f32.mrb[19].mxu1 }
 0xa09   : > { %v759_v40 = vmul.f32 %v3942_v45, %v3942_v45 }
 0xa0a   : > { %3232 = vpow2.f32 %v2823_v39 }
 0xa14   : > { %v3233_v41 = vpop.eup %3232 }
 0xa15   : > { %v1053_v42 = vadd.f32 1.0, %v3233_v41  ;;  %v976_v41 = vmul.f32 %v3973_v32, %v3973_v32 }
 0xa17   : > { %3234 = vrcp.f32 %v1053_v42 }
 0xa21   : > { %v3235_v43 = vpop.eup %3234 }
 0xa22   : > { %v1056_v44 = vmul.f32 2.0, %v3235_v43  ;;  %v1058_v49 = vmul.f32 %v3235_v43, %v962_v12 }
 0xa24   : > { %v2824_v46 = vadd.f32 -1.0, %v1056_v44 }
 0xa26   : > { %1060 = vrot.lane.b32.xlu0 %v2824_v46, %s3571_s15 }
 0xa98   : > { %v1061_v47 = vpop.permute.xlu0 %1060 }
 0xa99   : > { %v1063_v48 = vmul.f32 %v3235_v43, %v1061_v47 }
 0xa9b   : > { %1065 = vrot.lane.b32.xlu1 %v1063_v48, %s3572_s24 }
 0xb0d   : > { %v1066_v50 = vpop.permute.xlu1 %1065 }
 0xb0e   : > { %v1068_v15 = vadd.f32 %v1066_v50, %v1058_v49 }
 0xb10   : > { %3236 = vtanh.f32 %v1068_v15 }
 0xb1a   : > { %v3237_v51 = vpop.eup %3236 }
 0xb1b   : > { %1071 = vrot.lane.b32.xlu0 %v3237_v51, %s3571_s15 }
 0xb8d   : > { %v1072_v52 = vpop.permute.xlu0 %1071 }
 0xb8e   : > { %v3989_v53 = vmul.f32 %v3235_v43, %v1072_v52 }
 0xb90   : > { %v1108_v54 = vpack.c.bf16 %v3989_v53, %v3989_v53 }
 0xb92   : > { %1110 = vrot.lane.b32.xlu1 %v1108_v54, %s3572_s24 }
 0xc04   : > { %v1111_v55 = vpop.permute.xlu1 %1110 }
 0xc05   : > { %2994 = vmatmul.mubr.msk.bf16.vlgmr.msra.gmra.mrb[4].mxu0 %vm572_vm1, %v1111_v55  ;;  %v1082_v55 = vmul.f32 %v3989_v53, %v3989_v53 }
 0xc06   : > { %3006 = vmatpush3.bf16.msra.mxu0 %v3896_v4  ;;  %3009 = vmatprep.mubr.msk.bf16.mxu0 %vm3569_vm0, %v3568_v0 }
 0xc07   : > { %3007 = vmatprep.subr.bf16.mxu0 %v3568_v0 }
 0xc0a   : > { %3008 = vmatpush3.bf16.msra.mxu0 %v3901_v7 }
 0xcd8   : > { %v1149_v56 = vpop.f32.mrb[4].mxu0 }
 0xcd9   : > { %v1155_v57 = vadd.f32 %v1149_v56, %v3933_v21  ;;  %v2995_v58 = vpop.f32.mrb[5].mxu0 }
 0xcda   : > { %v1152_v59 = vpop.f32.mrb[6].mxu0 }
 0xcdb   : > { %v2826_v60 = vmul.f32 -1.442695, %v1155_v57  ;;  %v2996_v61 = vpop.f32.mrb[7].mxu0 }
 0xcdd   : > { %3238 = vpow2.f32 %v2826_v60 }
 0xce7   : > { %v3239_v62 = vpop.eup %3238 }
 0xce8   : > { %v1159_v63 = vadd.f32 1.0, %v3239_v62 }
 0xcea   : > { %3240 = vrcp.f32 %v1159_v63 }
 0xcf4   : > { %v3241_v1 = vpop.eup %3240 }
 0xcf5   : > { %v1162_v2 = vmul.f32 2.0, %v3241_v1  ;;  %v1164_v10 = vmul.f32 %v3241_v1, %v1068_v15 }
 0xcf7   : > { %v2827_v5 = vadd.f32 -1.0, %v1162_v2 }
 0xcf9   : > { %1166 = vrot.lane.b32.xlu0 %v2827_v5, %s3571_s15 }
 0xd6b   : > { %v1167_v6 = vpop.permute.xlu0 %1166 }
 0xd6c   : > { %v1169_v8 = vmul.f32 %v3241_v1, %v1167_v6 }
 0xd6e   : > { %1171 = vrot.lane.b32.xlu1 %v1169_v8, %s3572_s24 }
 0xde0   : > { %v1172_v11 = vpop.permute.xlu1 %1171 }
 0xde1   : > { %v1174_v21 = vadd.f32 %v1172_v11, %v1164_v10  ;;  %v2811_v11 = vld [vmem:[%s4566_s5] ss:$0 sm:$0xff] }
 0xde3   : > { %3242 = vtanh.f32 %v1174_v21 }
 0xded   : > { %v3243_v13 = vpop.eup %3242 }
 0xdee   : > { %1177 = vrot.lane.b32.xlu0 %v3243_v13, %s3571_s15 }
 0xe60   : > { %v1178_v14 = vpop.permute.xlu0 %1177 }
 0xe61   : > { %v4004_v16 = vmul.f32 %v3241_v1, %v1178_v14 }
 0xe63   : > { %v1214_v17 = vpack.c.bf16 %v4004_v16, %v4004_v16 }
 0xe65   : > { %1216 = vrot.lane.b32.xlu1 %v1214_v17, %s3572_s24 }
 0xed7   : > { %v1217_v18 = vpop.permute.xlu1 %1216 }
 0xed8   : > { %3002 = vmatmul.mubr.msk.bf16.vlgmr.msra.gmra.mrb[20].mxu1 %vm572_vm1, %v1217_v18  ;;  %v2810_v18 = vld [vmem:[%s4565_s4] ss:$0 sm:$0xff] }
 0xed9   : > { %3014 = vmatpush3.bf16.msra.mxu1 %v3896_v4  ;;  %3017 = vmatprep.mubr.msk.bf16.mxu1 %vm3569_vm0, %v3568_v0 }
 0xeda   : > { %3015 = vmatprep.subr.bf16.mxu1 %v3568_v0 }
 0xedd   : > { %3016 = vmatpush3.bf16.msra.mxu1 %v3901_v7 }
 0xede   : > { %3033 = vmatprep.subr.bf16.mxu1 %v3568_v0 }
 0xfab   : > { %v1255_v20 = vpop.f32.mrb[20].mxu1 }
 0xfac   : > { %v1261_v22 = vadd.f32 %v1255_v20, %v3937_v25  ;;  %v3003_v24 = vpop.f32.mrb[21].mxu1 }
 0xfad   : > { %v1258_v26 = vpop.f32.mrb[22].mxu1 }
 0xfae   : > { %v2829_v27 = vmul.f32 -1.442695, %v1261_v22  ;;  %v3004_v28 = vpop.f32.mrb[23].mxu1 }
 0xfb0   : > { %3244 = vpow2.f32 %v2829_v27 }
 0xfba   : > { %v3245_v29 = vpop.eup %3244 }
 0xfbb   : > { %v1265_v12 = vadd.f32 1.0, %v3245_v29 }
 0xfbd   : > { %3246 = vrcp.f32 %v1265_v12 }
 0xfc7   : > { %v3247_v4 = vpop.eup %3246 }
 0xfc8   : > { %v1268_v30 = vmul.f32 2.0, %v3247_v4  ;;  %v1270_v34 = vmul.f32 %v3247_v4, %v1174_v21 }
 0xfca   : > { %v2830_v31 = vadd.f32 -1.0, %v1268_v30 }
 0xfcc   : > { %1272 = vrot.lane.b32.xlu0 %v2830_v31, %s3571_s15 }
0x103e   : > { %v1273_v33 = vpop.permute.xlu0 %1272 }
0x103f   : > { %v1275_v7 = vmul.f32 %v3247_v4, %v1273_v33 }
0x1041   : > { %1277 = vrot.lane.b32.xlu1 %v1275_v7, %s3572_s24 }
0x10b3   : > { %v1278_v35 = vpop.permute.xlu1 %1277 }
0x10b4   : > { %v4019_v25 = vadd.f32 %v1278_v35, %v1270_v34 }
0x10b6   : > { %3248 = vtanh.f32 %v4019_v25 }
0x10c0   : > { %v3249_v36 = vpop.eup %3248 }
0x10c1   : > { %1283 = vrot.lane.b32.xlu0 %v3249_v36, %s3571_s15 }
0x1133   : > { %v1284_v37 = vpop.permute.xlu0 %1283 }
0x1134   : > { %v4023_v38 = vmul.f32 %v3247_v4, %v1284_v37 }
0x1136   : > { %v1320_v39 = vpack.c.bf16 %v4023_v38, %v4023_v38 }
0x1138   : > { %1322 = vrot.lane.b32.xlu1 %v1320_v39, %s3572_s24 }
0x113c   : > { %753 = vrot.lane.b32.xlu1 %v3942_v45, %s3572_s24 }
0x1140   : > { %970 = vrot.lane.b32.xlu1 %v3973_v32, %s3572_s24 }
0x1144   : > { %761 = vrot.lane.b32.xlu1 %v759_v40, %s3572_s24 }
0x1148   : > { %978 = vrot.lane.b32.xlu1 %v976_v41, %s3572_s24 }
0x11aa   : > { %v1323_v42 = vpop.permute.xlu1 %1322 }
0x11ab   : > { %3010 = vmatmul.mubr.msk.bf16.vlgmr.msra.gmra.mrb[8].mxu0 %vm572_vm1, %v1323_v42 }
0x11ae   : > { %v754_v56 = vpop.permute.xlu1 %753 }
0x11af   : > { %v756_v57 = vsel %vm572_vm1, %v754_v56, 0.0 }
0x11b2   : > { %v971_v58 = vpop.permute.xlu1 %970 }
0x11b3   : > { %v973_v59 = vsel %vm572_vm1, %v971_v58, 0.0  ;;  %v3205_v58 = vld [vmem:[#allocation10 + $0x8] sm:$0xff]  }
0x11b6   : > { %v762_v10 = vpop.permute.xlu1 %761 }
0x11b7   : > { %v764_v13 = vsel %vm572_vm1, %v762_v10, 0.0 }
0x11ba   : > { %v979_v14 = vpop.permute.xlu1 %978 }
0x11bb   : > { %v981_v17 = vsel %vm572_vm1, %v979_v14, 0.0 }
0x127e   : > { %v1361_v43 = vpop.f32.mrb[8].mxu0 }
0x127f   : > { %v1367_v44 = vadd.f32 %v1361_v43, %v3931_v19  ;;  %v3011_v46 = vpop.f32.mrb[9].mxu0  ;;  %v870_v19 = vmul.f32 %v3957_v3, %v3957_v3 }
0x1280   : > { %v1364_v47 = vpop.f32.mrb[10].mxu0 }
0x1281   : > { %v2832_v48 = vmul.f32 -1.442695, %v1367_v44  ;;  %v3012_v49 = vpop.f32.mrb[11].mxu0 }
0x1283   : > { %3250 = vpow2.f32 %v2832_v48 }
0x128d   : > { %v3251_v50 = vpop.eup %3250 }
0x128e   : > { %v1371_v15 = vadd.f32 1.0, %v3251_v50 }
0x1290   : > { %3252 = vrcp.f32 %v1371_v15 }
0x129a   : > { %v4040_v51 = vpop.eup %3252 }
0x129b   : > { %v1374_v52 = vmul.f32 2.0, %v4040_v51  ;;  %v1376_v20 = vmul.f32 %v4040_v51, %v4019_v25 }
0x129d   : > { %v2833_v54 = vadd.f32 -1.0, %v1374_v52 }
0x129f   : > { %1378 = vrot.lane.b32.xlu0 %v2833_v54, %s3571_s15 }
0x12a3   : > { %864 = vrot.lane.b32.xlu0 %v3957_v3, %s3572_s24 }
0x12a7   : > { %1076 = vrot.lane.b32.xlu0 %v3989_v53, %s3572_s24 }
0x12ab   : > { %872 = vrot.lane.b32.xlu0 %v870_v19, %s3572_s24 }
0x12af   : > { %1084 = vrot.lane.b32.xlu0 %v1082_v55, %s3572_s24 }
0x12ce   : > { %757 = vadd.xlane.f32.xlu0 %v756_v57  ;;  %v3204_v57 = vld [vmem:[#allocation10] sm:$0xff]  }
0x12cf   : > { %3021 = vmatprep.subr.bf16.mxu0 %v3204_v57 }
0x12d0   : > { %3022 = vmatpush3.bf16.msra.mxu0 %v3204_v57 }
0x12d1   : > { %3023 = vmatprep.subr.bf16.mxu0 %v3205_v58 }
0x12d2   : > { %974 = vadd.xlane.f32.xlu0 %v973_v59 }
0x12d4   : > { %3024 = vmatpush3.bf16.msra.mxu0 %v3205_v58 }
0x12d5   : > { %3049 = vmatprep.subr.bf16.mxu0 %v3568_v0 }
0x1311   : > { %v1379_v60 = vpop.permute.xlu0 %1378 }
0x1312   : > { %v1381_v61 = vmul.f32 %v4040_v51, %v1379_v60 }
0x1314   : > { %1383 = vrot.lane.b32.xlu1 %v1381_v61, %s3572_s24 }
0x1315   : > { %v865_v62 = vpop.permute.xlu0 %864 }
0x1316   : > { %v867_v21 = vsel %vm572_vm1, %v865_v62, 0.0 }
0x1319   : > { %v1077_v63 = vpop.permute.xlu0 %1076 }
0x131a   : > { %v1079_v1 = vsel %vm572_vm1, %v1077_v63, 0.0 }
0x131b   : > { %1080 = vadd.xlane.f32.xlu0 %v1079_v1 }
0x131d   : > { %v873_v2 = vpop.permute.xlu0 %872 }
0x131e   : > { %v875_v5 = vsel %vm572_vm1, %v873_v2, 0.0 }
0x131f   : > { %876 = vadd.xlane.f32.xlu0 %v875_v5 }
0x1321   : > { %v1085_v6 = vpop.permute.xlu0 %1084 }
0x1322   : > { %v1087_v8 = vsel %vm572_vm1, %v1085_v6, 0.0 }
0x1323   : > { %1088 = vadd.xlane.f32.xlu0 %v1087_v8 }
0x1338   : > { %868 = vadd.xlane.f32.xlu1 %v867_v21 }
0x1339   : > { %779 = vrot.lane.b32.xlu0 %v2811_v11, %s3573_s9 }
0x133c   : > { %765 = vadd.xlane.f32.xlu1 %v764_v13 }
0x1340   : > { %982 = vadd.xlane.f32.xlu1 %v981_v17 }
0x1351   : > { %775 = vrot.lane.b32.xlu1 %v2810_v18, %s3573_s9 }
0x135b   : > { %v758_v27 = vpop.xlane.xlu0 %757 }
0x135c   : > { %v767_v35 = vmul.f32 0.03125, %v758_v27 }
0x135e   : > { %v769_v41 = vmul.f32 %v767_v35, %v767_v35  ;;  %v771_v59 = vsub.f32 %v3942_v45, %v767_v35 }
0x135f   : > { %v975_v28 = vpop.xlane.xlu0 %974 }
0x1360   : > { %v984_v42 = vmul.f32 0.03125, %v975_v28 }
0x1362   : > { %v986_v49 = vmul.f32 %v984_v42, %v984_v42 }
0x1386   : > { %v1384_v22 = vpop.permute.xlu1 %1383 }
0x1387   : > { %v4074_v24 = vadd.f32 %v1384_v22, %v1376_v20 }
0x1389   : > { %3254 = vtanh.f32 %v4074_v24 }
0x1393   : > { %v3255_v26 = vpop.eup %3254 }
0x1394   : > { %1389 = vrot.lane.b32.xlu1 %v3255_v26, %s3571_s15 }
0x13a8   : > { %v1081_v29 = vpop.xlane.xlu0 %1080 }
0x13a9   : > { %v1090_v30 = vmul.f32 0.03125, %v1081_v29 }
0x13ab   : > { %v1092_v33 = vmul.f32 %v1090_v30, %v1090_v30  ;;  %v1094_v60 = vsub.f32 %v3989_v53, %v1090_v30 }
0x13ac   : > { %v877_v12 = vpop.xlane.xlu0 %876 }
0x13ad   : > { %v879_v36 = vmul.f32 0.03125, %v877_v12 }
0x13b0   : > { %v1089_v4 = vpop.xlane.xlu0 %1088 }
0x13b1   : > { %v1091_v31 = vmul.f32 0.03125, %v1089_v4 }
0x13b3   : > { %v1093_v7 = vsub.f32 %v1091_v31, %v1092_v33  ;;  %v4110_v33 = vld [vmem:[#allocation12] sm:$0xff]  }
0x13b4   : > { %v4084_v6 = vpop.permute.xlu0 %779 }
0x13b5   : > { %v1095_v39 = vadd.f32 1e-05, %v1093_v7  ;;  %v4115_v7 = vld [vmem:[#allocation12 + $0x8] sm:$0xff]  }
0x13b7   : > { %3256 = vrsqrt.f32 %v1095_v39 }
0x13c1   : > { %v3257_v19 = vpop.eup %3256 }
0x13c2   : > { %v1097_v5 = vmul.f32 %v3257_v19, %v1094_v60 }
0x13c5   : > { %v869_v34 = vpop.xlane.xlu1 %868 }
0x13c6   : > { %v878_v25 = vmul.f32 0.03125, %v869_v34 }
0x13c8   : > { %v880_v37 = vmul.f32 %v878_v25, %v878_v25  ;;  %v882_v55 = vsub.f32 %v3957_v3, %v878_v25  ;;  %v988_v3 = vsub.f32 %v3973_v32, %v984_v42 }
0x13c9   : > { %v766_v40 = vpop.xlane.xlu1 %765 }
0x13ca   : > { %v881_v43 = vsub.f32 %v879_v36, %v880_v37  ;;  %v768_v44 = vmul.f32 0.03125, %v766_v40 }
0x13cc   : > { %v883_v46 = vadd.f32 1e-05, %v881_v43  ;;  %v770_v47 = vsub.f32 %v768_v44, %v769_v41  ;;  %v4143_v44 = vld [vmem:[%s4569_s8] ss:$0 sm:$0xff] }
0x13cd   : > { %v983_v48 = vpop.xlane.xlu1 %982 }
0x13ce   : > { %3258 = vrsqrt.f32 %v883_v46  ;;  %v772_v50 = vadd.f32 1e-05, %v770_v47  ;;  %v985_v15 = vmul.f32 0.03125, %v983_v48 }
0x13d0   : > { %3260 = vrsqrt.f32 %v772_v50  ;;  %v987_v52 = vsub.f32 %v985_v15, %v986_v49 }
0x13d1   : > { %v4081_v63 = vpop.permute.xlu1 %775 }
0x13d2   : > { %v989_v54 = vadd.f32 1e-05, %v987_v52  ;;  %v1098_v53 = vmul.f32 %v1097_v5, %v4081_v63 }
0x13d4   : > { %3262 = vrsqrt.f32 %v989_v54  ;;  %v1099_v13 = vadd.f32 %v1098_v53, %v4084_v6 }
0x13d8   : > { %v3259_v56 = vpop.eup %3258 }
0x13d9   : > { %v885_v61 = vmul.f32 %v3259_v56, %v882_v55 }
0x13da   : > { %v3261_v62 = vpop.eup %3260 }
0x13db   : > { %v886_v1 = vmul.f32 %v885_v61, %v4081_v63  ;;  %v774_v2 = vmul.f32 %v3261_v62, %v771_v59 }
0x13dd   : > { %v887_v8 = vadd.f32 %v886_v1, %v4084_v6  ;;  %v778_v45 = vmul.f32 %v4081_v63, %v774_v2 }
0x13de   : > { %v3263_v10 = vpop.eup %3262 }
0x13df   : > { %889 = vrot.lane.b32.xlu0 %v887_v8, %s3572_s24  ;;  %v782_v11 = vadd.f32 %v4084_v6, %v778_v45  ;;  %v991_v21 = vmul.f32 %v3263_v10, %v988_v3 }
0x13e1   : > { %784 = vrot.lane.b32.xlu1 %v782_v11, %s3572_s24  ;;  %v992_v32 = vmul.f32 %v991_v21, %v4081_v63 }
0x13e3   : > { %1101 = vrot.lane.b32.xlu0 %v1099_v13, %s3572_s24  ;;  %v993_v14 = vadd.f32 %v992_v32, %v4084_v6 }
0x13e5   : > { %995 = vrot.lane.b32.xlu1 %v993_v14, %s3572_s24 }
0x1406   : > { %v1390_v17 = vpop.permute.xlu1 %1389 }
0x1407   : > { %v4100_v18 = vmul.f32 %v4040_v51, %v1390_v17 }
0x1409   : > { %v1426_v20 = vpack.c.bf16 %v4100_v18, %v4100_v18 }
0x140b   : > { %1428 = vrot.lane.b32.xlu1 %v1426_v20, %s3572_s24 }
0x1451   : > { %v890_v22 = vpop.permute.xlu0 %889 }
0x1452   : > { %893 = vst.msk [vmem:[#allocation3 + $0x8] sm:$0xff] %vm572_vm1, %v890_v22 }
0x1453   : > { %v785_v26 = vpop.permute.xlu1 %784 }
0x1454   : > { %787 = vst.msk [vmem:[#allocation3] sm:$0xff] %vm572_vm1, %v785_v26  ;;  %v1400_v26 = vmul.f32 %v4100_v18, %v4100_v18 }
0x1455   : > { %v1102_v27 = vpop.permute.xlu0 %1101 }
0x1456   : > { %1105 = vst.msk [vmem:[#allocation3 + $0x18] sm:$0xff] %vm572_vm1, %v1102_v27 }
0x1457   : > { %v996_v28 = vpop.permute.xlu1 %995 }
0x1458   : > { %999 = vst.msk [vmem:[#allocation3 + $0x10] sm:$0xff] %vm572_vm1, %v996_v28 }
0x1459   : > { %v1539_v51 = vld [vmem:[#allocation3 + $0x8] sm:$0xff] }
0x145b   : > { %v1538_v29 = vld [vmem:[#allocation3] sm:$0xff] }
0x145c   : > { %v1546_v12 = vpack.c.bf16 %v1539_v51, %v1538_v29 }
0x145d   : > { %v1541_v30 = vld [vmem:[#allocation3 + $0x18] sm:$0xff] }
0x145e   : > { %3025 = vmatprep.mubr.msk.bf16.mxu0 %vm572_vm1, %v1546_v12 }
0x145f   : > { %v1540_v4 = vld [vmem:[#allocation3 + $0x10] sm:$0xff] }
0x1460   : > { %v1547_v31 = vpack.c.bf16 %v1541_v30, %v1540_v4 }
0x1462   : > { %3026 = vmatmul.mubr.msk.bf16.vlgmr.msra.gmra.mrb[12].mxu0 %vm572_vm1, %v1547_v31 }
0x1463   : > { %3050 = vmatpush3.bf16.msra.mxu0 %v4110_v33 }
0x1464   : > { %3051 = vmatprep.subr.bf16.mxu0 %v3568_v0 }
0x1467   : > { %3052 = vmatpush3.bf16.msra.mxu0 %v4115_v7 }
0x1468   : > { %3065 = vmatprep.subr.bf16.mxu0 %v3568_v0 }
0x147d   : > { %v1429_v34 = vpop.permute.xlu1 %1428 }
0x147e   : > { %3018 = vmatmul.mubr.msk.bf16.vlgmr.msra.gmra.mrb[24].mxu1 %vm572_vm1, %v1429_v34 }
0x147f   : > { %3034 = vmatpush3.bf16.msra.mxu1 %v4110_v33  ;;  %3037 = vmatprep.mubr.msk.bf16.mxu1 %vm3569_vm0, %v3568_v0 }
0x1480   : > { %3035 = vmatprep.subr.bf16.mxu1 %v3568_v0 }
0x1483   : > { %3036 = vmatpush3.bf16.msra.mxu1 %v4115_v7 }
0x1484   : > { %3041 = vmatprep.subr.bf16.mxu1 %v3568_v0 }
0x1486   : > { %3038 = vmatmul.mubr.bf16.vlgmr.msra.gmra.mrb[28].mxu1 %v3570_v9 }
0x1487   : > { %3042 = vmatpush3.bf16.msra.mxu1 %v4110_v33  ;;  %3045 = vmatprep.mubr.msk.bf16.mxu1 %vm3569_vm0, %v3568_v0 }
0x1488   : > { %3043 = vmatprep.subr.bf16.mxu1 %v3568_v0 }
0x148b   : > { %3044 = vmatpush3.bf16.msra.mxu1 %v4115_v7 }
0x148c   : > { %3057 = vmatprep.subr.bf16.mxu1 %v3568_v0 }
0x1535   : > { %v4133_v35 = vpop.f32.mrb[12].mxu0 }
0x1536   : > { %v1615_v25 = vpop.f32.mrb[13].mxu0 }
0x1537   : > { %v4135_v36 = vpop.f32.mrb[14].mxu0  ;;  %v1616_v46 = vadd.f32 %v4143_v44, %v1615_v25 }
0x1538   : > { %v4137_v37 = vpop.f32.mrb[15].mxu0 }
0x1539   : > { %v1619_v27 = vadd.f32 %v4143_v44, %v4137_v37 }
0x1551   : > { %v1467_v39 = vpop.f32.mrb[24].mxu1 }
0x1552   : > { %v1473_v40 = vadd.f32 %v1467_v39, %v3935_v23  ;;  %v3019_v41 = vpop.f32.mrb[25].mxu1 }
0x1553   : > { %v1470_v42 = vpop.f32.mrb[26].mxu1 }
0x1554   : > { %v3020_v43 = vpop.f32.mrb[27].mxu1  ;;  %v2835_v59 = vmul.f32 -1.442695, %v1473_v40  ;;  %v1294_v42 = vmul.f32 %v4023_v38, %v4023_v38 }
0x1559   : > { %v1713_v47 = vpop.f32.mrb[28].mxu1 }
0x155a   : > { %v1719_v48 = vadd.f32 %v1713_v47, %v1616_v46  ;;  %v3039_v49 = vpop.f32.mrb[29].mxu1 }
0x155b   : > { %v1716_v50 = vpop.f32.mrb[30].mxu1 }
0x155c   : > { %v2848_v15 = vmul.f32 -1.442695, %v1719_v48  ;;  %v3040_v52 = vpop.f32.mrb[31].mxu1 }
0x155e   : > { %3264 = vpow2.f32 %v2848_v15 }
0x1568   : > { %v3265_v54 = vpop.eup %3264 }
0x1569   : > { %v1723_v19 = vadd.f32 1.0, %v3265_v54 }
0x156b   : > { %3266 = vrcp.f32 %v1723_v19 }
0x156c   : > { %3268 = vpow2.f32 %v2835_v59 }
0x1575   : > { %v3267_v23 = vpop.eup %3266 }
0x1576   : > { %v1726_v55 = vmul.f32 2.0, %v3267_v23  ;;  %v3269_v60 = vpop.eup %3268  ;;  %v1728_v62 = vmul.f32 0.0, %v3267_v23 }
0x1577   : > { %v1477_v61 = vadd.f32 1.0, %v3269_v60 }
0x1578   : > { %v2849_v56 = vadd.f32 -1.0, %v1726_v55 }
0x1579   : > { %3270 = vrcp.f32 %v1477_v61 }
0x157a   : > { %1730 = vrot.lane.b32.xlu0 %v2849_v56, %s3571_s15 }
0x1583   : > { %v3271_v5 = vpop.eup %3270 }
0x1584   : > { %v1480_v3 = vmul.f32 2.0, %v3271_v5  ;;  %v1482_v14 = vmul.f32 %v3271_v5, %v4074_v24  ;;  %v1188_v24 = vmul.f32 %v4004_v16, %v4004_v16 }
0x1586   : > { %v2836_v45 = vadd.f32 -1.0, %v1480_v3 }
0x15ec   : > { %v1731_v57 = vpop.permute.xlu0 %1730 }
0x15ed   : > { %v1733_v58 = vmul.f32 %v3267_v23, %v1731_v57 }
0x15ef   : > { %1735 = vrot.lane.b32.xlu1 %v1733_v58, %s3572_s24 }
0x1661   : > { %v1736_v1 = vpop.permute.xlu1 %1735 }
0x1662   : > { %v4148_v2 = vadd.f32 %v1736_v1, %v1728_v62 }
0x1664   : > { %3272 = vtanh.f32 %v4148_v2 }
0x166e   : > { %v3273_v8 = vpop.eup %3272 }
0x166f   : > { %1741 = vrot.lane.b32.xlu0 %v3273_v8, %s3571_s15 }
0x1673   : > { %1484 = vrot.lane.b32.xlu0 %v2836_v45, %s3571_s15 }
0x16e1   : > { %v1742_v53 = vpop.permute.xlu0 %1741 }
0x16e2   : > { %v4153_v10 = vmul.f32 %v3267_v23, %v1742_v53 }
0x16e4   : > { %v1782_v11 = vpack.c.bf16 %v4153_v10, %v4153_v10 }
0x16e5   : > { %v1485_v21 = vpop.permute.xlu0 %1484 }
0x16e6   : > { %1784 = vrot.lane.b32.xlu1 %v1782_v11, %s3572_s24  ;;  %v1487_v13 = vmul.f32 %v3271_v5, %v1485_v21 }
0x16ea   : > { %1489 = vrot.lane.b32.xlu1 %v1487_v13, %s3572_s24 }
0x1758   : > { %v1785_v32 = vpop.permute.xlu1 %1784 }
0x1759   : > { %3046 = vmatmul.mubr.msk.bf16.vlgmr.msra.gmra.mrb[32].mxu1 %vm572_vm1, %v1785_v32 }
0x175a   : > { %3058 = vmatpush3.bf16.msra.mxu1 %v4110_v33  ;;  %3061 = vmatprep.mubr.msk.bf16.mxu1 %vm3569_vm0, %v3568_v0 }
0x175b   : > { %3059 = vmatprep.subr.bf16.mxu1 %v3568_v0 }
0x175c   : > { %v1490_v17 = vpop.permute.xlu1 %1489 }
0x175d   : > { %v1492_v20 = vadd.f32 %v1490_v17, %v1482_v14 }
0x175e   : > { %3060 = vmatpush3.bf16.msra.mxu1 %v4115_v7 }
0x175f   : > { %3274 = vtanh.f32 %v1492_v20  ;;  %3073 = vmatprep.subr.bf16.mxu1 %v3568_v0 }
0x1769   : > { %v3275_v22 = vpop.eup %3274 }
0x176a   : > { %1495 = vrot.lane.b32.xlu0 %v3275_v22, %s3571_s15 }
0x176e   : > { %1182 = vrot.lane.b32.xlu0 %v4004_v16, %s3572_s24 }
0x1772   : > { %1394 = vrot.lane.b32.xlu0 %v4100_v18, %s3572_s24 }
0x1776   : > { %1190 = vrot.lane.b32.xlu0 %v1188_v24, %s3572_s24 }
0x177a   : > { %1402 = vrot.lane.b32.xlu0 %v1400_v26, %s3572_s24 }
0x17dc   : > { %v1496_v41 = vpop.permute.xlu0 %1495 }
0x17dd   : > { %v4186_v37 = vmul.f32 %v3271_v5, %v1496_v41 }
0x17df   : > { %v1506_v43 = vmul.f32 %v4186_v37, %v4186_v37 }
0x17e0   : > { %v1183_v46 = vpop.permute.xlu0 %1182 }
0x17e1   : > { %v1185_v47 = vsel %vm572_vm1, %v1183_v46, 0.0 }
0x17e4   : > { %v1395_v49 = vpop.permute.xlu0 %1394 }
0x17e5   : > { %v1397_v54 = vsel %vm572_vm1, %v1395_v49, 0.0 }
0x17e8   : > { %v1191_v23 = vpop.permute.xlu0 %1190 }
0x17e9   : > { %v1193_v56 = vsel %vm572_vm1, %v1191_v23, 0.0 }
0x17ec   : > { %v1403_v61 = vpop.permute.xlu0 %1402 }
0x17ed   : > { %v1405_v62 = vsel %vm572_vm1, %v1403_v61, 0.0 }
0x182c   : > { %v1823_v28 = vpop.f32.mrb[32].mxu1 }
0x182d   : > { %v1829_v29 = vadd.f32 %v1823_v28, %v1619_v27  ;;  %v3047_v51 = vpop.f32.mrb[33].mxu1 }
0x182e   : > { %v1826_v12 = vpop.f32.mrb[34].mxu1 }
0x182f   : > { %v2851_v4 = vmul.f32 -1.442695, %v1829_v29  ;;  %v3048_v30 = vpop.f32.mrb[35].mxu1 }
0x1831   : > { %3276 = vpow2.f32 %v2851_v4 }
0x183b   : > { %v3277_v31 = vpop.eup %3276 }
0x183c   : > { %v1833_v34 = vadd.f32 1.0, %v3277_v31 }
0x183e   : > { %3278 = vrcp.f32 %v1833_v34 }
0x1848   : > { %v4180_v25 = vpop.eup %3278 }
0x1849   : > { %v1836_v39 = vmul.f32 2.0, %v4180_v25  ;;  %v1838_v26 = vmul.f32 %v4180_v25, %v4148_v2 }
0x184b   : > { %v2852_v40 = vadd.f32 -1.0, %v1836_v39 }
0x184d   : > { %1840 = vrot.lane.b32.xlu1 %v2852_v40, %s3571_s15 }
0x1851   : > { %1288 = vrot.lane.b32.xlu1 %v4023_v38, %s3572_s24 }
0x1855   : > { %1500 = vrot.lane.b32.xlu1 %v4186_v37, %s3572_s24 }
0x1859   : > { %1296 = vrot.lane.b32.xlu1 %v1294_v42, %s3572_s24 }
0x185d   : > { %1508 = vrot.lane.b32.xlu1 %v1506_v43, %s3572_s24 }
0x1881   : > { %1186 = vadd.xlane.f32.xlu1 %v1185_v47 }
0x18bf   : > { %v1841_v48 = vpop.permute.xlu1 %1840 }
0x18c0   : > { %v1843_v60 = vmul.f32 %v4180_v25, %v1841_v48 }
0x18c3   : > { %v1289_v50 = vpop.permute.xlu1 %1288 }
0x18c4   : > { %v1291_v15 = vsel %vm572_vm1, %v1289_v50, 0.0 }
0x18c5   : > { %1292 = vadd.xlane.f32.xlu0 %v1291_v15 }
0x18c7   : > { %v1501_v52 = vpop.permute.xlu1 %1500 }
0x18c8   : > { %v1503_v19 = vsel %vm572_vm1, %v1501_v52, 0.0 }
0x18c9   : > { %1398 = vadd.xlane.f32.xlu0 %v1397_v54  ;;  %1504 = vadd.xlane.f32.xlu1 %v1503_v19 }
0x18cb   : > { %v1297_v55 = vpop.permute.xlu1 %1296 }
0x18cc   : > { %v1299_v57 = vsel %vm572_vm1, %v1297_v55, 0.0 }
0x18cd   : > { %1194 = vadd.xlane.f32.xlu0 %v1193_v56  ;;  %1300 = vadd.xlane.f32.xlu1 %v1299_v57 }
0x18cf   : > { %v1509_v58 = vpop.permute.xlu1 %1508 }
0x18d0   : > { %v1511_v59 = vsel %vm572_vm1, %v1509_v58, 0.0 }
0x18d1   : > { %1512 = vadd.xlane.f32.xlu1 %v1511_v59 }
0x18e3   : > { %1845 = vrot.lane.b32.xlu0 %v1843_v60, %s3572_s24 }
0x1902   : > { %1406 = vadd.xlane.f32.xlu0 %v1405_v62 }
0x190e   : > { %v1187_v1 = vpop.xlane.xlu1 %1186 }
0x190f   : > { %v1196_v45 = vmul.f32 0.03125, %v1187_v1 }
0x1911   : > { %v1198_v32 = vmul.f32 %v1196_v45, %v1196_v45  ;;  %v1200_v39 = vsub.f32 %v4004_v16, %v1196_v45 }
0x1952   : > { %v1293_v5 = vpop.xlane.xlu0 %1292 }
0x1953   : > { %v1302_v53 = vmul.f32 0.03125, %v1293_v5 }
0x1955   : > { %v1304_v14 = vmul.f32 %v1302_v53, %v1302_v53  ;;  %v1306_v2 = vsub.f32 %v4023_v38, %v1302_v53 }
0x1956   : > { %v1399_v3 = vpop.xlane.xlu0 %1398  ;;  %v1505_v8 = vpop.xlane.xlu1 %1504 }
0x1957   : > { %v1514_v11 = vmul.f32 0.03125, %v1505_v8  ;;  %v1408_v54 = vmul.f32 0.03125, %v1399_v3 }
0x1959   : > { %v1516_v27 = vmul.f32 %v1514_v11, %v1514_v11  ;;  %v1518_v47 = vsub.f32 %v4186_v37, %v1514_v11  ;;  %v1410_v23 = vmul.f32 %v1408_v54, %v1408_v54  ;;  %v1412_v58 = vsub.f32 %v4100_v18, %v1408_v54 }
0x195a   : > { %v1195_v21 = vpop.xlane.xlu0 %1194  ;;  %v1301_v13 = vpop.xlane.xlu1 %1300 }
0x195b   : > { %v1197_v17 = vmul.f32 0.03125, %v1195_v21  ;;  %v1303_v20 = vmul.f32 0.03125, %v1301_v13 }
0x195d   : > { %v1199_v22 = vsub.f32 %v1197_v17, %v1198_v32  ;;  %v1305_v24 = vsub.f32 %v1303_v20, %v1304_v14 }
0x195e   : > { %v1846_v28 = vpop.permute.xlu0 %1845  ;;  %v1513_v29 = vpop.xlane.xlu1 %1512 }
0x195f   : > { %v1201_v51 = vadd.f32 1e-05, %v1199_v22  ;;  %v1307_v12 = vadd.f32 1e-05, %v1305_v24  ;;  %v4208_v4 = vadd.f32 %v1846_v28, %v1838_v26  ;;  %v1515_v30 = vmul.f32 0.03125, %v1513_v29 }
0x1960   : > { %v1624_v24 = vadd.f32 %v4133_v35, %v4143_v44 }
0x1961   : > { %3280 = vrsqrt.f32 %v1201_v51  ;;  %v1517_v31 = vsub.f32 %v1515_v30, %v1516_v27 }
0x1962   : > { %3282 = vrsqrt.f32 %v1307_v12 }
0x1963   : > { %3284 = vtanh.f32 %v4208_v4  ;;  %v1519_v34 = vadd.f32 1e-05, %v1517_v31 }
0x1965   : > { %3286 = vrsqrt.f32 %v1519_v34 }
0x196b   : > { %v3281_v40 = vpop.eup %3280 }
0x196c   : > { %v3283_v41 = vpop.eup %3282  ;;  %v1203_v42 = vmul.f32 %v3281_v40, %v1200_v39 }
0x196d   : > { %v3285_v43 = vpop.eup %3284  ;;  %v1309_v46 = vmul.f32 %v3283_v41, %v1306_v2 }
0x196e   : > { %1851 = vrot.lane.b32.xlu0 %v3285_v43, %s3571_s15  ;;  %v1204_v48 = vmul.f32 %v1203_v42, %v4081_v63 }
0x196f   : > { %v3287_v49 = vpop.eup %3286  ;;  %v1310_v15 = vmul.f32 %v1309_v46, %v4081_v63 }
0x1970   : > { %v1205_v50 = vadd.f32 %v1204_v48, %v4084_v6  ;;  %v1521_v52 = vmul.f32 %v3287_v49, %v1518_v47 }
0x1971   : > { %v1311_v16 = vadd.f32 %v1310_v15, %v4084_v6 }
0x1972   : > { %1207 = vrot.lane.b32.xlu1 %v1205_v50, %s3572_s24  ;;  %v1522_v38 = vmul.f32 %v1521_v52, %v4081_v63 }
0x1974   : > { %v1523_v37 = vadd.f32 %v1522_v38, %v4084_v6 }
0x1976   : > { %1313 = vrot.lane.b32.xlu1 %v1311_v16, %s3572_s24 }
0x197a   : > { %1525 = vrot.lane.b32.xlu1 %v1523_v37, %s3572_s24 }
0x198f   : > { %v1407_v19 = vpop.xlane.xlu0 %1406 }
0x1990   : > { %v1409_v55 = vmul.f32 0.03125, %v1407_v19 }
0x1992   : > { %v1411_v56 = vsub.f32 %v1409_v55, %v1410_v23 }
0x1994   : > { %v1413_v57 = vadd.f32 1e-05, %v1411_v56 }
0x1996   : > { %3288 = vrsqrt.f32 %v1413_v57 }
0x19a0   : > { %v3289_v59 = vpop.eup %3288 }
0x19a1   : > { %v1415_v60 = vmul.f32 %v3289_v59, %v1412_v58 }
0x19a3   : > { %v1416_v61 = vmul.f32 %v1415_v60, %v4081_v63 }
0x19a5   : > { %v1417_v62 = vadd.f32 %v1416_v61, %v4084_v6 }
0x19a7   : > { %1419 = vrot.lane.b32.xlu0 %v1417_v62, %s3572_s24 }
0x19e0   : > { %v1852_v1 = vpop.permute.xlu0 %1851 }
0x19e1   : > { %v4229_v5 = vmul.f32 %v4180_v25, %v1852_v1 }
0x19e3   : > { %v1886_v3 = vpack.c.bf16 %v4229_v5, %v4229_v5 }
0x19e4   : > { %v1208_v8 = vpop.permute.xlu1 %1207 }
0x19e5   : > { %1888 = vrot.lane.b32.xlu0 %v1886_v3, %s3572_s24  ;;  %1211 = vst.msk [vmem:[#allocation3 + $0x20] sm:$0xff] %vm572_vm1, %v1208_v8 }
0x19e8   : > { %v1314_v18 = vpop.permute.xlu1 %1313 }
0x19e9   : > { %1317 = vst.msk [vmem:[#allocation3 + $0x28] sm:$0xff] %vm572_vm1, %v1314_v18 }
0x19ec   : > { %v1526_v63 = vpop.permute.xlu1 %1525  ;;  %v1542_v6 = vld [vmem:[#allocation3 + $0x20] sm:$0xff] }
0x19ed   : > { %1529 = vst.msk [vmem:[#allocation3 + $0x38] sm:$0xff] %vm572_vm1, %v1526_v63 }
0x19f0   : > { %v1543_v45 = vld [vmem:[#allocation3 + $0x28] sm:$0xff] }
0x19f1   : > { %v1548_v53 = vpack.c.bf16 %v1543_v45, %v1542_v6 }
0x19f3   : > { %3029 = vmatprep.mubr.msk.bf16.mxu0 %vm572_vm1, %v1548_v53 }
0x19f4   : > { %v1545_v21 = vld [vmem:[#allocation3 + $0x38] sm:$0xff] }
0x1a19   : > { %v1420_v25 = vpop.permute.xlu0 %1419 }
0x1a1a   : > { %1423 = vst.msk [vmem:[#allocation3 + $0x30] sm:$0xff] %vm572_vm1, %v1420_v25 }
0x1a21   : > { %v1544_v11 = vld [vmem:[#allocation3 + $0x30] sm:$0xff] }
0x1a22   : > { %v1549_v13 = vpack.c.bf16 %v1545_v21, %v1544_v11 }
0x1a24   : > { %3030 = vmatmul.mubr.msk.bf16.gmra.mrb[16].mxu0 %vm572_vm1, %v1549_v13 }
0x1a25   : > { %3053 = vmatprep.mubr.msk.bf16.mxu0 %vm3569_vm0, %v3568_v0 }
0x1a57   : > { %v1889_v32 = vpop.permute.xlu0 %1888 }
0x1a58   : > { %3054 = vmatmul.mubr.msk.bf16.vlgmr.msra.gmra.mrb[20].mxu0 %vm572_vm1, %v1889_v32 }
0x1a59   : > { %3066 = vmatpush3.bf16.msra.mxu0 %v4110_v33  ;;  %3069 = vmatprep.mubr.msk.bf16.mxu0 %vm3569_vm0, %v3568_v0 }
0x1a5a   : > { %3067 = vmatprep.subr.bf16.mxu0 %v3568_v0 }
0x1a5d   : > { %3068 = vmatpush3.bf16.msra.mxu0 %v4115_v7 }
0x1a5e   : > { %3081 = vmatprep.subr.bf16.mxu0 %v3568_v0 }
0x1af7   : > { %v4249_v14 = vpop.f32.mrb[16].mxu0 }
0x1af8   : > { %v4251_v17 = vpop.f32.mrb[17].mxu0 }
0x1af9   : > { %v4253_v20 = vpop.f32.mrb[18].mxu0  ;;  %v1632_v63 = vadd.f32 %v4143_v44, %v4251_v17 }
0x1afa   : > { %v4255_v22 = vpop.f32.mrb[19].mxu0 }
0x1b2b   : > { %v1927_v26 = vpop.f32.mrb[20].mxu0 }
0x1b2c   : > { %v1933_v27 = vadd.f32 %v1927_v26, %v1624_v24  ;;  %v3055_v28 = vpop.f32.mrb[21].mxu0 }
0x1b2d   : > { %v1930_v29 = vpop.f32.mrb[22].mxu0 }
0x1b2e   : > { %v2854_v51 = vmul.f32 -1.442695, %v1933_v27  ;;  %v3056_v12 = vpop.f32.mrb[23].mxu0 }
0x1b30   : > { %3290 = vpow2.f32 %v2854_v51 }
0x1b3a   : > { %v3291_v30 = vpop.eup %3290 }
0x1b3b   : > { %v1937_v31 = vadd.f32 1.0, %v3291_v30 }
0x1b3d   : > { %3292 = vrcp.f32 %v1937_v31 }
0x1b47   : > { %v3293_v34 = vpop.eup %3292 }
0x1b48   : > { %v1940_v39 = vmul.f32 2.0, %v3293_v34  ;;  %v1942_v35 = vmul.f32 %v3293_v34, %v4208_v4  ;;  %v1627_v4 = vadd.f32 %v4135_v36, %v4143_v44 }
0x1b4a   : > { %v2855_v40 = vadd.f32 -1.0, %v1940_v39 }
0x1b4c   : > { %1944 = vrot.lane.b32.xlu1 %v2855_v40, %s3571_s15 }
0x1bbe   : > { %v1945_v2 = vpop.permute.xlu1 %1944 }
0x1bbf   : > { %v1947_v41 = vmul.f32 %v3293_v34, %v1945_v2  ;;  %v1635_v2 = vadd.f32 %v4143_v44, %v4255_v22 }
0x1bc1   : > { %1949 = vrot.lane.b32.xlu0 %v1947_v41, %s3572_s24 }
0x1c33   : > { %v1950_v42 = vpop.permute.xlu0 %1949 }
0x1c34   : > { %v1952_v43 = vadd.f32 %v1950_v42, %v1942_v35 }
0x1c36   : > { %3294 = vtanh.f32 %v1952_v43 }
0x1c40   : > { %v3295_v46 = vpop.eup %3294 }
0x1c41   : > { %1955 = vrot.lane.b32.xlu1 %v3295_v46, %s3571_s15 }
0x1cb3   : > { %v1956_v47 = vpop.permute.xlu1 %1955 }
0x1cb4   : > { %v4263_v48 = vmul.f32 %v3293_v34, %v1956_v47 }
0x1cb6   : > { %v1990_v49 = vpack.c.bf16 %v4263_v48, %v4263_v48 }
0x1cb8   : > { %1992 = vrot.lane.b32.xlu0 %v1990_v49, %s3572_s24 }
0x1d2a   : > { %v1993_v50 = vpop.permute.xlu0 %1992 }
0x1d2b   : > { %3062 = vmatmul.mubr.msk.bf16.vlgmr.msra.gmra.mrb[36].mxu1 %vm572_vm1, %v1993_v50 }
0x1d2c   : > { %3074 = vmatpush3.bf16.msra.mxu1 %v4110_v33  ;;  %3077 = vmatprep.mubr.msk.bf16.mxu1 %vm3569_vm0, %v3568_v0 }
0x1d2d   : > { %3075 = vmatprep.subr.bf16.mxu1 %v3568_v0 }
0x1d30   : > { %3076 = vmatpush3.bf16.msra.mxu1 %v4115_v7 }
0x1d31   : > { %3089 = vmatprep.subr.bf16.mxu1 %v3568_v0 }
0x1dfe   : > { %v2031_v15 = vpop.f32.mrb[36].mxu1 }
0x1dff   : > { %v2037_v52 = vadd.f32 %v2031_v15, %v1627_v4  ;;  %v3063_v16 = vpop.f32.mrb[37].mxu1 }
0x1e00   : > { %v2034_v38 = vpop.f32.mrb[38].mxu1 }
0x1e01   : > { %v2857_v37 = vmul.f32 -1.442695, %v2037_v52  ;;  %v3064_v54 = vpop.f32.mrb[39].mxu1 }
0x1e03   : > { %3296 = vpow2.f32 %v2857_v37 }
0x1e0d   : > { %v3297_v19 = vpop.eup %3296 }
0x1e0e   : > { %v2041_v23 = vadd.f32 1.0, %v3297_v19 }
0x1e10   : > { %3298 = vrcp.f32 %v2041_v23 }
0x1e1a   : > { %v3299_v55 = vpop.eup %3298 }
0x1e1b   : > { %v2044_v56 = vmul.f32 2.0, %v3299_v55  ;;  %v2046_v36 = vmul.f32 %v3299_v55, %v1952_v43 }
0x1e1d   : > { %v2858_v57 = vadd.f32 -1.0, %v2044_v56 }
0x1e1f   : > { %2048 = vrot.lane.b32.xlu1 %v2858_v57, %s3571_s15 }
0x1e91   : > { %v2049_v58 = vpop.permute.xlu1 %2048 }
0x1e92   : > { %v2051_v59 = vmul.f32 %v3299_v55, %v2049_v58 }
0x1e94   : > { %2053 = vrot.lane.b32.xlu0 %v2051_v59, %s3572_s24 }
0x1f06   : > { %v2054_v60 = vpop.permute.xlu0 %2053 }
0x1f07   : > { %v2056_v61 = vadd.f32 %v2054_v60, %v2046_v36 }
0x1f09   : > { %3300 = vtanh.f32 %v2056_v61 }
0x1f13   : > { %v3301_v62 = vpop.eup %3300 }
0x1f14   : > { %2059 = vrot.lane.b32.xlu1 %v3301_v62, %s3571_s15 }
0x1f86   : > { %v2060_v1 = vpop.permute.xlu1 %2059 }
0x1f87   : > { %v4280_v3 = vmul.f32 %v3299_v55, %v2060_v1  ;;  %v1640_v55 = vadd.f32 %v4249_v14, %v4143_v44 }
0x1f89   : > { %v2094_v8 = vpack.c.bf16 %v4280_v3, %v4280_v3 }
0x1f8b   : > { %2096 = vrot.lane.b32.xlu0 %v2094_v8, %s3572_s24 }
0x1ffd   : > { %v2097_v18 = vpop.permute.xlu0 %2096 }
0x1ffe   : > { %3070 = vmatmul.mubr.msk.bf16.vlgmr.msra.gmra.mrb[24].mxu0 %vm572_vm1, %v2097_v18 }
0x1fff   : > { %3082 = vmatpush3.bf16.msra.mxu0 %v4110_v33  ;;  %3085 = vmatprep.mubr.msk.bf16.mxu0 %vm3569_vm0, %v3568_v0 }
0x2000   : > { %3083 = vmatprep.subr.bf16.mxu0 %v3568_v0 }
0x2003   : > { %3084 = vmatpush3.bf16.msra.mxu0 %v4115_v7 }
0x20d1   : > { %v2135_v6 = vpop.f32.mrb[24].mxu0 }
0x20d2   : > { %v2141_v45 = vadd.f32 %v2135_v6, %v1632_v63  ;;  %v3071_v53 = vpop.f32.mrb[25].mxu0 }
0x20d3   : > { %v2138_v25 = vpop.f32.mrb[26].mxu0 }
0x20d4   : > { %v2860_v11 = vmul.f32 -1.442695, %v2141_v45  ;;  %v3072_v21 = vpop.f32.mrb[27].mxu0 }
0x20d6   : > { %3302 = vpow2.f32 %v2860_v11  ;;  %v1752_v11 = vmul.f32 %v4153_v10, %v4153_v10 }
0x20e0   : > { %v3303_v13 = vpop.eup %3302 }
0x20e1   : > { %v2145_v32 = vadd.f32 1.0, %v3303_v13 }
0x20e3   : > { %3304 = vrcp.f32 %v2145_v32 }
0x20ed   : > { %v3305_v24 = vpop.eup %3304 }
0x20ee   : > { %v2148_v26 = vmul.f32 2.0, %v3305_v24  ;;  %v2150_v17 = vmul.f32 %v3305_v24, %v2056_v61 }
0x20f0   : > { %v2861_v27 = vadd.f32 -1.0, %v2148_v26 }
0x20f2   : > { %2152 = vrot.lane.b32.xlu1 %v2861_v27, %s3571_s15 }
0x2164   : > { %v2153_v28 = vpop.permute.xlu1 %2152 }
0x2165   : > { %v2155_v29 = vmul.f32 %v3305_v24, %v2153_v28  ;;  %v2845_v28 = vld [vmem:[%s4603_s20] ss:$0 sm:$0xff]  ;;  %s3574_s20 = smov [#allocation13]  }
0x2166   : > { %s3488_s14 = sshll.u32 %s3574_s20, 4  ;;  %s3489_s14 = int_to_ptr.vmem [resolvable:$false] %s3488_s14 }
0x2167   : > { %2157 = vrot.lane.b32.xlu0 %v2155_v29, %s3572_s24  ;;  %s3490_s16 = scalar_lea.vmem %s3489_s14, 4096 }
0x21d9   : > { %v2158_v51 = vpop.permute.xlu0 %2157 }
0x21da   : > { %v2160_v12 = vadd.f32 %v2158_v51, %v2150_v17  ;;  %v2844_v17 = vld [vmem:[%s4604_s18] ss:$0 sm:$0xff]  ;;  %s4606_s18 = sld [smem:[#allocation23_spill]] }
0x21dc   : > { %3306 = vtanh.f32 %v2160_v12 }
0x21e6   : > { %v3307_v30 = vpop.eup %3306 }
0x21e7   : > { %2163 = vrot.lane.b32.xlu1 %v3307_v30, %s3571_s15 }
0x2259   : > { %v2164_v31 = vpop.permute.xlu1 %2163 }
0x225a   : > { %v4296_v34 = vmul.f32 %v3305_v24, %v2164_v31 }
0x225c   : > { %v2198_v39 = vpack.c.bf16 %v4296_v34, %v4296_v34 }
0x225e   : > { %2200 = vrot.lane.b32.xlu0 %v2198_v39, %s3572_s24 }
0x22d0   : > { %v2201_v40 = vpop.permute.xlu0 %2200 }
0x22d1   : > { %3078 = vmatmul.mubr.msk.bf16.vlgmr.msra.gmra.mrb[40].mxu1 %vm572_vm1, %v2201_v40 }
0x22d2   : > { %3090 = vmatpush3.bf16.msra.mxu1 %v4110_v33  ;;  %3093 = vmatprep.mubr.msk.bf16.mxu1 %vm3569_vm0, %v3568_v0 }
0x22d3   : > { %3091 = vmatprep.subr.bf16.mxu1 %v3568_v0 }
0x22d6   : > { %3092 = vmatpush3.bf16.msra.mxu1 %v4115_v7 }
0x23a4   : > { %v2239_v41 = vpop.f32.mrb[40].mxu1 }
0x23a5   : > { %v2245_v35 = vadd.f32 %v2239_v41, %v1635_v2  ;;  %v3079_v42 = vpop.f32.mrb[41].mxu1 }
0x23a6   : > { %v2242_v43 = vpop.f32.mrb[42].mxu1 }
0x23a7   : > { %v2863_v46 = vmul.f32 -1.442695, %v2245_v35  ;;  %v3080_v47 = vpop.f32.mrb[43].mxu1 }
0x23a9   : > { %3308 = vpow2.f32 %v2863_v46 }
0x23b3   : > { %v3309_v49 = vpop.eup %3308 }
0x23b4   : > { %v2249_v50 = vadd.f32 1.0, %v3309_v49 }
0x23b6   : > { %3310 = vrcp.f32 %v2249_v50 }
0x23c0   : > { %v3311_v33 = vpop.eup %3310 }
0x23c1   : > { %v2252_v4 = vmul.f32 2.0, %v3311_v33  ;;  %v2254_v22 = vmul.f32 %v3311_v33, %v2160_v12 }
0x23c3   : > { %v2864_v15 = vadd.f32 -1.0, %v2252_v4 }
0x23c5   : > { %2256 = vrot.lane.b32.xlu1 %v2864_v15, %s3571_s15 }
0x2437   : > { %v2257_v0 = vpop.permute.xlu1 %2256 }
0x2438   : > { %v2259_v7 = vmul.f32 %v3311_v33, %v2257_v0 }
0x243a   : > { %2261 = vrot.lane.b32.xlu0 %v2259_v7, %s3572_s24 }
0x24ac   : > { %v2262_v52 = vpop.permute.xlu0 %2261 }
0x24ad   : > { %v2264_v16 = vadd.f32 %v2262_v52, %v2254_v22  ;;  %v1643_v22 = vadd.f32 %v4253_v20, %v4143_v44 }
0x24af   : > { %3312 = vtanh.f32 %v2264_v16 }
0x24b9   : > { %v3313_v38 = vpop.eup %3312 }
0x24ba   : > { %2267 = vrot.lane.b32.xlu1 %v3313_v38, %s3571_s15 }
0x252c   : > { %v2268_v37 = vpop.permute.xlu1 %2267 }
0x252d   : > { %v4312_v54 = vmul.f32 %v3311_v33, %v2268_v37  ;;  %v1862_v33 = vmul.f32 %v4229_v5, %v4229_v5 }
0x252f   : > { %v2302_v19 = vpack.c.bf16 %v4312_v54, %v4312_v54 }
0x2531   : > { %2304 = vrot.lane.b32.xlu0 %v2302_v19, %s3572_s24 }
0x25a3   : > { %v2305_v23 = vpop.permute.xlu0 %2304 }
0x25a4   : > { %3086 = vmatmul.mubr.msk.bf16.vlgmr.msra.gmra.mrb[28].mxu0 %vm572_vm1, %v2305_v23  ;;  %v1966_v23 = vmul.f32 %v4263_v48, %v4263_v48 }
0x25a5   : > { %2601 = vmatprep.mubr.bf16.mxu0 %v3570_v9 }
0x2677   : > { %v2343_v56 = vpop.f32.mrb[28].mxu0 }
0x2678   : > { %v2349_v57 = vadd.f32 %v2343_v56, %v1640_v55  ;;  %v3087_v58 = vpop.f32.mrb[29].mxu0 }
0x2679   : > { %v2346_v59 = vpop.f32.mrb[30].mxu0 }
0x267a   : > { %v2866_v36 = vmul.f32 -1.442695, %v2349_v57  ;;  %v3088_v60 = vpop.f32.mrb[31].mxu0 }
0x267c   : > { %3314 = vpow2.f32 %v2866_v36 }
0x2686   : > { %v3315_v61 = vpop.eup %3314 }
0x2687   : > { %v2353_v62 = vadd.f32 1.0, %v3315_v61 }
0x2689   : > { %3316 = vrcp.f32 %v2353_v62  ;;  %v3208_v62 = vld [vmem:[%s4605_s19] ss:$8 sps:$4 sm:$0xff]  }
0x2693   : > { %v3317_v1 = vpop.eup %3316 }
0x2694   : > { %v2356_v8 = vmul.f32 2.0, %v3317_v1  ;;  %v2358_v14 = vmul.f32 %v3317_v1, %v2264_v16 }
0x2696   : > { %v2867_v18 = vadd.f32 -1.0, %v2356_v8  ;;  %v3213_v8 = vld [vmem:[%s4605_s19 + $0x14] ss:$8 sps:$4 sm:$0xff]  }
0x2698   : > { %2360 = vrot.lane.b32.xlu1 %v2867_v18, %s3571_s15  ;;  %v3211_v18 = vld [vmem:[%s4605_s19 + $0x10] ss:$8 sps:$4 sm:$0xff]  }
0x270a   : > { %v2361_v63 = vpop.permute.xlu1 %2360 }
0x270b   : > { %v2363_v6 = vmul.f32 %v3317_v1, %v2361_v63 }
0x270d   : > { %2365 = vrot.lane.b32.xlu0 %v2363_v6, %s3572_s24 }
0x277f   : > { %v2366_v45 = vpop.permute.xlu0 %2365 }
0x2780   : > { %v4323_v53 = vadd.f32 %v2366_v45, %v2358_v14 }
0x2782   : > { %3318 = vtanh.f32 %v4323_v53 }
0x278c   : > { %v3319_v25 = vpop.eup %3318 }
0x278d   : > { %2371 = vrot.lane.b32.xlu1 %v3319_v25, %s3571_s15 }
0x2791   : > { %1746 = vrot.lane.b32.xlu1 %v4153_v10, %s3572_s24 }
0x2795   : > { %1754 = vrot.lane.b32.xlu1 %v1752_v11, %s3572_s24 }
0x27ff   : > { %v2372_v21 = vpop.permute.xlu1 %2371 }
0x2800   : > { %v4332_v13 = vmul.f32 %v3317_v1, %v2372_v21  ;;  %v3210_v1 = vld [vmem:[%s4605_s19 + $0x4] ss:$8 sps:$4 sm:$0xff]  }
0x2801   : > { %2569 = vmatprep.subr.bf16.mxu0 %v3210_v1 }
0x2802   : > { %v2406_v32 = vpack.c.bf16 %v4332_v13, %v4332_v13  ;;  %2570 = vmatpush1.bf16.msra.mxu0 %v3208_v62 }
0x2803   : > { %v1747_v24 = vpop.permute.xlu1 %1746  ;;  %2571 = vmatprep.subr.bf16.mxu0 %v3213_v8 }
0x2804   : > { %2408 = vrot.lane.b32.xlu0 %v2406_v32, %s3572_s24  ;;  %v1749_v29 = vsel %vm572_vm1, %v1747_v24, 0.0 }
0x2806   : > { %2572 = vmatpush1.bf16.msra.mxu0 %v3211_v18 }
0x2807   : > { %v1755_v26 = vpop.permute.xlu1 %1754 }
0x2808   : > { %v1757_v27 = vsel %vm572_vm1, %v1755_v26, 0.0 }
0x2809   : > { %1758 = vadd.xlane.f32.xlu1 %v1757_v27 }
0x281a   : > { %1772 = vrot.lane.b32.xlu1 %v2845_v28, %s3573_s9 }
0x2823   : > { %1750 = vadd.xlane.f32.xlu0 %v1749_v29 }
0x2839   : > { %1768 = vrot.lane.b32.xlu0 %v2844_v17, %s3573_s9  ;;  %s4423_s9 = scalar_lea.vmem [#allocation13], %s2798_s21 }
0x2876   : > { %v2409_v51 = vpop.permute.xlu0 %2408 }
0x2877   : > { %3094 = vmatmul.mubr.msk.bf16.vlgmr.msra.gmra.mrb[44].mxu1 %vm572_vm1, %v2409_v51 }
0x2896   : > { %v1759_v12 = vpop.xlane.xlu1 %1758 }
0x2897   : > { %v1761_v39 = vmul.f32 0.03125, %v1759_v12 }
0x289a   : > { %v4351_v47 = vpop.permute.xlu1 %1772 }
0x28b0   : > { %v1751_v30 = vpop.xlane.xlu0 %1750 }
0x28b1   : > { %v1760_v31 = vmul.f32 0.03125, %v1751_v30 }
0x28b3   : > { %v1762_v40 = vmul.f32 %v1760_v31, %v1760_v31  ;;  %v1764_v35 = vsub.f32 %v4153_v10, %v1760_v31 }
0x28b4   : > { %v4349_v43 = vpop.permute.xlu0 %1768 }
0x28b5   : > { %v1763_v2 = vsub.f32 %v1761_v39, %v1762_v40 }
0x28b7   : > { %v1765_v41 = vadd.f32 1e-05, %v1763_v2 }
0x28b9   : > { %3320 = vrsqrt.f32 %v1765_v41 }
0x28c3   : > { %v3321_v42 = vpop.eup %3320 }
0x28c4   : > { %v1767_v46 = vmul.f32 %v3321_v42, %v1764_v35 }
0x28c6   : > { %v1771_v49 = vmul.f32 %v4349_v43, %v1767_v46 }
0x28c8   : > { %v1775_v50 = vadd.f32 %v4351_v47, %v1771_v49 }
0x28ca   : > { %1777 = vrot.lane.b32.xlu0 %v1775_v50, %s3572_s24 }
0x28ce   : > { %1856 = vrot.lane.b32.xlu0 %v4229_v5, %s3572_s24 }
0x28d2   : > { %1864 = vrot.lane.b32.xlu0 %v1862_v33, %s3572_s24 }
0x293c   : > { %v1778_v10 = vpop.permute.xlu0 %1777 }
0x293d   : > { %1780 = vst.msk [vmem:[#allocation3] sm:$0xff] %vm572_vm1, %v1778_v10 }
0x2940   : > { %v1857_v4 = vpop.permute.xlu0 %1856 }
0x2941   : > { %v1859_v15 = vsel %vm572_vm1, %v1857_v4, 0.0 }
0x2942   : > { %1860 = vadd.xlane.f32.xlu1 %v1859_v15 }
0x2944   : > { %v1865_v0 = vpop.permute.xlu0 %1864  ;;  %v2513_v29 = vld [vmem:[#allocation3] sm:$0xff] }
0x2945   : > { %v1867_v7 = vsel %vm572_vm1, %v1865_v0, 0.0  ;;  %v2070_v0 = vmul.f32 %v4280_v3, %v4280_v3 }
0x2946   : > { %1868 = vadd.xlane.f32.xlu0 %v1867_v7 }
0x294a   : > { %v2447_v52 = vpop.f32.mrb[44].mxu1 }
0x294b   : > { %v2453_v16 = vadd.f32 %v2447_v52, %v1643_v22  ;;  %v3095_v38 = vpop.f32.mrb[45].mxu1  ;;  %v2527_v22 = vlaneseq }
0x294c   : > { %v2450_v37 = vpop.f32.mrb[46].mxu1 }
0x294d   : > { %v3096_v19 = vpop.f32.mrb[47].mxu1  ;;  %v2869_v11 = vmul.f32 -1.442695, %v2453_v16  ;;  %v2528_v16 = vshrl.u32 %v2527_v22, 7 }
0x294e   : > { %v2525_v19 = vld [vmem:[%s4606_s18] sm:$0x3] }
0x294f   : > { %v2529_v37 = vsub.s32 0, %v2528_v16 }
0x295c   : > { %1960 = vrot.lane.b32.xlu0 %v4263_v48, %s3572_s24 }
0x2960   : > { %1968 = vrot.lane.b32.xlu0 %v1966_v23, %s3572_s24  ;;  %v2533_v23 = vsub.s32 1, %v2528_v16 }
0x29cf   : > { %v1861_v55 = vpop.xlane.xlu1 %1860 }
0x29d0   : > { %v1870_v56 = vmul.f32 0.03125, %v1861_v55 }
0x29d2   : > { %v1872_v58 = vmul.f32 %v1870_v56, %v1870_v56  ;;  %v1874_v63 = vsub.f32 %v4229_v5, %v1870_v56  ;;  %v4416_v56 = vrot.slane %v2525_v19, %v2529_v37 }
0x29d3   : > { %v1869_v57 = vpop.xlane.xlu0 %1868 }
0x29d4   : > { %v1871_v59 = vmul.f32 0.03125, %v1869_v57  ;;  %v4418_v57 = vrot.slane %v2525_v19, %v2533_v23 }
0x29d6   : > { %v1873_v36 = vsub.f32 %v1871_v59, %v1872_v58 }
0x29d7   : > { %v1961_v44 = vpop.permute.xlu0 %1960 }
0x29d8   : > { %v1875_v20 = vadd.f32 1e-05, %v1873_v36  ;;  %v1963_v24 = vsel %vm572_vm1, %v1961_v44, 0.0 }
0x29da   : > { %3322 = vrsqrt.f32 %v1875_v20 }
0x29db   : > { %v1969_v60 = vpop.permute.xlu0 %1968  ;;  %3324 = vpow2.f32 %v2869_v11 }
0x29dc   : > { %v1971_v61 = vsel %vm572_vm1, %v1969_v60, 0.0 }
0x29dd   : > { %1972 = vadd.xlane.f32.xlu0 %v1971_v61 }
0x29e4   : > { %v3323_v6 = vpop.eup %3322 }
0x29e5   : > { %v1877_v14 = vmul.f32 %v3323_v6, %v1874_v63  ;;  %v3325_v21 = vpop.eup %3324 }
0x29e6   : > { %v2457_v32 = vadd.f32 1.0, %v3325_v21 }
0x29e7   : > { %v1878_v45 = vmul.f32 %v1877_v14, %v4349_v43 }
0x29e8   : > { %3326 = vrcp.f32 %v2457_v32 }
0x29e9   : > { %v1879_v25 = vadd.f32 %v1878_v45, %v4351_v47 }
0x29eb   : > { %1881 = vrot.lane.b32.xlu1 %v1879_v25, %s3572_s24 }
0x29f2   : > { %v4389_v26 = vpop.eup %3326 }
0x29f3   : > { %v2460_v5 = vmul.f32 2.0, %v4389_v26 }
0x29f5   : > { %v2870_v27 = vadd.f32 -1.0, %v2460_v5 }
0x2a0f   : > { %1964 = vadd.xlane.f32.xlu1 %v1963_v24 }
0x2a20   : > { %2464 = vrot.lane.b32.xlu1 %v2870_v27, %s3571_s15  ;;  %v2174_v27 = vmul.f32 %v4296_v34, %v4296_v34 }
0x2a24   : > { %2064 = vrot.lane.b32.xlu1 %v4280_v3, %s3572_s24 }
0x2a5d   : > { %v1882_v28 = vpop.permute.xlu1 %1881 }
0x2a5e   : > { %1884 = vst.msk [vmem:[#allocation3 + $0x8] sm:$0xff] %vm572_vm1, %v1882_v28 }
0x2a65   : > { %v2514_v17 = vld [vmem:[#allocation3 + $0x8] sm:$0xff] }
0x2a66   : > { %v2521_v51 = vpack.c.bf16 %v2514_v17, %v2513_v29 }
0x2a68   : > { %2875 = vmatmul.mubr.msk.bf16.vlgmr.msra.gmra.mrb[32].mxu0 %vm572_vm1, %v2521_v51 }
0x2a69   : > { %2611 = vmatprep.mubr.bf16.mxu0 %v3570_v9 }
0x2a6a   : > { %v1973_v12 = vpop.xlane.xlu0 %1972 }
0x2a6b   : > { %v1975_v39 = vmul.f32 0.03125, %v1973_v12 }
0x2a9c   : > { %v1965_v30 = vpop.xlane.xlu1 %1964 }
0x2a9d   : > { %v1974_v31 = vmul.f32 0.03125, %v1965_v30  ;;  %v2462_v30 = vmul.f32 %v4389_v26, %v4323_v53 }
0x2a9f   : > { %v1976_v40 = vmul.f32 %v1974_v31, %v1974_v31  ;;  %v1978_v49 = vsub.f32 %v4263_v48, %v1974_v31 }
0x2aa0   : > { %v2465_v2 = vpop.permute.xlu1 %2464 }
0x2aa1   : > { %v1977_v41 = vsub.f32 %v1975_v39, %v1976_v40  ;;  %v2467_v15 = vmul.f32 %v4389_v26, %v2465_v2  ;;  %v2278_v40 = vmul.f32 %v4312_v54, %v4312_v54 }
0x2aa3   : > { %v1979_v35 = vadd.f32 1e-05, %v1977_v41 }
0x2aa4   : > { %v2065_v42 = vpop.permute.xlu1 %2064 }
0x2aa5   : > { %3328 = vrsqrt.f32 %v1979_v35  ;;  %v2067_v46 = vsel %vm572_vm1, %v2065_v42, 0.0 }
0x2aa6   : > { %2068 = vadd.xlane.f32.xlu1 %v2067_v46 }
0x2aaf   : > { %v3329_v50 = vpop.eup %3328 }
0x2ab0   : > { %v1981_v33 = vmul.f32 %v3329_v50, %v1978_v49 }
0x2ab2   : > { %v1982_v10 = vmul.f32 %v1981_v33, %v4349_v43 }
0x2ab4   : > { %v1983_v4 = vadd.f32 %v1982_v10, %v4351_v47 }
0x2ab6   : > { %1985 = vrot.lane.b32.xlu0 %v1983_v4, %s3572_s24 }
0x2ab7   : > { %2469 = vrot.lane.b32.xlu1 %v2467_v15, %s3572_s24 }
0x2aba   : > { %2072 = vrot.lane.b32.xlu0 %v2070_v0, %s3572_s24 }
0x2abb   : > { %2168 = vrot.lane.b32.xlu1 %v4296_v34, %s3572_s24 }
0x2b28   : > { %v1986_v48 = vpop.permute.xlu0 %1985 }
0x2b29   : > { %1988 = vst.msk [vmem:[#allocation3 + $0x10] sm:$0xff] %vm572_vm1, %v1986_v48 }
0x2b2c   : > { %v2073_v7 = vpop.permute.xlu0 %2072 }
0x2b2d   : > { %v2075_v52 = vsel %vm572_vm1, %v2073_v7, 0.0 }
0x2b2e   : > { %2076 = vadd.xlane.f32.xlu0 %v2075_v52 }
0x2b33   : > { %v2069_v38 = vpop.xlane.xlu1 %2068 }
0x2b34   : > { %v2078_v18 = vmul.f32 0.03125, %v2069_v38 }
0x2b36   : > { %v2080_v6 = vmul.f32 %v2078_v18, %v2078_v18  ;;  %v2082_v11 = vsub.f32 %v4280_v3, %v2078_v18  ;;  %v2515_v3 = vld [vmem:[#allocation3 + $0x10] sm:$0xff] }
0x2b37   : > { %v2470_v55 = vpop.permute.xlu1 %2469 }
0x2b38   : > { %v2472_v31 = vadd.f32 %v2470_v55, %v2462_v30 }
0x2b3b   : > { %v2603_v58 = vpop.f32.mrb[32].mxu0  ;;  %v2169_v59 = vpop.permute.xlu1 %2168 }
0x2b3c   : > { %v2604_v36 = vadd.f32 %v2603_v58, %v4416_v56  ;;  %v2171_v44 = vsel %vm572_vm1, %v2169_v59, 0.0  ;;  %v2605_v20 = vpop.f32.mrb[33].mxu0 }
0x2b3d   : > { %v2606_v60 = vadd.f32 %v2605_v20, %v4418_v57  ;;  %v2607_v61 = vpop.f32.mrb[34].mxu0  ;;  %2172 = vadd.xlane.f32.xlu1 %v2171_v44 }
0x2b3e   : > { %2642 = vst [vmem:[%s4423_s9] sm:$0xff] %v2604_v36  ;;  %v2608_v62 = vadd.f32 %v2607_v61, %v4416_v56  ;;  %v2609_v1 = vpop.f32.mrb[35].mxu0 }
0x2b3f   : > { %2643 = vst [vmem:[%s4423_s9 + $0x8] sm:$0xff] %v2606_v60  ;;  %v2610_v8 = vadd.f32 %v2609_v1, %v4418_v57 }
0x2b40   : > { %2644 = vst [vmem:[%s4423_s9 + $0x10] sm:$0xff] %v2608_v62 }
0x2b41   : > { %2645 = vst [vmem:[%s4423_s9 + $0x18] sm:$0xff] %v2610_v8 }
0x2bbb   : > { %v2077_v63 = vpop.xlane.xlu0 %2076 }
0x2bbc   : > { %v2079_v14 = vmul.f32 0.03125, %v2077_v63 }
0x2bbe   : > { %v2081_v45 = vsub.f32 %v2079_v14, %v2080_v6 }
0x2bc0   : > { %v2083_v25 = vadd.f32 1e-05, %v2081_v45 }
0x2bc2   : > { %3330 = vrsqrt.f32 %v2083_v25 }
0x2bc3   : > { %3332 = vtanh.f32 %v2472_v31 }
0x2bca   : > { %v2173_v2 = vpop.xlane.xlu1 %2172 }
0x2bcb   : > { %v2182_v41 = vmul.f32 0.03125, %v2173_v2 }
0x2bcc   : > { %v3331_v21 = vpop.eup %3330 }
0x2bcd   : > { %v2085_v32 = vmul.f32 %v3331_v21, %v2082_v11  ;;  %v3333_v39 = vpop.eup %3332  ;;  %v2184_v42 = vmul.f32 %v2182_v41, %v2182_v41  ;;  %v2186_v4 = vsub.f32 %v4296_v34, %v2182_v41  ;;  %v2382_v11 = vmul.f32 %v4332_v13, %v4332_v13 }
0x2bcf   : > { %v2086_v24 = vmul.f32 %v2085_v32, %v4349_v43 }
0x2bd1   : > { %v2087_v5 = vadd.f32 %v2086_v24, %v4351_v47 }
0x2bd3   : > { %2089 = vrot.lane.b32.xlu0 %v2087_v5, %s3572_s24 }
0x2bd7   : > { %2176 = vrot.lane.b32.xlu0 %v2174_v27, %s3572_s24 }
0x2c45   : > { %v2090_v28 = vpop.permute.xlu0 %2089 }
0x2c46   : > { %2092 = vst.msk [vmem:[#allocation3 + $0x18] sm:$0xff] %vm572_vm1, %v2090_v28 }
0x2c49   : > { %v2177_v29 = vpop.permute.xlu0 %2176 }
0x2c4a   : > { %v2179_v17 = vsel %vm572_vm1, %v2177_v29, 0.0 }
0x2c4b   : > { %2180 = vadd.xlane.f32.xlu0 %v2179_v17 }
0x2c4d   : > { %v2516_v51 = vld [vmem:[#allocation3 + $0x18] sm:$0xff] }
0x2c4e   : > { %v2522_v12 = vpack.c.bf16 %v2516_v51, %v2515_v3 }
0x2c50   : > { %2876 = vmatmul.mubr.msk.bf16.gmra.mrb[36].mxu0 %vm572_vm1, %v2522_v12 }
0x2c51   : > { %2621 = vmatprep.mubr.bf16.mxu0 %v3570_v9 }
0x2c61   : > { %2475 = vrot.lane.b32.xlu0 %v3333_v39, %s3571_s15  ;;  %s2884_s15 = sshll.u32 %s3669_s29, 8  ;;  %s2659_s29 = scalar_lea.sflag [#allocation6], %s3873_s22 }
0x2c62   : > { %s4509_s23 = scalar_lea.hbm %s4607_s10, %s2884_s15 }
0x2c65   : > { %2280 = vrot.lane.b32.xlu0 %v2278_v40, %s3572_s24 }
0x2cd8   : > { %v2181_v35 = vpop.xlane.xlu0 %2180 }
0x2cd9   : > { %v2183_v46 = vmul.f32 0.03125, %v2181_v35 }
0x2cdb   : > { %v2185_v53 = vsub.f32 %v2183_v46, %v2184_v42 }
0x2cdc   : > { %v2476_v49 = vpop.permute.xlu0 %2475 }
0x2cdd   : > { %v2187_v50 = vadd.f32 1e-05, %v2185_v53  ;;  %v2478_v21 = vmul.f32 %v4389_v26, %v2476_v49 }
0x2cdf   : > { %3334 = vrsqrt.f32 %v2187_v50  ;;  %v2486_v32 = vmul.f32 %v2478_v21, %v2478_v21 }
0x2ce0   : > { %v2281_v33 = vpop.permute.xlu0 %2280 }
0x2ce1   : > { %v2283_v10 = vsel %vm572_vm1, %v2281_v33, 0.0 }
0x2ce2   : > { %2284 = vadd.xlane.f32.xlu0 %v2283_v10 }
0x2ce9   : > { %v3335_v15 = vpop.eup %3334 }
0x2cea   : > { %v2189_v0 = vmul.f32 %v3335_v15, %v2186_v4 }
0x2cec   : > { %v2190_v48 = vmul.f32 %v2189_v0, %v4349_v43 }
0x2cee   : > { %v2191_v7 = vadd.f32 %v2190_v48, %v4351_v47 }
0x2cf0   : > { %2193 = vrot.lane.b32.xlu1 %v2191_v7, %s3572_s24 }
0x2cf4   : > { %2272 = vrot.lane.b32.xlu1 %v4312_v54, %s3572_s24 }
0x2cf8   : > { %2376 = vrot.lane.b32.xlu0 %v4332_v13, %s3572_s24 }
0x2d23   : > { %v2613_v22 = vpop.f32.mrb[36].mxu0 }
0x2d24   : > { %v2614_v34 = vadd.f32 %v2613_v22, %v4416_v56  ;;  %v2615_v52 = vpop.f32.mrb[37].mxu0 }
0x2d25   : > { %v2616_v16 = vadd.f32 %v2615_v52, %v4418_v57  ;;  %v2617_v38 = vpop.f32.mrb[38].mxu0 }
0x2d26   : > { %2646 = vst [vmem:[%s4423_s9 + $0x20] sm:$0xff] %v2614_v34  ;;  %v2618_v37 = vadd.f32 %v2617_v38, %v4416_v56  ;;  %v2619_v19 = vpop.f32.mrb[39].mxu0 }
0x2d27   : > { %2647 = vst [vmem:[%s4423_s9 + $0x28] sm:$0xff] %v2616_v16  ;;  %v2620_v23 = vadd.f32 %v2619_v19, %v4418_v57 }
0x2d28   : > { %2648 = vst [vmem:[%s4423_s9 + $0x30] sm:$0xff] %v2618_v37 }
0x2d29   : > { %2649 = vst [vmem:[%s4423_s9 + $0x38] sm:$0xff] %v2620_v23 }
0x2d62   : > { %v2194_v55 = vpop.permute.xlu1 %2193 }
0x2d63   : > { %2196 = vst.msk [vmem:[#allocation3 + $0x20] sm:$0xff] %vm572_vm1, %v2194_v55 }
0x2d66   : > { %v2273_v58 = vpop.permute.xlu1 %2272 }
0x2d67   : > { %v2275_v59 = vsel %vm572_vm1, %v2273_v58, 0.0 }
0x2d68   : > { %2276 = vadd.xlane.f32.xlu1 %v2275_v59 }
0x2d6a   : > { %v2517_v28 = vld [vmem:[#allocation3 + $0x20] sm:$0xff] }
0x2d6f   : > { %v2285_v36 = vpop.xlane.xlu0 %2284 }
0x2d70   : > { %v2287_v62 = vmul.f32 0.03125, %v2285_v36 }
0x2d73   : > { %v2377_v44 = vpop.permute.xlu0 %2376 }
0x2d74   : > { %v2379_v20 = vsel %vm572_vm1, %v2377_v44, 0.0 }
0x2d75   : > { %2380 = vadd.xlane.f32.xlu0 %v2379_v20 }
0x2df5   : > { %v2277_v60 = vpop.xlane.xlu1 %2276 }
0x2df6   : > { %v2286_v61 = vmul.f32 0.03125, %v2277_v60 }
0x2df8   : > { %v2288_v1 = vmul.f32 %v2286_v61, %v2286_v61  ;;  %v2290_v63 = vsub.f32 %v4312_v54, %v2286_v61 }
0x2dfa   : > { %v2289_v8 = vsub.f32 %v2287_v62, %v2288_v1 }
0x2dfc   : > { %v2291_v18 = vadd.f32 1e-05, %v2289_v8 }
0x2dfe   : > { %3336 = vrsqrt.f32 %v2291_v18 }
0x2e02   : > { %v2381_v12 = vpop.xlane.xlu0 %2380 }
0x2e03   : > { %v2390_v30 = vmul.f32 0.03125, %v2381_v12 }
0x2e05   : > { %v2392_v39 = vmul.f32 %v2390_v30, %v2390_v30 }
0x2e08   : > { %v3337_v6 = vpop.eup %3336 }
0x2e09   : > { %v2293_v14 = vmul.f32 %v3337_v6, %v2290_v63 }
0x2e0b   : > { %v2294_v45 = vmul.f32 %v2293_v14, %v4349_v43 }
0x2e0d   : > { %v2295_v25 = vadd.f32 %v2294_v45, %v4351_v47 }
0x2e0f   : > { %2297 = vrot.lane.b32.xlu1 %v2295_v25, %s3572_s24 }
0x2e13   : > { %2384 = vrot.lane.b32.xlu1 %v2382_v11, %s3572_s24 }
0x2e17   : > { %2480 = vrot.lane.b32.xlu1 %v2478_v21, %s3572_s24 }
0x2e1b   : > { %2488 = vrot.lane.b32.xlu1 %v2486_v32, %s3572_s24 }
0x2e81   : > { %v2298_v54 = vpop.permute.xlu1 %2297 }
0x2e82   : > { %2300 = vst.msk [vmem:[#allocation3 + $0x28] sm:$0xff] %vm572_vm1, %v2298_v54 }
0x2e85   : > { %v2385_v24 = vpop.permute.xlu1 %2384 }
0x2e86   : > { %v2387_v5 = vsel %vm572_vm1, %v2385_v24, 0.0 }
0x2e87   : > { %2388 = vadd.xlane.f32.xlu1 %v2387_v5 }
0x2e89   : > { %v2481_v27 = vpop.permute.xlu1 %2480  ;;  %v2518_v29 = vld [vmem:[#allocation3 + $0x28] sm:$0xff] }
0x2e8a   : > { %v2483_v17 = vsel %vm572_vm1, %v2481_v27, 0.0  ;;  %v2523_v3 = vpack.c.bf16 %v2518_v29, %v2517_v28 }
0x2e8b   : > { %2484 = vadd.xlane.f32.xlu1 %v2483_v17 }
0x2e8c   : > { %2877 = vmatmul.mubr.msk.bf16.gmra.mrb[40].mxu0 %vm572_vm1, %v2523_v3 }
0x2e8d   : > { %v2489_v26 = vpop.permute.xlu1 %2488  ;;  %2631 = vmatprep.mubr.bf16.mxu0 %v3570_v9  ;;  %v2394_v9 = vsub.f32 %v4332_v13, %v2390_v30 }
0x2e8e   : > { %v2491_v51 = vsel %vm572_vm1, %v2489_v26, 0.0 }
0x2e8f   : > { %2492 = vadd.xlane.f32.xlu1 %v2491_v51 }
0x2f14   : > { %v2389_v31 = vpop.xlane.xlu1 %2388 }
0x2f15   : > { %v2391_v40 = vmul.f32 0.03125, %v2389_v31 }
0x2f17   : > { %v2393_v2 = vsub.f32 %v2391_v40, %v2392_v39 }
0x2f18   : > { %v2485_v41 = vpop.xlane.xlu1 %2484 }
0x2f19   : > { %v2395_v35 = vadd.f32 1e-05, %v2393_v2  ;;  %v2494_v42 = vmul.f32 0.03125, %v2485_v41 }
0x2f1b   : > { %3338 = vrsqrt.f32 %v2395_v35  ;;  %v2496_v53 = vmul.f32 %v2494_v42, %v2494_v42  ;;  %v2498_v48 = vsub.f32 %v2478_v21, %v2494_v42 }
0x2f1c   : > { %v2493_v46 = vpop.xlane.xlu1 %2492 }
0x2f1d   : > { %v2495_v49 = vmul.f32 0.03125, %v2493_v46 }
0x2f1f   : > { %v2497_v50 = vsub.f32 %v2495_v49, %v2496_v53 }
0x2f21   : > { %v2499_v33 = vadd.f32 1e-05, %v2497_v50 }
0x2f23   : > { %3340 = vrsqrt.f32 %v2499_v33 }
0x2f25   : > { %v3339_v10 = vpop.eup %3338 }
0x2f26   : > { %v2397_v4 = vmul.f32 %v3339_v10, %v2394_v9 }
0x2f28   : > { %v2398_v15 = vmul.f32 %v2397_v4, %v4349_v43 }
0x2f2a   : > { %v2399_v0 = vadd.f32 %v2398_v15, %v4351_v47 }
0x2f2c   : > { %2401 = vrot.lane.b32.xlu0 %v2399_v0, %s3572_s24 }
0x2f2d   : > { %v3341_v7 = vpop.eup %3340 }
0x2f2e   : > { %v2501_v22 = vmul.f32 %v3341_v7, %v2498_v48 }
0x2f30   : > { %v2502_v34 = vmul.f32 %v2501_v22, %v4349_v43 }
0x2f32   : > { %v2503_v52 = vadd.f32 %v2502_v34, %v4351_v47 }
0x2f34   : > { %2505 = vrot.lane.b32.xlu1 %v2503_v52, %s3572_s24  ;;  %s2672_s24 = sshll.u32 %s4423_s9, 4  ;;  %s4513_s24 = int_to_ptr.vmem [resolvable:$true] %s2672_s24 }
0x2f35   : > { %s3484_s17 = scalar_lea.vmem %s4513_s24, 2048  ;;  %p3491_p12 = scmp.lt.s32.totalorder %s4513_s24, %s3489_s14 }
0x2f36   : > { %p3485_p3 = scmp.ne.s32.totalorder %s4513_s24, %s3484_s17  ;;  %p3492_p1 = scmp.lt.s32.totalorder %s3490_s16, %s3484_s17 }
0x2f38   : > { %p3486_p5 = pnand %p3485_p3, %p3819_p10  ;;  %p3493_p2 = por %p3492_p1, %p3491_p12 }
0x2f3a   : > { %p3487_p7 = pneg %p3486_p5 }
0x2f3c   : > { %p3494_p13 = pnand %p3493_p2, %p3487_p7 }
0x2f5f   : > { %v2623_v13 = vpop.f32.mrb[40].mxu0 }
0x2f60   : > { %v2624_v16 = vadd.f32 %v2623_v13, %v4416_v56  ;;  %v2625_v38 = vpop.f32.mrb[41].mxu0 }
0x2f61   : > { %v2626_v37 = vadd.f32 %v2625_v38, %v4418_v57  ;;  %v2627_v19 = vpop.f32.mrb[42].mxu0 }
0x2f62   : > { %2650 = vst [vmem:[%s4423_s9 + $0x40] sm:$0xff] %v2624_v16  ;;  %v2628_v23 = vadd.f32 %v2627_v19, %v4416_v56  ;;  %v2629_v55 = vpop.f32.mrb[43].mxu0 }
0x2f63   : > { %2651 = vst [vmem:[%s4423_s9 + $0x48] sm:$0xff] %v2626_v37  ;;  %v2630_v43 = vadd.f32 %v2629_v55, %v4418_v57 }
0x2f64   : > { %2652 = vst [vmem:[%s4423_s9 + $0x50] sm:$0xff] %v2628_v23 }
0x2f65   : > { %2653 = vst [vmem:[%s4423_s9 + $0x58] sm:$0xff] %v2630_v43 }
0x2f9e   : > { %v2402_v47 = vpop.permute.xlu0 %2401 }
0x2f9f   : > { %2404 = vst.msk [vmem:[#allocation3 + $0x30] sm:$0xff] %vm572_vm1, %v2402_v47 }
0x2fa6   : > { %v2506_v58 = vpop.permute.xlu1 %2505  ;;  %v2519_v59 = vld [vmem:[#allocation3 + $0x30] sm:$0xff] }
0x2fa7   : > { %2508 = vst.msk [vmem:[#allocation3 + $0x38] sm:$0xff] %vm572_vm1, %v2506_v58 }
0x2fae   : > { %v2520_v36 = vld [vmem:[#allocation3 + $0x38] sm:$0xff] }
0x2faf   : > { %v2524_v44 = vpack.c.bf16 %v2520_v36, %v2519_v59 }
0x2fb1   : > { %2878 = vmatmul.mubr.msk.bf16.gmra.mrb[44].mxu0 %vm572_vm1, %v2524_v44 }
0x3084   : > { %v2633_v20 = vpop.f32.mrb[44].mxu0 }
0x3085   : > { %v2634_v60 = vadd.f32 %v2633_v20, %v4416_v56  ;;  %v2635_v61 = vpop.f32.mrb[45].mxu0 }
0x3086   : > { %v2636_v62 = vadd.f32 %v2635_v61, %v4418_v57  ;;  %v2637_v1 = vpop.f32.mrb[46].mxu0 }
0x3087   : > { %2654 = vst [vmem:[%s4423_s9 + $0x60] sm:$0xff] %v2634_v60  ;;  %v2638_v8 = vadd.f32 %v2637_v1, %v4416_v56  ;;  %v2639_v18 = vpop.f32.mrb[47].mxu0 }
0x3088   : > { %2655 = vst [vmem:[%s4423_s9 + $0x68] sm:$0xff] %v2636_v62  ;;  %v2640_v63 = vadd.f32 %v2639_v18, %v4418_v57 }
0x3089   : > { %2656 = vst [vmem:[%s4423_s9 + $0x70] sm:$0xff] %v2638_v8 }
0x308a   : > { %2657 = vst [vmem:[%s4423_s9 + $0x78] sm:$0xff] %v2640_v63 }
0x308b   : > { %3497 = shalt.err (!%p3494_p13)
}
0x308c   : > { %s3498_s18 = scalar_lea.hbm %s4509_s23, 2048  ;;  %s3502_s15 = scalar_lea.hbm %s4607_s10, 4096 }
0x308d   : > { %p3499_p9 = scmp.ne.s32.totalorder %s4509_s23, %s3498_s18  ;;  %p3503_p4 = scmp.lt.u32.totalorder %s4509_s23, %s4607_s10 }
0x308e   : > { %p3504_p8 = scmp.lt.u32.totalorder %s3502_s15, %s3498_s18  ;;  %p3506_p3 = scmp.lt.u32.totalorder %s3498_s18, %s4509_s23 }
0x308f   : > { %p3500_p0 = pnand %p3499_p9, %p3819_p10 }
0x3090   : > { %p3505_p6 = por %p3504_p8, %p3503_p4 }
0x3091   : > { %p3501_p11 = pneg %p3500_p0 }
0x3092   : > { %p3507_p5 = por %p3506_p3, %p3505_p6 }
0x3094   : > { %p3508_p7 = pnand %p3507_p5, %p3501_p11 }
0x3096   : > { %3511 = shalt.err (!%p3508_p7)
}
0x3097   : > { %s3575_s17 = smov 256   ;;  %s3576_s20 = smov 512  }
0x3098   : > { %s3577_s14 = smov 16  }
0x3099   : > { %3115 = dma.vmem_to_hbm [thread:$0]  (%p3819_p10), %s4513_s24, 2048, %s4509_s23, %s2659_s29, %s3575_s17, %s3576_s20, %s3577_s14  }
0x309a PF: > { %s4608_s16 = sld [smem:[#allocation18_spill]]  ;;  %s4609_s21 = sld [smem:[#allocation19_spill]] }
0x309b   : > { %p4611_p1 = scmp.ge.s32.totalorder %s3558_s28, 2 }
0x30a0   : > { %s2687_s9 = sand.u32 1, %s4608_s16   ;;  %p4610_p12 = scmp.ne.s32.totalorder %s4609_s21, 0 }
0x30a1   : > { %s2688_s18 = scalar_lea.sflag [#allocation6], %s2687_s9 }
0x30a2   : > { %p3135_p2 = pnand %p4611_p1, %p4610_p12 }
0x30a4   : > { %3541 = dma.done.wait (!%p3135_p2), %s2688_s18, 2048  }
0x30a5   : > { %3543 = vsyncadd (!%p3135_p2), %s2688_s18, 4294965248  ;;  %p28_p13 = scmp.ge.s32.totalorder %s3809_s13, 4   ;;  %s4612_s25 = smov %s3550_s26 }
0x30a6   : > { %s4613_s26 = smov %s3554_s27  ;;  %s4614_s27 = smov %s3825_s30 }
0x30a7   : > { %s4615_s28 = smov %s3809_s13  ;;  %30 = sbr.rel (!%p28_p13) target bundleno = 13 (0xd), region = 147 }
0x30ae   :  { %2693 = vsyncpa [#allocation5], 1 }
0x30af   :  { %2695 = vsyncpa [#allocation5 + $0x1], 1 }
0x30b0   :  { %2696 = vsyncpa [#allocation8], 1 }
0x30b1   :  { %2697 = vsyncpa [#allocation11], 1 }
0x30b2   :  { %2698 = vsyncpa [#allocation6], 1 }
0x30b3   :  { %2700 = vsyncpa [#allocation6 + $0x1], 1 }

// kernel: tpu_custom_call.1
= control target key start
LH: loop header
LB: loop body
LE: loop exit
PB: predicated region body
PF: predicated region fallthrough
CT: control target
= control target key end

     0   :  { %s4561_s0 = inlined_call_operand.hbm [shape: bf16[8,16,32], index: 0, kind: input, shape index: {}]   ;;  %s4562_s1 = inlined_call_operand.hbm [shape: bf16[32,128], index: 1, kind: input, shape index: {}]   ;;  %s4563_s2 = inlined_call_operand.hbm [shape: bf16[32,128], index: 2, kind: input, shape index: {}]   ;;  %s4564_s3 = inlined_call_operand.vmem [shape: f32[1,128], index: 3, kind: input, shape index: {}]   ;;  %s4565_s4 = inlined_call_operand.vmem [shape: f32[1,32], index: 4, kind: input, shape index: {}]   ;;  %s4566_s5 = inlined_call_operand.vmem [shape: f32[1,32], index: 5, kind: input, shape index: {}]   ;;  %s4567_s6 = inlined_call_operand.hbm [shape: bf16[32,128], index: 6, kind: input, shape index: {}]   ;;  %s4568_s7 = inlined_call_operand.hbm [shape: bf16[32,128], index: 7, kind: input, shape index: {}]   ;;  %s4569_s8 = inlined_call_operand.vmem [shape: f32[1,128], index: 8, kind: input, shape index: {}]   ;;  %s4570_s9 = inlined_call_operand.vmem [shape: f32[1,32], index: 9, kind: input, shape index: {}]   ;;  %s4571_s10 = inlined_call_operand.vmem [shape: f32[1,32], index: 10, kind: input, shape index: {}]   ;;  %s4572_s11 = inlined_call_operand.vmem [shape: bf16[32,256], index: 11, kind: input, shape index: {}]   ;;  %s4573_s12 = inlined_call_operand.vmem [shape: f32[1,256], index: 12, kind: input, shape index: {}]   ;;  %s4574_s13 = inlined_call_operand.hbm [shape: f32[8,16,256], index: 13, kind: output, shape index: {}]  }
   0x1   :  { %4582 = sst [smem:[#allocation20_spill]] %s4570_s9 }
   0x2   :  { %4583 = sst [smem:[#allocation21_spill]] %s4571_s10 }
   0x3   :  { %4584 = sst [smem:[#allocation22_spill]] %s4572_s11 }
   0x4   :  { %4585 = sst [smem:[#allocation23_spill]] %s4573_s12 }
   0x5   :  { %4586 = sst [smem:[#allocation24_spill]] %s4574_s13 }
   0x6   :  { %18 = vsyncpa [#allocation5], 0 }
   0x7   :  { %20 = vsyncpa [#allocation5 + $0x1], 0 }
   0x8   :  { %21 = vsyncpa [#allocation8], 0 }
   0x9   :  { %22 = vsyncpa [#allocation11], 0 }
   0xa   :  { %23 = vsyncpa [#allocation6], 0 }
   0xb   :  { %25 = vsyncpa [#allocation6 + $0x1], 0  ;;  %s3648_s25 = smov 0   ;;  %s3650_s26 = smov 0  }
   0xc   :  { %s3652_s27 = smov 0   ;;  %s3654_s28 = smov 0  }
   0xd LB: > { %4587 = sst [smem:[#allocation18_spill]] %s3546_s25  ;;  %s3669_s29 = sadd.s32 4294967295, %s3558_s28   ;;  %s3558_s28 = sphi %s3654_s28, %s4615_s28   ;;  %s3554_s27 = sphi %s3652_s27, %s4614_s27   ;;  %s3550_s26 = sphi %s3650_s26, %s4613_s26   ;;  %s3546_s25 = sphi %s3648_s25, %s4612_s25  }
   0xe   : > { %s2783_s30 = sadd.s32 4294967294, %s3558_s28   ;;  %p51_p0 = scmp.ne.s32.totalorder %s3550_s26, %s3546_s25 }
   0xf   : > { %p4578_p1 = scmp.eq.s32.totalorder %s3669_s29, 0  ;;  %p333_p3 = scmp.eq.s32.totalorder %s2783_s30, 1 }
  0x10   : > { %p2784_p5 = scmp.ge.s32.totalorder %s3558_s28, 1  ;;  %p340_p7 = scmp.lt.s32.totalorder %s3558_s28, 3 }
  0x11   : > { %p3678_p4 = por %p4578_p1, %p51_p0  ;;  %p3683_p6 = por %p333_p3, %p51_p0 }
  0x12   : > { %p3688_p8 = pnand %p2784_p5, %p340_p7  ;;  %s3560_s17 = smov [#allocation7]  }
  0x13   : > { %s4588_s14 = scalar_select %p3678_p4, 1, 0 }
  0x14   : > { %s4589_s15 = scalar_select %p3683_p6, 1, 0 }
  0x15   : > { %s4591_s16 = scalar_select %p3688_p8, 1, 0 }
  0x16   : > { %4590 = sst [smem:[#allocation19_spill]] %s4589_s15  ;;  %s352_s18 = sshll.u32 %s3560_s17, 4  ;;  %s3692_s18 = int_to_ptr.vmem [resolvable:$true] %s352_s18 }
  0x17   : > { %p3117_p9 = pneg %p3688_p8  ;;  %s3561_s20 = smov [#allocation10]  }
  0x18   : > { %s387_s21 = sshll.u32 %s3561_s20, 4  ;;  %s3562_s22 = smov [#allocation9]   ;;  %s3703_s21 = int_to_ptr.vmem [resolvable:$true] %s387_s21 }
  0x19   : > { %p3699_p11 = pnand %p3117_p9, %p4578_p1  ;;  %s3705_s23 = sshll.u32 %s3562_s22, 4  ;;  %s366_s23 = int_to_ptr.vmem [resolvable:$true] %s3705_s23 }
  0x1a   : > { %s3342_s17 = scalar_lea.hbm %s4562_s1, 256 }
  0x1b   : > { %p3343_p12 = scmp.ne.s32.totalorder %s4562_s1, %s3342_s17  ;;  %p3715_p13 = pneg %p3699_p11 }
  0x1c   : > { %p3349_p5 = scmp.lt.u32.totalorder %s3342_s17, %s4562_s1 }
  0x1d   : > { %p3345_p0 = pnand %p3715_p13, %p3343_p12 }
  0x1f   : > { %p3346_p3 = pneg %p3345_p0 }
  0x21   : > { %p3351_p7 = pnand %p3349_p5, %p3346_p3 }
  0x23   : > { %3354 = shalt.err (!%p3351_p7)
}
  0x24   : > { %s3355_s25 = scalar_lea.vmem %s3692_s18, 256  ;;  %p3363_p2 = scmp.lt.s32.totalorder %s3692_s18, %s3692_s18 }
  0x25   : > { %p3356_p9 = scmp.ne.s32.totalorder %s3692_s18, %s3355_s25  ;;  %p3364_p6 = scmp.lt.s32.totalorder %s3355_s25, %s3355_s25 }
  0x27   : > { %p3358_p10 = pnand %p3356_p9, %p3715_p13  ;;  %p3365_p12 = por %p3364_p6, %p3363_p2 }
  0x29   : > { %p3359_p1 = pneg %p3358_p10 }
  0x2b   : > { %p3366_p0 = pnand %p3365_p12, %p3359_p1 }
  0x2d   : > { %3369 = shalt.err (!%p3366_p0)
}
  0x2e   : > { %s3563_s15 = smov 64   ;;  %s3564_s24 = smov 4  }
  0x2f   : > { %3120 = dma.hbm_to_vmem [thread:$0]  (!%p3699_p11), %s4562_s1, 256, %s3692_s18, [#allocation8], %s3563_s15, %s3563_s15, %s3564_s24  }
  0x30   : > { %s3370_s25 = scalar_lea.hbm %s4567_s6, 256 }
  0x31   : > { %p3371_p1 = scmp.ne.s32.totalorder %s4567_s6, %s3370_s25  ;;  %p3377_p10 = scmp.lt.u32.totalorder %s3370_s25, %s4567_s6 }
  0x33   : > { %p3373_p2 = pnand %p3371_p1, %p3715_p13 }
  0x35   : > { %p3374_p6 = pneg %p3373_p2 }
  0x37   : > { %p3379_p3 = pnand %p3377_p10, %p3374_p6 }
  0x39   : > { %3382 = shalt.err (!%p3379_p3)
}
  0x3a   : > { %s3383_s18 = scalar_lea.vmem %s3703_s21, 256  ;;  %p3391_p12 = scmp.lt.s32.totalorder %s3703_s21, %s3703_s21 }
  0x3b   : > { %p3384_p5 = scmp.ne.s32.totalorder %s3703_s21, %s3383_s18  ;;  %p3392_p0 = scmp.lt.s32.totalorder %s3383_s18, %s3383_s18 }
  0x3d   : > { %p3386_p7 = pnand %p3384_p5, %p3715_p13  ;;  %p3393_p1 = por %p3392_p0, %p3391_p12 }
  0x3f   : > { %p3387_p9 = pneg %p3386_p7 }
  0x41   : > { %p3394_p2 = pnand %p3393_p1, %p3387_p9 }
  0x43   : > { %3397 = shalt.err (!%p3394_p2)
}
  0x44   : > { %3126 = dma.hbm_to_vmem [thread:$0]  (!%p3699_p11), %s4567_s6, 256, %s3703_s21, [#allocation11], %s3563_s15, %s3563_s15, %s3564_s24  }
  0x45   : > { %s3398_s30 = scalar_lea.hbm %s4563_s2, 256 }
  0x46   : > { %p3399_p6 = scmp.ne.s32.totalorder %s4563_s2, %s3398_s30  ;;  %p3405_p5 = scmp.lt.u32.totalorder %s3398_s30, %s4563_s2 }
  0x48   : > { %p3401_p10 = pnand %p3399_p6, %p3715_p13 }
  0x4a   : > { %p3402_p3 = pneg %p3401_p10 }
  0x4c   : > { %p3407_p7 = pnand %p3405_p5, %p3402_p3 }
  0x4e   : > { %3410 = shalt.err (!%p3407_p7)
}
  0x4f   : > { %s3411_s18 = scalar_lea.vmem %s366_s23, 256  ;;  %p3419_p1 = scmp.lt.s32.totalorder %s366_s23, %s366_s23 }
  0x50   : > { %p3412_p9 = scmp.ne.s32.totalorder %s366_s23, %s3411_s18  ;;  %p3420_p2 = scmp.lt.s32.totalorder %s3411_s18, %s3411_s18 }
  0x52   : > { %p3414_p12 = pnand %p3412_p9, %p3715_p13  ;;  %p3421_p4 = por %p3420_p2, %p3419_p1 }
  0x54   : > { %p3415_p0 = pneg %p3414_p12 }
  0x56   : > { %p3422_p8 = pnand %p3421_p4, %p3415_p0 }
  0x58   : > { %3425 = shalt.err (!%p3422_p8)
}
  0x59   : > { %3123 = dma.hbm_to_vmem [thread:$0]  (!%p3699_p11), %s4563_s2, 256, %s366_s23, [#allocation8], %s3563_s15, %s3563_s15, %s3564_s24  }
  0x5a   : > { %s3565_s10 = smov [#allocation12]   ;;  %s3426_s17 = scalar_lea.hbm %s4568_s7, 256 }
  0x5b   : > { %s400_s11 = sshll.u32 %s3565_s10, 4  ;;  %p3427_p4 = scmp.ne.s32.totalorder %s4568_s7, %s3426_s17  ;;  %s401_s11 = int_to_ptr.vmem [resolvable:$true] %s400_s11 }
  0x5c   : > { %p3433_p10 = scmp.lt.u32.totalorder %s3426_s17, %s4568_s7 }
  0x5d   : > { %p3429_p8 = pnand %p3427_p4, %p3715_p13 }
  0x5f   : > { %p3430_p6 = pneg %p3429_p8 }
  0x61   : > { %p3435_p3 = pnand %p3433_p10, %p3430_p6 }
  0x63   : > { %3438 = shalt.err (!%p3435_p3)
}
  0x64   : > { %s3439_s23 = scalar_lea.vmem %s401_s11, 256  ;;  %p3447_p12 = scmp.lt.s32.totalorder %s401_s11, %s401_s11 }
  0x65   : > { %p3440_p5 = scmp.ne.s32.totalorder %s401_s11, %s3439_s23  ;;  %p3448_p0 = scmp.lt.s32.totalorder %s3439_s23, %s3439_s23 }
  0x67   : > { %p3442_p7 = pnand %p3440_p5, %p3715_p13  ;;  %p3449_p1 = por %p3448_p0, %p3447_p12 }
  0x69   : > { %p3443_p9 = pneg %p3442_p7 }
  0x6b   : > { %p3450_p2 = pnand %p3449_p1, %p3443_p9 }
  0x6d   : > { %3453 = shalt.err (!%p3450_p2)
}
  0x6e   : > { %3129 = dma.hbm_to_vmem [thread:$0]  (!%p3699_p11), %s4568_s7, 256, %s401_s11, [#allocation11], %s3563_s15, %s3563_s15, %s3564_s24  }
  0x6f   : > { %s3809_s13 = sadd.s32 1, %s3558_s28   ;;  %s38_s19 = sadd.s32 1, %s3554_s27 }
  0x70   : > { %s35_s10 = ssub.s32 %s3558_s28, %s3809_s13  ;;  %p45_p13 = scmp.ne.s32.totalorder %s3554_s27, %s3550_s26 }
  0x71   : > { %p36_p4 = scmp.eq.s32.totalorder %s35_s10, 0  ;;  %p46_p8 = scmp.eq.s32.totalorder %s3558_s28, 0 }
  0x72   : > { %p4594_p6 = scmp.eq.s32.totalorder %s3669_s29, 1  ;;  %p3142_p3 = scmp.lt.s32.totalorder %s3558_s28, 2 }
  0x73   : > { %s3825_s30 = scalar_select %p36_p4, %s3554_s27, %s38_s19  }
  0x74   : > { %p3819_p10 = por %p4594_p6, %p45_p13  ;;  %p47_p5 = por %p46_p8, %p45_p13 }
  0x75   : > { %s429_s17 = sand.u32 1, %s3554_s27   ;;  %s2791_s11 = sshll.u32 %s3558_s28, 6 }
  0x76   : > { %s2790_s20 = sshll.u32 %s429_s17, 5  ;;  %s3832_s18 = scalar_lea.hbm %s4561_s0, %s2791_s11 }
  0x77   : > { %s433_s23 = scalar_lea.vmem [#allocation4], %s2790_s20  ;;  %p3836_p11 = pnand %p3142_p3, %p47_p5 }
  0x78   : > { %s439_s21 = sshll.u32 %s433_s23, 4  ;;  %s3840_s19 = scalar_lea.sflag [#allocation5], %s429_s17  ;;  %s3834_s21 = int_to_ptr.vmem [resolvable:$true] %s439_s21 }
  0x79   : > { %s3454_s10 = scalar_lea.hbm %s3832_s18, 512  ;;  %p3456_p9 = pneg %p3836_p11 }
  0x7a   : > { %p3455_p7 = scmp.ne.s32.totalorder %s3832_s18, %s3454_s10  ;;  %s3459_s22 = scalar_lea.hbm %s4561_s0, 1024 }
  0x7b   : > { %p3460_p1 = scmp.lt.u32.totalorder %s3832_s18, %s4561_s0  ;;  %p3461_p2 = scmp.lt.u32.totalorder %s3459_s22, %s3454_s10 }
  0x7c   : > { %p3457_p12 = pnand %p3456_p9, %p3455_p7  ;;  %p3463_p4 = scmp.lt.u32.totalorder %s3454_s10, %s3832_s18 }
  0x7d   : > { %p3462_p13 = por %p3461_p2, %p3460_p1 }
  0x7e   : > { %p3458_p0 = pneg %p3457_p12 }
  0x7f   : > { %p3464_p8 = por %p3463_p4, %p3462_p13 }
  0x81   : > { %p3465_p6 = pnand %p3464_p8, %p3458_p0 }
  0x83   : > { %3468 = shalt.err (!%p3465_p6)
}
  0x84   : > { %s3469_s17 = scalar_lea.vmem %s3834_s21, 512  ;;  %s3566_s20 = smov [#allocation4]  }
  0x85   : > { %p3470_p3 = scmp.ne.s32.totalorder %s3834_s21, %s3469_s17  ;;  %s3474_s11 = sshll.u32 %s3566_s20, 4  ;;  %s3475_s11 = int_to_ptr.vmem [resolvable:$false] %s3474_s11 }
  0x86   : > { %s3476_s25 = scalar_lea.vmem %s3475_s11, 1024  ;;  %p3477_p12 = scmp.lt.s32.totalorder %s3834_s21, %s3475_s11 }
  0x87   : > { %p3472_p5 = pnand %p3470_p3, %p3456_p9  ;;  %p3478_p1 = scmp.lt.s32.totalorder %s3476_s25, %s3469_s17 }
  0x89   : > { %p3473_p7 = pneg %p3472_p5  ;;  %p3479_p2 = por %p3478_p1, %p3477_p12 }
  0x8b   : > { %p3480_p13 = pnand %p3479_p2, %p3473_p7 }
  0x8d   : > { %3483 = shalt.err (!%p3480_p13)
}
  0x8e   : > { %s3567_s10 = smov 128   ;;  %p4597_p9 = scmp.ne.s32.totalorder %s4591_s16, 0 }
  0x8f   : > { %3133 = dma.hbm_to_vmem [thread:$0]  (!%p3836_p11), %s3832_s18, 512, %s3834_s21, %s3840_s19, %s3567_s10, %s3563_s15, %s3564_s24  }
  0x90   : > { %451 = sbr.rel (%p4597_p9) target bundleno = 12442 (0x309a), region = 72  ;;  %s3873_s22 = sand.u32 (!%p4597_p9), 1, %s3550_s26  }
  0x91   : > { %s2793_s23 = sshll.u32 (!%p4597_p9), %s3873_s22, 5  ;;  %s454_s17 = scalar_lea.sflag (!%p4597_p9), [#allocation5], %s3873_s22 }
  0x92   : > { %s3877_s20 = scalar_lea.vmem (!%p4597_p9), [#allocation4], %s2793_s23  ;;  %p4598_p0 = scmp.ne.s32.totalorder (!%p4597_p9), %s4588_s14, 0 }
  0x97   : > { %3529 = dma.done.wait (%p4598_p0), %s454_s17, 512  }
  0x98   : > { %3531 = vsyncadd (%p4598_p0), %s454_s17, 4294966784  ;;  %p4599_p11 = scmp.eq.s32.totalorder %s3669_s29, 0 }
  0x9a   : > { %3533 = dma.done.wait (%p4599_p11), [#allocation8], 512   ;;  %p4600_p4 = pmov %p4599_p11 }
  0x9c   : > { %3535 = vsyncadd (%p4600_p4), [#allocation8], 4294966784  ;;  %p4601_p8 = pmov %p4600_p4 }
  0x9d   : > { %p4602_p6 = pmov %p4600_p4 }
  0x9e   : > { %3537 = dma.done.wait (%p4601_p8), [#allocation11], 512  }
  0x9f   : > { %3539 = vsyncadd (%p4602_p6), [#allocation11], 4294966784  ;;  %v3568_v0 = vmov 0.0   ;;  %vm3569_vm0 = vmmov 0   ;;  %v3196_v1 = vld [vmem:[#allocation7] sm:$0xff]   ;;  %v3197_v2 = vld [vmem:[#allocation7 + $0x8] sm:$0xff]  }
  0xa0   : > { %2973 = vmatprep.subr.bf16.mxu0 %v3568_v0  ;;  %2977 = vmatprep.mubr.msk.bf16.mxu0 %vm3569_vm0, %v3568_v0  ;;  %vm572_vm1 = vcmask 261120   ;;  %v3198_v3 = vld [vmem:[%s3877_s20] sm:$0xff]   ;;  %v3896_v4 = vld [vmem:[#allocation9] sm:$0xff]   ;;  %v3199_v5 = vld [vmem:[%s3877_s20 + $0x8] sm:$0xff]   ;;  %v3570_v9 = vmov 0   ;;  %s3571_s15 = smov 64  }
  0xa1   : > { %2945 = vmatprep.subr.bf16.mxu1 %v3196_v1  ;;  %2949 = vmatprep.mubr.msk.bf16.mxu1 %vm572_vm1, %v3198_v3  ;;  %v3201_v6 = vld [vmem:[%s3877_s20 + $0x10] sm:$0xff]   ;;  %v3901_v7 = vld [vmem:[#allocation9 + $0x8] sm:$0xff]   ;;  %v2799_v10 = vld [vmem:[%s4564_s3] ss:$0 sm:$0xff]  ;;  %s3572_s24 = smov 32   ;;  %s3573_s9 = smov 96  }
  0xa2   : > { %2946 = vmatpush3.bf16.msra.mxu1 %v3196_v1  ;;  %2974 = vmatpush3.bf16.msra.mxu0 %v3896_v4  ;;  %v3202_v8 = vld [vmem:[%s3877_s20 + $0x18] sm:$0xff]   ;;  %s4603_s20 = sld [smem:[#allocation21_spill]]  ;;  %s4604_s18 = sld [smem:[#allocation20_spill]] }
  0xa3   : > { %2947 = vmatprep.subr.bf16.mxu1 %v3197_v2  ;;  %2975 = vmatprep.subr.bf16.mxu0 %v3568_v0  ;;  %s4605_s19 = sld [smem:[#allocation22_spill]]  ;;  %s2798_s21 = sshll.u32 %s3873_s22, 7 }
  0xa4   : > { %s4607_s10 = sld [smem:[#allocation24_spill]] }
  0xa6   : > { %2948 = vmatpush3.bf16.msra.mxu1 %v3197_v2  ;;  %2976 = vmatpush3.bf16.msra.mxu0 %v3901_v7 }
  0xa7   : > { %2957 = vmatprep.subr.bf16.mxu1 %v3568_v0  ;;  %2989 = vmatprep.subr.bf16.mxu0 %v3568_v0 }
  0xa9   : > { %2950 = vmatmul.mubr.msk.bf16.vlgmr.msra.gmra.mrb[0].mxu1 %vm572_vm1, %v3199_v5 }
  0xaa   : > { %2958 = vmatpush3.bf16.msra.mxu1 %v3896_v4  ;;  %2953 = vmatprep.mubr.msk.bf16.mxu1 %vm572_vm1, %v3201_v6 }
  0xab   : > { %2959 = vmatprep.subr.bf16.mxu1 %v3568_v0 }
  0xae   : > { %2960 = vmatpush3.bf16.msra.mxu1 %v3901_v7 }
  0xaf   : > { %2965 = vmatprep.subr.bf16.mxu1 %v3568_v0 }
  0xb1   : > { %2954 = vmatmul.mubr.msk.bf16.gmra.mrb[4].mxu1 %vm572_vm1, %v3202_v8 }
  0xb2   : > { %2961 = vmatprep.mubr.msk.bf16.mxu1 %vm3569_vm0, %v3568_v0 }
  0xb9   : > { %2962 = vmatmul.mubr.bf16.vlgmr.msra.gmra.mrb[8].mxu1 %v3570_v9 }
  0xba   : > { %2966 = vmatpush3.bf16.msra.mxu1 %v3896_v4  ;;  %2969 = vmatprep.mubr.msk.bf16.mxu1 %vm3569_vm0, %v3568_v0 }
  0xbb   : > { %2967 = vmatprep.subr.bf16.mxu1 %v3568_v0 }
  0xbe   : > { %2968 = vmatpush3.bf16.msra.mxu1 %v3901_v7 }
  0xbf   : > { %2981 = vmatprep.subr.bf16.mxu1 %v3568_v0 }
 0x17c   : > { %v2951_v11 = vpop.f32.mrb[0].mxu1 }
 0x17d   : > { %v3927_v12 = vadd.f32 %v2951_v11, %v2799_v10  ;;  %v619_v13 = vpop.f32.mrb[1].mxu1 }
 0x17e   : > { %v2952_v14 = vpop.f32.mrb[2].mxu1  ;;  %v620_v26 = vadd.f32 %v2799_v10, %v619_v13 }
 0x17f   : > { %v3929_v15 = vadd.f32 %v2952_v14, %v2799_v10  ;;  %v622_v16 = vpop.f32.mrb[3].mxu1 }
 0x180   : > { %v623_v17 = vadd.f32 %v2799_v10, %v622_v16 }
 0x184   : > { %v2955_v18 = vpop.f32.mrb[4].mxu1 }
 0x185   : > { %v3931_v19 = vadd.f32 %v2955_v18, %v2799_v10  ;;  %v635_v20 = vpop.f32.mrb[5].mxu1 }
 0x186   : > { %v3933_v21 = vadd.f32 %v2799_v10, %v635_v20  ;;  %v2956_v22 = vpop.f32.mrb[6].mxu1 }
 0x187   : > { %v3935_v23 = vadd.f32 %v2956_v22, %v2799_v10  ;;  %v638_v24 = vpop.f32.mrb[7].mxu1 }
 0x188   : > { %v3937_v25 = vadd.f32 %v2799_v10, %v638_v24 }
 0x18c   : > { %v720_v27 = vpop.f32.mrb[8].mxu1 }
 0x18d   : > { %v726_v28 = vadd.f32 %v720_v27, %v620_v26  ;;  %v2963_v29 = vpop.f32.mrb[9].mxu1 }
 0x18e   : > { %v723_v30 = vpop.f32.mrb[10].mxu1 }
 0x18f   : > { %v2814_v31 = vmul.f32 -1.442695, %v726_v28  ;;  %v2964_v32 = vpop.f32.mrb[11].mxu1 }
 0x191   : > { %3214 = vpow2.f32 %v2814_v31 }
 0x19b   : > { %v3215_v33 = vpop.eup %3214 }
 0x19c   : > { %v730_v34 = vadd.f32 1.0, %v3215_v33 }
 0x19e   : > { %3216 = vrcp.f32 %v730_v34 }
 0x1a8   : > { %v3217_v35 = vpop.eup %3216 }
 0x1a9   : > { %v733_v36 = vmul.f32 2.0, %v3217_v35  ;;  %v735_v40 = vmul.f32 0.0, %v3217_v35 }
 0x1ab   : > { %v2815_v37 = vadd.f32 -1.0, %v733_v36 }
 0x1ad   : > { %737 = vrot.lane.b32.xlu0 %v2815_v37, %s3571_s15 }
 0x21f   : > { %v738_v38 = vpop.permute.xlu0 %737 }
 0x220   : > { %v740_v39 = vmul.f32 %v3217_v35, %v738_v38 }
 0x222   : > { %742 = vrot.lane.b32.xlu0 %v740_v39, %s3572_s24 }
 0x294   : > { %v743_v41 = vpop.permute.xlu0 %742 }
 0x295   : > { %v745_v42 = vadd.f32 %v743_v41, %v735_v40 }
 0x297   : > { %3218 = vtanh.f32 %v745_v42 }
 0x2a1   : > { %v3219_v43 = vpop.eup %3218 }
 0x2a2   : > { %748 = vrot.lane.b32.xlu1 %v3219_v43, %s3571_s15 }
 0x314   : > { %v749_v44 = vpop.permute.xlu1 %748 }
 0x315   : > { %v3942_v45 = vmul.f32 %v3217_v35, %v749_v44 }
 0x317   : > { %v790_v46 = vpack.c.bf16 %v3942_v45, %v3942_v45 }
 0x319   : > { %792 = vrot.lane.b32.xlu1 %v790_v46, %s3572_s24 }
 0x38b   : > { %v793_v47 = vpop.permute.xlu1 %792 }
 0x38c   : > { %2970 = vmatmul.mubr.msk.bf16.vlgmr.msra.gmra.mrb[12].mxu1 %vm572_vm1, %v793_v47 }
 0x38d   : > { %2982 = vmatpush3.bf16.msra.mxu1 %v3896_v4  ;;  %2985 = vmatprep.mubr.msk.bf16.mxu1 %vm3569_vm0, %v3568_v0 }
 0x38e   : > { %2983 = vmatprep.subr.bf16.mxu1 %v3568_v0 }
 0x391   : > { %2984 = vmatpush3.bf16.msra.mxu1 %v3901_v7 }
 0x392   : > { %2997 = vmatprep.subr.bf16.mxu1 %v3568_v0 }
 0x45f   : > { %v831_v48 = vpop.f32.mrb[12].mxu1 }
 0x460   : > { %v837_v49 = vadd.f32 %v831_v48, %v623_v17  ;;  %v2971_v50 = vpop.f32.mrb[13].mxu1 }
 0x461   : > { %v834_v51 = vpop.f32.mrb[14].mxu1 }
 0x462   : > { %v2817_v52 = vmul.f32 -1.442695, %v837_v49  ;;  %v2972_v53 = vpop.f32.mrb[15].mxu1 }
 0x464   : > { %3220 = vpow2.f32 %v2817_v52 }
 0x46e   : > { %v3221_v54 = vpop.eup %3220 }
 0x46f   : > { %v841_v55 = vadd.f32 1.0, %v3221_v54 }
 0x471   : > { %3222 = vrcp.f32 %v841_v55 }
 0x47b   : > { %v3223_v56 = vpop.eup %3222 }
 0x47c   : > { %v844_v57 = vmul.f32 2.0, %v3223_v56  ;;  %v846_v61 = vmul.f32 %v3223_v56, %v745_v42 }
 0x47e   : > { %v2818_v58 = vadd.f32 -1.0, %v844_v57 }
 0x480   : > { %848 = vrot.lane.b32.xlu0 %v2818_v58, %s3571_s15 }
 0x4f2   : > { %v849_v59 = vpop.permute.xlu0 %848 }
 0x4f3   : > { %v851_v60 = vmul.f32 %v3223_v56, %v849_v59 }
 0x4f5   : > { %853 = vrot.lane.b32.xlu1 %v851_v60, %s3572_s24 }
 0x567   : > { %v854_v62 = vpop.permute.xlu1 %853 }
 0x568   : > { %v856_v63 = vadd.f32 %v854_v62, %v846_v61 }
 0x56a   : > { %3224 = vtanh.f32 %v856_v63 }
 0x574   : > { %v3225_v1 = vpop.eup %3224 }
 0x575   : > { %859 = vrot.lane.b32.xlu0 %v3225_v1, %s3571_s15 }
 0x5e7   : > { %v860_v2 = vpop.permute.xlu0 %859 }
 0x5e8   : > { %v3957_v3 = vmul.f32 %v3223_v56, %v860_v2 }
 0x5ea   : > { %v896_v5 = vpack.c.bf16 %v3957_v3, %v3957_v3 }
 0x5ec   : > { %898 = vrot.lane.b32.xlu1 %v896_v5, %s3572_s24 }
 0x65e   : > { %v899_v6 = vpop.permute.xlu1 %898 }
 0x65f   : > { %2978 = vmatmul.mubr.msk.bf16.vlgmr.msra.gmra.mrb[0].mxu0 %vm572_vm1, %v899_v6 }
 0x660   : > { %2990 = vmatpush3.bf16.msra.mxu0 %v3896_v4  ;;  %2993 = vmatprep.mubr.msk.bf16.mxu0 %vm3569_vm0, %v3568_v0 }
 0x661   : > { %2991 = vmatprep.subr.bf16.mxu0 %v3568_v0 }
 0x664   : > { %2992 = vmatpush3.bf16.msra.mxu0 %v3901_v7 }
 0x665   : > { %3005 = vmatprep.subr.bf16.mxu0 %v3568_v0 }
 0x732   : > { %v937_v8 = vpop.f32.mrb[0].mxu0 }
 0x733   : > { %v943_v10 = vadd.f32 %v937_v8, %v3927_v12  ;;  %v2979_v11 = vpop.f32.mrb[1].mxu0 }
 0x734   : > { %v940_v13 = vpop.f32.mrb[2].mxu0 }
 0x735   : > { %v2820_v14 = vmul.f32 -1.442695, %v943_v10  ;;  %v2980_v16 = vpop.f32.mrb[3].mxu0 }
 0x737   : > { %3226 = vpow2.f32 %v2820_v14 }
 0x741   : > { %v3227_v17 = vpop.eup %3226 }
 0x742   : > { %v947_v18 = vadd.f32 1.0, %v3227_v17 }
 0x744   : > { %3228 = vrcp.f32 %v947_v18 }
 0x74e   : > { %v3229_v20 = vpop.eup %3228 }
 0x74f   : > { %v950_v22 = vmul.f32 2.0, %v3229_v20  ;;  %v952_v28 = vmul.f32 %v3229_v20, %v856_v63 }
 0x751   : > { %v2821_v24 = vadd.f32 -1.0, %v950_v22 }
 0x753   : > { %954 = vrot.lane.b32.xlu0 %v2821_v24, %s3571_s15 }
 0x7c5   : > { %v955_v26 = vpop.permute.xlu0 %954 }
 0x7c6   : > { %v957_v27 = vmul.f32 %v3229_v20, %v955_v26 }
 0x7c8   : > { %959 = vrot.lane.b32.xlu1 %v957_v27, %s3572_s24 }
 0x83a   : > { %v960_v29 = vpop.permute.xlu1 %959 }
 0x83b   : > { %v962_v12 = vadd.f32 %v960_v29, %v952_v28 }
 0x83d   : > { %3230 = vtanh.f32 %v962_v12 }
 0x847   : > { %v3231_v30 = vpop.eup %3230 }
 0x848   : > { %965 = vrot.lane.b32.xlu0 %v3231_v30, %s3571_s15 }
 0x8ba   : > { %v966_v31 = vpop.permute.xlu0 %965 }
 0x8bb   : > { %v3973_v32 = vmul.f32 %v3229_v20, %v966_v31 }
 0x8bd   : > { %v1002_v33 = vpack.c.bf16 %v3973_v32, %v3973_v32 }
 0x8bf   : > { %1004 = vrot.lane.b32.xlu1 %v1002_v33, %s3572_s24 }
 0x931   : > { %v1005_v34 = vpop.permute.xlu1 %1004 }
 0x932   : > { %2986 = vmatmul.mubr.msk.bf16.vlgmr.msra.gmra.mrb[16].mxu1 %vm572_vm1, %v1005_v34 }
 0x933   : > { %2998 = vmatpush3.bf16.msra.mxu1 %v3896_v4  ;;  %3001 = vmatprep.mubr.msk.bf16.mxu1 %vm3569_vm0, %v3568_v0 }
 0x934   : > { %2999 = vmatprep.subr.bf16.mxu1 %v3568_v0 }
 0x937   : > { %3000 = vmatpush3.bf16.msra.mxu1 %v3901_v7 }
 0x938   : > { %3013 = vmatprep.subr.bf16.mxu1 %v3568_v0 }
 0xa05   : > { %v1043_v35 = vpop.f32.mrb[16].mxu1 }
 0xa06   : > { %v1049_v36 = vadd.f32 %v1043_v35, %v3929_v15  ;;  %v2987_v37 = vpop.f32.mrb[17].mxu1 }
 0xa07   : > { %v1046_v38 = vpop.f32.mrb[18].mxu1 }
 0xa08   : > { %v2823_v39 = vmul.f32 -1.442695, %v1049_v36  ;;  %v2988_v40 = vpop.f32.mrb[19].mxu1 }
 0xa09   : > { %v759_v40 = vmul.f32 %v3942_v45, %v3942_v45 }
 0xa0a   : > { %3232 = vpow2.f32 %v2823_v39 }
 0xa14   : > { %v3233_v41 = vpop.eup %3232 }
 0xa15   : > { %v1053_v42 = vadd.f32 1.0, %v3233_v41  ;;  %v976_v41 = vmul.f32 %v3973_v32, %v3973_v32 }
 0xa17   : > { %3234 = vrcp.f32 %v1053_v42 }
 0xa21   : > { %v3235_v43 = vpop.eup %3234 }
 0xa22   : > { %v1056_v44 = vmul.f32 2.0, %v3235_v43  ;;  %v1058_v49 = vmul.f32 %v3235_v43, %v962_v12 }
 0xa24   : > { %v2824_v46 = vadd.f32 -1.0, %v1056_v44 }
 0xa26   : > { %1060 = vrot.lane.b32.xlu0 %v2824_v46, %s3571_s15 }
 0xa98   : > { %v1061_v47 = vpop.permute.xlu0 %1060 }
 0xa99   : > { %v1063_v48 = vmul.f32 %v3235_v43, %v1061_v47 }
 0xa9b   : > { %1065 = vrot.lane.b32.xlu1 %v1063_v48, %s3572_s24 }
 0xb0d   : > { %v1066_v50 = vpop.permute.xlu1 %1065 }
 0xb0e   : > { %v1068_v15 = vadd.f32 %v1066_v50, %v1058_v49 }
 0xb10   : > { %3236 = vtanh.f32 %v1068_v15 }
 0xb1a   : > { %v3237_v51 = vpop.eup %3236 }
 0xb1b   : > { %1071 = vrot.lane.b32.xlu0 %v3237_v51, %s3571_s15 }
 0xb8d   : > { %v1072_v52 = vpop.permute.xlu0 %1071 }
 0xb8e   : > { %v3989_v53 = vmul.f32 %v3235_v43, %v1072_v52 }
 0xb90   : > { %v1108_v54 = vpack.c.bf16 %v3989_v53, %v3989_v53 }
 0xb92   : > { %1110 = vrot.lane.b32.xlu1 %v1108_v54, %s3572_s24 }
 0xc04   : > { %v1111_v55 = vpop.permute.xlu1 %1110 }
 0xc05   : > { %2994 = vmatmul.mubr.msk.bf16.vlgmr.msra.gmra.mrb[4].mxu0 %vm572_vm1, %v1111_v55  ;;  %v1082_v55 = vmul.f32 %v3989_v53, %v3989_v53 }
 0xc06   : > { %3006 = vmatpush3.bf16.msra.mxu0 %v3896_v4  ;;  %3009 = vmatprep.mubr.msk.bf16.mxu0 %vm3569_vm0, %v3568_v0 }
 0xc07   : > { %3007 = vmatprep.subr.bf16.mxu0 %v3568_v0 }
 0xc0a   : > { %3008 = vmatpush3.bf16.msra.mxu0 %v3901_v7 }
 0xcd8   : > { %v1149_v56 = vpop.f32.mrb[4].mxu0 }
 0xcd9   : > { %v1155_v57 = vadd.f32 %v1149_v56, %v3933_v21  ;;  %v2995_v58 = vpop.f32.mrb[5].mxu0 }
 0xcda   : > { %v1152_v59 = vpop.f32.mrb[6].mxu0 }
 0xcdb   : > { %v2826_v60 = vmul.f32 -1.442695, %v1155_v57  ;;  %v2996_v61 = vpop.f32.mrb[7].mxu0 }
 0xcdd   : > { %3238 = vpow2.f32 %v2826_v60 }
 0xce7   : > { %v3239_v62 = vpop.eup %3238 }
 0xce8   : > { %v1159_v63 = vadd.f32 1.0, %v3239_v62 }
 0xcea   : > { %3240 = vrcp.f32 %v1159_v63 }
 0xcf4   : > { %v3241_v1 = vpop.eup %3240 }
 0xcf5   : > { %v1162_v2 = vmul.f32 2.0, %v3241_v1  ;;  %v1164_v10 = vmul.f32 %v3241_v1, %v1068_v15 }
 0xcf7   : > { %v2827_v5 = vadd.f32 -1.0, %v1162_v2 }
 0xcf9   : > { %1166 = vrot.lane.b32.xlu0 %v2827_v5, %s3571_s15 }
 0xd6b   : > { %v1167_v6 = vpop.permute.xlu0 %1166 }
 0xd6c   : > { %v1169_v8 = vmul.f32 %v3241_v1, %v1167_v6 }
 0xd6e   : > { %1171 = vrot.lane.b32.xlu1 %v1169_v8, %s3572_s24 }
 0xde0   : > { %v1172_v11 = vpop.permute.xlu1 %1171 }
 0xde1   : > { %v1174_v21 = vadd.f32 %v1172_v11, %v1164_v10  ;;  %v2811_v11 = vld [vmem:[%s4566_s5] ss:$0 sm:$0xff] }
 0xde3   : > { %3242 = vtanh.f32 %v1174_v21 }
 0xded   : > { %v3243_v13 = vpop.eup %3242 }
 0xdee   : > { %1177 = vrot.lane.b32.xlu0 %v3243_v13, %s3571_s15 }
 0xe60   : > { %v1178_v14 = vpop.permute.xlu0 %1177 }
 0xe61   : > { %v4004_v16 = vmul.f32 %v3241_v1, %v1178_v14 }
 0xe63   : > { %v1214_v17 = vpack.c.bf16 %v4004_v16, %v4004_v16 }
 0xe65   : > { %1216 = vrot.lane.b32.xlu1 %v1214_v17, %s3572_s24 }
 0xed7   : > { %v1217_v18 = vpop.permute.xlu1 %1216 }
 0xed8   : > { %3002 = vmatmul.mubr.msk.bf16.vlgmr.msra.gmra.mrb[20].mxu1 %vm572_vm1, %v1217_v18  ;;  %v2810_v18 = vld [vmem:[%s4565_s4] ss:$0 sm:$0xff] }
 0xed9   : > { %3014 = vmatpush3.bf16.msra.mxu1 %v3896_v4  ;;  %3017 = vmatprep.mubr.msk.bf16.mxu1 %vm3569_vm0, %v3568_v0 }
 0xeda   : > { %3015 = vmatprep.subr.bf16.mxu1 %v3568_v0 }
 0xedd   : > { %3016 = vmatpush3.bf16.msra.mxu1 %v3901_v7 }
 0xede   : > { %3033 = vmatprep.subr.bf16.mxu1 %v3568_v0 }
 0xfab   : > { %v1255_v20 = vpop.f32.mrb[20].mxu1 }
 0xfac   : > { %v1261_v22 = vadd.f32 %v1255_v20, %v3937_v25  ;;  %v3003_v24 = vpop.f32.mrb[21].mxu1 }
 0xfad   : > { %v1258_v26 = vpop.f32.mrb[22].mxu1 }
 0xfae   : > { %v2829_v27 = vmul.f32 -1.442695, %v1261_v22  ;;  %v3004_v28 = vpop.f32.mrb[23].mxu1 }
 0xfb0   : > { %3244 = vpow2.f32 %v2829_v27 }
 0xfba   : > { %v3245_v29 = vpop.eup %3244 }
 0xfbb   : > { %v1265_v12 = vadd.f32 1.0, %v3245_v29 }
 0xfbd   : > { %3246 = vrcp.f32 %v1265_v12 }
 0xfc7   : > { %v3247_v4 = vpop.eup %3246 }
 0xfc8   : > { %v1268_v30 = vmul.f32 2.0, %v3247_v4  ;;  %v1270_v34 = vmul.f32 %v3247_v4, %v1174_v21 }
 0xfca   : > { %v2830_v31 = vadd.f32 -1.0, %v1268_v30 }
 0xfcc   : > { %1272 = vrot.lane.b32.xlu0 %v2830_v31, %s3571_s15 }
0x103e   : > { %v1273_v33 = vpop.permute.xlu0 %1272 }
0x103f   : > { %v1275_v7 = vmul.f32 %v3247_v4, %v1273_v33 }
0x1041   : > { %1277 = vrot.lane.b32.xlu1 %v1275_v7, %s3572_s24 }
0x10b3   : > { %v1278_v35 = vpop.permute.xlu1 %1277 }
0x10b4   : > { %v4019_v25 = vadd.f32 %v1278_v35, %v1270_v34 }
0x10b6   : > { %3248 = vtanh.f32 %v4019_v25 }
0x10c0   : > { %v3249_v36 = vpop.eup %3248 }
0x10c1   : > { %1283 = vrot.lane.b32.xlu0 %v3249_v36, %s3571_s15 }
0x1133   : > { %v1284_v37 = vpop.permute.xlu0 %1283 }
0x1134   : > { %v4023_v38 = vmul.f32 %v3247_v4, %v1284_v37 }
0x1136   : > { %v1320_v39 = vpack.c.bf16 %v4023_v38, %v4023_v38 }
0x1138   : > { %1322 = vrot.lane.b32.xlu1 %v1320_v39, %s3572_s24 }
0x113c   : > { %753 = vrot.lane.b32.xlu1 %v3942_v45, %s3572_s24 }
0x1140   : > { %970 = vrot.lane.b32.xlu1 %v3973_v32, %s3572_s24 }
0x1144   : > { %761 = vrot.lane.b32.xlu1 %v759_v40, %s3572_s24 }
0x1148   : > { %978 = vrot.lane.b32.xlu1 %v976_v41, %s3572_s24 }
0x11aa   : > { %v1323_v42 = vpop.permute.xlu1 %1322 }
0x11ab   : > { %3010 = vmatmul.mubr.msk.bf16.vlgmr.msra.gmra.mrb[8].mxu0 %vm572_vm1, %v1323_v42 }
0x11ae   : > { %v754_v56 = vpop.permute.xlu1 %753 }
0x11af   : > { %v756_v57 = vsel %vm572_vm1, %v754_v56, 0.0 }
0x11b2   : > { %v971_v58 = vpop.permute.xlu1 %970 }
0x11b3   : > { %v973_v59 = vsel %vm572_vm1, %v971_v58, 0.0  ;;  %v3205_v58 = vld [vmem:[#allocation10 + $0x8] sm:$0xff]  }
0x11b6   : > { %v762_v10 = vpop.permute.xlu1 %761 }
0x11b7   : > { %v764_v13 = vsel %vm572_vm1, %v762_v10, 0.0 }
0x11ba   : > { %v979_v14 = vpop.permute.xlu1 %978 }
0x11bb   : > { %v981_v17 = vsel %vm572_vm1, %v979_v14, 0.0 }
0x127e   : > { %v1361_v43 = vpop.f32.mrb[8].mxu0 }
0x127f   : > { %v1367_v44 = vadd.f32 %v1361_v43, %v3931_v19  ;;  %v3011_v46 = vpop.f32.mrb[9].mxu0  ;;  %v870_v19 = vmul.f32 %v3957_v3, %v3957_v3 }
0x1280   : > { %v1364_v47 = vpop.f32.mrb[10].mxu0 }
0x1281   : > { %v2832_v48 = vmul.f32 -1.442695, %v1367_v44  ;;  %v3012_v49 = vpop.f32.mrb[11].mxu0 }
0x1283   : > { %3250 = vpow2.f32 %v2832_v48 }
0x128d   : > { %v3251_v50 = vpop.eup %3250 }
0x128e   : > { %v1371_v15 = vadd.f32 1.0, %v3251_v50 }
0x1290   : > { %3252 = vrcp.f32 %v1371_v15 }
0x129a   : > { %v4040_v51 = vpop.eup %3252 }
0x129b   : > { %v1374_v52 = vmul.f32 2.0, %v4040_v51  ;;  %v1376_v20 = vmul.f32 %v4040_v51, %v4019_v25 }
0x129d   : > { %v2833_v54 = vadd.f32 -1.0, %v1374_v52 }
0x129f   : > { %1378 = vrot.lane.b32.xlu0 %v2833_v54, %s3571_s15 }
0x12a3   : > { %864 = vrot.lane.b32.xlu0 %v3957_v3, %s3572_s24 }
0x12a7   : > { %1076 = vrot.lane.b32.xlu0 %v3989_v53, %s3572_s24 }
0x12ab   : > { %872 = vrot.lane.b32.xlu0 %v870_v19, %s3572_s24 }
0x12af   : > { %1084 = vrot.lane.b32.xlu0 %v1082_v55, %s3572_s24 }
0x12ce   : > { %757 = vadd.xlane.f32.xlu0 %v756_v57  ;;  %v3204_v57 = vld [vmem:[#allocation10] sm:$0xff]  }
0x12cf   : > { %3021 = vmatprep.subr.bf16.mxu0 %v3204_v57 }
0x12d0   : > { %3022 = vmatpush3.bf16.msra.mxu0 %v3204_v57 }
0x12d1   : > { %3023 = vmatprep.subr.bf16.mxu0 %v3205_v58 }
0x12d2   : > { %974 = vadd.xlane.f32.xlu0 %v973_v59 }
0x12d4   : > { %3024 = vmatpush3.bf16.msra.mxu0 %v3205_v58 }
0x12d5   : > { %3049 = vmatprep.subr.bf16.mxu0 %v3568_v0 }
0x1311   : > { %v1379_v60 = vpop.permute.xlu0 %1378 }
0x1312   : > { %v1381_v61 = vmul.f32 %v4040_v51, %v1379_v60 }
0x1314   : > { %1383 = vrot.lane.b32.xlu1 %v1381_v61, %s3572_s24 }
0x1315   : > { %v865_v62 = vpop.permute.xlu0 %864 }
0x1316   : > { %v867_v21 = vsel %vm572_vm1, %v865_v62, 0.0 }
0x1319   : > { %v1077_v63 = vpop.permute.xlu0 %1076 }
0x131a   : > { %v1079_v1 = vsel %vm572_vm1, %v1077_v63, 0.0 }
0x131b   : > { %1080 = vadd.xlane.f32.xlu0 %v1079_v1 }
0x131d   : > { %v873_v2 = vpop.permute.xlu0 %872 }
0x131e   : > { %v875_v5 = vsel %vm572_vm1, %v873_v2, 0.0 }
0x131f   : > { %876 = vadd.xlane.f32.xlu0 %v875_v5 }
0x1321   : > { %v1085_v6 = vpop.permute.xlu0 %1084 }
0x1322   : > { %v1087_v8 = vsel %vm572_vm1, %v1085_v6, 0.0 }
0x1323   : > { %1088 = vadd.xlane.f32.xlu0 %v1087_v8 }
0x1338   : > { %868 = vadd.xlane.f32.xlu1 %v867_v21 }
0x1339   : > { %779 = vrot.lane.b32.xlu0 %v2811_v11, %s3573_s9 }
0x133c   : > { %765 = vadd.xlane.f32.xlu1 %v764_v13 }
0x1340   : > { %982 = vadd.xlane.f32.xlu1 %v981_v17 }
0x1351   : > { %775 = vrot.lane.b32.xlu1 %v2810_v18, %s3573_s9 }
0x135b   : > { %v758_v27 = vpop.xlane.xlu0 %757 }
0x135c   : > { %v767_v35 = vmul.f32 0.03125, %v758_v27 }
0x135e   : > { %v769_v41 = vmul.f32 %v767_v35, %v767_v35  ;;  %v771_v59 = vsub.f32 %v3942_v45, %v767_v35 }
0x135f   : > { %v975_v28 = vpop.xlane.xlu0 %974 }
0x1360   : > { %v984_v42 = vmul.f32 0.03125, %v975_v28 }
0x1362   : > { %v986_v49 = vmul.f32 %v984_v42, %v984_v42 }
0x1386   : > { %v1384_v22 = vpop.permute.xlu1 %1383 }
0x1387   : > { %v4074_v24 = vadd.f32 %v1384_v22, %v1376_v20 }
0x1389   : > { %3254 = vtanh.f32 %v4074_v24 }
0x1393   : > { %v3255_v26 = vpop.eup %3254 }
0x1394   : > { %1389 = vrot.lane.b32.xlu1 %v3255_v26, %s3571_s15 }
0x13a8   : > { %v1081_v29 = vpop.xlane.xlu0 %1080 }
0x13a9   : > { %v1090_v30 = vmul.f32 0.03125, %v1081_v29 }
0x13ab   : > { %v1092_v33 = vmul.f32 %v1090_v30, %v1090_v30  ;;  %v1094_v60 = vsub.f32 %v3989_v53, %v1090_v30 }
0x13ac   : > { %v877_v12 = vpop.xlane.xlu0 %876 }
0x13ad   : > { %v879_v36 = vmul.f32 0.03125, %v877_v12 }
0x13b0   : > { %v1089_v4 = vpop.xlane.xlu0 %1088 }
0x13b1   : > { %v1091_v31 = vmul.f32 0.03125, %v1089_v4 }
0x13b3   : > { %v1093_v7 = vsub.f32 %v1091_v31, %v1092_v33  ;;  %v4110_v33 = vld [vmem:[#allocation12] sm:$0xff]  }
0x13b4   : > { %v4084_v6 = vpop.permute.xlu0 %779 }
0x13b5   : > { %v1095_v39 = vadd.f32 1e-05, %v1093_v7  ;;  %v4115_v7 = vld [vmem:[#allocation12 + $0x8] sm:$0xff]  }
0x13b7   : > { %3256 = vrsqrt.f32 %v1095_v39 }
0x13c1   : > { %v3257_v19 = vpop.eup %3256 }
0x13c2   : > { %v1097_v5 = vmul.f32 %v3257_v19, %v1094_v60 }
0x13c5   : > { %v869_v34 = vpop.xlane.xlu1 %868 }
0x13c6   : > { %v878_v25 = vmul.f32 0.03125, %v869_v34 }
0x13c8   : > { %v880_v37 = vmul.f32 %v878_v25, %v878_v25  ;;  %v882_v55 = vsub.f32 %v3957_v3, %v878_v25  ;;  %v988_v3 = vsub.f32 %v3973_v32, %v984_v42 }
0x13c9   : > { %v766_v40 = vpop.xlane.xlu1 %765 }
0x13ca   : > { %v881_v43 = vsub.f32 %v879_v36, %v880_v37  ;;  %v768_v44 = vmul.f32 0.03125, %v766_v40 }
0x13cc   : > { %v883_v46 = vadd.f32 1e-05, %v881_v43  ;;  %v770_v47 = vsub.f32 %v768_v44, %v769_v41  ;;  %v4143_v44 = vld [vmem:[%s4569_s8] ss:$0 sm:$0xff] }
0x13cd   : > { %v983_v48 = vpop.xlane.xlu1 %982 }
0x13ce   : > { %3258 = vrsqrt.f32 %v883_v46  ;;  %v772_v50 = vadd.f32 1e-05, %v770_v47  ;;  %v985_v15 = vmul.f32 0.03125, %v983_v48 }
0x13d0   : > { %3260 = vrsqrt.f32 %v772_v50  ;;  %v987_v52 = vsub.f32 %v985_v15, %v986_v49 }
0x13d1   : > { %v4081_v63 = vpop.permute.xlu1 %775 }
0x13d2   : > { %v989_v54 = vadd.f32 1e-05, %v987_v52  ;;  %v1098_v53 = vmul.f32 %v1097_v5, %v4081_v63 }
0x13d4   : > { %3262 = vrsqrt.f32 %v989_v54  ;;  %v1099_v13 = vadd.f32 %v1098_v53, %v4084_v6 }
0x13d8   : > { %v3259_v56 = vpop.eup %3258 }
0x13d9   : > { %v885_v61 = vmul.f32 %v3259_v56, %v882_v55 }
0x13da   : > { %v3261_v62 = vpop.eup %3260 }
0x13db   : > { %v886_v1 = vmul.f32 %v885_v61, %v4081_v63  ;;  %v774_v2 = vmul.f32 %v3261_v62, %v771_v59 }
0x13dd   : > { %v887_v8 = vadd.f32 %v886_v1, %v4084_v6  ;;  %v778_v45 = vmul.f32 %v4081_v63, %v774_v2 }
0x13de   : > { %v3263_v10 = vpop.eup %3262 }
0x13df   : > { %889 = vrot.lane.b32.xlu0 %v887_v8, %s3572_s24  ;;  %v782_v11 = vadd.f32 %v4084_v6, %v778_v45  ;;  %v991_v21 = vmul.f32 %v3263_v10, %v988_v3 }
0x13e1   : > { %784 = vrot.lane.b32.xlu1 %v782_v11, %s3572_s24  ;;  %v992_v32 = vmul.f32 %v991_v21, %v4081_v63 }
0x13e3   : > { %1101 = vrot.lane.b32.xlu0 %v1099_v13, %s3572_s24  ;;  %v993_v14 = vadd.f32 %v992_v32, %v4084_v6 }
0x13e5   : > { %995 = vrot.lane.b32.xlu1 %v993_v14, %s3572_s24 }
0x1406   : > { %v1390_v17 = vpop.permute.xlu1 %1389 }
0x1407   : > { %v4100_v18 = vmul.f32 %v4040_v51, %v1390_v17 }
0x1409   : > { %v1426_v20 = vpack.c.bf16 %v4100_v18, %v4100_v18 }
0x140b   : > { %1428 = vrot.lane.b32.xlu1 %v1426_v20, %s3572_s24 }
0x1451   : > { %v890_v22 = vpop.permute.xlu0 %889 }
0x1452   : > { %893 = vst.msk [vmem:[#allocation3 + $0x8] sm:$0xff] %vm572_vm1, %v890_v22 }
0x1453   : > { %v785_v26 = vpop.permute.xlu1 %784 }
0x1454   : > { %787 = vst.msk [vmem:[#allocation3] sm:$0xff] %vm572_vm1, %v785_v26  ;;  %v1400_v26 = vmul.f32 %v4100_v18, %v4100_v18 }
0x1455   : > { %v1102_v27 = vpop.permute.xlu0 %1101 }
0x1456   : > { %1105 = vst.msk [vmem:[#allocation3 + $0x18] sm:$0xff] %vm572_vm1, %v1102_v27 }
0x1457   : > { %v996_v28 = vpop.permute.xlu1 %995 }
0x1458   : > { %999 = vst.msk [vmem:[#allocation3 + $0x10] sm:$0xff] %vm572_vm1, %v996_v28 }
0x1459   : > { %v1539_v51 = vld [vmem:[#allocation3 + $0x8] sm:$0xff] }
0x145b   : > { %v1538_v29 = vld [vmem:[#allocation3] sm:$0xff] }
0x145c   : > { %v1546_v12 = vpack.c.bf16 %v1539_v51, %v1538_v29 }
0x145d   : > { %v1541_v30 = vld [vmem:[#allocation3 + $0x18] sm:$0xff] }
0x145e   : > { %3025 = vmatprep.mubr.msk.bf16.mxu0 %vm572_vm1, %v1546_v12 }
0x145f   : > { %v1540_v4 = vld [vmem:[#allocation3 + $0x10] sm:$0xff] }
0x1460   : > { %v1547_v31 = vpack.c.bf16 %v1541_v30, %v1540_v4 }
0x1462   : > { %3026 = vmatmul.mubr.msk.bf16.vlgmr.msra.gmra.mrb[12].mxu0 %vm572_vm1, %v1547_v31 }
0x1463   : > { %3050 = vmatpush3.bf16.msra.mxu0 %v4110_v33 }
0x1464   : > { %3051 = vmatprep.subr.bf16.mxu0 %v3568_v0 }
0x1467   : > { %3052 = vmatpush3.bf16.msra.mxu0 %v4115_v7 }
0x1468   : > { %3065 = vmatprep.subr.bf16.mxu0 %v3568_v0 }
0x147d   : > { %v1429_v34 = vpop.permute.xlu1 %1428 }
0x147e   : > { %3018 = vmatmul.mubr.msk.bf16.vlgmr.msra.gmra.mrb[24].mxu1 %vm572_vm1, %v1429_v34 }
0x147f   : > { %3034 = vmatpush3.bf16.msra.mxu1 %v4110_v33  ;;  %3037 = vmatprep.mubr.msk.bf16.mxu1 %vm3569_vm0, %v3568_v0 }
0x1480   : > { %3035 = vmatprep.subr.bf16.mxu1 %v3568_v0 }
0x1483   : > { %3036 = vmatpush3.bf16.msra.mxu1 %v4115_v7 }
0x1484   : > { %3041 = vmatprep.subr.bf16.mxu1 %v3568_v0 }
0x1486   : > { %3038 = vmatmul.mubr.bf16.vlgmr.msra.gmra.mrb[28].mxu1 %v3570_v9 }
0x1487   : > { %3042 = vmatpush3.bf16.msra.mxu1 %v4110_v33  ;;  %3045 = vmatprep.mubr.msk.bf16.mxu1 %vm3569_vm0, %v3568_v0 }
0x1488   : > { %3043 = vmatprep.subr.bf16.mxu1 %v3568_v0 }
0x148b   : > { %3044 = vmatpush3.bf16.msra.mxu1 %v4115_v7 }
0x148c   : > { %3057 = vmatprep.subr.bf16.mxu1 %v3568_v0 }
0x1535   : > { %v4133_v35 = vpop.f32.mrb[12].mxu0 }
0x1536   : > { %v1615_v25 = vpop.f32.mrb[13].mxu0 }
0x1537   : > { %v4135_v36 = vpop.f32.mrb[14].mxu0  ;;  %v1616_v46 = vadd.f32 %v4143_v44, %v1615_v25 }
0x1538   : > { %v4137_v37 = vpop.f32.mrb[15].mxu0 }
0x1539   : > { %v1619_v27 = vadd.f32 %v4143_v44, %v4137_v37 }
0x1551   : > { %v1467_v39 = vpop.f32.mrb[24].mxu1 }
0x1552   : > { %v1473_v40 = vadd.f32 %v1467_v39, %v3935_v23  ;;  %v3019_v41 = vpop.f32.mrb[25].mxu1 }
0x1553   : > { %v1470_v42 = vpop.f32.mrb[26].mxu1 }
0x1554   : > { %v3020_v43 = vpop.f32.mrb[27].mxu1  ;;  %v2835_v59 = vmul.f32 -1.442695, %v1473_v40  ;;  %v1294_v42 = vmul.f32 %v4023_v38, %v4023_v38 }
0x1559   : > { %v1713_v47 = vpop.f32.mrb[28].mxu1 }
0x155a   : > { %v1719_v48 = vadd.f32 %v1713_v47, %v1616_v46  ;;  %v3039_v49 = vpop.f32.mrb[29].mxu1 }
0x155b   : > { %v1716_v50 = vpop.f32.mrb[30].mxu1 }
0x155c   : > { %v2848_v15 = vmul.f32 -1.442695, %v1719_v48  ;;  %v3040_v52 = vpop.f32.mrb[31].mxu1 }
0x155e   : > { %3264 = vpow2.f32 %v2848_v15 }
0x1568   : > { %v3265_v54 = vpop.eup %3264 }
0x1569   : > { %v1723_v19 = vadd.f32 1.0, %v3265_v54 }
0x156b   : > { %3266 = vrcp.f32 %v1723_v19 }
0x156c   : > { %3268 = vpow2.f32 %v2835_v59 }
0x1575   : > { %v3267_v23 = vpop.eup %3266 }
0x1576   : > { %v1726_v55 = vmul.f32 2.0, %v3267_v23  ;;  %v3269_v60 = vpop.eup %3268  ;;  %v1728_v62 = vmul.f32 0.0, %v3267_v23 }
0x1577   : > { %v1477_v61 = vadd.f32 1.0, %v3269_v60 }
0x1578   : > { %v2849_v56 = vadd.f32 -1.0, %v1726_v55 }
0x1579   : > { %3270 = vrcp.f32 %v1477_v61 }
0x157a   : > { %1730 = vrot.lane.b32.xlu0 %v2849_v56, %s3571_s15 }
0x1583   : > { %v3271_v5 = vpop.eup %3270 }
0x1584   : > { %v1480_v3 = vmul.f32 2.0, %v3271_v5  ;;  %v1482_v14 = vmul.f32 %v3271_v5, %v4074_v24  ;;  %v1188_v24 = vmul.f32 %v4004_v16, %v4004_v16 }
0x1586   : > { %v2836_v45 = vadd.f32 -1.0, %v1480_v3 }
0x15ec   : > { %v1731_v57 = vpop.permute.xlu0 %1730 }
0x15ed   : > { %v1733_v58 = vmul.f32 %v3267_v23, %v1731_v57 }
0x15ef   : > { %1735 = vrot.lane.b32.xlu1 %v1733_v58, %s3572_s24 }
0x1661   : > { %v1736_v1 = vpop.permute.xlu1 %1735 }
0x1662   : > { %v4148_v2 = vadd.f32 %v1736_v1, %v1728_v62 }
0x1664   : > { %3272 = vtanh.f32 %v4148_v2 }
0x166e   : > { %v3273_v8 = vpop.eup %3272 }
0x166f   : > { %1741 = vrot.lane.b32.xlu0 %v3273_v8, %s3571_s15 }
0x1673   : > { %1484 = vrot.lane.b32.xlu0 %v2836_v45, %s3571_s15 }
0x16e1   : > { %v1742_v53 = vpop.permute.xlu0 %1741 }
0x16e2   : > { %v4153_v10 = vmul.f32 %v3267_v23, %v1742_v53 }
0x16e4   : > { %v1782_v11 = vpack.c.bf16 %v4153_v10, %v4153_v10 }
0x16e5   : > { %v1485_v21 = vpop.permute.xlu0 %1484 }
0x16e6   : > { %1784 = vrot.lane.b32.xlu1 %v1782_v11, %s3572_s24  ;;  %v1487_v13 = vmul.f32 %v3271_v5, %v1485_v21 }
0x16ea   : > { %1489 = vrot.lane.b32.xlu1 %v1487_v13, %s3572_s24 }
0x1758   : > { %v1785_v32 = vpop.permute.xlu1 %1784 }
0x1759   : > { %3046 = vmatmul.mubr.msk.bf16.vlgmr.msra.gmra.mrb[32].mxu1 %vm572_vm1, %v1785_v32 }
0x175a   : > { %3058 = vmatpush3.bf16.msra.mxu1 %v4110_v33  ;;  %3061 = vmatprep.mubr.msk.bf16.mxu1 %vm3569_vm0, %v3568_v0 }
0x175b   : > { %3059 = vmatprep.subr.bf16.mxu1 %v3568_v0 }
0x175c   : > { %v1490_v17 = vpop.permute.xlu1 %1489 }
0x175d   : > { %v1492_v20 = vadd.f32 %v1490_v17, %v1482_v14 }
0x175e   : > { %3060 = vmatpush3.bf16.msra.mxu1 %v4115_v7 }
0x175f   : > { %3274 = vtanh.f32 %v1492_v20  ;;  %3073 = vmatprep.subr.bf16.mxu1 %v3568_v0 }
0x1769   : > { %v3275_v22 = vpop.eup %3274 }
0x176a   : > { %1495 = vrot.lane.b32.xlu0 %v3275_v22, %s3571_s15 }
0x176e   : > { %1182 = vrot.lane.b32.xlu0 %v4004_v16, %s3572_s24 }
0x1772   : > { %1394 = vrot.lane.b32.xlu0 %v4100_v18, %s3572_s24 }
0x1776   : > { %1190 = vrot.lane.b32.xlu0 %v1188_v24, %s3572_s24 }
0x177a   : > { %1402 = vrot.lane.b32.xlu0 %v1400_v26, %s3572_s24 }
0x17dc   : > { %v1496_v41 = vpop.permute.xlu0 %1495 }
0x17dd   : > { %v4186_v37 = vmul.f32 %v3271_v5, %v1496_v41 }
0x17df   : > { %v1506_v43 = vmul.f32 %v4186_v37, %v4186_v37 }
0x17e0   : > { %v1183_v46 = vpop.permute.xlu0 %1182 }
0x17e1   : > { %v1185_v47 = vsel %vm572_vm1, %v1183_v46, 0.0 }
0x17e4   : > { %v1395_v49 = vpop.permute.xlu0 %1394 }
0x17e5   : > { %v1397_v54 = vsel %vm572_vm1, %v1395_v49, 0.0 }
0x17e8   : > { %v1191_v23 = vpop.permute.xlu0 %1190 }
0x17e9   : > { %v1193_v56 = vsel %vm572_vm1, %v1191_v23, 0.0 }
0x17ec   : > { %v1403_v61 = vpop.permute.xlu0 %1402 }
0x17ed   : > { %v1405_v62 = vsel %vm572_vm1, %v1403_v61, 0.0 }
0x182c   : > { %v1823_v28 = vpop.f32.mrb[32].mxu1 }
0x182d   : > { %v1829_v29 = vadd.f32 %v1823_v28, %v1619_v27  ;;  %v3047_v51 = vpop.f32.mrb[33].mxu1 }
0x182e   : > { %v1826_v12 = vpop.f32.mrb[34].mxu1 }
0x182f   : > { %v2851_v4 = vmul.f32 -1.442695, %v1829_v29  ;;  %v3048_v30 = vpop.f32.mrb[35].mxu1 }
0x1831   : > { %3276 = vpow2.f32 %v2851_v4 }
0x183b   : > { %v3277_v31 = vpop.eup %3276 }
0x183c   : > { %v1833_v34 = vadd.f32 1.0, %v3277_v31 }
0x183e   : > { %3278 = vrcp.f32 %v1833_v34 }
0x1848   : > { %v4180_v25 = vpop.eup %3278 }
0x1849   : > { %v1836_v39 = vmul.f32 2.0, %v4180_v25  ;;  %v1838_v26 = vmul.f32 %v4180_v25, %v4148_v2 }
0x184b   : > { %v2852_v40 = vadd.f32 -1.0, %v1836_v39 }
0x184d   : > { %1840 = vrot.lane.b32.xlu1 %v2852_v40, %s3571_s15 }
0x1851   : > { %1288 = vrot.lane.b32.xlu1 %v4023_v38, %s3572_s24 }
0x1855   : > { %1500 = vrot.lane.b32.xlu1 %v4186_v37, %s3572_s24 }
0x1859   : > { %1296 = vrot.lane.b32.xlu1 %v1294_v42, %s3572_s24 }
0x185d   : > { %1508 = vrot.lane.b32.xlu1 %v1506_v43, %s3572_s24 }
0x1881   : > { %1186 = vadd.xlane.f32.xlu1 %v1185_v47 }
0x18bf   : > { %v1841_v48 = vpop.permute.xlu1 %1840 }
0x18c0   : > { %v1843_v60 = vmul.f32 %v4180_v25, %v1841_v48 }
0x18c3   : > { %v1289_v50 = vpop.permute.xlu1 %1288 }
0x18c4   : > { %v1291_v15 = vsel %vm572_vm1, %v1289_v50, 0.0 }
0x18c5   : > { %1292 = vadd.xlane.f32.xlu0 %v1291_v15 }
0x18c7   : > { %v1501_v52 = vpop.permute.xlu1 %1500 }
0x18c8   : > { %v1503_v19 = vsel %vm572_vm1, %v1501_v52, 0.0 }
0x18c9   : > { %1398 = vadd.xlane.f32.xlu0 %v1397_v54  ;;  %1504 = vadd.xlane.f32.xlu1 %v1503_v19 }
0x18cb   : > { %v1297_v55 = vpop.permute.xlu1 %1296 }
0x18cc   : > { %v1299_v57 = vsel %vm572_vm1, %v1297_v55, 0.0 }
0x18cd   : > { %1194 = vadd.xlane.f32.xlu0 %v1193_v56  ;;  %1300 = vadd.xlane.f32.xlu1 %v1299_v57 }
0x18cf   : > { %v1509_v58 = vpop.permute.xlu1 %1508 }
0x18d0   : > { %v1511_v59 = vsel %vm572_vm1, %v1509_v58, 0.0 }
0x18d1   : > { %1512 = vadd.xlane.f32.xlu1 %v1511_v59 }
0x18e3   : > { %1845 = vrot.lane.b32.xlu0 %v1843_v60, %s3572_s24 }
0x1902   : > { %1406 = vadd.xlane.f32.xlu0 %v1405_v62 }
0x190e   : > { %v1187_v1 = vpop.xlane.xlu1 %1186 }
0x190f   : > { %v1196_v45 = vmul.f32 0.03125, %v1187_v1 }
0x1911   : > { %v1198_v32 = vmul.f32 %v1196_v45, %v1196_v45  ;;  %v1200_v39 = vsub.f32 %v4004_v16, %v1196_v45 }
0x1952   : > { %v1293_v5 = vpop.xlane.xlu0 %1292 }
0x1953   : > { %v1302_v53 = vmul.f32 0.03125, %v1293_v5 }
0x1955   : > { %v1304_v14 = vmul.f32 %v1302_v53, %v1302_v53  ;;  %v1306_v2 = vsub.f32 %v4023_v38, %v1302_v53 }
0x1956   : > { %v1399_v3 = vpop.xlane.xlu0 %1398  ;;  %v1505_v8 = vpop.xlane.xlu1 %1504 }
0x1957   : > { %v1514_v11 = vmul.f32 0.03125, %v1505_v8  ;;  %v1408_v54 = vmul.f32 0.03125, %v1399_v3 }
0x1959   : > { %v1516_v27 = vmul.f32 %v1514_v11, %v1514_v11  ;;  %v1518_v47 = vsub.f32 %v4186_v37, %v1514_v11  ;;  %v1410_v23 = vmul.f32 %v1408_v54, %v1408_v54  ;;  %v1412_v58 = vsub.f32 %v4100_v18, %v1408_v54 }
0x195a   : > { %v1195_v21 = vpop.xlane.xlu0 %1194  ;;  %v1301_v13 = vpop.xlane.xlu1 %1300 }
0x195b   : > { %v1197_v17 = vmul.f32 0.03125, %v1195_v21  ;;  %v1303_v20 = vmul.f32 0.03125, %v1301_v13 }
0x195d   : > { %v1199_v22 = vsub.f32 %v1197_v17, %v1198_v32  ;;  %v1305_v24 = vsub.f32 %v1303_v20, %v1304_v14 }
0x195e   : > { %v1846_v28 = vpop.permute.xlu0 %1845  ;;  %v1513_v29 = vpop.xlane.xlu1 %1512 }
0x195f   : > { %v1201_v51 = vadd.f32 1e-05, %v1199_v22  ;;  %v1307_v12 = vadd.f32 1e-05, %v1305_v24  ;;  %v4208_v4 = vadd.f32 %v1846_v28, %v1838_v26  ;;  %v1515_v30 = vmul.f32 0.03125, %v1513_v29 }
0x1960   : > { %v1624_v24 = vadd.f32 %v4133_v35, %v4143_v44 }
0x1961   : > { %3280 = vrsqrt.f32 %v1201_v51  ;;  %v1517_v31 = vsub.f32 %v1515_v30, %v1516_v27 }
0x1962   : > { %3282 = vrsqrt.f32 %v1307_v12 }
0x1963   : > { %3284 = vtanh.f32 %v4208_v4  ;;  %v1519_v34 = vadd.f32 1e-05, %v1517_v31 }
0x1965   : > { %3286 = vrsqrt.f32 %v1519_v34 }
0x196b   : > { %v3281_v40 = vpop.eup %3280 }
0x196c   : > { %v3283_v41 = vpop.eup %3282  ;;  %v1203_v42 = vmul.f32 %v3281_v40, %v1200_v39 }
0x196d   : > { %v3285_v43 = vpop.eup %3284  ;;  %v1309_v46 = vmul.f32 %v3283_v41, %v1306_v2 }
0x196e   : > { %1851 = vrot.lane.b32.xlu0 %v3285_v43, %s3571_s15  ;;  %v1204_v48 = vmul.f32 %v1203_v42, %v4081_v63 }
0x196f   : > { %v3287_v49 = vpop.eup %3286  ;;  %v1310_v15 = vmul.f32 %v1309_v46, %v4081_v63 }
0x1970   : > { %v1205_v50 = vadd.f32 %v1204_v48, %v4084_v6  ;;  %v1521_v52 = vmul.f32 %v3287_v49, %v1518_v47 }
0x1971   : > { %v1311_v16 = vadd.f32 %v1310_v15, %v4084_v6 }
0x1972   : > { %1207 = vrot.lane.b32.xlu1 %v1205_v50, %s3572_s24  ;;  %v1522_v38 = vmul.f32 %v1521_v52, %v4081_v63 }
0x1974   : > { %v1523_v37 = vadd.f32 %v1522_v38, %v4084_v6 }
0x1976   : > { %1313 = vrot.lane.b32.xlu1 %v1311_v16, %s3572_s24 }
0x197a   : > { %1525 = vrot.lane.b32.xlu1 %v1523_v37, %s3572_s24 }
0x198f   : > { %v1407_v19 = vpop.xlane.xlu0 %1406 }
0x1990   : > { %v1409_v55 = vmul.f32 0.03125, %v1407_v19 }
0x1992   : > { %v1411_v56 = vsub.f32 %v1409_v55, %v1410_v23 }
0x1994   : > { %v1413_v57 = vadd.f32 1e-05, %v1411_v56 }
0x1996   : > { %3288 = vrsqrt.f32 %v1413_v57 }
0x19a0   : > { %v3289_v59 = vpop.eup %3288 }
0x19a1   : > { %v1415_v60 = vmul.f32 %v3289_v59, %v1412_v58 }
0x19a3   : > { %v1416_v61 = vmul.f32 %v1415_v60, %v4081_v63 }
0x19a5   : > { %v1417_v62 = vadd.f32 %v1416_v61, %v4084_v6 }
0x19a7   : > { %1419 = vrot.lane.b32.xlu0 %v1417_v62, %s3572_s24 }
0x19e0   : > { %v1852_v1 = vpop.permute.xlu0 %1851 }
0x19e1   : > { %v4229_v5 = vmul.f32 %v4180_v25, %v1852_v1 }
0x19e3   : > { %v1886_v3 = vpack.c.bf16 %v4229_v5, %v4229_v5 }
0x19e4   : > { %v1208_v8 = vpop.permute.xlu1 %1207 }
0x19e5   : > { %1888 = vrot.lane.b32.xlu0 %v1886_v3, %s3572_s24  ;;  %1211 = vst.msk [vmem:[#allocation3 + $0x20] sm:$0xff] %vm572_vm1, %v1208_v8 }
0x19e8   : > { %v1314_v18 = vpop.permute.xlu1 %1313 }
0x19e9   : > { %1317 = vst.msk [vmem:[#allocation3 + $0x28] sm:$0xff] %vm572_vm1, %v1314_v18 }
0x19ec   : > { %v1526_v63 = vpop.permute.xlu1 %1525  ;;  %v1542_v6 = vld [vmem:[#allocation3 + $0x20] sm:$0xff] }
0x19ed   : > { %1529 = vst.msk [vmem:[#allocation3 + $0x38] sm:$0xff] %vm572_vm1, %v1526_v63 }
0x19f0   : > { %v1543_v45 = vld [vmem:[#allocation3 + $0x28] sm:$0xff] }
0x19f1   : > { %v1548_v53 = vpack.c.bf16 %v1543_v45, %v1542_v6 }
0x19f3   : > { %3029 = vmatprep.mubr.msk.bf16.mxu0 %vm572_vm1, %v1548_v53 }
0x19f4   : > { %v1545_v21 = vld [vmem:[#allocation3 + $0x38] sm:$0xff] }
0x1a19   : > { %v1420_v25 = vpop.permute.xlu0 %1419 }
0x1a1a   : > { %1423 = vst.msk [vmem:[#allocation3 + $0x30] sm:$0xff] %vm572_vm1, %v1420_v25 }
0x1a21   : > { %v1544_v11 = vld [vmem:[#allocation3 + $0x30] sm:$0xff] }
0x1a22   : > { %v1549_v13 = vpack.c.bf16 %v1545_v21, %v1544_v11 }
0x1a24   : > { %3030 = vmatmul.mubr.msk.bf16.gmra.mrb[16].mxu0 %vm572_vm1, %v1549_v13 }
0x1a25   : > { %3053 = vmatprep.mubr.msk.bf16.mxu0 %vm3569_vm0, %v3568_v0 }
0x1a57   : > { %v1889_v32 = vpop.permute.xlu0 %1888 }
0x1a58   : > { %3054 = vmatmul.mubr.msk.bf16.vlgmr.msra.gmra.mrb[20].mxu0 %vm572_vm1, %v1889_v32 }
0x1a59   : > { %3066 = vmatpush3.bf16.msra.mxu0 %v4110_v33  ;;  %3069 = vmatprep.mubr.msk.bf16.mxu0 %vm3569_vm0, %v3568_v0 }
0x1a5a   : > { %3067 = vmatprep.subr.bf16.mxu0 %v3568_v0 }
0x1a5d   : > { %3068 = vmatpush3.bf16.msra.mxu0 %v4115_v7 }
0x1a5e   : > { %3081 = vmatprep.subr.bf16.mxu0 %v3568_v0 }
0x1af7   : > { %v4249_v14 = vpop.f32.mrb[16].mxu0 }
0x1af8   : > { %v4251_v17 = vpop.f32.mrb[17].mxu0 }
0x1af9   : > { %v4253_v20 = vpop.f32.mrb[18].mxu0  ;;  %v1632_v63 = vadd.f32 %v4143_v44, %v4251_v17 }
0x1afa   : > { %v4255_v22 = vpop.f32.mrb[19].mxu0 }
0x1b2b   : > { %v1927_v26 = vpop.f32.mrb[20].mxu0 }
0x1b2c   : > { %v1933_v27 = vadd.f32 %v1927_v26, %v1624_v24  ;;  %v3055_v28 = vpop.f32.mrb[21].mxu0 }
0x1b2d   : > { %v1930_v29 = vpop.f32.mrb[22].mxu0 }
0x1b2e   : > { %v2854_v51 = vmul.f32 -1.442695, %v1933_v27  ;;  %v3056_v12 = vpop.f32.mrb[23].mxu0 }
0x1b30   : > { %3290 = vpow2.f32 %v2854_v51 }
0x1b3a   : > { %v3291_v30 = vpop.eup %3290 }
0x1b3b   : > { %v1937_v31 = vadd.f32 1.0, %v3291_v30 }
0x1b3d   : > { %3292 = vrcp.f32 %v1937_v31 }
0x1b47   : > { %v3293_v34 = vpop.eup %3292 }
0x1b48   : > { %v1940_v39 = vmul.f32 2.0, %v3293_v34  ;;  %v1942_v35 = vmul.f32 %v3293_v34, %v4208_v4  ;;  %v1627_v4 = vadd.f32 %v4135_v36, %v4143_v44 }
0x1b4a   : > { %v2855_v40 = vadd.f32 -1.0, %v1940_v39 }
0x1b4c   : > { %1944 = vrot.lane.b32.xlu1 %v2855_v40, %s3571_s15 }
0x1bbe   : > { %v1945_v2 = vpop.permute.xlu1 %1944 }
0x1bbf   : > { %v1947_v41 = vmul.f32 %v3293_v34, %v1945_v2  ;;  %v1635_v2 = vadd.f32 %v4143_v44, %v4255_v22 }
0x1bc1   : > { %1949 = vrot.lane.b32.xlu0 %v1947_v41, %s3572_s24 }
0x1c33   : > { %v1950_v42 = vpop.permute.xlu0 %1949 }
0x1c34   : > { %v1952_v43 = vadd.f32 %v1950_v42, %v1942_v35 }
0x1c36   : > { %3294 = vtanh.f32 %v1952_v43 }
0x1c40   : > { %v3295_v46 = vpop.eup %3294 }
0x1c41   : > { %1955 = vrot.lane.b32.xlu1 %v3295_v46, %s3571_s15 }
0x1cb3   : > { %v1956_v47 = vpop.permute.xlu1 %1955 }
0x1cb4   : > { %v4263_v48 = vmul.f32 %v3293_v34, %v1956_v47 }
0x1cb6   : > { %v1990_v49 = vpack.c.bf16 %v4263_v48, %v4263_v48 }
0x1cb8   : > { %1992 = vrot.lane.b32.xlu0 %v1990_v49, %s3572_s24 }
0x1d2a   : > { %v1993_v50 = vpop.permute.xlu0 %1992 }
0x1d2b   : > { %3062 = vmatmul.mubr.msk.bf16.vlgmr.msra.gmra.mrb[36].mxu1 %vm572_vm1, %v1993_v50 }
0x1d2c   : > { %3074 = vmatpush3.bf16.msra.mxu1 %v4110_v33  ;;  %3077 = vmatprep.mubr.msk.bf16.mxu1 %vm3569_vm0, %v3568_v0 }
0x1d2d   : > { %3075 = vmatprep.subr.bf16.mxu1 %v3568_v0 }
0x1d30   : > { %3076 = vmatpush3.bf16.msra.mxu1 %v4115_v7 }
0x1d31   : > { %3089 = vmatprep.subr.bf16.mxu1 %v3568_v0 }
0x1dfe   : > { %v2031_v15 = vpop.f32.mrb[36].mxu1 }
0x1dff   : > { %v2037_v52 = vadd.f32 %v2031_v15, %v1627_v4  ;;  %v3063_v16 = vpop.f32.mrb[37].mxu1 }
0x1e00   : > { %v2034_v38 = vpop.f32.mrb[38].mxu1 }
0x1e01   : > { %v2857_v37 = vmul.f32 -1.442695, %v2037_v52  ;;  %v3064_v54 = vpop.f32.mrb[39].mxu1 }
0x1e03   : > { %3296 = vpow2.f32 %v2857_v37 }
0x1e0d   : > { %v3297_v19 = vpop.eup %3296 }
0x1e0e   : > { %v2041_v23 = vadd.f32 1.0, %v3297_v19 }
0x1e10   : > { %3298 = vrcp.f32 %v2041_v23 }
0x1e1a   : > { %v3299_v55 = vpop.eup %3298 }
0x1e1b   : > { %v2044_v56 = vmul.f32 2.0, %v3299_v55  ;;  %v2046_v36 = vmul.f32 %v3299_v55, %v1952_v43 }
0x1e1d   : > { %v2858_v57 = vadd.f32 -1.0, %v2044_v56 }
0x1e1f   : > { %2048 = vrot.lane.b32.xlu1 %v2858_v57, %s3571_s15 }
0x1e91   : > { %v2049_v58 = vpop.permute.xlu1 %2048 }
0x1e92   : > { %v2051_v59 = vmul.f32 %v3299_v55, %v2049_v58 }
0x1e94   : > { %2053 = vrot.lane.b32.xlu0 %v2051_v59, %s3572_s24 }
0x1f06   : > { %v2054_v60 = vpop.permute.xlu0 %2053 }
0x1f07   : > { %v2056_v61 = vadd.f32 %v2054_v60, %v2046_v36 }
0x1f09   : > { %3300 = vtanh.f32 %v2056_v61 }
0x1f13   : > { %v3301_v62 = vpop.eup %3300 }
0x1f14   : > { %2059 = vrot.lane.b32.xlu1 %v3301_v62, %s3571_s15 }
0x1f86   : > { %v2060_v1 = vpop.permute.xlu1 %2059 }
0x1f87   : > { %v4280_v3 = vmul.f32 %v3299_v55, %v2060_v1  ;;  %v1640_v55 = vadd.f32 %v4249_v14, %v4143_v44 }
0x1f89   : > { %v2094_v8 = vpack.c.bf16 %v4280_v3, %v4280_v3 }
0x1f8b   : > { %2096 = vrot.lane.b32.xlu0 %v2094_v8, %s3572_s24 }
0x1ffd   : > { %v2097_v18 = vpop.permute.xlu0 %2096 }
0x1ffe   : > { %3070 = vmatmul.mubr.msk.bf16.vlgmr.msra.gmra.mrb[24].mxu0 %vm572_vm1, %v2097_v18 }
0x1fff   : > { %3082 = vmatpush3.bf16.msra.mxu0 %v4110_v33  ;;  %3085 = vmatprep.mubr.msk.bf16.mxu0 %vm3569_vm0, %v3568_v0 }
0x2000   : > { %3083 = vmatprep.subr.bf16.mxu0 %v3568_v0 }
0x2003   : > { %3084 = vmatpush3.bf16.msra.mxu0 %v4115_v7 }
0x20d1   : > { %v2135_v6 = vpop.f32.mrb[24].mxu0 }
0x20d2   : > { %v2141_v45 = vadd.f32 %v2135_v6, %v1632_v63  ;;  %v3071_v53 = vpop.f32.mrb[25].mxu0 }
0x20d3   : > { %v2138_v25 = vpop.f32.mrb[26].mxu0 }
0x20d4   : > { %v2860_v11 = vmul.f32 -1.442695, %v2141_v45  ;;  %v3072_v21 = vpop.f32.mrb[27].mxu0 }
0x20d6   : > { %3302 = vpow2.f32 %v2860_v11  ;;  %v1752_v11 = vmul.f32 %v4153_v10, %v4153_v10 }
0x20e0   : > { %v3303_v13 = vpop.eup %3302 }
0x20e1   : > { %v2145_v32 = vadd.f32 1.0, %v3303_v13 }
0x20e3   : > { %3304 = vrcp.f32 %v2145_v32 }
0x20ed   : > { %v3305_v24 = vpop.eup %3304 }
0x20ee   : > { %v2148_v26 = vmul.f32 2.0, %v3305_v24  ;;  %v2150_v17 = vmul.f32 %v3305_v24, %v2056_v61 }
0x20f0   : > { %v2861_v27 = vadd.f32 -1.0, %v2148_v26 }
0x20f2   : > { %2152 = vrot.lane.b32.xlu1 %v2861_v27, %s3571_s15 }
0x2164   : > { %v2153_v28 = vpop.permute.xlu1 %2152 }
0x2165   : > { %v2155_v29 = vmul.f32 %v3305_v24, %v2153_v28  ;;  %v2845_v28 = vld [vmem:[%s4603_s20] ss:$0 sm:$0xff]  ;;  %s3574_s20 = smov [#allocation13]  }
0x2166   : > { %s3488_s14 = sshll.u32 %s3574_s20, 4  ;;  %s3489_s14 = int_to_ptr.vmem [resolvable:$false] %s3488_s14 }
0x2167   : > { %2157 = vrot.lane.b32.xlu0 %v2155_v29, %s3572_s24  ;;  %s3490_s16 = scalar_lea.vmem %s3489_s14, 4096 }
0x21d9   : > { %v2158_v51 = vpop.permute.xlu0 %2157 }
0x21da   : > { %v2160_v12 = vadd.f32 %v2158_v51, %v2150_v17  ;;  %v2844_v17 = vld [vmem:[%s4604_s18] ss:$0 sm:$0xff]  ;;  %s4606_s18 = sld [smem:[#allocation23_spill]] }
0x21dc   : > { %3306 = vtanh.f32 %v2160_v12 }
0x21e6   : > { %v3307_v30 = vpop.eup %3306 }
0x21e7   : > { %2163 = vrot.lane.b32.xlu1 %v3307_v30, %s3571_s15 }
0x2259   : > { %v2164_v31 = vpop.permute.xlu1 %2163 }
0x225a   : > { %v4296_v34 = vmul.f32 %v3305_v24, %v2164_v31 }
0x225c   : > { %v2198_v39 = vpack.c.bf16 %v4296_v34, %v4296_v34 }
0x225e   : > { %2200 = vrot.lane.b32.xlu0 %v2198_v39, %s3572_s24 }
0x22d0   : > { %v2201_v40 = vpop.permute.xlu0 %2200 }
0x22d1   : > { %3078 = vmatmul.mubr.msk.bf16.vlgmr.msra.gmra.mrb[40].mxu1 %vm572_vm1, %v2201_v40 }
0x22d2   : > { %3090 = vmatpush3.bf16.msra.mxu1 %v4110_v33  ;;  %3093 = vmatprep.mubr.msk.bf16.mxu1 %vm3569_vm0, %v3568_v0 }
0x22d3   : > { %3091 = vmatprep.subr.bf16.mxu1 %v3568_v0 }
0x22d6   : > { %3092 = vmatpush3.bf16.msra.mxu1 %v4115_v7 }
0x23a4   : > { %v2239_v41 = vpop.f32.mrb[40].mxu1 }
0x23a5   : > { %v2245_v35 = vadd.f32 %v2239_v41, %v1635_v2  ;;  %v3079_v42 = vpop.f32.mrb[41].mxu1 }
0x23a6   : > { %v2242_v43 = vpop.f32.mrb[42].mxu1 }
0x23a7   : > { %v2863_v46 = vmul.f32 -1.442695, %v2245_v35  ;;  %v3080_v47 = vpop.f32.mrb[43].mxu1 }
0x23a9   : > { %3308 = vpow2.f32 %v2863_v46 }
0x23b3   : > { %v3309_v49 = vpop.eup %3308 }
0x23b4   : > { %v2249_v50 = vadd.f32 1.0, %v3309_v49 }
0x23b6   : > { %3310 = vrcp.f32 %v2249_v50 }
0x23c0   : > { %v3311_v33 = vpop.eup %3310 }
0x23c1   : > { %v2252_v4 = vmul.f32 2.0, %v3311_v33  ;;  %v2254_v22 = vmul.f32 %v3311_v33, %v2160_v12 }
0x23c3   : > { %v2864_v15 = vadd.f32 -1.0, %v2252_v4 }
0x23c5   : > { %2256 = vrot.lane.b32.xlu1 %v2864_v15, %s3571_s15 }
0x2437   : > { %v2257_v0 = vpop.permute.xlu1 %2256 }
0x2438   : > { %v2259_v7 = vmul.f32 %v3311_v33, %v2257_v0 }
0x243a   : > { %2261 = vrot.lane.b32.xlu0 %v2259_v7, %s3572_s24 }
0x24ac   : > { %v2262_v52 = vpop.permute.xlu0 %2261 }
0x24ad   : > { %v2264_v16 = vadd.f32 %v2262_v52, %v2254_v22  ;;  %v1643_v22 = vadd.f32 %v4253_v20, %v4143_v44 }
0x24af   : > { %3312 = vtanh.f32 %v2264_v16 }
0x24b9   : > { %v3313_v38 = vpop.eup %3312 }
0x24ba   : > { %2267 = vrot.lane.b32.xlu1 %v3313_v38, %s3571_s15 }
0x252c   : > { %v2268_v37 = vpop.permute.xlu1 %2267 }
0x252d   : > { %v4312_v54 = vmul.f32 %v3311_v33, %v2268_v37  ;;  %v1862_v33 = vmul.f32 %v4229_v5, %v4229_v5 }
0x252f   : > { %v2302_v19 = vpack.c.bf16 %v4312_v54, %v4312_v54 }
0x2531   : > { %2304 = vrot.lane.b32.xlu0 %v2302_v19, %s3572_s24 }
0x25a3   : > { %v2305_v23 = vpop.permute.xlu0 %2304 }
0x25a4   : > { %3086 = vmatmul.mubr.msk.bf16.vlgmr.msra.gmra.mrb[28].mxu0 %vm572_vm1, %v2305_v23  ;;  %v1966_v23 = vmul.f32 %v4263_v48, %v4263_v48 }
0x25a5   : > { %2601 = vmatprep.mubr.bf16.mxu0 %v3570_v9 }
0x2677   : > { %v2343_v56 = vpop.f32.mrb[28].mxu0 }
0x2678   : > { %v2349_v57 = vadd.f32 %v2343_v56, %v1640_v55  ;;  %v3087_v58 = vpop.f32.mrb[29].mxu0 }
0x2679   : > { %v2346_v59 = vpop.f32.mrb[30].mxu0 }
0x267a   : > { %v2866_v36 = vmul.f32 -1.442695, %v2349_v57  ;;  %v3088_v60 = vpop.f32.mrb[31].mxu0 }
0x267c   : > { %3314 = vpow2.f32 %v2866_v36 }
0x2686   : > { %v3315_v61 = vpop.eup %3314 }
0x2687   : > { %v2353_v62 = vadd.f32 1.0, %v3315_v61 }
0x2689   : > { %3316 = vrcp.f32 %v2353_v62  ;;  %v3208_v62 = vld [vmem:[%s4605_s19] ss:$8 sps:$4 sm:$0xff]  }
0x2693   : > { %v3317_v1 = vpop.eup %3316 }
0x2694   : > { %v2356_v8 = vmul.f32 2.0, %v3317_v1  ;;  %v2358_v14 = vmul.f32 %v3317_v1, %v2264_v16 }
0x2696   : > { %v2867_v18 = vadd.f32 -1.0, %v2356_v8  ;;  %v3213_v8 = vld [vmem:[%s4605_s19 + $0x14] ss:$8 sps:$4 sm:$0xff]  }
0x2698   : > { %2360 = vrot.lane.b32.xlu1 %v2867_v18, %s3571_s15  ;;  %v3211_v18 = vld [vmem:[%s4605_s19 + $0x10] ss:$8 sps:$4 sm:$0xff]  }
0x270a   : > { %v2361_v63 = vpop.permute.xlu1 %2360 }
0x270b   : > { %v2363_v6 = vmul.f32 %v3317_v1, %v2361_v63 }
0x270d   : > { %2365 = vrot.lane.b32.xlu0 %v2363_v6, %s3572_s24 }
0x277f   : > { %v2366_v45 = vpop.permute.xlu0 %2365 }
0x2780   : > { %v4323_v53 = vadd.f32 %v2366_v45, %v2358_v14 }
0x2782   : > { %3318 = vtanh.f32 %v4323_v53 }
0x278c   : > { %v3319_v25 = vpop.eup %3318 }
0x278d   : > { %2371 = vrot.lane.b32.xlu1 %v3319_v25, %s3571_s15 }
0x2791   : > { %1746 = vrot.lane.b32.xlu1 %v4153_v10, %s3572_s24 }
0x2795   : > { %1754 = vrot.lane.b32.xlu1 %v1752_v11, %s3572_s24 }
0x27ff   : > { %v2372_v21 = vpop.permute.xlu1 %2371 }
0x2800   : > { %v4332_v13 = vmul.f32 %v3317_v1, %v2372_v21  ;;  %v3210_v1 = vld [vmem:[%s4605_s19 + $0x4] ss:$8 sps:$4 sm:$0xff]  }
0x2801   : > { %2569 = vmatprep.subr.bf16.mxu0 %v3210_v1 }
0x2802   : > { %v2406_v32 = vpack.c.bf16 %v4332_v13, %v4332_v13  ;;  %2570 = vmatpush1.bf16.msra.mxu0 %v3208_v62 }
0x2803   : > { %v1747_v24 = vpop.permute.xlu1 %1746  ;;  %2571 = vmatprep.subr.bf16.mxu0 %v3213_v8 }
0x2804   : > { %2408 = vrot.lane.b32.xlu0 %v2406_v32, %s3572_s24  ;;  %v1749_v29 = vsel %vm572_vm1, %v1747_v24, 0.0 }
0x2806   : > { %2572 = vmatpush1.bf16.msra.mxu0 %v3211_v18 }
0x2807   : > { %v1755_v26 = vpop.permute.xlu1 %1754 }
0x2808   : > { %v1757_v27 = vsel %vm572_vm1, %v1755_v26, 0.0 }
0x2809   : > { %1758 = vadd.xlane.f32.xlu1 %v1757_v27 }
0x281a   : > { %1772 = vrot.lane.b32.xlu1 %v2845_v28, %s3573_s9 }
0x2823   : > { %1750 = vadd.xlane.f32.xlu0 %v1749_v29 }
0x2839   : > { %1768 = vrot.lane.b32.xlu0 %v2844_v17, %s3573_s9  ;;  %s4423_s9 = scalar_lea.vmem [#allocation13], %s2798_s21 }
0x2876   : > { %v2409_v51 = vpop.permute.xlu0 %2408 }
0x2877   : > { %3094 = vmatmul.mubr.msk.bf16.vlgmr.msra.gmra.mrb[44].mxu1 %vm572_vm1, %v2409_v51 }
0x2896   : > { %v1759_v12 = vpop.xlane.xlu1 %1758 }
0x2897   : > { %v1761_v39 = vmul.f32 0.03125, %v1759_v12 }
0x289a   : > { %v4351_v47 = vpop.permute.xlu1 %1772 }
0x28b0   : > { %v1751_v30 = vpop.xlane.xlu0 %1750 }
0x28b1   : > { %v1760_v31 = vmul.f32 0.03125, %v1751_v30 }
0x28b3   : > { %v1762_v40 = vmul.f32 %v1760_v31, %v1760_v31  ;;  %v1764_v35 = vsub.f32 %v4153_v10, %v1760_v31 }
0x28b4   : > { %v4349_v43 = vpop.permute.xlu0 %1768 }
0x28b5   : > { %v1763_v2 = vsub.f32 %v1761_v39, %v1762_v40 }
0x28b7   : > { %v1765_v41 = vadd.f32 1e-05, %v1763_v2 }
0x28b9   : > { %3320 = vrsqrt.f32 %v1765_v41 }
0x28c3   : > { %v3321_v42 = vpop.eup %3320 }
0x28c4   : > { %v1767_v46 = vmul.f32 %v3321_v42, %v1764_v35 }
0x28c6   : > { %v1771_v49 = vmul.f32 %v4349_v43, %v1767_v46 }
0x28c8   : > { %v1775_v50 = vadd.f32 %v4351_v47, %v1771_v49 }
0x28ca   : > { %1777 = vrot.lane.b32.xlu0 %v1775_v50, %s3572_s24 }
0x28ce   : > { %1856 = vrot.lane.b32.xlu0 %v4229_v5, %s3572_s24 }
0x28d2   : > { %1864 = vrot.lane.b32.xlu0 %v1862_v33, %s3572_s24 }
0x293c   : > { %v1778_v10 = vpop.permute.xlu0 %1777 }
0x293d   : > { %1780 = vst.msk [vmem:[#allocation3] sm:$0xff] %vm572_vm1, %v1778_v10 }
0x2940   : > { %v1857_v4 = vpop.permute.xlu0 %1856 }
0x2941   : > { %v1859_v15 = vsel %vm572_vm1, %v1857_v4, 0.0 }
0x2942   : > { %1860 = vadd.xlane.f32.xlu1 %v1859_v15 }
0x2944   : > { %v1865_v0 = vpop.permute.xlu0 %1864  ;;  %v2513_v29 = vld [vmem:[#allocation3] sm:$0xff] }
0x2945   : > { %v1867_v7 = vsel %vm572_vm1, %v1865_v0, 0.0  ;;  %v2070_v0 = vmul.f32 %v4280_v3, %v4280_v3 }
0x2946   : > { %1868 = vadd.xlane.f32.xlu0 %v1867_v7 }
0x294a   : > { %v2447_v52 = vpop.f32.mrb[44].mxu1 }
0x294b   : > { %v2453_v16 = vadd.f32 %v2447_v52, %v1643_v22  ;;  %v3095_v38 = vpop.f32.mrb[45].mxu1  ;;  %v2527_v22 = vlaneseq }
0x294c   : > { %v2450_v37 = vpop.f32.mrb[46].mxu1 }
0x294d   : > { %v3096_v19 = vpop.f32.mrb[47].mxu1  ;;  %v2869_v11 = vmul.f32 -1.442695, %v2453_v16  ;;  %v2528_v16 = vshrl.u32 %v2527_v22, 7 }
0x294e   : > { %v2525_v19 = vld [vmem:[%s4606_s18] sm:$0x3] }
0x294f   : > { %v2529_v37 = vsub.s32 0, %v2528_v16 }
0x295c   : > { %1960 = vrot.lane.b32.xlu0 %v4263_v48, %s3572_s24 }
0x2960   : > { %1968 = vrot.lane.b32.xlu0 %v1966_v23, %s3572_s24  ;;  %v2533_v23 = vsub.s32 1, %v2528_v16 }
0x29cf   : > { %v1861_v55 = vpop.xlane.xlu1 %1860 }
0x29d0   : > { %v1870_v56 = vmul.f32 0.03125, %v1861_v55 }
0x29d2   : > { %v1872_v58 = vmul.f32 %v1870_v56, %v1870_v56  ;;  %v1874_v63 = vsub.f32 %v4229_v5, %v1870_v56  ;;  %v4416_v56 = vrot.slane %v2525_v19, %v2529_v37 }
0x29d3   : > { %v1869_v57 = vpop.xlane.xlu0 %1868 }
0x29d4   : > { %v1871_v59 = vmul.f32 0.03125, %v1869_v57  ;;  %v4418_v57 = vrot.slane %v2525_v19, %v2533_v23 }
0x29d6   : > { %v1873_v36 = vsub.f32 %v1871_v59, %v1872_v58 }
0x29d7   : > { %v1961_v44 = vpop.permute.xlu0 %1960 }
0x29d8   : > { %v1875_v20 = vadd.f32 1e-05, %v1873_v36  ;;  %v1963_v24 = vsel %vm572_vm1, %v1961_v44, 0.0 }
0x29da   : > { %3322 = vrsqrt.f32 %v1875_v20 }
0x29db   : > { %v1969_v60 = vpop.permute.xlu0 %1968  ;;  %3324 = vpow2.f32 %v2869_v11 }
0x29dc   : > { %v1971_v61 = vsel %vm572_vm1, %v1969_v60, 0.0 }
0x29dd   : > { %1972 = vadd.xlane.f32.xlu0 %v1971_v61 }
0x29e4   : > { %v3323_v6 = vpop.eup %3322 }
0x29e5   : > { %v1877_v14 = vmul.f32 %v3323_v6, %v1874_v63  ;;  %v3325_v21 = vpop.eup %3324 }
0x29e6   : > { %v2457_v32 = vadd.f32 1.0, %v3325_v21 }
0x29e7   : > { %v1878_v45 = vmul.f32 %v1877_v14, %v4349_v43 }
0x29e8   : > { %3326 = vrcp.f32 %v2457_v32 }
0x29e9   : > { %v1879_v25 = vadd.f32 %v1878_v45, %v4351_v47 }
0x29eb   : > { %1881 = vrot.lane.b32.xlu1 %v1879_v25, %s3572_s24 }
0x29f2   : > { %v4389_v26 = vpop.eup %3326 }
0x29f3   : > { %v2460_v5 = vmul.f32 2.0, %v4389_v26 }
0x29f5   : > { %v2870_v27 = vadd.f32 -1.0, %v2460_v5 }
0x2a0f   : > { %1964 = vadd.xlane.f32.xlu1 %v1963_v24 }
0x2a20   : > { %2464 = vrot.lane.b32.xlu1 %v2870_v27, %s3571_s15  ;;  %v2174_v27 = vmul.f32 %v4296_v34, %v4296_v34 }
0x2a24   : > { %2064 = vrot.lane.b32.xlu1 %v4280_v3, %s3572_s24 }
0x2a5d   : > { %v1882_v28 = vpop.permute.xlu1 %1881 }
0x2a5e   : > { %1884 = vst.msk [vmem:[#allocation3 + $0x8] sm:$0xff] %vm572_vm1, %v1882_v28 }
0x2a65   : > { %v2514_v17 = vld [vmem:[#allocation3 + $0x8] sm:$0xff] }
0x2a66   : > { %v2521_v51 = vpack.c.bf16 %v2514_v17, %v2513_v29 }
0x2a68   : > { %2875 = vmatmul.mubr.msk.bf16.vlgmr.msra.gmra.mrb[32].mxu0 %vm572_vm1, %v2521_v51 }
0x2a69   : > { %2611 = vmatprep.mubr.bf16.mxu0 %v3570_v9 }
0x2a6a   : > { %v1973_v12 = vpop.xlane.xlu0 %1972 }
0x2a6b   : > { %v1975_v39 = vmul.f32 0.03125, %v1973_v12 }
0x2a9c   : > { %v1965_v30 = vpop.xlane.xlu1 %1964 }
0x2a9d   : > { %v1974_v31 = vmul.f32 0.03125, %v1965_v30  ;;  %v2462_v30 = vmul.f32 %v4389_v26, %v4323_v53 }
0x2a9f   : > { %v1976_v40 = vmul.f32 %v1974_v31, %v1974_v31  ;;  %v1978_v49 = vsub.f32 %v4263_v48, %v1974_v31 }
0x2aa0   : > { %v2465_v2 = vpop.permute.xlu1 %2464 }
0x2aa1   : > { %v1977_v41 = vsub.f32 %v1975_v39, %v1976_v40  ;;  %v2467_v15 = vmul.f32 %v4389_v26, %v2465_v2  ;;  %v2278_v40 = vmul.f32 %v4312_v54, %v4312_v54 }
0x2aa3   : > { %v1979_v35 = vadd.f32 1e-05, %v1977_v41 }
0x2aa4   : > { %v2065_v42 = vpop.permute.xlu1 %2064 }
0x2aa5   : > { %3328 = vrsqrt.f32 %v1979_v35  ;;  %v2067_v46 = vsel %vm572_vm1, %v2065_v42, 0.0 }
0x2aa6   : > { %2068 = vadd.xlane.f32.xlu1 %v2067_v46 }
0x2aaf   : > { %v3329_v50 = vpop.eup %3328 }
0x2ab0   : > { %v1981_v33 = vmul.f32 %v3329_v50, %v1978_v49 }
0x2ab2   : > { %v1982_v10 = vmul.f32 %v1981_v33, %v4349_v43 }
0x2ab4   : > { %v1983_v4 = vadd.f32 %v1982_v10, %v4351_v47 }
0x2ab6   : > { %1985 = vrot.lane.b32.xlu0 %v1983_v4, %s3572_s24 }
0x2ab7   : > { %2469 = vrot.lane.b32.xlu1 %v2467_v15, %s3572_s24 }
0x2aba   : > { %2072 = vrot.lane.b32.xlu0 %v2070_v0, %s3572_s24 }
0x2abb   : > { %2168 = vrot.lane.b32.xlu1 %v4296_v34, %s3572_s24 }
0x2b28   : > { %v1986_v48 = vpop.permute.xlu0 %1985 }
0x2b29   : > { %1988 = vst.msk [vmem:[#allocation3 + $0x10] sm:$0xff] %vm572_vm1, %v1986_v48 }
0x2b2c   : > { %v2073_v7 = vpop.permute.xlu0 %2072 }
0x2b2d   : > { %v2075_v52 = vsel %vm572_vm1, %v2073_v7, 0.0 }
0x2b2e   : > { %2076 = vadd.xlane.f32.xlu0 %v2075_v52 }
0x2b33   : > { %v2069_v38 = vpop.xlane.xlu1 %2068 }
0x2b34   : > { %v2078_v18 = vmul.f32 0.03125, %v2069_v38 }
0x2b36   : > { %v2080_v6 = vmul.f32 %v2078_v18, %v2078_v18  ;;  %v2082_v11 = vsub.f32 %v4280_v3, %v2078_v18  ;;  %v2515_v3 = vld [vmem:[#allocation3 + $0x10] sm:$0xff] }
0x2b37   : > { %v2470_v55 = vpop.permute.xlu1 %2469 }
0x2b38   : > { %v2472_v31 = vadd.f32 %v2470_v55, %v2462_v30 }
0x2b3b   : > { %v2603_v58 = vpop.f32.mrb[32].mxu0  ;;  %v2169_v59 = vpop.permute.xlu1 %2168 }
0x2b3c   : > { %v2604_v36 = vadd.f32 %v2603_v58, %v4416_v56  ;;  %v2171_v44 = vsel %vm572_vm1, %v2169_v59, 0.0  ;;  %v2605_v20 = vpop.f32.mrb[33].mxu0 }
0x2b3d   : > { %v2606_v60 = vadd.f32 %v2605_v20, %v4418_v57  ;;  %v2607_v61 = vpop.f32.mrb[34].mxu0  ;;  %2172 = vadd.xlane.f32.xlu1 %v2171_v44 }
0x2b3e   : > { %2642 = vst [vmem:[%s4423_s9] sm:$0xff] %v2604_v36  ;;  %v2608_v62 = vadd.f32 %v2607_v61, %v4416_v56  ;;  %v2609_v1 = vpop.f32.mrb[35].mxu0 }
0x2b3f   : > { %2643 = vst [vmem:[%s4423_s9 + $0x8] sm:$0xff] %v2606_v60  ;;  %v2610_v8 = vadd.f32 %v2609_v1, %v4418_v57 }
0x2b40   : > { %2644 = vst [vmem:[%s4423_s9 + $0x10] sm:$0xff] %v2608_v62 }
0x2b41   : > { %2645 = vst [vmem:[%s4423_s9 + $0x18] sm:$0xff] %v2610_v8 }
0x2bbb   : > { %v2077_v63 = vpop.xlane.xlu0 %2076 }
0x2bbc   : > { %v2079_v14 = vmul.f32 0.03125, %v2077_v63 }
0x2bbe   : > { %v2081_v45 = vsub.f32 %v2079_v14, %v2080_v6 }
0x2bc0   : > { %v2083_v25 = vadd.f32 1e-05, %v2081_v45 }
0x2bc2   : > { %3330 = vrsqrt.f32 %v2083_v25 }
0x2bc3   : > { %3332 = vtanh.f32 %v2472_v31 }
0x2bca   : > { %v2173_v2 = vpop.xlane.xlu1 %2172 }
0x2bcb   : > { %v2182_v41 = vmul.f32 0.03125, %v2173_v2 }
0x2bcc   : > { %v3331_v21 = vpop.eup %3330 }
0x2bcd   : > { %v2085_v32 = vmul.f32 %v3331_v21, %v2082_v11  ;;  %v3333_v39 = vpop.eup %3332  ;;  %v2184_v42 = vmul.f32 %v2182_v41, %v2182_v41  ;;  %v2186_v4 = vsub.f32 %v4296_v34, %v2182_v41  ;;  %v2382_v11 = vmul.f32 %v4332_v13, %v4332_v13 }
0x2bcf   : > { %v2086_v24 = vmul.f32 %v2085_v32, %v4349_v43 }
0x2bd1   : > { %v2087_v5 = vadd.f32 %v2086_v24, %v4351_v47 }
0x2bd3   : > { %2089 = vrot.lane.b32.xlu0 %v2087_v5, %s3572_s24 }
0x2bd7   : > { %2176 = vrot.lane.b32.xlu0 %v2174_v27, %s3572_s24 }
0x2c45   : > { %v2090_v28 = vpop.permute.xlu0 %2089 }
0x2c46   : > { %2092 = vst.msk [vmem:[#allocation3 + $0x18] sm:$0xff] %vm572_vm1, %v2090_v28 }
0x2c49   : > { %v2177_v29 = vpop.permute.xlu0 %2176 }
0x2c4a   : > { %v2179_v17 = vsel %vm572_vm1, %v2177_v29, 0.0 }
0x2c4b   : > { %2180 = vadd.xlane.f32.xlu0 %v2179_v17 }
0x2c4d   : > { %v2516_v51 = vld [vmem:[#allocation3 + $0x18] sm:$0xff] }
0x2c4e   : > { %v2522_v12 = vpack.c.bf16 %v2516_v51, %v2515_v3 }
0x2c50   : > { %2876 = vmatmul.mubr.msk.bf16.gmra.mrb[36].mxu0 %vm572_vm1, %v2522_v12 }
0x2c51   : > { %2621 = vmatprep.mubr.bf16.mxu0 %v3570_v9 }
0x2c61   : > { %2475 = vrot.lane.b32.xlu0 %v3333_v39, %s3571_s15  ;;  %s2884_s15 = sshll.u32 %s3669_s29, 8  ;;  %s2659_s29 = scalar_lea.sflag [#allocation6], %s3873_s22 }
0x2c62   : > { %s4509_s23 = scalar_lea.hbm %s4607_s10, %s2884_s15 }
0x2c65   : > { %2280 = vrot.lane.b32.xlu0 %v2278_v40, %s3572_s24 }
0x2cd8   : > { %v2181_v35 = vpop.xlane.xlu0 %2180 }
0x2cd9   : > { %v2183_v46 = vmul.f32 0.03125, %v2181_v35 }
0x2cdb   : > { %v2185_v53 = vsub.f32 %v2183_v46, %v2184_v42 }
0x2cdc   : > { %v2476_v49 = vpop.permute.xlu0 %2475 }
0x2cdd   : > { %v2187_v50 = vadd.f32 1e-05, %v2185_v53  ;;  %v2478_v21 = vmul.f32 %v4389_v26, %v2476_v49 }
0x2cdf   : > { %3334 = vrsqrt.f32 %v2187_v50  ;;  %v2486_v32 = vmul.f32 %v2478_v21, %v2478_v21 }
0x2ce0   : > { %v2281_v33 = vpop.permute.xlu0 %2280 }
0x2ce1   : > { %v2283_v10 = vsel %vm572_vm1, %v2281_v33, 0.0 }
0x2ce2   : > { %2284 = vadd.xlane.f32.xlu0 %v2283_v10 }
0x2ce9   : > { %v3335_v15 = vpop.eup %3334 }
0x2cea   : > { %v2189_v0 = vmul.f32 %v3335_v15, %v2186_v4 }
0x2cec   : > { %v2190_v48 = vmul.f32 %v2189_v0, %v4349_v43 }
0x2cee   : > { %v2191_v7 = vadd.f32 %v2190_v48, %v4351_v47 }
0x2cf0   : > { %2193 = vrot.lane.b32.xlu1 %v2191_v7, %s3572_s24 }
0x2cf4   : > { %2272 = vrot.lane.b32.xlu1 %v4312_v54, %s3572_s24 }
0x2cf8   : > { %2376 = vrot.lane.b32.xlu0 %v4332_v13, %s3572_s24 }
0x2d23   : > { %v2613_v22 = vpop.f32.mrb[36].mxu0 }
0x2d24   : > { %v2614_v34 = vadd.f32 %v2613_v22, %v4416_v56  ;;  %v2615_v52 = vpop.f32.mrb[37].mxu0 }
0x2d25   : > { %v2616_v16 = vadd.f32 %v2615_v52, %v4418_v57  ;;  %v2617_v38 = vpop.f32.mrb[38].mxu0 }
0x2d26   : > { %2646 = vst [vmem:[%s4423_s9 + $0x20] sm:$0xff] %v2614_v34  ;;  %v2618_v37 = vadd.f32 %v2617_v38, %v4416_v56  ;;  %v2619_v19 = vpop.f32.mrb[39].mxu0 }
0x2d27   : > { %2647 = vst [vmem:[%s4423_s9 + $0x28] sm:$0xff] %v2616_v16  ;;  %v2620_v23 = vadd.f32 %v2619_v19, %v4418_v57 }
0x2d28   : > { %2648 = vst [vmem:[%s4423_s9 + $0x30] sm:$0xff] %v2618_v37 }
0x2d29   : > { %2649 = vst [vmem:[%s4423_s9 + $0x38] sm:$0xff] %v2620_v23 }
0x2d62   : > { %v2194_v55 = vpop.permute.xlu1 %2193 }
0x2d63   : > { %2196 = vst.msk [vmem:[#allocation3 + $0x20] sm:$0xff] %vm572_vm1, %v2194_v55 }
0x2d66   : > { %v2273_v58 = vpop.permute.xlu1 %2272 }
0x2d67   : > { %v2275_v59 = vsel %vm572_vm1, %v2273_v58, 0.0 }
0x2d68   : > { %2276 = vadd.xlane.f32.xlu1 %v2275_v59 }
0x2d6a   : > { %v2517_v28 = vld [vmem:[#allocation3 + $0x20] sm:$0xff] }
0x2d6f   : > { %v2285_v36 = vpop.xlane.xlu0 %2284 }
0x2d70   : > { %v2287_v62 = vmul.f32 0.03125, %v2285_v36 }
0x2d73   : > { %v2377_v44 = vpop.permute.xlu0 %2376 }
0x2d74   : > { %v2379_v20 = vsel %vm572_vm1, %v2377_v44, 0.0 }
0x2d75   : > { %2380 = vadd.xlane.f32.xlu0 %v2379_v20 }
0x2df5   : > { %v2277_v60 = vpop.xlane.xlu1 %2276 }
0x2df6   : > { %v2286_v61 = vmul.f32 0.03125, %v2277_v60 }
0x2df8   : > { %v2288_v1 = vmul.f32 %v2286_v61, %v2286_v61  ;;  %v2290_v63 = vsub.f32 %v4312_v54, %v2286_v61 }
0x2dfa   : > { %v2289_v8 = vsub.f32 %v2287_v62, %v2288_v1 }
0x2dfc   : > { %v2291_v18 = vadd.f32 1e-05, %v2289_v8 }
0x2dfe   : > { %3336 = vrsqrt.f32 %v2291_v18 }
0x2e02   : > { %v2381_v12 = vpop.xlane.xlu0 %2380 }
0x2e03   : > { %v2390_v30 = vmul.f32 0.03125, %v2381_v12 }
0x2e05   : > { %v2392_v39 = vmul.f32 %v2390_v30, %v2390_v30 }
0x2e08   : > { %v3337_v6 = vpop.eup %3336 }
0x2e09   : > { %v2293_v14 = vmul.f32 %v3337_v6, %v2290_v63 }
0x2e0b   : > { %v2294_v45 = vmul.f32 %v2293_v14, %v4349_v43 }
0x2e0d   : > { %v2295_v25 = vadd.f32 %v2294_v45, %v4351_v47 }
0x2e0f   : > { %2297 = vrot.lane.b32.xlu1 %v2295_v25, %s3572_s24 }
0x2e13   : > { %2384 = vrot.lane.b32.xlu1 %v2382_v11, %s3572_s24 }
0x2e17   : > { %2480 = vrot.lane.b32.xlu1 %v2478_v21, %s3572_s24 }
0x2e1b   : > { %2488 = vrot.lane.b32.xlu1 %v2486_v32, %s3572_s24 }
0x2e81   : > { %v2298_v54 = vpop.permute.xlu1 %2297 }
0x2e82   : > { %2300 = vst.msk [vmem:[#allocation3 + $0x28] sm:$0xff] %vm572_vm1, %v2298_v54 }
0x2e85   : > { %v2385_v24 = vpop.permute.xlu1 %2384 }
0x2e86   : > { %v2387_v5 = vsel %vm572_vm1, %v2385_v24, 0.0 }
0x2e87   : > { %2388 = vadd.xlane.f32.xlu1 %v2387_v5 }
0x2e89   : > { %v2481_v27 = vpop.permute.xlu1 %2480  ;;  %v2518_v29 = vld [vmem:[#allocation3 + $0x28] sm:$0xff] }
0x2e8a   : > { %v2483_v17 = vsel %vm572_vm1, %v2481_v27, 0.0  ;;  %v2523_v3 = vpack.c.bf16 %v2518_v29, %v2517_v28 }
0x2e8b   : > { %2484 = vadd.xlane.f32.xlu1 %v2483_v17 }
0x2e8c   : > { %2877 = vmatmul.mubr.msk.bf16.gmra.mrb[40].mxu0 %vm572_vm1, %v2523_v3 }
0x2e8d   : > { %v2489_v26 = vpop.permute.xlu1 %2488  ;;  %2631 = vmatprep.mubr.bf16.mxu0 %v3570_v9  ;;  %v2394_v9 = vsub.f32 %v4332_v13, %v2390_v30 }
0x2e8e   : > { %v2491_v51 = vsel %vm572_vm1, %v2489_v26, 0.0 }
0x2e8f   : > { %2492 = vadd.xlane.f32.xlu1 %v2491_v51 }
0x2f14   : > { %v2389_v31 = vpop.xlane.xlu1 %2388 }
0x2f15   : > { %v2391_v40 = vmul.f32 0.03125, %v2389_v31 }
0x2f17   : > { %v2393_v2 = vsub.f32 %v2391_v40, %v2392_v39 }
0x2f18   : > { %v2485_v41 = vpop.xlane.xlu1 %2484 }
0x2f19   : > { %v2395_v35 = vadd.f32 1e-05, %v2393_v2  ;;  %v2494_v42 = vmul.f32 0.03125, %v2485_v41 }
0x2f1b   : > { %3338 = vrsqrt.f32 %v2395_v35  ;;  %v2496_v53 = vmul.f32 %v2494_v42, %v2494_v42  ;;  %v2498_v48 = vsub.f32 %v2478_v21, %v2494_v42 }
0x2f1c   : > { %v2493_v46 = vpop.xlane.xlu1 %2492 }
0x2f1d   : > { %v2495_v49 = vmul.f32 0.03125, %v2493_v46 }
0x2f1f   : > { %v2497_v50 = vsub.f32 %v2495_v49, %v2496_v53 }
0x2f21   : > { %v2499_v33 = vadd.f32 1e-05, %v2497_v50 }
0x2f23   : > { %3340 = vrsqrt.f32 %v2499_v33 }
0x2f25   : > { %v3339_v10 = vpop.eup %3338 }
0x2f26   : > { %v2397_v4 = vmul.f32 %v3339_v10, %v2394_v9 }
0x2f28   : > { %v2398_v15 = vmul.f32 %v2397_v4, %v4349_v43 }
0x2f2a   : > { %v2399_v0 = vadd.f32 %v2398_v15, %v4351_v47 }
0x2f2c   : > { %2401 = vrot.lane.b32.xlu0 %v2399_v0, %s3572_s24 }
0x2f2d   : > { %v3341_v7 = vpop.eup %3340 }
0x2f2e   : > { %v2501_v22 = vmul.f32 %v3341_v7, %v2498_v48 }
0x2f30   : > { %v2502_v34 = vmul.f32 %v2501_v22, %v4349_v43 }
0x2f32   : > { %v2503_v52 = vadd.f32 %v2502_v34, %v4351_v47 }
0x2f34   : > { %2505 = vrot.lane.b32.xlu1 %v2503_v52, %s3572_s24  ;;  %s2672_s24 = sshll.u32 %s4423_s9, 4  ;;  %s4513_s24 = int_to_ptr.vmem [resolvable:$true] %s2672_s24 }
0x2f35   : > { %s3484_s17 = scalar_lea.vmem %s4513_s24, 2048  ;;  %p3491_p12 = scmp.lt.s32.totalorder %s4513_s24, %s3489_s14 }
0x2f36   : > { %p3485_p3 = scmp.ne.s32.totalorder %s4513_s24, %s3484_s17  ;;  %p3492_p1 = scmp.lt.s32.totalorder %s3490_s16, %s3484_s17 }
0x2f38   : > { %p3486_p5 = pnand %p3485_p3, %p3819_p10  ;;  %p3493_p2 = por %p3492_p1, %p3491_p12 }
0x2f3a   : > { %p3487_p7 = pneg %p3486_p5 }
0x2f3c   : > { %p3494_p13 = pnand %p3493_p2, %p3487_p7 }
0x2f5f   : > { %v2623_v13 = vpop.f32.mrb[40].mxu0 }
0x2f60   : > { %v2624_v16 = vadd.f32 %v2623_v13, %v4416_v56  ;;  %v2625_v38 = vpop.f32.mrb[41].mxu0 }
0x2f61   : > { %v2626_v37 = vadd.f32 %v2625_v38, %v4418_v57  ;;  %v2627_v19 = vpop.f32.mrb[42].mxu0 }
0x2f62   : > { %2650 = vst [vmem:[%s4423_s9 + $0x40] sm:$0xff] %v2624_v16  ;;  %v2628_v23 = vadd.f32 %v2627_v19, %v4416_v56  ;;  %v2629_v55 = vpop.f32.mrb[43].mxu0 }
0x2f63   : > { %2651 = vst [vmem:[%s4423_s9 + $0x48] sm:$0xff] %v2626_v37  ;;  %v2630_v43 = vadd.f32 %v2629_v55, %v4418_v57 }
0x2f64   : > { %2652 = vst [vmem:[%s4423_s9 + $0x50] sm:$0xff] %v2628_v23 }
0x2f65   : > { %2653 = vst [vmem:[%s4423_s9 + $0x58] sm:$0xff] %v2630_v43 }
0x2f9e   : > { %v2402_v47 = vpop.permute.xlu0 %2401 }
0x2f9f   : > { %2404 = vst.msk [vmem:[#allocation3 + $0x30] sm:$0xff] %vm572_vm1, %v2402_v47 }
0x2fa6   : > { %v2506_v58 = vpop.permute.xlu1 %2505  ;;  %v2519_v59 = vld [vmem:[#allocation3 + $0x30] sm:$0xff] }
0x2fa7   : > { %2508 = vst.msk [vmem:[#allocation3 + $0x38] sm:$0xff] %vm572_vm1, %v2506_v58 }
0x2fae   : > { %v2520_v36 = vld [vmem:[#allocation3 + $0x38] sm:$0xff] }
0x2faf   : > { %v2524_v44 = vpack.c.bf16 %v2520_v36, %v2519_v59 }
0x2fb1   : > { %2878 = vmatmul.mubr.msk.bf16.gmra.mrb[44].mxu0 %vm572_vm1, %v2524_v44 }
0x3084   : > { %v2633_v20 = vpop.f32.mrb[44].mxu0 }
0x3085   : > { %v2634_v60 = vadd.f32 %v2633_v20, %v4416_v56  ;;  %v2635_v61 = vpop.f32.mrb[45].mxu0 }
0x3086   : > { %v2636_v62 = vadd.f32 %v2635_v61, %v4418_v57  ;;  %v2637_v1 = vpop.f32.mrb[46].mxu0 }
0x3087   : > { %2654 = vst [vmem:[%s4423_s9 + $0x60] sm:$0xff] %v2634_v60  ;;  %v2638_v8 = vadd.f32 %v2637_v1, %v4416_v56  ;;  %v2639_v18 = vpop.f32.mrb[47].mxu0 }
0x3088   : > { %2655 = vst [vmem:[%s4423_s9 + $0x68] sm:$0xff] %v2636_v62  ;;  %v2640_v63 = vadd.f32 %v2639_v18, %v4418_v57 }
0x3089   : > { %2656 = vst [vmem:[%s4423_s9 + $0x70] sm:$0xff] %v2638_v8 }
0x308a   : > { %2657 = vst [vmem:[%s4423_s9 + $0x78] sm:$0xff] %v2640_v63 }
0x308b   : > { %3497 = shalt.err (!%p3494_p13)
}
0x308c   : > { %s3498_s18 = scalar_lea.hbm %s4509_s23, 2048  ;;  %s3502_s15 = scalar_lea.hbm %s4607_s10, 4096 }
0x308d   : > { %p3499_p9 = scmp.ne.s32.totalorder %s4509_s23, %s3498_s18  ;;  %p3503_p4 = scmp.lt.u32.totalorder %s4509_s23, %s4607_s10 }
0x308e   : > { %p3504_p8 = scmp.lt.u32.totalorder %s3502_s15, %s3498_s18  ;;  %p3506_p3 = scmp.lt.u32.totalorder %s3498_s18, %s4509_s23 }
0x308f   : > { %p3500_p0 = pnand %p3499_p9, %p3819_p10 }
0x3090   : > { %p3505_p6 = por %p3504_p8, %p3503_p4 }
0x3091   : > { %p3501_p11 = pneg %p3500_p0 }
0x3092   : > { %p3507_p5 = por %p3506_p3, %p3505_p6 }
0x3094   : > { %p3508_p7 = pnand %p3507_p5, %p3501_p11 }
0x3096   : > { %3511 = shalt.err (!%p3508_p7)
}
0x3097   : > { %s3575_s17 = smov 256   ;;  %s3576_s20 = smov 512  }
0x3098   : > { %s3577_s14 = smov 16  }
0x3099   : > { %3115 = dma.vmem_to_hbm [thread:$0]  (%p3819_p10), %s4513_s24, 2048, %s4509_s23, %s2659_s29, %s3575_s17, %s3576_s20, %s3577_s14  }
0x309a PF: > { %s4608_s16 = sld [smem:[#allocation18_spill]]  ;;  %s4609_s21 = sld [smem:[#allocation19_spill]] }
0x309b   : > { %p4611_p1 = scmp.ge.s32.totalorder %s3558_s28, 2 }
0x30a0   : > { %s2687_s9 = sand.u32 1, %s4608_s16   ;;  %p4610_p12 = scmp.ne.s32.totalorder %s4609_s21, 0 }
0x30a1   : > { %s2688_s18 = scalar_lea.sflag [#allocation6], %s2687_s9 }
0x30a2   : > { %p3135_p2 = pnand %p4611_p1, %p4610_p12 }
0x30a4   : > { %3541 = dma.done.wait (!%p3135_p2), %s2688_s18, 2048  }
0x30a5   : > { %3543 = vsyncadd (!%p3135_p2), %s2688_s18, 4294965248  ;;  %p28_p13 = scmp.ge.s32.totalorder %s3809_s13, 4   ;;  %s4612_s25 = smov %s3550_s26 }
0x30a6   : > { %s4613_s26 = smov %s3554_s27  ;;  %s4614_s27 = smov %s3825_s30 }
0x30a7   : > { %s4615_s28 = smov %s3809_s13  ;;  %30 = sbr.rel (!%p28_p13) target bundleno = 13 (0xd), region = 147 }
0x30ae   :  { %2693 = vsyncpa [#allocation5], 1 }
0x30af   :  { %2695 = vsyncpa [#allocation5 + $0x1], 1 }
0x30b0   :  { %2696 = vsyncpa [#allocation8], 1 }
0x30b1   :  { %2697 = vsyncpa [#allocation11], 1 }
0x30b2   :  { %2698 = vsyncpa [#allocation6], 1 }
0x30b3   :  { %2700 = vsyncpa [#allocation6 + $0x1], 1 }

</bundles_post_ra>
